<compile_context>
chip_gen: v7x
topology: tpu7x:2x2x1
jax: 0.10.0
libtpu: 0.0.40
codegen_flags: <defaults>
</compile_context>

<pallas_src>
import functools

import jax
import jax.numpy as jnp
from jax.experimental import pallas as pl
from jax.experimental.pallas import tpu as pltpu

_MIB = 1024 * 1024


def _round_up(x, m):
    return ((x + m - 1) // m) * m


def _cdiv(a, b):
    return (a + b - 1) // b


def _vmem_budget():
    """(per-step tile budget, vmem_limit_bytes) for this TPU generation."""
    cap = None
    try:
        cap = int(pltpu.get_tpu_info().vmem_capacity_bytes)
    except Exception:
        cap = None
    if cap is None:
        try:
            kind = jax.devices()[0].device_kind.lower()
            big = any(v in kind for v in ("v3", "v4", "v5", "v6"))
            cap = 128 * _MIB if big else 64 * _MIB        # v7x: 64 MiB per TC
        except Exception:
            cap = 64 * _MIB
    budget = int(cap * 0.55)                              # leave compiler headroom
    limit = int(min(cap - 16 * _MIB, cap * 0.8))
    return budget, limit


def _pick_tile_h(H, W, cins, cout, out_itemsize, budget_bytes, max_rows=64):
    """Largest H-tile whose per-step VMEM footprint fits; prefers divisors of H."""
    wstride = _round_up(W + 2, 8)
    wl = _round_up(W, 8)
    ctot = sum(cins)
    xf_lanes = _round_up(3 * ctot, 128)
    acc_lanes = _round_up(cout, 128)
    w_bytes = 2 * 3 * (3 * ctot) * _round_up(cout, 128) * 2          # dbl-buffered weights
    h_blk = sum(2 * 2 * wl * _round_up(c, 128) * 2 for c in cins)    # halo blocks

    def vmem_use(t):
        x_blk = sum(2 * t * wl * _round_up(c, 128) * 2 for c in cins)
        o_blk = 2 * t * wl * acc_lanes * out_itemsize
        xflat = (8 + (t + 2) * wstride) * xf_lanes * 2
        acc = t * wstride * acc_lanes * 4
        mm_tmp = t * wstride * acc_lanes * 4                          # matmul temp headroom
        return x_blk + h_blk + o_blk + xflat + acc + mm_tmp + w_bytes

    cand = [t for t in range(1, min(H, max_rows) + 1) if vmem_use(t) <= budget_bytes]
    if not cand:
        return 1
    best_any = max(cand)
    divs = [t for t in cand if H % t == 0]
    if divs:
        best_div = max(divs)
        if _cdiv(H, best_div) <= int(1.25 * _cdiv(H, best_any)) + 1:
            return best_div                                           # no padded rows
    return best_any                                                   # caller pads H


# -----------------------------------------------------------------------------
# Pallas kernel: fused im2col + 3x3 conv + bias + ReLU for one (batch, H-tile).
# Multiple inputs are concatenated along channels *inside* the VMEM scratch.
# -----------------------------------------------------------------------------
def _conv3x3_bias_relu_kernel(*refs, n_in, cins, T, W, Wstride, OFF):
    x_refs = refs[:n_in]
    h_refs = refs[n_in:2 * n_in]
    w_ref, b_ref, o_ref, xflat_ref, acc_ref = refs[2 * n_in:]

    ctot = sum(cins)
    coffs, c = [], 0
    for ci in cins:
        coffs.append(c)
        c += ci

    zrow = jnp.zeros((1, ctot), dtype=xflat_ref.dtype)

    # Scratch layout: row r = OFF + pr*Wstride + x holds, in lane chunk dx
    # (columns [dx*ctot, (dx+1)*ctot)), the padded-image value xpad(pr, x+dx).
    def write_padded_row(pr, rows):
        base = OFF + pr * Wstride
        for j in range(n_in):
            c0, cj = coffs[j], cins[j]
            r = rows[j]                                            # (W, cin_j)
            xflat_ref[base + 1:base + 1 + W, c0:c0 + cj] = r                       # dx = 0
            xflat_ref[base:base + W, ctot + c0:ctot + c0 + cj] = r                 # dx = 1
            xflat_ref[base - 1:base - 1 + W, 2 * ctot + c0:2 * ctot + c0 + cj] = r  # dx = 2
        # The only padding positions read by *stored* outputs: left pad (dx=0 at
        # x=0) and right pad (dx=2 at x=W-1).  Everything else is data or junk
        # rows that are dropped at the store, so no full-scratch zero sweep.
        xflat_ref[base:base + 1, 0:ctot] = zrow
        xflat_ref[base + W - 1:base + W, 2 * ctot:3 * ctot] = zrow

    write_padded_row(0, [h_refs[j][0, 0] for j in range(n_in)])        # top halo
    for i in range(T):
        write_padded_row(i + 1, [x_refs[j][0, i] for j in range(n_in)])
    write_padded_row(T + 1, [h_refs[j][0, 1] for j in range(n_in)])    # bottom halo

    # 3 accumulating MXU matmuls (one per ky tap row), K = 3*ctot, f32 acc in VMEM.
    m2 = T * Wstride
    acc_ref[...] = jnp.dot(xflat_ref[OFF:OFF + m2, :], w_ref[0],
                           preferred_element_type=jnp.float32)
    for dy in (1, 2):
        s = OFF + dy * Wstride
        acc_ref[...] += jnp.dot(xflat_ref[s:s + m2, :], w_ref[dy],
                                preferred_element_type=jnp.float32)

    # Epilogue per output row: bias + ReLU + cast; junk columns never touched.
    # TODO(synk): the (Wstride - W) junk columns still burn MXU flops above.
    bias = b_ref[...]                                                  # (1, cout)
    for i in range(T):
        r0 = i * Wstride
        o_ref[0, i] = jnp.maximum(acc_ref[r0:r0 + W, :] + bias, 0.0).astype(o_ref.dtype)


def conv3x3_bias_relu(xs, wt, b, out_dtype):
    """Fused 3x3 conv (padding=1, stride 1) + bias + ReLU.

    xs: list of NHWC arrays (same N,H,W) -- channels are concatenated in-kernel.
    wt: (3, 3*sum(Cin), Cout) bf16 weights;  b: (1, Cout) f32 bias.
    Returns (N, H, W, Cout) in out_dtype.
    """
    xs = [x.astype(jnp.bfloat16) for x in xs]
    N, H, W = (int(d) for d in xs[0].shape[:3])
    cins = tuple(int(x.shape[3]) for x in xs)
    ctot = sum(cins)
    cout = int(wt.shape[2])
    out_itemsize = jnp.dtype(out_dtype).itemsize

    budget, vlimit = _vmem_budget()
    T = _pick_tile_h(H, W, cins, cout, out_itemsize, budget)
    Hp = _round_up(H, T)
    if Hp != H:                                   # pad H instead of a T=1 cliff
        xs = [jnp.pad(x, ((0, 0), (0, Hp - H), (0, 0), (0, 0))) for x in xs]
    nH = Hp // T
    wstride = _round_up(W + 2, 8)
    OFF = 8
    MP = OFF + (T + 2) * wstride

    # Halo rows: the row just above / below each H-tile (zeros at image edges).
    halos = []
    for x in xs:
        cin = x.shape[3]
        zrow = jnp.zeros((N, 1, W, cin), x.dtype)
        tops = jnp.concatenate([zrow, x[:, T - 1::T][:, :nH - 1]], axis=1)
        bots = jnp.concatenate([x[:, T::T][:, :nH - 1], zrow], axis=1)
        halos.append(jnp.stack([tops, bots], axis=2).reshape(N, nH * 2, W, cin))

    kernel = functools.partial(_conv3x3_bias_relu_kernel, n_in=len(xs), cins=cins,
                               T=T, W=W, Wstride=wstride, OFF=OFF)

    in_specs = ([pl.BlockSpec((1, T, W, c), lambda n, h: (n, h, 0, 0)) for c in cins]
                + [pl.BlockSpec((1, 2, W, c), lambda n, h: (n, h, 0, 0)) for c in cins]
                + [pl.BlockSpec((3, 3 * ctot, cout), lambda n, h: (0, 0, 0)),
                   pl.BlockSpec((1, cout), lambda n, h: (0, 0))])

    out = pl.pallas_call(
        kernel,
        out_shape=jax.ShapeDtypeStruct((N, Hp, W, cout), out_dtype),
        grid=(N, nH),
        in_specs=in_specs,
        out_specs=pl.BlockSpec((1, T, W, cout), lambda n, h: (n, h, 0, 0)),
        scratch_shapes=[pltpu.VMEM((MP, 3 * ctot), jnp.bfloat16),
                        pltpu.VMEM((T * wstride, cout), jnp.float32)],
        compiler_params=pltpu.CompilerParams(
            dimension_semantics=("parallel", "parallel"),
            vmem_limit_bytes=vlimit),
    )(*xs, *halos, wt, b)
    return out[:, :H] if Hp != H else out


# -----------------------------------------------------------------------------
# Bilinear 2x upsampling (align_corners=True) as two dense interpolation matmuls.
# -----------------------------------------------------------------------------
def _interp_matrix(n_in, n_out):
    if n_in == 1:
        return jnp.ones((n_out, 1), jnp.float32)
    src = jnp.arange(n_out, dtype=jnp.float32) * (n_in - 1) / (n_out - 1)
    idx = jnp.arange(n_in, dtype=jnp.float32)
    return jnp.maximum(0.0, 1.0 - jnp.abs(src[:, None] - idx[None, :]))


def upsample2x_bilinear_align_corners_nhwc(x):
    """Matches nn.UpsamplingBilinear2d(scale_factor=2) on an NHWC tensor."""
    N, H, W, C = x.shape
    Ah = _interp_matrix(H, 2 * H)
    Aw = _interp_matrix(W, 2 * W)
    hp = jax.lax.Precision.HIGHEST
    y = jnp.einsum("oh,nhwc->nowc", Ah, x, precision=hp)
    return jnp.einsum("pw,nowc->nopc", Aw, y, precision=hp)
    # TODO(synk): fold the 4-tap blend into conv1's in-kernel scratch assembly
    # so the upsampled tensor never round-trips HBM either.


# -----------------------------------------------------------------------------
# UP module forward (NCHW in / NCHW out, same semantics as the PyTorch module)
# -----------------------------------------------------------------------------
def _prep_conv_params(w_oihw, b):
    cout, cin = int(w_oihw.shape[0]), int(w_oihw.shape[1])
    # OIHW -> (ky, kx, Cin, Cout) -> (ky=3, kx*Cin=3*Cin, Cout): chunk dx on the
    # K axis matches the dx lane chunks of the kernel's scratch.
    wt = jnp.transpose(w_oihw, (2, 3, 1, 0)).reshape(3, 3 * cin, cout)
    return wt.astype(jnp.bfloat16), b.reshape(1, cout).astype(jnp.float32)


def init_up_params(key, in_size, insize2, out_size):
    c1_in = in_size + insize2
    k1, k2, k3, k4 = jax.random.split(key, 4)
    s1 = 1.0 / jnp.sqrt(c1_in * 9.0)
    s2 = 1.0 / jnp.sqrt(out_size * 9.0)
    return {
        "w1": jax.random.uniform(k1, (out_size, c1_in, 3, 3), jnp.float32, -s1, s1),
        "b1": jax.random.uniform(k2, (out_size,), jnp.float32, -s1, s1),
        "w2": jax.random.uniform(k3, (out_size, out_size, 3, 3), jnp.float32, -s2, s2),
        "b2": jax.random.uniform(k4, (out_size,), jnp.float32, -s2, s2),
    }


@jax.jit
def up_forward(inputs1, inputs2, params):
    # inputs1: (N, in_size, H, W); inputs2: (N, insize2, H/2, W/2) -- NCHW.
    x1 = jnp.transpose(inputs1, (0, 2, 3, 1))           # NCHW -> NHWC
    x2 = jnp.transpose(inputs2, (0, 2, 3, 1))
    x2u = upsample2x_bilinear_align_corners_nhwc(x2)

    w1m, b1m = _prep_conv_params(params["w1"], params["b1"])
    w2m, b2m = _prep_conv_params(params["w2"], params["b2"])

    # conv1 + ReLU: channel concat of [inputs1, up(inputs2)] fused in-kernel.
    y = conv3x3_bias_relu([x1, x2u], w1m, b1m, out_dtype=jnp.bfloat16)
    # TODO(synk): fuse conv2 into the conv1 kernel (keep the conv1 tile + 1-row
    # halo in VMEM) to remove this intermediate HBM round trip.
    y = conv3x3_bias_relu([y], w2m, b2m, out_dtype=jnp.float32)          # conv2 + ReLU
    return jnp.transpose(y, (0, 3, 1, 2))                                # NHWC -> NCHW


# f32 XLA reference (used only for a loose bf16-tolerance self-check).
def _ref_upsample_gather_nhwc(x):
    N, H, W, C = x.shape
    Ho, Wo = 2 * H, 2 * W

    def coords(n_in, n_out):
        c = jnp.arange(n_out, dtype=jnp.float32) * (n_in - 1) / (n_out - 1)
        i0 = jnp.clip(jnp.floor(c).astype(jnp.int32), 0, n_in - 1)
        i1 = jnp.clip(i0 + 1, 0, n_in - 1)
        return c - i0.astype(jnp.float32), i0, i1

    fh, h0, h1 = coords(H, Ho)
    fw, w0, w1 = coords(W, Wo)
    rows = (jnp.take(x, h0, axis=1) * (1.0 - fh)[None, :, None, None]
            + jnp.take(x, h1, axis=1) * fh[None, :, None, None])
    return (jnp.take(rows, w0, axis=2) * (1.0 - fw)[None, None, :, None]
            + jnp.take(rows, w1, axis=2) * fw[None, None, :, None])


def _ref_conv3x3_relu_nhwc(x, w_oihw, b):
    w_hwio = jnp.transpose(w_oihw, (2, 3, 1, 0))
    y = jax.lax.conv_general_dilated(
        x, w_hwio, window_strides=(1, 1), padding="SAME",
        dimension_numbers=("NHWC", "HWIO", "NHWC"))
    return jnp.maximum(y + b[None, None, None, :], 0.0)


if __name__ == "__main__":
    N, in_size, insize2, out_size, H, W = 2, 4, 4, 8, 16, 16

    key = jax.random.PRNGKey(0)
    k_in1, k_in2, k_par = jax.random.split(key, 3)
    inputs1 = jax.random.normal(k_in1, (N, in_size, H, W), jnp.float32)
    inputs2 = jax.random.normal(k_in2, (N, insize2, H // 2, W // 2), jnp.float32)
    params = init_up_params(k_par, in_size, insize2, out_size)

    out = up_forward(inputs1, inputs2, params)
    out = jax.block_until_ready(out)
    assert out.shape == (N, out_size, H, W)
    assert bool(jnp.all(out >= 0.0))  # ReLU output

    # Loose correctness check against an f32 XLA conv reference (bf16 matmuls).
    x1 = jnp.transpose(inputs1, (0, 2, 3, 1))
    x2 = jnp.transpose(inputs2, (0, 2, 3, 1))
    xcat = jnp.concatenate([x1, _ref_upsample_gather_nhwc(x2)], axis=-1)
    ref = _ref_conv3x3_relu_nhwc(
        _ref_conv3x3_relu_nhwc(xcat, params["w1"], params["b1"]),
        params["w2"], params["b2"])
    ref = jnp.transpose(ref, (0, 3, 1, 2))
    err = float(jnp.max(jnp.abs(out - ref)))
    scale = float(jnp.max(jnp.abs(ref)))
    assert err <= 5e-2 * scale + 1e-4, (err, scale)

    print("KERNEL_OK")
</pallas_src>

<mosaic_0001>
module attributes {stable_mosaic.version = 11 : i64} {
  func.func @_conv3x3_bias_relu_kernel(%arg0: i32, %arg1: i32, %arg2: memref<1x16x16x4xbf16, #tpu.memory_space<vmem>>, %arg3: memref<1x16x16x4xbf16, #tpu.memory_space<vmem>>, %arg4: memref<1x2x16x4xbf16, #tpu.memory_space<vmem>>, %arg5: memref<1x2x16x4xbf16, #tpu.memory_space<vmem>>, %arg6: memref<3x24x8xbf16, #tpu.memory_space<vmem>>, %arg7: memref<1x8xf32, #tpu.memory_space<vmem>>, %arg8: memref<1x16x16x8xbf16, #tpu.memory_space<vmem>>, %arg9: memref<440x24xbf16, #tpu.memory_space<vmem>>, %arg10: memref<384x8xf32, #tpu.memory_space<vmem>>) attributes {dimension_semantics = [#tpu.dimension_semantics<parallel>, #tpu.dimension_semantics<parallel>], iteration_bounds = array<i64: 2, 1>, scalar_prefetch = 0 : i64, scratch_operands = 2 : i64, tpu.core_type = #tpu.core_type<tc>, window_params = [{transform_indices = @transform_0, window_bounds = array<i64: 1, 16, 16, 4>}, {transform_indices = @transform_1, window_bounds = array<i64: 1, 16, 16, 4>}, {transform_indices = @transform_2, window_bounds = array<i64: 1, 2, 16, 4>}, {transform_indices = @transform_3, window_bounds = array<i64: 1, 2, 16, 4>}, {pipeline_mode = #tpu.pipeline_mode<synchronous>, transform_indices = @transform_4, window_bounds = array<i64: 3, 24, 8>}, {pipeline_mode = #tpu.pipeline_mode<synchronous>, transform_indices = @transform_5, window_bounds = array<i64: 1, 8>}, {transform_indices = @transform_6, window_bounds = array<i64: 1, 16, 16, 8>}]} {
    %cst = arith.constant 0.000000e+00 : bf16
    %0 = vector.broadcast %cst : bf16 to vector<1x8xbf16>
    %c0 = arith.constant 0 : index
    %c0_0 = arith.constant 0 : index
    %c0_1 = arith.constant 0 : index
    %c0_2 = arith.constant 0 : index
    %1 = vector.load %arg4[%c0, %c0_0, %c0_1, %c0_2] : memref<1x2x16x4xbf16, #tpu.memory_space<vmem>>, vector<1x1x16x4xbf16>
    %2 = vector.shape_cast %1 : vector<1x1x16x4xbf16> to vector<16x4xbf16>
    %c0_3 = arith.constant 0 : index
    %c0_4 = arith.constant 0 : index
    %c0_5 = arith.constant 0 : index
    %c0_6 = arith.constant 0 : index
    %3 = vector.load %arg5[%c0_3, %c0_4, %c0_5, %c0_6] : memref<1x2x16x4xbf16, #tpu.memory_space<vmem>>, vector<1x1x16x4xbf16>
    %4 = vector.shape_cast %3 : vector<1x1x16x4xbf16> to vector<16x4xbf16>
    %c9 = arith.constant 9 : index
    %c0_7 = arith.constant 0 : index
    %5 = vector.load %arg9[%c9, %c0_7] : memref<440x24xbf16, #tpu.memory_space<vmem>>, vector<16x4xbf16>
    tpu.vector_store %arg9[%c9, %c0_7], %2 {strides = array<i32>} : memref<440x24xbf16, #tpu.memory_space<vmem>>, vector<16x4xbf16>,
    %c8 = arith.constant 8 : index
    %c8_8 = arith.constant 8 : index
    %6 = vector.load %arg9[%c8, %c8_8] : memref<440x24xbf16, #tpu.memory_space<vmem>>, vector<16x4xbf16>
    tpu.vector_store %arg9[%c8, %c8_8], %2 {strides = array<i32>} : memref<440x24xbf16, #tpu.memory_space<vmem>>, vector<16x4xbf16>,
    %c7 = arith.constant 7 : index
    %c16 = arith.constant 16 : index
    %7 = vector.load %arg9[%c7, %c16] : memref<440x24xbf16, #tpu.memory_space<vmem>>, vector<16x4xbf16>
    tpu.vector_store %arg9[%c7, %c16], %2 {strides = array<i32>} : memref<440x24xbf16, #tpu.memory_space<vmem>>, vector<16x4xbf16>,
    %c9_9 = arith.constant 9 : index
    %c4 = arith.constant 4 : index
    %8 = vector.load %arg9[%c9_9, %c4] : memref<440x24xbf16, #tpu.memory_space<vmem>>, vector<16x4xbf16>
    tpu.vector_store %arg9[%c9_9, %c4], %4 {strides = array<i32>} : memref<440x24xbf16, #tpu.memory_space<vmem>>, vector<16x4xbf16>,
    %c8_10 = arith.constant 8 : index
    %c12 = arith.constant 12 : index
    %9 = vector.load %arg9[%c8_10, %c12] : memref<440x24xbf16, #tpu.memory_space<vmem>>, vector<16x4xbf16>
    tpu.vector_store %arg9[%c8_10, %c12], %4 {strides = array<i32>} : memref<440x24xbf16, #tpu.memory_space<vmem>>, vector<16x4xbf16>,
    %c7_11 = arith.constant 7 : index
    %c20 = arith.constant 20 : index
    %10 = vector.load %arg9[%c7_11, %c20] : memref<440x24xbf16, #tpu.memory_space<vmem>>, vector<16x4xbf16>
    tpu.vector_store %arg9[%c7_11, %c20], %4 {strides = array<i32>} : memref<440x24xbf16, #tpu.memory_space<vmem>>, vector<16x4xbf16>,
    %c8_12 = arith.constant 8 : index
    %c0_13 = arith.constant 0 : index
    %11 = vector.load %arg9[%c8_12, %c0_13] : memref<440x24xbf16, #tpu.memory_space<vmem>>, vector<1x8xbf16>
    tpu.vector_store %arg9[%c8_12, %c0_13], %0 {strides = array<i32>} : memref<440x24xbf16, #tpu.memory_space<vmem>>, vector<1x8xbf16>,
    %c23 = arith.constant 23 : index
    %c16_14 = arith.constant 16 : index
    %12 = vector.load %arg9[%c23, %c16_14] : memref<440x24xbf16, #tpu.memory_space<vmem>>, vector<1x8xbf16>
    tpu.vector_store %arg9[%c23, %c16_14], %0 {strides = array<i32>} : memref<440x24xbf16, #tpu.memory_space<vmem>>, vector<1x8xbf16>,
    %c0_15 = arith.constant 0 : index
    %c0_16 = arith.constant 0 : index
    %c0_17 = arith.constant 0 : index
    %c0_18 = arith.constant 0 : index
    %13 = vector.load %arg2[%c0_15, %c0_16, %c0_17, %c0_18] : memref<1x16x16x4xbf16, #tpu.memory_space<vmem>>, vector<1x1x16x4xbf16>
    %14 = vector.shape_cast %13 : vector<1x1x16x4xbf16> to vector<16x4xbf16>
    %c0_19 = arith.constant 0 : index
    %c0_20 = arith.constant 0 : index
    %c0_21 = arith.constant 0 : index
    %c0_22 = arith.constant 0 : index
    %15 = vector.load %arg3[%c0_19, %c0_20, %c0_21, %c0_22] : memref<1x16x16x4xbf16, #tpu.memory_space<vmem>>, vector<1x1x16x4xbf16>
    %16 = vector.shape_cast %15 : vector<1x1x16x4xbf16> to vector<16x4xbf16>
    %c33 = arith.constant 33 : index
    %c0_23 = arith.constant 0 : index
    %17 = vector.load %arg9[%c33, %c0_23] : memref<440x24xbf16, #tpu.memory_space<vmem>>, vector<16x4xbf16>
    tpu.vector_store %arg9[%c33, %c0_23], %14 {strides = array<i32>} : memref<440x24xbf16, #tpu.memory_space<vmem>>, vector<16x4xbf16>,
    %c32 = arith.constant 32 : index
    %c8_24 = arith.constant 8 : index
    %18 = vector.load %arg9[%c32, %c8_24] : memref<440x24xbf16, #tpu.memory_space<vmem>>, vector<16x4xbf16>
    tpu.vector_store %arg9[%c32, %c8_24], %14 {strides = array<i32>} : memref<440x24xbf16, #tpu.memory_space<vmem>>, vector<16x4xbf16>,
    %c31 = arith.constant 31 : index
    %c16_25 = arith.constant 16 : index
    %19 = vector.load %arg9[%c31, %c16_25] : memref<440x24xbf16, #tpu.memory_space<vmem>>, vector<16x4xbf16>
    tpu.vector_store %arg9[%c31, %c16_25], %14 {strides = array<i32>} : memref<440x24xbf16, #tpu.memory_space<vmem>>, vector<16x4xbf16>,
    %c33_26 = arith.constant 33 : index
    %c4_27 = arith.constant 4 : index
    %20 = vector.load %arg9[%c33_26, %c4_27] : memref<440x24xbf16, #tpu.memory_space<vmem>>, vector<16x4xbf16>
    tpu.vector_store %arg9[%c33_26, %c4_27], %16 {strides = array<i32>} : memref<440x24xbf16, #tpu.memory_space<vmem>>, vector<16x4xbf16>,
    %c32_28 = arith.constant 32 : index
    %c12_29 = arith.constant 12 : index
    %21 = vector.load %arg9[%c32_28, %c12_29] : memref<440x24xbf16, #tpu.memory_space<vmem>>, vector<16x4xbf16>
    tpu.vector_store %arg9[%c32_28, %c12_29], %16 {strides = array<i32>} : memref<440x24xbf16, #tpu.memory_space<vmem>>, vector<16x4xbf16>,
    %c31_30 = arith.constant 31 : index
    %c20_31 = arith.constant 20 : index
    %22 = vector.load %arg9[%c31_30, %c20_31] : memref<440x24xbf16, #tpu.memory_space<vmem>>, vector<16x4xbf16>
    tpu.vector_store %arg9[%c31_30, %c20_31], %16 {strides = array<i32>} : memref<440x24xbf16, #tpu.memory_space<vmem>>, vector<16x4xbf16>,
    %c32_32 = arith.constant 32 : index
    %c0_33 = arith.constant 0 : index
    %23 = vector.load %arg9[%c32_32, %c0_33] : memref<440x24xbf16, #tpu.memory_space<vmem>>, vector<1x8xbf16>
    tpu.vector_store %arg9[%c32_32, %c0_33], %0 {strides = array<i32>} : memref<440x24xbf16, #tpu.memory_space<vmem>>, vector<1x8xbf16>,
    %c47 = arith.constant 47 : index
    %c16_34 = arith.constant 16 : index
    %24 = vector.load %arg9[%c47, %c16_34] : memref<440x24xbf16, #tpu.memory_space<vmem>>, vector<1x8xbf16>
    tpu.vector_store %arg9[%c47, %c16_34], %0 {strides = array<i32>} : memref<440x24xbf16, #tpu.memory_space<vmem>>, vector<1x8xbf16>,
    %c0_35 = arith.constant 0 : index
    %c1 = arith.constant 1 : index
    %c0_36 = arith.constant 0 : index
    %c0_37 = arith.constant 0 : index
    %25 = vector.load %arg2[%c0_35, %c1, %c0_36, %c0_37] : memref<1x16x16x4xbf16, #tpu.memory_space<vmem>>, vector<1x1x16x4xbf16>
    %26 = vector.shape_cast %25 : vector<1x1x16x4xbf16> to vector<16x4xbf16>
    %c0_38 = arith.constant 0 : index
    %c1_39 = arith.constant 1 : index
    %c0_40 = arith.constant 0 : index
    %c0_41 = arith.constant 0 : index
    %27 = vector.load %arg3[%c0_38, %c1_39, %c0_40, %c0_41] : memref<1x16x16x4xbf16, #tpu.memory_space<vmem>>, vector<1x1x16x4xbf16>
    %28 = vector.shape_cast %27 : vector<1x1x16x4xbf16> to vector<16x4xbf16>
    %c57 = arith.constant 57 : index
    %c0_42 = arith.constant 0 : index
    %29 = vector.load %arg9[%c57, %c0_42] : memref<440x24xbf16, #tpu.memory_space<vmem>>, vector<16x4xbf16>
    tpu.vector_store %arg9[%c57, %c0_42], %26 {strides = array<i32>} : memref<440x24xbf16, #tpu.memory_space<vmem>>, vector<16x4xbf16>,
    %c56 = arith.constant 56 : index
    %c8_43 = arith.constant 8 : index
    %30 = vector.load %arg9[%c56, %c8_43] : memref<440x24xbf16, #tpu.memory_space<vmem>>, vector<16x4xbf16>
    tpu.vector_store %arg9[%c56, %c8_43], %26 {strides = array<i32>} : memref<440x24xbf16, #tpu.memory_space<vmem>>, vector<16x4xbf16>,
    %c55 = arith.constant 55 : index
    %c16_44 = arith.constant 16 : index
    %31 = vector.load %arg9[%c55, %c16_44] : memref<440x24xbf16, #tpu.memory_space<vmem>>, vector<16x4xbf16>
    tpu.vector_store %arg9[%c55, %c16_44], %26 {strides = array<i32>} : memref<440x24xbf16, #tpu.memory_space<vmem>>, vector<16x4xbf16>,
    %c57_45 = arith.constant 57 : index
    %c4_46 = arith.constant 4 : index
    %32 = vector.load %arg9[%c57_45, %c4_46] : memref<440x24xbf16, #tpu.memory_space<vmem>>, vector<16x4xbf16>
    tpu.vector_store %arg9[%c57_45, %c4_46], %28 {strides = array<i32>} : memref<440x24xbf16, #tpu.memory_space<vmem>>, vector<16x4xbf16>,
    %c56_47 = arith.constant 56 : index
    %c12_48 = arith.constant 12 : index
    %33 = vector.load %arg9[%c56_47, %c12_48] : memref<440x24xbf16, #tpu.memory_space<vmem>>, vector<16x4xbf16>
    tpu.vector_store %arg9[%c56_47, %c12_48], %28 {strides = array<i32>} : memref<440x24xbf16, #tpu.memory_space<vmem>>, vector<16x4xbf16>,
    %c55_49 = arith.constant 55 : index
    %c20_50 = arith.constant 20 : index
    %34 = vector.load %arg9[%c55_49, %c20_50] : memref<440x24xbf16, #tpu.memory_space<vmem>>, vector<16x4xbf16>
    tpu.vector_store %arg9[%c55_49, %c20_50], %28 {strides = array<i32>} : memref<440x24xbf16, #tpu.memory_space<vmem>>, vector<16x4xbf16>,
    %c56_51 = arith.constant 56 : index
    %c0_52 = arith.constant 0 : index
    %35 = vector.load %arg9[%c56_51, %c0_52] : memref<440x24xbf16, #tpu.memory_space<vmem>>, vector<1x8xbf16>
    tpu.vector_store %arg9[%c56_51, %c0_52], %0 {strides = array<i32>} : memref<440x24xbf16, #tpu.memory_space<vmem>>, vector<1x8xbf16>,
    %c71 = arith.constant 71 : index
    %c16_53 = arith.constant 16 : index
    %36 = vector.load %arg9[%c71, %c16_53] : memref<440x24xbf16, #tpu.memory_space<vmem>>, vector<1x8xbf16>
    tpu.vector_store %arg9[%c71, %c16_53], %0 {strides = array<i32>} : memref<440x24xbf16, #tpu.memory_space<vmem>>, vector<1x8xbf16>,
    %c0_54 = arith.constant 0 : index
    %c2 = arith.constant 2 : index
    %c0_55 = arith.constant 0 : index
    %c0_56 = arith.constant 0 : index
    %37 = vector.load %arg2[%c0_54, %c2, %c0_55, %c0_56] : memref<1x16x16x4xbf16, #tpu.memory_space<vmem>>, vector<1x1x16x4xbf16>
    %38 = vector.shape_cast %37 : vector<1x1x16x4xbf16> to vector<16x4xbf16>
    %c0_57 = arith.constant 0 : index
    %c2_58 = arith.constant 2 : index
    %c0_59 = arith.constant 0 : index
    %c0_60 = arith.constant 0 : index
    %39 = vector.load %arg3[%c0_57, %c2_58, %c0_59, %c0_60] : memref<1x16x16x4xbf16, #tpu.memory_space<vmem>>, vector<1x1x16x4xbf16>
    %40 = vector.shape_cast %39 : vector<1x1x16x4xbf16> to vector<16x4xbf16>
    %c81 = arith.constant 81 : index
    %c0_61 = arith.constant 0 : index
    %41 = vector.load %arg9[%c81, %c0_61] : memref<440x24xbf16, #tpu.memory_space<vmem>>, vector<16x4xbf16>
    tpu.vector_store %arg9[%c81, %c0_61], %38 {strides = array<i32>} : memref<440x24xbf16, #tpu.memory_space<vmem>>, vector<16x4xbf16>,
    %c80 = arith.constant 80 : index
    %c8_62 = arith.constant 8 : index
    %42 = vector.load %arg9[%c80, %c8_62] : memref<440x24xbf16, #tpu.memory_space<vmem>>, vector<16x4xbf16>
    tpu.vector_store %arg9[%c80, %c8_62], %38 {strides = array<i32>} : memref<440x24xbf16, #tpu.memory_space<vmem>>, vector<16x4xbf16>,
    %c79 = arith.constant 79 : index
    %c16_63 = arith.constant 16 : index
    %43 = vector.load %arg9[%c79, %c16_63] : memref<440x24xbf16, #tpu.memory_space<vmem>>, vector<16x4xbf16>
    tpu.vector_store %arg9[%c79, %c16_63], %38 {strides = array<i32>} : memref<440x24xbf16, #tpu.memory_space<vmem>>, vector<16x4xbf16>,
    %c81_64 = arith.constant 81 : index
    %c4_65 = arith.constant 4 : index
    %44 = vector.load %arg9[%c81_64, %c4_65] : memref<440x24xbf16, #tpu.memory_space<vmem>>, vector<16x4xbf16>
    tpu.vector_store %arg9[%c81_64, %c4_65], %40 {strides = array<i32>} : memref<440x24xbf16, #tpu.memory_space<vmem>>, vector<16x4xbf16>,
    %c80_66 = arith.constant 80 : index
    %c12_67 = arith.constant 12 : index
    %45 = vector.load %arg9[%c80_66, %c12_67] : memref<440x24xbf16, #tpu.memory_space<vmem>>, vector<16x4xbf16>
    tpu.vector_store %arg9[%c80_66, %c12_67], %40 {strides = array<i32>} : memref<440x24xbf16, #tpu.memory_space<vmem>>, vector<16x4xbf16>,
    %c79_68 = arith.constant 79 : index
    %c20_69 = arith.constant 20 : index
    %46 = vector.load %arg9[%c79_68, %c20_69] : memref<440x24xbf16, #tpu.memory_space<vmem>>, vector<16x4xbf16>
    tpu.vector_store %arg9[%c79_68, %c20_69], %40 {strides = array<i32>} : memref<440x24xbf16, #tpu.memory_space<vmem>>, vector<16x4xbf16>,
    %c80_70 = arith.constant 80 : index
    %c0_71 = arith.constant 0 : index
    %47 = vector.load %arg9[%c80_70, %c0_71] : memref<440x24xbf16, #tpu.memory_space<vmem>>, vector<1x8xbf16>
    tpu.vector_store %arg9[%c80_70, %c0_71], %0 {strides = array<i32>} : memref<440x24xbf16, #tpu.memory_space<vmem>>, vector<1x8xbf16>,
    %c95 = arith.constant 95 : index
    %c16_72 = arith.constant 16 : index
    %48 = vector.load %arg9[%c95, %c16_72] : memref<440x24xbf16, #tpu.memory_space<vmem>>, vector<1x8xbf16>
    tpu.vector_store %arg9[%c95, %c16_72], %0 {strides = array<i32>} : memref<440x24xbf16, #tpu.memory_space<vmem>>, vector<1x8xbf16>,
    %c0_73 = arith.constant 0 : index
    %c3 = arith.constant 3 : index
    %c0_74 = arith.constant 0 : index
    %c0_75 = arith.constant 0 : index
    %49 = vector.load %arg2[%c0_73, %c3, %c0_74, %c0_75] : memref<1x16x16x4xbf16, #tpu.memory_space<vmem>>, vector<1x1x16x4xbf16>
    %50 = vector.shape_cast %49 : vector<1x1x16x4xbf16> to vector<16x4xbf16>
    %c0_76 = arith.constant 0 : index
    %c3_77 = arith.constant 3 : index
    %c0_78 = arith.constant 0 : index
    %c0_79 = arith.constant 0 : index
    %51 = vector.load %arg3[%c0_76, %c3_77, %c0_78, %c0_79] : memref<1x16x16x4xbf16, #tpu.memory_space<vmem>>, vector<1x1x16x4xbf16>
    %52 = vector.shape_cast %51 : vector<1x1x16x4xbf16> to vector<16x4xbf16>
    %c105 = arith.constant 105 : index
    %c0_80 = arith.constant 0 : index
    %53 = vector.load %arg9[%c105, %c0_80] : memref<440x24xbf16, #tpu.memory_space<vmem>>, vector<16x4xbf16>
    tpu.vector_store %arg9[%c105, %c0_80], %50 {strides = array<i32>} : memref<440x24xbf16, #tpu.memory_space<vmem>>, vector<16x4xbf16>,
    %c104 = arith.constant 104 : index
    %c8_81 = arith.constant 8 : index
    %54 = vector.load %arg9[%c104, %c8_81] : memref<440x24xbf16, #tpu.memory_space<vmem>>, vector<16x4xbf16>
    tpu.vector_store %arg9[%c104, %c8_81], %50 {strides = array<i32>} : memref<440x24xbf16, #tpu.memory_space<vmem>>, vector<16x4xbf16>,
    %c103 = arith.constant 103 : index
    %c16_82 = arith.constant 16 : index
    %55 = vector.load %arg9[%c103, %c16_82] : memref<440x24xbf16, #tpu.memory_space<vmem>>, vector<16x4xbf16>
    tpu.vector_store %arg9[%c103, %c16_82], %50 {strides = array<i32>} : memref<440x24xbf16, #tpu.memory_space<vmem>>, vector<16x4xbf16>,
    %c105_83 = arith.constant 105 : index
    %c4_84 = arith.constant 4 : index
    %56 = vector.load %arg9[%c105_83, %c4_84] : memref<440x24xbf16, #tpu.memory_space<vmem>>, vector<16x4xbf16>
    tpu.vector_store %arg9[%c105_83, %c4_84], %52 {strides = array<i32>} : memref<440x24xbf16, #tpu.memory_space<vmem>>, vector<16x4xbf16>,
    %c104_85 = arith.constant 104 : index
    %c12_86 = arith.constant 12 : index
    %57 = vector.load %arg9[%c104_85, %c12_86] : memref<440x24xbf16, #tpu.memory_space<vmem>>, vector<16x4xbf16>
    tpu.vector_store %arg9[%c104_85, %c12_86], %52 {strides = array<i32>} : memref<440x24xbf16, #tpu.memory_space<vmem>>, vector<16x4xbf16>,
    %c103_87 = arith.constant 103 : index
    %c20_88 = arith.constant 20 : index
    %58 = vector.load %arg9[%c103_87, %c20_88] : memref<440x24xbf16, #tpu.memory_space<vmem>>, vector<16x4xbf16>
    tpu.vector_store %arg9[%c103_87, %c20_88], %52 {strides = array<i32>} : memref<440x24xbf16, #tpu.memory_space<vmem>>, vector<16x4xbf16>,
    %c104_89 = arith.constant 104 : index
    %c0_90 = arith.constant 0 : index
    %59 = vector.load %arg9[%c104_89, %c0_90] : memref<440x24xbf16, #tpu.memory_space<vmem>>, vector<1x8xbf16>
    tpu.vector_store %arg9[%c104_89, %c0_90], %0 {strides = array<i32>} : memref<440x24xbf16, #tpu.memory_space<vmem>>, vector<1x8xbf16>,
    %c119 = arith.constant 119 : index
    %c16_91 = arith.constant 16 : index
    %60 = vector.load %arg9[%c119, %c16_91] : memref<440x24xbf16, #tpu.memory_space<vmem>>, vector<1x8xbf16>
    tpu.vector_store %arg9[%c119, %c16_91], %0 {strides = array<i32>} : memref<440x24xbf16, #tpu.memory_space<vmem>>, vector<1x8xbf16>,
    %c0_92 = arith.constant 0 : index
    %c4_93 = arith.constant 4 : index
    %c0_94 = arith.constant 0 : index
    %c0_95 = arith.constant 0 : index
    %61 = vector.load %arg2[%c0_92, %c4_93, %c0_94, %c0_95] : memref<1x16x16x4xbf16, #tpu.memory_space<vmem>>, vector<1x1x16x4xbf16>
    %62 = vector.shape_cast %61 : vector<1x1x16x4xbf16> to vector<16x4xbf16>
    %c0_96 = arith.constant 0 : index
    %c4_97 = arith.constant 4 : index
    %c0_98 = arith.constant 0 : index
    %c0_99 = arith.constant 0 : index
    %63 = vector.load %arg3[%c0_96, %c4_97, %c0_98, %c0_99] : memref<1x16x16x4xbf16, #tpu.memory_space<vmem>>, vector<1x1x16x4xbf16>
    %64 = vector.shape_cast %63 : vector<1x1x16x4xbf16> to vector<16x4xbf16>
    %c129 = arith.constant 129 : index
    %c0_100 = arith.constant 0 : index
    %65 = vector.load %arg9[%c129, %c0_100] : memref<440x24xbf16, #tpu.memory_space<vmem>>, vector<16x4xbf16>
    tpu.vector_store %arg9[%c129, %c0_100], %62 {strides = array<i32>} : memref<440x24xbf16, #tpu.memory_space<vmem>>, vector<16x4xbf16>,
    %c128 = arith.constant 128 : index
    %c8_101 = arith.constant 8 : index
    %66 = vector.load %arg9[%c128, %c8_101] : memref<440x24xbf16, #tpu.memory_space<vmem>>, vector<16x4xbf16>
    tpu.vector_store %arg9[%c128, %c8_101], %62 {strides = array<i32>} : memref<440x24xbf16, #tpu.memory_space<vmem>>, vector<16x4xbf16>,
    %c127 = arith.constant 127 : index
    %c16_102 = arith.constant 16 : index
    %67 = vector.load %arg9[%c127, %c16_102] : memref<440x24xbf16, #tpu.memory_space<vmem>>, vector<16x4xbf16>
    tpu.vector_store %arg9[%c127, %c16_102], %62 {strides = array<i32>} : memref<440x24xbf16, #tpu.memory_space<vmem>>, vector<16x4xbf16>,
    %c129_103 = arith.constant 129 : index
    %c4_104 = arith.constant 4 : index
    %68 = vector.load %arg9[%c129_103, %c4_104] : memref<440x24xbf16, #tpu.memory_space<vmem>>, vector<16x4xbf16>
    tpu.vector_store %arg9[%c129_103, %c4_104], %64 {strides = array<i32>} : memref<440x24xbf16, #tpu.memory_space<vmem>>, vector<16x4xbf16>,
    %c128_105 = arith.constant 128 : index
    %c12_106 = arith.constant 12 : index
    %69 = vector.load %arg9[%c128_105, %c12_106] : memref<440x24xbf16, #tpu.memory_space<vmem>>, vector<16x4xbf16>
    tpu.vector_store %arg9[%c128_105, %c12_106], %64 {strides = array<i32>} : memref<440x24xbf16, #tpu.memory_space<vmem>>, vector<16x4xbf16>,
    %c127_107 = arith.constant 127 : index
    %c20_108 = arith.constant 20 : index
    %70 = vector.load %arg9[%c127_107, %c20_108] : memref<440x24xbf16, #tpu.memory_space<vmem>>, vector<16x4xbf16>
    tpu.vector_store %arg9[%c127_107, %c20_108], %64 {strides = array<i32>} : memref<440x24xbf16, #tpu.memory_space<vmem>>, vector<16x4xbf16>,
    %c128_109 = arith.constant 128 : index
    %c0_110 = arith.constant 0 : index
    %71 = vector.load %arg9[%c128_109, %c0_110] : memref<440x24xbf16, #tpu.memory_space<vmem>>, vector<1x8xbf16>
    tpu.vector_store %arg9[%c128_109, %c0_110], %0 {strides = array<i32>} : memref<440x24xbf16, #tpu.memory_space<vmem>>, vector<1x8xbf16>,
    %c143 = arith.constant 143 : index
    %c16_111 = arith.constant 16 : index
    %72 = vector.load %arg9[%c143, %c16_111] : memref<440x24xbf16, #tpu.memory_space<vmem>>, vector<1x8xbf16>
    tpu.vector_store %arg9[%c143, %c16_111], %0 {strides = array<i32>} : memref<440x24xbf16, #tpu.memory_space<vmem>>, vector<1x8xbf16>,
    %c0_112 = arith.constant 0 : index
    %c5 = arith.constant 5 : index
    %c0_113 = arith.constant 0 : index
    %c0_114 = arith.constant 0 : index
    %73 = vector.load %arg2[%c0_112, %c5, %c0_113, %c0_114] : memref<1x16x16x4xbf16, #tpu.memory_space<vmem>>, vector<1x1x16x4xbf16>
    %74 = vector.shape_cast %73 : vector<1x1x16x4xbf16> to vector<16x4xbf16>
    %c0_115 = arith.constant 0 : index
    %c5_116 = arith.constant 5 : index
    %c0_117 = arith.constant 0 : index
    %c0_118 = arith.constant 0 : index
    %75 = vector.load %arg3[%c0_115, %c5_116, %c0_117, %c0_118] : memref<1x16x16x4xbf16, #tpu.memory_space<vmem>>, vector<1x1x16x4xbf16>
    %76 = vector.shape_cast %75 : vector<1x1x16x4xbf16> to vector<16x4xbf16>
    %c153 = arith.constant 153 : index
    %c0_119 = arith.constant 0 : index
    %77 = vector.load %arg9[%c153, %c0_119] : memref<440x24xbf16, #tpu.memory_space<vmem>>, vector<16x4xbf16>
    tpu.vector_store %arg9[%c153, %c0_119], %74 {strides = array<i32>} : memref<440x24xbf16, #tpu.memory_space<vmem>>, vector<16x4xbf16>,
    %c152 = arith.constant 152 : index
    %c8_120 = arith.constant 8 : index
    %78 = vector.load %arg9[%c152, %c8_120] : memref<440x24xbf16, #tpu.memory_space<vmem>>, vector<16x4xbf16>
    tpu.vector_store %arg9[%c152, %c8_120], %74 {strides = array<i32>} : memref<440x24xbf16, #tpu.memory_space<vmem>>, vector<16x4xbf16>,
    %c151 = arith.constant 151 : index
    %c16_121 = arith.constant 16 : index
    %79 = vector.load %arg9[%c151, %c16_121] : memref<440x24xbf16, #tpu.memory_space<vmem>>, vector<16x4xbf16>
    tpu.vector_store %arg9[%c151, %c16_121], %74 {strides = array<i32>} : memref<440x24xbf16, #tpu.memory_space<vmem>>, vector<16x4xbf16>,
    %c153_122 = arith.constant 153 : index
    %c4_123 = arith.constant 4 : index
    %80 = vector.load %arg9[%c153_122, %c4_123] : memref<440x24xbf16, #tpu.memory_space<vmem>>, vector<16x4xbf16>
    tpu.vector_store %arg9[%c153_122, %c4_123], %76 {strides = array<i32>} : memref<440x24xbf16, #tpu.memory_space<vmem>>, vector<16x4xbf16>,
    %c152_124 = arith.constant 152 : index
    %c12_125 = arith.constant 12 : index
    %81 = vector.load %arg9[%c152_124, %c12_125] : memref<440x24xbf16, #tpu.memory_space<vmem>>, vector<16x4xbf16>
    tpu.vector_store %arg9[%c152_124, %c12_125], %76 {strides = array<i32>} : memref<440x24xbf16, #tpu.memory_space<vmem>>, vector<16x4xbf16>,
    %c151_126 = arith.constant 151 : index
    %c20_127 = arith.constant 20 : index
    %82 = vector.load %arg9[%c151_126, %c20_127] : memref<440x24xbf16, #tpu.memory_space<vmem>>, vector<16x4xbf16>
    tpu.vector_store %arg9[%c151_126, %c20_127], %76 {strides = array<i32>} : memref<440x24xbf16, #tpu.memory_space<vmem>>, vector<16x4xbf16>,
    %c152_128 = arith.constant 152 : index
    %c0_129 = arith.constant 0 : index
    %83 = vector.load %arg9[%c152_128, %c0_129] : memref<440x24xbf16, #tpu.memory_space<vmem>>, vector<1x8xbf16>
    tpu.vector_store %arg9[%c152_128, %c0_129], %0 {strides = array<i32>} : memref<440x24xbf16, #tpu.memory_space<vmem>>, vector<1x8xbf16>,
    %c167 = arith.constant 167 : index
    %c16_130 = arith.constant 16 : index
    %84 = vector.load %arg9[%c167, %c16_130] : memref<440x24xbf16, #tpu.memory_space<vmem>>, vector<1x8xbf16>
    tpu.vector_store %arg9[%c167, %c16_130], %0 {strides = array<i32>} : memref<440x24xbf16, #tpu.memory_space<vmem>>, vector<1x8xbf16>,
    %c0_131 = arith.constant 0 : index
    %c6 = arith.constant 6 : index
    %c0_132 = arith.constant 0 : index
    %c0_133 = arith.constant 0 : index
    %85 = vector.load %arg2[%c0_131, %c6, %c0_132, %c0_133] : memref<1x16x16x4xbf16, #tpu.memory_space<vmem>>, vector<1x1x16x4xbf16>
    %86 = vector.shape_cast %85 : vector<1x1x16x4xbf16> to vector<16x4xbf16>
    %c0_134 = arith.constant 0 : index
    %c6_135 = arith.constant 6 : index
    %c0_136 = arith.constant 0 : index
    %c0_137 = arith.constant 0 : index
    %87 = vector.load %arg3[%c0_134, %c6_135, %c0_136, %c0_137] : memref<1x16x16x4xbf16, #tpu.memory_space<vmem>>, vector<1x1x16x4xbf16>
    %88 = vector.shape_cast %87 : vector<1x1x16x4xbf16> to vector<16x4xbf16>
    %c177 = arith.constant 177 : index
    %c0_138 = arith.constant 0 : index
    %89 = vector.load %arg9[%c177, %c0_138] : memref<440x24xbf16, #tpu.memory_space<vmem>>, vector<16x4xbf16>
    tpu.vector_store %arg9[%c177, %c0_138], %86 {strides = array<i32>} : memref<440x24xbf16, #tpu.memory_space<vmem>>, vector<16x4xbf16>,
    %c176 = arith.constant 176 : index
    %c8_139 = arith.constant 8 : index
    %90 = vector.load %arg9[%c176, %c8_139] : memref<440x24xbf16, #tpu.memory_space<vmem>>, vector<16x4xbf16>
    tpu.vector_store %arg9[%c176, %c8_139], %86 {strides = array<i32>} : memref<440x24xbf16, #tpu.memory_space<vmem>>, vector<16x4xbf16>,
    %c175 = arith.constant 175 : index
    %c16_140 = arith.constant 16 : index
    %91 = vector.load %arg9[%c175, %c16_140] : memref<440x24xbf16, #tpu.memory_space<vmem>>, vector<16x4xbf16>
    tpu.vector_store %arg9[%c175, %c16_140], %86 {strides = array<i32>} : memref<440x24xbf16, #tpu.memory_space<vmem>>, vector<16x4xbf16>,
    %c177_141 = arith.constant 177 : index
    %c4_142 = arith.constant 4 : index
    %92 = vector.load %arg9[%c177_141, %c4_142] : memref<440x24xbf16, #tpu.memory_space<vmem>>, vector<16x4xbf16>
    tpu.vector_store %arg9[%c177_141, %c4_142], %88 {strides = array<i32>} : memref<440x24xbf16, #tpu.memory_space<vmem>>, vector<16x4xbf16>,
    %c176_143 = arith.constant 176 : index
    %c12_144 = arith.constant 12 : index
    %93 = vector.load %arg9[%c176_143, %c12_144] : memref<440x24xbf16, #tpu.memory_space<vmem>>, vector<16x4xbf16>
    tpu.vector_store %arg9[%c176_143, %c12_144], %88 {strides = array<i32>} : memref<440x24xbf16, #tpu.memory_space<vmem>>, vector<16x4xbf16>,
    %c175_145 = arith.constant 175 : index
    %c20_146 = arith.constant 20 : index
    %94 = vector.load %arg9[%c175_145, %c20_146] : memref<440x24xbf16, #tpu.memory_space<vmem>>, vector<16x4xbf16>
    tpu.vector_store %arg9[%c175_145, %c20_146], %88 {strides = array<i32>} : memref<440x24xbf16, #tpu.memory_space<vmem>>, vector<16x4xbf16>,
    %c176_147 = arith.constant 176 : index
    %c0_148 = arith.constant 0 : index
    %95 = vector.load %arg9[%c176_147, %c0_148] : memref<440x24xbf16, #tpu.memory_space<vmem>>, vector<1x8xbf16>
    tpu.vector_store %arg9[%c176_147, %c0_148], %0 {strides = array<i32>} : memref<440x24xbf16, #tpu.memory_space<vmem>>, vector<1x8xbf16>,
    %c191 = arith.constant 191 : index
    %c16_149 = arith.constant 16 : index
    %96 = vector.load %arg9[%c191, %c16_149] : memref<440x24xbf16, #tpu.memory_space<vmem>>, vector<1x8xbf16>
    tpu.vector_store %arg9[%c191, %c16_149], %0 {strides = array<i32>} : memref<440x24xbf16, #tpu.memory_space<vmem>>, vector<1x8xbf16>,
    %c0_150 = arith.constant 0 : index
    %c7_151 = arith.constant 7 : index
    %c0_152 = arith.constant 0 : index
    %c0_153 = arith.constant 0 : index
    %97 = vector.load %arg2[%c0_150, %c7_151, %c0_152, %c0_153] : memref<1x16x16x4xbf16, #tpu.memory_space<vmem>>, vector<1x1x16x4xbf16>
    %98 = vector.shape_cast %97 : vector<1x1x16x4xbf16> to vector<16x4xbf16>
    %c0_154 = arith.constant 0 : index
    %c7_155 = arith.constant 7 : index
    %c0_156 = arith.constant 0 : index
    %c0_157 = arith.constant 0 : index
    %99 = vector.load %arg3[%c0_154, %c7_155, %c0_156, %c0_157] : memref<1x16x16x4xbf16, #tpu.memory_space<vmem>>, vector<1x1x16x4xbf16>
    %100 = vector.shape_cast %99 : vector<1x1x16x4xbf16> to vector<16x4xbf16>
    %c201 = arith.constant 201 : index
    %c0_158 = arith.constant 0 : index
    %101 = vector.load %arg9[%c201, %c0_158] : memref<440x24xbf16, #tpu.memory_space<vmem>>, vector<16x4xbf16>
    tpu.vector_store %arg9[%c201, %c0_158], %98 {strides = array<i32>} : memref<440x24xbf16, #tpu.memory_space<vmem>>, vector<16x4xbf16>,
    %c200 = arith.constant 200 : index
    %c8_159 = arith.constant 8 : index
    %102 = vector.load %arg9[%c200, %c8_159] : memref<440x24xbf16, #tpu.memory_space<vmem>>, vector<16x4xbf16>
    tpu.vector_store %arg9[%c200, %c8_159], %98 {strides = array<i32>} : memref<440x24xbf16, #tpu.memory_space<vmem>>, vector<16x4xbf16>,
    %c199 = arith.constant 199 : index
    %c16_160 = arith.constant 16 : index
    %103 = vector.load %arg9[%c199, %c16_160] : memref<440x24xbf16, #tpu.memory_space<vmem>>, vector<16x4xbf16>
    tpu.vector_store %arg9[%c199, %c16_160], %98 {strides = array<i32>} : memref<440x24xbf16, #tpu.memory_space<vmem>>, vector<16x4xbf16>,
    %c201_161 = arith.constant 201 : index
    %c4_162 = arith.constant 4 : index
    %104 = vector.load %arg9[%c201_161, %c4_162] : memref<440x24xbf16, #tpu.memory_space<vmem>>, vector<16x4xbf16>
    tpu.vector_store %arg9[%c201_161, %c4_162], %100 {strides = array<i32>} : memref<440x24xbf16, #tpu.memory_space<vmem>>, vector<16x4xbf16>,
    %c200_163 = arith.constant 200 : index
    %c12_164 = arith.constant 12 : index
    %105 = vector.load %arg9[%c200_163, %c12_164] : memref<440x24xbf16, #tpu.memory_space<vmem>>, vector<16x4xbf16>
    tpu.vector_store %arg9[%c200_163, %c12_164], %100 {strides = array<i32>} : memref<440x24xbf16, #tpu.memory_space<vmem>>, vector<16x4xbf16>,
    %c199_165 = arith.constant 199 : index
    %c20_166 = arith.constant 20 : index
    %106 = vector.load %arg9[%c199_165, %c20_166] : memref<440x24xbf16, #tpu.memory_space<vmem>>, vector<16x4xbf16>
    tpu.vector_store %arg9[%c199_165, %c20_166], %100 {strides = array<i32>} : memref<440x24xbf16, #tpu.memory_space<vmem>>, vector<16x4xbf16>,
    %c200_167 = arith.constant 200 : index
    %c0_168 = arith.constant 0 : index
    %107 = vector.load %arg9[%c200_167, %c0_168] : memref<440x24xbf16, #tpu.memory_space<vmem>>, vector<1x8xbf16>
    tpu.vector_store %arg9[%c200_167, %c0_168], %0 {strides = array<i32>} : memref<440x24xbf16, #tpu.memory_space<vmem>>, vector<1x8xbf16>,
    %c215 = arith.constant 215 : index
    %c16_169 = arith.constant 16 : index
    %108 = vector.load %arg9[%c215, %c16_169] : memref<440x24xbf16, #tpu.memory_space<vmem>>, vector<1x8xbf16>
    tpu.vector_store %arg9[%c215, %c16_169], %0 {strides = array<i32>} : memref<440x24xbf16, #tpu.memory_space<vmem>>, vector<1x8xbf16>,
    %c0_170 = arith.constant 0 : index
    %c8_171 = arith.constant 8 : index
    %c0_172 = arith.constant 0 : index
    %c0_173 = arith.constant 0 : index
    %109 = vector.load %arg2[%c0_170, %c8_171, %c0_172, %c0_173] : memref<1x16x16x4xbf16, #tpu.memory_space<vmem>>, vector<1x1x16x4xbf16>
    %110 = vector.shape_cast %109 : vector<1x1x16x4xbf16> to vector<16x4xbf16>
    %c0_174 = arith.constant 0 : index
    %c8_175 = arith.constant 8 : index
    %c0_176 = arith.constant 0 : index
    %c0_177 = arith.constant 0 : index
    %111 = vector.load %arg3[%c0_174, %c8_175, %c0_176, %c0_177] : memref<1x16x16x4xbf16, #tpu.memory_space<vmem>>, vector<1x1x16x4xbf16>
    %112 = vector.shape_cast %111 : vector<1x1x16x4xbf16> to vector<16x4xbf16>
    %c225 = arith.constant 225 : index
    %c0_178 = arith.constant 0 : index
    %113 = vector.load %arg9[%c225, %c0_178] : memref<440x24xbf16, #tpu.memory_space<vmem>>, vector<16x4xbf16>
    tpu.vector_store %arg9[%c225, %c0_178], %110 {strides = array<i32>} : memref<440x24xbf16, #tpu.memory_space<vmem>>, vector<16x4xbf16>,
    %c224 = arith.constant 224 : index
    %c8_179 = arith.constant 8 : index
    %114 = vector.load %arg9[%c224, %c8_179] : memref<440x24xbf16, #tpu.memory_space<vmem>>, vector<16x4xbf16>
    tpu.vector_store %arg9[%c224, %c8_179], %110 {strides = array<i32>} : memref<440x24xbf16, #tpu.memory_space<vmem>>, vector<16x4xbf16>,
    %c223 = arith.constant 223 : index
    %c16_180 = arith.constant 16 : index
    %115 = vector.load %arg9[%c223, %c16_180] : memref<440x24xbf16, #tpu.memory_space<vmem>>, vector<16x4xbf16>
    tpu.vector_store %arg9[%c223, %c16_180], %110 {strides = array<i32>} : memref<440x24xbf16, #tpu.memory_space<vmem>>, vector<16x4xbf16>,
    %c225_181 = arith.constant 225 : index
    %c4_182 = arith.constant 4 : index
    %116 = vector.load %arg9[%c225_181, %c4_182] : memref<440x24xbf16, #tpu.memory_space<vmem>>, vector<16x4xbf16>
    tpu.vector_store %arg9[%c225_181, %c4_182], %112 {strides = array<i32>} : memref<440x24xbf16, #tpu.memory_space<vmem>>, vector<16x4xbf16>,
    %c224_183 = arith.constant 224 : index
    %c12_184 = arith.constant 12 : index
    %117 = vector.load %arg9[%c224_183, %c12_184] : memref<440x24xbf16, #tpu.memory_space<vmem>>, vector<16x4xbf16>
    tpu.vector_store %arg9[%c224_183, %c12_184], %112 {strides = array<i32>} : memref<440x24xbf16, #tpu.memory_space<vmem>>, vector<16x4xbf16>,
    %c223_185 = arith.constant 223 : index
    %c20_186 = arith.constant 20 : index
    %118 = vector.load %arg9[%c223_185, %c20_186] : memref<440x24xbf16, #tpu.memory_space<vmem>>, vector<16x4xbf16>
    tpu.vector_store %arg9[%c223_185, %c20_186], %112 {strides = array<i32>} : memref<440x24xbf16, #tpu.memory_space<vmem>>, vector<16x4xbf16>,
    %c224_187 = arith.constant 224 : index
    %c0_188 = arith.constant 0 : index
    %119 = vector.load %arg9[%c224_187, %c0_188] : memref<440x24xbf16, #tpu.memory_space<vmem>>, vector<1x8xbf16>
    tpu.vector_store %arg9[%c224_187, %c0_188], %0 {strides = array<i32>} : memref<440x24xbf16, #tpu.memory_space<vmem>>, vector<1x8xbf16>,
    %c239 = arith.constant 239 : index
    %c16_189 = arith.constant 16 : index
    %120 = vector.load %arg9[%c239, %c16_189] : memref<440x24xbf16, #tpu.memory_space<vmem>>, vector<1x8xbf16>
    tpu.vector_store %arg9[%c239, %c16_189], %0 {strides = array<i32>} : memref<440x24xbf16, #tpu.memory_space<vmem>>, vector<1x8xbf16>,
    %c0_190 = arith.constant 0 : index
    %c9_191 = arith.constant 9 : index
    %c0_192 = arith.constant 0 : index
    %c0_193 = arith.constant 0 : index
    %121 = vector.load %arg2[%c0_190, %c9_191, %c0_192, %c0_193] : memref<1x16x16x4xbf16, #tpu.memory_space<vmem>>, vector<1x1x16x4xbf16>
    %122 = vector.shape_cast %121 : vector<1x1x16x4xbf16> to vector<16x4xbf16>
    %c0_194 = arith.constant 0 : index
    %c9_195 = arith.constant 9 : index
    %c0_196 = arith.constant 0 : index
    %c0_197 = arith.constant 0 : index
    %123 = vector.load %arg3[%c0_194, %c9_195, %c0_196, %c0_197] : memref<1x16x16x4xbf16, #tpu.memory_space<vmem>>, vector<1x1x16x4xbf16>
    %124 = vector.shape_cast %123 : vector<1x1x16x4xbf16> to vector<16x4xbf16>
    %c249 = arith.constant 249 : index
    %c0_198 = arith.constant 0 : index
    %125 = vector.load %arg9[%c249, %c0_198] : memref<440x24xbf16, #tpu.memory_space<vmem>>, vector<16x4xbf16>
    tpu.vector_store %arg9[%c249, %c0_198], %122 {strides = array<i32>} : memref<440x24xbf16, #tpu.memory_space<vmem>>, vector<16x4xbf16>,
    %c248 = arith.constant 248 : index
    %c8_199 = arith.constant 8 : index
    %126 = vector.load %arg9[%c248, %c8_199] : memref<440x24xbf16, #tpu.memory_space<vmem>>, vector<16x4xbf16>
    tpu.vector_store %arg9[%c248, %c8_199], %122 {strides = array<i32>} : memref<440x24xbf16, #tpu.memory_space<vmem>>, vector<16x4xbf16>,
    %c247 = arith.constant 247 : index
    %c16_200 = arith.constant 16 : index
    %127 = vector.load %arg9[%c247, %c16_200] : memref<440x24xbf16, #tpu.memory_space<vmem>>, vector<16x4xbf16>
    tpu.vector_store %arg9[%c247, %c16_200], %122 {strides = array<i32>} : memref<440x24xbf16, #tpu.memory_space<vmem>>, vector<16x4xbf16>,
    %c249_201 = arith.constant 249 : index
    %c4_202 = arith.constant 4 : index
    %128 = vector.load %arg9[%c249_201, %c4_202] : memref<440x24xbf16, #tpu.memory_space<vmem>>, vector<16x4xbf16>
    tpu.vector_store %arg9[%c249_201, %c4_202], %124 {strides = array<i32>} : memref<440x24xbf16, #tpu.memory_space<vmem>>, vector<16x4xbf16>,
    %c248_203 = arith.constant 248 : index
    %c12_204 = arith.constant 12 : index
    %129 = vector.load %arg9[%c248_203, %c12_204] : memref<440x24xbf16, #tpu.memory_space<vmem>>, vector<16x4xbf16>
    tpu.vector_store %arg9[%c248_203, %c12_204], %124 {strides = array<i32>} : memref<440x24xbf16, #tpu.memory_space<vmem>>, vector<16x4xbf16>,
    %c247_205 = arith.constant 247 : index
    %c20_206 = arith.constant 20 : index
    %130 = vector.load %arg9[%c247_205, %c20_206] : memref<440x24xbf16, #tpu.memory_space<vmem>>, vector<16x4xbf16>
    tpu.vector_store %arg9[%c247_205, %c20_206], %124 {strides = array<i32>} : memref<440x24xbf16, #tpu.memory_space<vmem>>, vector<16x4xbf16>,
    %c248_207 = arith.constant 248 : index
    %c0_208 = arith.constant 0 : index
    %131 = vector.load %arg9[%c248_207, %c0_208] : memref<440x24xbf16, #tpu.memory_space<vmem>>, vector<1x8xbf16>
    tpu.vector_store %arg9[%c248_207, %c0_208], %0 {strides = array<i32>} : memref<440x24xbf16, #tpu.memory_space<vmem>>, vector<1x8xbf16>,
    %c263 = arith.constant 263 : index
    %c16_209 = arith.constant 16 : index
    %132 = vector.load %arg9[%c263, %c16_209] : memref<440x24xbf16, #tpu.memory_space<vmem>>, vector<1x8xbf16>
    tpu.vector_store %arg9[%c263, %c16_209], %0 {strides = array<i32>} : memref<440x24xbf16, #tpu.memory_space<vmem>>, vector<1x8xbf16>,
    %c0_210 = arith.constant 0 : index
    %c10 = arith.constant 10 : index
    %c0_211 = arith.constant 0 : index
    %c0_212 = arith.constant 0 : index
    %133 = vector.load %arg2[%c0_210, %c10, %c0_211, %c0_212] : memref<1x16x16x4xbf16, #tpu.memory_space<vmem>>, vector<1x1x16x4xbf16>
    %134 = vector.shape_cast %133 : vector<1x1x16x4xbf16> to vector<16x4xbf16>
    %c0_213 = arith.constant 0 : index
    %c10_214 = arith.constant 10 : index
    %c0_215 = arith.constant 0 : index
    %c0_216 = arith.constant 0 : index
    %135 = vector.load %arg3[%c0_213, %c10_214, %c0_215, %c0_216] : memref<1x16x16x4xbf16, #tpu.memory_space<vmem>>, vector<1x1x16x4xbf16>
    %136 = vector.shape_cast %135 : vector<1x1x16x4xbf16> to vector<16x4xbf16>
    %c273 = arith.constant 273 : index
    %c0_217 = arith.constant 0 : index
    %137 = vector.load %arg9[%c273, %c0_217] : memref<440x24xbf16, #tpu.memory_space<vmem>>, vector<16x4xbf16>
    tpu.vector_store %arg9[%c273, %c0_217], %134 {strides = array<i32>} : memref<440x24xbf16, #tpu.memory_space<vmem>>, vector<16x4xbf16>,
    %c272 = arith.constant 272 : index
    %c8_218 = arith.constant 8 : index
    %138 = vector.load %arg9[%c272, %c8_218] : memref<440x24xbf16, #tpu.memory_space<vmem>>, vector<16x4xbf16>
    tpu.vector_store %arg9[%c272, %c8_218], %134 {strides = array<i32>} : memref<440x24xbf16, #tpu.memory_space<vmem>>, vector<16x4xbf16>,
    %c271 = arith.constant 271 : index
    %c16_219 = arith.constant 16 : index
    %139 = vector.load %arg9[%c271, %c16_219] : memref<440x24xbf16, #tpu.memory_space<vmem>>, vector<16x4xbf16>
    tpu.vector_store %arg9[%c271, %c16_219], %134 {strides = array<i32>} : memref<440x24xbf16, #tpu.memory_space<vmem>>, vector<16x4xbf16>,
    %c273_220 = arith.constant 273 : index
    %c4_221 = arith.constant 4 : index
    %140 = vector.load %arg9[%c273_220, %c4_221] : memref<440x24xbf16, #tpu.memory_space<vmem>>, vector<16x4xbf16>
    tpu.vector_store %arg9[%c273_220, %c4_221], %136 {strides = array<i32>} : memref<440x24xbf16, #tpu.memory_space<vmem>>, vector<16x4xbf16>,
    %c272_222 = arith.constant 272 : index
    %c12_223 = arith.constant 12 : index
    %141 = vector.load %arg9[%c272_222, %c12_223] : memref<440x24xbf16, #tpu.memory_space<vmem>>, vector<16x4xbf16>
    tpu.vector_store %arg9[%c272_222, %c12_223], %136 {strides = array<i32>} : memref<440x24xbf16, #tpu.memory_space<vmem>>, vector<16x4xbf16>,
    %c271_224 = arith.constant 271 : index
    %c20_225 = arith.constant 20 : index
    %142 = vector.load %arg9[%c271_224, %c20_225] : memref<440x24xbf16, #tpu.memory_space<vmem>>, vector<16x4xbf16>
    tpu.vector_store %arg9[%c271_224, %c20_225], %136 {strides = array<i32>} : memref<440x24xbf16, #tpu.memory_space<vmem>>, vector<16x4xbf16>,
    %c272_226 = arith.constant 272 : index
    %c0_227 = arith.constant 0 : index
    %143 = vector.load %arg9[%c272_226, %c0_227] : memref<440x24xbf16, #tpu.memory_space<vmem>>, vector<1x8xbf16>
    tpu.vector_store %arg9[%c272_226, %c0_227], %0 {strides = array<i32>} : memref<440x24xbf16, #tpu.memory_space<vmem>>, vector<1x8xbf16>,
    %c287 = arith.constant 287 : index
    %c16_228 = arith.constant 16 : index
    %144 = vector.load %arg9[%c287, %c16_228] : memref<440x24xbf16, #tpu.memory_space<vmem>>, vector<1x8xbf16>
    tpu.vector_store %arg9[%c287, %c16_228], %0 {strides = array<i32>} : memref<440x24xbf16, #tpu.memory_space<vmem>>, vector<1x8xbf16>,
    %c0_229 = arith.constant 0 : index
    %c11 = arith.constant 11 : index
    %c0_230 = arith.constant 0 : index
    %c0_231 = arith.constant 0 : index
    %145 = vector.load %arg2[%c0_229, %c11, %c0_230, %c0_231] : memref<1x16x16x4xbf16, #tpu.memory_space<vmem>>, vector<1x1x16x4xbf16>
    %146 = vector.shape_cast %145 : vector<1x1x16x4xbf16> to vector<16x4xbf16>
    %c0_232 = arith.constant 0 : index
    %c11_233 = arith.constant 11 : index
    %c0_234 = arith.constant 0 : index
    %c0_235 = arith.constant 0 : index
    %147 = vector.load %arg3[%c0_232, %c11_233, %c0_234, %c0_235] : memref<1x16x16x4xbf16, #tpu.memory_space<vmem>>, vector<1x1x16x4xbf16>
    %148 = vector.shape_cast %147 : vector<1x1x16x4xbf16> to vector<16x4xbf16>
    %c297 = arith.constant 297 : index
    %c0_236 = arith.constant 0 : index
    %149 = vector.load %arg9[%c297, %c0_236] : memref<440x24xbf16, #tpu.memory_space<vmem>>, vector<16x4xbf16>
    tpu.vector_store %arg9[%c297, %c0_236], %146 {strides = array<i32>} : memref<440x24xbf16, #tpu.memory_space<vmem>>, vector<16x4xbf16>,
    %c296 = arith.constant 296 : index
    %c8_237 = arith.constant 8 : index
    %150 = vector.load %arg9[%c296, %c8_237] : memref<440x24xbf16, #tpu.memory_space<vmem>>, vector<16x4xbf16>
    tpu.vector_store %arg9[%c296, %c8_237], %146 {strides = array<i32>} : memref<440x24xbf16, #tpu.memory_space<vmem>>, vector<16x4xbf16>,
    %c295 = arith.constant 295 : index
    %c16_238 = arith.constant 16 : index
    %151 = vector.load %arg9[%c295, %c16_238] : memref<440x24xbf16, #tpu.memory_space<vmem>>, vector<16x4xbf16>
    tpu.vector_store %arg9[%c295, %c16_238], %146 {strides = array<i32>} : memref<440x24xbf16, #tpu.memory_space<vmem>>, vector<16x4xbf16>,
    %c297_239 = arith.constant 297 : index
    %c4_240 = arith.constant 4 : index
    %152 = vector.load %arg9[%c297_239, %c4_240] : memref<440x24xbf16, #tpu.memory_space<vmem>>, vector<16x4xbf16>
    tpu.vector_store %arg9[%c297_239, %c4_240], %148 {strides = array<i32>} : memref<440x24xbf16, #tpu.memory_space<vmem>>, vector<16x4xbf16>,
    %c296_241 = arith.constant 296 : index
    %c12_242 = arith.constant 12 : index
    %153 = vector.load %arg9[%c296_241, %c12_242] : memref<440x24xbf16, #tpu.memory_space<vmem>>, vector<16x4xbf16>
    tpu.vector_store %arg9[%c296_241, %c12_242], %148 {strides = array<i32>} : memref<440x24xbf16, #tpu.memory_space<vmem>>, vector<16x4xbf16>,
    %c295_243 = arith.constant 295 : index
    %c20_244 = arith.constant 20 : index
    %154 = vector.load %arg9[%c295_243, %c20_244] : memref<440x24xbf16, #tpu.memory_space<vmem>>, vector<16x4xbf16>
    tpu.vector_store %arg9[%c295_243, %c20_244], %148 {strides = array<i32>} : memref<440x24xbf16, #tpu.memory_space<vmem>>, vector<16x4xbf16>,
    %c296_245 = arith.constant 296 : index
    %c0_246 = arith.constant 0 : index
    %155 = vector.load %arg9[%c296_245, %c0_246] : memref<440x24xbf16, #tpu.memory_space<vmem>>, vector<1x8xbf16>
    tpu.vector_store %arg9[%c296_245, %c0_246], %0 {strides = array<i32>} : memref<440x24xbf16, #tpu.memory_space<vmem>>, vector<1x8xbf16>,
    %c311 = arith.constant 311 : index
    %c16_247 = arith.constant 16 : index
    %156 = vector.load %arg9[%c311, %c16_247] : memref<440x24xbf16, #tpu.memory_space<vmem>>, vector<1x8xbf16>
    tpu.vector_store %arg9[%c311, %c16_247], %0 {strides = array<i32>} : memref<440x24xbf16, #tpu.memory_space<vmem>>, vector<1x8xbf16>,
    %c0_248 = arith.constant 0 : index
    %c12_249 = arith.constant 12 : index
    %c0_250 = arith.constant 0 : index
    %c0_251 = arith.constant 0 : index
    %157 = vector.load %arg2[%c0_248, %c12_249, %c0_250, %c0_251] : memref<1x16x16x4xbf16, #tpu.memory_space<vmem>>, vector<1x1x16x4xbf16>
    %158 = vector.shape_cast %157 : vector<1x1x16x4xbf16> to vector<16x4xbf16>
    %c0_252 = arith.constant 0 : index
    %c12_253 = arith.constant 12 : index
    %c0_254 = arith.constant 0 : index
    %c0_255 = arith.constant 0 : index
    %159 = vector.load %arg3[%c0_252, %c12_253, %c0_254, %c0_255] : memref<1x16x16x4xbf16, #tpu.memory_space<vmem>>, vector<1x1x16x4xbf16>
    %160 = vector.shape_cast %159 : vector<1x1x16x4xbf16> to vector<16x4xbf16>
    %c321 = arith.constant 321 : index
    %c0_256 = arith.constant 0 : index
    %161 = vector.load %arg9[%c321, %c0_256] : memref<440x24xbf16, #tpu.memory_space<vmem>>, vector<16x4xbf16>
    tpu.vector_store %arg9[%c321, %c0_256], %158 {strides = array<i32>} : memref<440x24xbf16, #tpu.memory_space<vmem>>, vector<16x4xbf16>,
    %c320 = arith.constant 320 : index
    %c8_257 = arith.constant 8 : index
    %162 = vector.load %arg9[%c320, %c8_257] : memref<440x24xbf16, #tpu.memory_space<vmem>>, vector<16x4xbf16>
    tpu.vector_store %arg9[%c320, %c8_257], %158 {strides = array<i32>} : memref<440x24xbf16, #tpu.memory_space<vmem>>, vector<16x4xbf16>,
    %c319 = arith.constant 319 : index
    %c16_258 = arith.constant 16 : index
    %163 = vector.load %arg9[%c319, %c16_258] : memref<440x24xbf16, #tpu.memory_space<vmem>>, vector<16x4xbf16>
    tpu.vector_store %arg9[%c319, %c16_258], %158 {strides = array<i32>} : memref<440x24xbf16, #tpu.memory_space<vmem>>, vector<16x4xbf16>,
    %c321_259 = arith.constant 321 : index
    %c4_260 = arith.constant 4 : index
    %164 = vector.load %arg9[%c321_259, %c4_260] : memref<440x24xbf16, #tpu.memory_space<vmem>>, vector<16x4xbf16>
    tpu.vector_store %arg9[%c321_259, %c4_260], %160 {strides = array<i32>} : memref<440x24xbf16, #tpu.memory_space<vmem>>, vector<16x4xbf16>,
    %c320_261 = arith.constant 320 : index
    %c12_262 = arith.constant 12 : index
    %165 = vector.load %arg9[%c320_261, %c12_262] : memref<440x24xbf16, #tpu.memory_space<vmem>>, vector<16x4xbf16>
    tpu.vector_store %arg9[%c320_261, %c12_262], %160 {strides = array<i32>} : memref<440x24xbf16, #tpu.memory_space<vmem>>, vector<16x4xbf16>,
    %c319_263 = arith.constant 319 : index
    %c20_264 = arith.constant 20 : index
    %166 = vector.load %arg9[%c319_263, %c20_264] : memref<440x24xbf16, #tpu.memory_space<vmem>>, vector<16x4xbf16>
    tpu.vector_store %arg9[%c319_263, %c20_264], %160 {strides = array<i32>} : memref<440x24xbf16, #tpu.memory_space<vmem>>, vector<16x4xbf16>,
    %c320_265 = arith.constant 320 : index
    %c0_266 = arith.constant 0 : index
    %167 = vector.load %arg9[%c320_265, %c0_266] : memref<440x24xbf16, #tpu.memory_space<vmem>>, vector<1x8xbf16>
    tpu.vector_store %arg9[%c320_265, %c0_266], %0 {strides = array<i32>} : memref<440x24xbf16, #tpu.memory_space<vmem>>, vector<1x8xbf16>,
    %c335 = arith.constant 335 : index
    %c16_267 = arith.constant 16 : index
    %168 = vector.load %arg9[%c335, %c16_267] : memref<440x24xbf16, #tpu.memory_space<vmem>>, vector<1x8xbf16>
    tpu.vector_store %arg9[%c335, %c16_267], %0 {strides = array<i32>} : memref<440x24xbf16, #tpu.memory_space<vmem>>, vector<1x8xbf16>,
    %c0_268 = arith.constant 0 : index
    %c13 = arith.constant 13 : index
    %c0_269 = arith.constant 0 : index
    %c0_270 = arith.constant 0 : index
    %169 = vector.load %arg2[%c0_268, %c13, %c0_269, %c0_270] : memref<1x16x16x4xbf16, #tpu.memory_space<vmem>>, vector<1x1x16x4xbf16>
    %170 = vector.shape_cast %169 : vector<1x1x16x4xbf16> to vector<16x4xbf16>
    %c0_271 = arith.constant 0 : index
    %c13_272 = arith.constant 13 : index
    %c0_273 = arith.constant 0 : index
    %c0_274 = arith.constant 0 : index
    %171 = vector.load %arg3[%c0_271, %c13_272, %c0_273, %c0_274] : memref<1x16x16x4xbf16, #tpu.memory_space<vmem>>, vector<1x1x16x4xbf16>
    %172 = vector.shape_cast %171 : vector<1x1x16x4xbf16> to vector<16x4xbf16>
    %c345 = arith.constant 345 : index
    %c0_275 = arith.constant 0 : index
    %173 = vector.load %arg9[%c345, %c0_275] : memref<440x24xbf16, #tpu.memory_space<vmem>>, vector<16x4xbf16>
    tpu.vector_store %arg9[%c345, %c0_275], %170 {strides = array<i32>} : memref<440x24xbf16, #tpu.memory_space<vmem>>, vector<16x4xbf16>,
    %c344 = arith.constant 344 : index
    %c8_276 = arith.constant 8 : index
    %174 = vector.load %arg9[%c344, %c8_276] : memref<440x24xbf16, #tpu.memory_space<vmem>>, vector<16x4xbf16>
    tpu.vector_store %arg9[%c344, %c8_276], %170 {strides = array<i32>} : memref<440x24xbf16, #tpu.memory_space<vmem>>, vector<16x4xbf16>,
    %c343 = arith.constant 343 : index
    %c16_277 = arith.constant 16 : index
    %175 = vector.load %arg9[%c343, %c16_277] : memref<440x24xbf16, #tpu.memory_space<vmem>>, vector<16x4xbf16>
    tpu.vector_store %arg9[%c343, %c16_277], %170 {strides = array<i32>} : memref<440x24xbf16, #tpu.memory_space<vmem>>, vector<16x4xbf16>,
    %c345_278 = arith.constant 345 : index
    %c4_279 = arith.constant 4 : index
    %176 = vector.load %arg9[%c345_278, %c4_279] : memref<440x24xbf16, #tpu.memory_space<vmem>>, vector<16x4xbf16>
    tpu.vector_store %arg9[%c345_278, %c4_279], %172 {strides = array<i32>} : memref<440x24xbf16, #tpu.memory_space<vmem>>, vector<16x4xbf16>,
    %c344_280 = arith.constant 344 : index
    %c12_281 = arith.constant 12 : index
    %177 = vector.load %arg9[%c344_280, %c12_281] : memref<440x24xbf16, #tpu.memory_space<vmem>>, vector<16x4xbf16>
    tpu.vector_store %arg9[%c344_280, %c12_281], %172 {strides = array<i32>} : memref<440x24xbf16, #tpu.memory_space<vmem>>, vector<16x4xbf16>,
    %c343_282 = arith.constant 343 : index
    %c20_283 = arith.constant 20 : index
    %178 = vector.load %arg9[%c343_282, %c20_283] : memref<440x24xbf16, #tpu.memory_space<vmem>>, vector<16x4xbf16>
    tpu.vector_store %arg9[%c343_282, %c20_283], %172 {strides = array<i32>} : memref<440x24xbf16, #tpu.memory_space<vmem>>, vector<16x4xbf16>,
    %c344_284 = arith.constant 344 : index
    %c0_285 = arith.constant 0 : index
    %179 = vector.load %arg9[%c344_284, %c0_285] : memref<440x24xbf16, #tpu.memory_space<vmem>>, vector<1x8xbf16>
    tpu.vector_store %arg9[%c344_284, %c0_285], %0 {strides = array<i32>} : memref<440x24xbf16, #tpu.memory_space<vmem>>, vector<1x8xbf16>,
    %c359 = arith.constant 359 : index
    %c16_286 = arith.constant 16 : index
    %180 = vector.load %arg9[%c359, %c16_286] : memref<440x24xbf16, #tpu.memory_space<vmem>>, vector<1x8xbf16>
    tpu.vector_store %arg9[%c359, %c16_286], %0 {strides = array<i32>} : memref<440x24xbf16, #tpu.memory_space<vmem>>, vector<1x8xbf16>,
    %c0_287 = arith.constant 0 : index
    %c14 = arith.constant 14 : index
    %c0_288 = arith.constant 0 : index
    %c0_289 = arith.constant 0 : index
    %181 = vector.load %arg2[%c0_287, %c14, %c0_288, %c0_289] : memref<1x16x16x4xbf16, #tpu.memory_space<vmem>>, vector<1x1x16x4xbf16>
    %182 = vector.shape_cast %181 : vector<1x1x16x4xbf16> to vector<16x4xbf16>
    %c0_290 = arith.constant 0 : index
    %c14_291 = arith.constant 14 : index
    %c0_292 = arith.constant 0 : index
    %c0_293 = arith.constant 0 : index
    %183 = vector.load %arg3[%c0_290, %c14_291, %c0_292, %c0_293] : memref<1x16x16x4xbf16, #tpu.memory_space<vmem>>, vector<1x1x16x4xbf16>
    %184 = vector.shape_cast %183 : vector<1x1x16x4xbf16> to vector<16x4xbf16>
    %c369 = arith.constant 369 : index
    %c0_294 = arith.constant 0 : index
    %185 = vector.load %arg9[%c369, %c0_294] : memref<440x24xbf16, #tpu.memory_space<vmem>>, vector<16x4xbf16>
    tpu.vector_store %arg9[%c369, %c0_294], %182 {strides = array<i32>} : memref<440x24xbf16, #tpu.memory_space<vmem>>, vector<16x4xbf16>,
    %c368 = arith.constant 368 : index
    %c8_295 = arith.constant 8 : index
    %186 = vector.load %arg9[%c368, %c8_295] : memref<440x24xbf16, #tpu.memory_space<vmem>>, vector<16x4xbf16>
    tpu.vector_store %arg9[%c368, %c8_295], %182 {strides = array<i32>} : memref<440x24xbf16, #tpu.memory_space<vmem>>, vector<16x4xbf16>,
    %c367 = arith.constant 367 : index
    %c16_296 = arith.constant 16 : index
    %187 = vector.load %arg9[%c367, %c16_296] : memref<440x24xbf16, #tpu.memory_space<vmem>>, vector<16x4xbf16>
    tpu.vector_store %arg9[%c367, %c16_296], %182 {strides = array<i32>} : memref<440x24xbf16, #tpu.memory_space<vmem>>, vector<16x4xbf16>,
    %c369_297 = arith.constant 369 : index
    %c4_298 = arith.constant 4 : index
    %188 = vector.load %arg9[%c369_297, %c4_298] : memref<440x24xbf16, #tpu.memory_space<vmem>>, vector<16x4xbf16>
    tpu.vector_store %arg9[%c369_297, %c4_298], %184 {strides = array<i32>} : memref<440x24xbf16, #tpu.memory_space<vmem>>, vector<16x4xbf16>,
    %c368_299 = arith.constant 368 : index
    %c12_300 = arith.constant 12 : index
    %189 = vector.load %arg9[%c368_299, %c12_300] : memref<440x24xbf16, #tpu.memory_space<vmem>>, vector<16x4xbf16>
    tpu.vector_store %arg9[%c368_299, %c12_300], %184 {strides = array<i32>} : memref<440x24xbf16, #tpu.memory_space<vmem>>, vector<16x4xbf16>,
    %c367_301 = arith.constant 367 : index
    %c20_302 = arith.constant 20 : index
    %190 = vector.load %arg9[%c367_301, %c20_302] : memref<440x24xbf16, #tpu.memory_space<vmem>>, vector<16x4xbf16>
    tpu.vector_store %arg9[%c367_301, %c20_302], %184 {strides = array<i32>} : memref<440x24xbf16, #tpu.memory_space<vmem>>, vector<16x4xbf16>,
    %c368_303 = arith.constant 368 : index
    %c0_304 = arith.constant 0 : index
    %191 = vector.load %arg9[%c368_303, %c0_304] : memref<440x24xbf16, #tpu.memory_space<vmem>>, vector<1x8xbf16>
    tpu.vector_store %arg9[%c368_303, %c0_304], %0 {strides = array<i32>} : memref<440x24xbf16, #tpu.memory_space<vmem>>, vector<1x8xbf16>,
    %c383 = arith.constant 383 : index
    %c16_305 = arith.constant 16 : index
    %192 = vector.load %arg9[%c383, %c16_305] : memref<440x24xbf16, #tpu.memory_space<vmem>>, vector<1x8xbf16>
    tpu.vector_store %arg9[%c383, %c16_305], %0 {strides = array<i32>} : memref<440x24xbf16, #tpu.memory_space<vmem>>, vector<1x8xbf16>,
    %c0_306 = arith.constant 0 : index
    %c15 = arith.constant 15 : index
    %c0_307 = arith.constant 0 : index
    %c0_308 = arith.constant 0 : index
    %193 = vector.load %arg2[%c0_306, %c15, %c0_307, %c0_308] : memref<1x16x16x4xbf16, #tpu.memory_space<vmem>>, vector<1x1x16x4xbf16>
    %194 = vector.shape_cast %193 : vector<1x1x16x4xbf16> to vector<16x4xbf16>
    %c0_309 = arith.constant 0 : index
    %c15_310 = arith.constant 15 : index
    %c0_311 = arith.constant 0 : index
    %c0_312 = arith.constant 0 : index
    %195 = vector.load %arg3[%c0_309, %c15_310, %c0_311, %c0_312] : memref<1x16x16x4xbf16, #tpu.memory_space<vmem>>, vector<1x1x16x4xbf16>
    %196 = vector.shape_cast %195 : vector<1x1x16x4xbf16> to vector<16x4xbf16>
    %c393 = arith.constant 393 : index
    %c0_313 = arith.constant 0 : index
    %197 = vector.load %arg9[%c393, %c0_313] : memref<440x24xbf16, #tpu.memory_space<vmem>>, vector<16x4xbf16>
    tpu.vector_store %arg9[%c393, %c0_313], %194 {strides = array<i32>} : memref<440x24xbf16, #tpu.memory_space<vmem>>, vector<16x4xbf16>,
    %c392 = arith.constant 392 : index
    %c8_314 = arith.constant 8 : index
    %198 = vector.load %arg9[%c392, %c8_314] : memref<440x24xbf16, #tpu.memory_space<vmem>>, vector<16x4xbf16>
    tpu.vector_store %arg9[%c392, %c8_314], %194 {strides = array<i32>} : memref<440x24xbf16, #tpu.memory_space<vmem>>, vector<16x4xbf16>,
    %c391 = arith.constant 391 : index
    %c16_315 = arith.constant 16 : index
    %199 = vector.load %arg9[%c391, %c16_315] : memref<440x24xbf16, #tpu.memory_space<vmem>>, vector<16x4xbf16>
    tpu.vector_store %arg9[%c391, %c16_315], %194 {strides = array<i32>} : memref<440x24xbf16, #tpu.memory_space<vmem>>, vector<16x4xbf16>,
    %c393_316 = arith.constant 393 : index
    %c4_317 = arith.constant 4 : index
    %200 = vector.load %arg9[%c393_316, %c4_317] : memref<440x24xbf16, #tpu.memory_space<vmem>>, vector<16x4xbf16>
    tpu.vector_store %arg9[%c393_316, %c4_317], %196 {strides = array<i32>} : memref<440x24xbf16, #tpu.memory_space<vmem>>, vector<16x4xbf16>,
    %c392_318 = arith.constant 392 : index
    %c12_319 = arith.constant 12 : index
    %201 = vector.load %arg9[%c392_318, %c12_319] : memref<440x24xbf16, #tpu.memory_space<vmem>>, vector<16x4xbf16>
    tpu.vector_store %arg9[%c392_318, %c12_319], %196 {strides = array<i32>} : memref<440x24xbf16, #tpu.memory_space<vmem>>, vector<16x4xbf16>,
    %c391_320 = arith.constant 391 : index
    %c20_321 = arith.constant 20 : index
    %202 = vector.load %arg9[%c391_320, %c20_321] : memref<440x24xbf16, #tpu.memory_space<vmem>>, vector<16x4xbf16>
    tpu.vector_store %arg9[%c391_320, %c20_321], %196 {strides = array<i32>} : memref<440x24xbf16, #tpu.memory_space<vmem>>, vector<16x4xbf16>,
    %c392_322 = arith.constant 392 : index
    %c0_323 = arith.constant 0 : index
    %203 = vector.load %arg9[%c392_322, %c0_323] : memref<440x24xbf16, #tpu.memory_space<vmem>>, vector<1x8xbf16>
    tpu.vector_store %arg9[%c392_322, %c0_323], %0 {strides = array<i32>} : memref<440x24xbf16, #tpu.memory_space<vmem>>, vector<1x8xbf16>,
    %c407 = arith.constant 407 : index
    %c16_324 = arith.constant 16 : index
    %204 = vector.load %arg9[%c407, %c16_324] : memref<440x24xbf16, #tpu.memory_space<vmem>>, vector<1x8xbf16>
    tpu.vector_store %arg9[%c407, %c16_324], %0 {strides = array<i32>} : memref<440x24xbf16, #tpu.memory_space<vmem>>, vector<1x8xbf16>,
    %c0_325 = arith.constant 0 : index
    %c1_326 = arith.constant 1 : index
    %c0_327 = arith.constant 0 : index
    %c0_328 = arith.constant 0 : index
    %205 = vector.load %arg4[%c0_325, %c1_326, %c0_327, %c0_328] : memref<1x2x16x4xbf16, #tpu.memory_space<vmem>>, vector<1x1x16x4xbf16>
    %206 = vector.shape_cast %205 : vector<1x1x16x4xbf16> to vector<16x4xbf16>
    %c0_329 = arith.constant 0 : index
    %c1_330 = arith.constant 1 : index
    %c0_331 = arith.constant 0 : index
    %c0_332 = arith.constant 0 : index
    %207 = vector.load %arg5[%c0_329, %c1_330, %c0_331, %c0_332] : memref<1x2x16x4xbf16, #tpu.memory_space<vmem>>, vector<1x1x16x4xbf16>
    %208 = vector.shape_cast %207 : vector<1x1x16x4xbf16> to vector<16x4xbf16>
    %c417 = arith.constant 417 : index
    %c0_333 = arith.constant 0 : index
    %209 = vector.load %arg9[%c417, %c0_333] : memref<440x24xbf16, #tpu.memory_space<vmem>>, vector<16x4xbf16>
    tpu.vector_store %arg9[%c417, %c0_333], %206 {strides = array<i32>} : memref<440x24xbf16, #tpu.memory_space<vmem>>, vector<16x4xbf16>,
    %c416 = arith.constant 416 : index
    %c8_334 = arith.constant 8 : index
    %210 = vector.load %arg9[%c416, %c8_334] : memref<440x24xbf16, #tpu.memory_space<vmem>>, vector<16x4xbf16>
    tpu.vector_store %arg9[%c416, %c8_334], %206 {strides = array<i32>} : memref<440x24xbf16, #tpu.memory_space<vmem>>, vector<16x4xbf16>,
    %c415 = arith.constant 415 : index
    %c16_335 = arith.constant 16 : index
    %211 = vector.load %arg9[%c415, %c16_335] : memref<440x24xbf16, #tpu.memory_space<vmem>>, vector<16x4xbf16>
    tpu.vector_store %arg9[%c415, %c16_335], %206 {strides = array<i32>} : memref<440x24xbf16, #tpu.memory_space<vmem>>, vector<16x4xbf16>,
    %c417_336 = arith.constant 417 : index
    %c4_337 = arith.constant 4 : index
    %212 = vector.load %arg9[%c417_336, %c4_337] : memref<440x24xbf16, #tpu.memory_space<vmem>>, vector<16x4xbf16>
    tpu.vector_store %arg9[%c417_336, %c4_337], %208 {strides = array<i32>} : memref<440x24xbf16, #tpu.memory_space<vmem>>, vector<16x4xbf16>,
    %c416_338 = arith.constant 416 : index
    %c12_339 = arith.constant 12 : index
    %213 = vector.load %arg9[%c416_338, %c12_339] : memref<440x24xbf16, #tpu.memory_space<vmem>>, vector<16x4xbf16>
    tpu.vector_store %arg9[%c416_338, %c12_339], %208 {strides = array<i32>} : memref<440x24xbf16, #tpu.memory_space<vmem>>, vector<16x4xbf16>,
    %c415_340 = arith.constant 415 : index
    %c20_341 = arith.constant 20 : index
    %214 = vector.load %arg9[%c415_340, %c20_341] : memref<440x24xbf16, #tpu.memory_space<vmem>>, vector<16x4xbf16>
    tpu.vector_store %arg9[%c415_340, %c20_341], %208 {strides = array<i32>} : memref<440x24xbf16, #tpu.memory_space<vmem>>, vector<16x4xbf16>,
    %c416_342 = arith.constant 416 : index
    %c0_343 = arith.constant 0 : index
    %215 = vector.load %arg9[%c416_342, %c0_343] : memref<440x24xbf16, #tpu.memory_space<vmem>>, vector<1x8xbf16>
    tpu.vector_store %arg9[%c416_342, %c0_343], %0 {strides = array<i32>} : memref<440x24xbf16, #tpu.memory_space<vmem>>, vector<1x8xbf16>,
    %c431 = arith.constant 431 : index
    %c16_344 = arith.constant 16 : index
    %216 = vector.load %arg9[%c431, %c16_344] : memref<440x24xbf16, #tpu.memory_space<vmem>>, vector<1x8xbf16>
    tpu.vector_store %arg9[%c431, %c16_344], %0 {strides = array<i32>} : memref<440x24xbf16, #tpu.memory_space<vmem>>, vector<1x8xbf16>,
    %c8_345 = arith.constant 8 : index
    %c0_346 = arith.constant 0 : index
    %217 = vector.load %arg9[%c8_345, %c0_346] : memref<440x24xbf16, #tpu.memory_space<vmem>>, vector<384x24xbf16>
    %c0_347 = arith.constant 0 : index
    %c0_348 = arith.constant 0 : index
    %c0_349 = arith.constant 0 : index
    %218 = vector.load %arg6[%c0_347, %c0_348, %c0_349] : memref<3x24x8xbf16, #tpu.memory_space<vmem>>, vector<1x24x8xbf16>
    %219 = vector.shape_cast %218 : vector<1x24x8xbf16> to vector<24x8xbf16>
    %cst_350 = arith.constant dense<0.000000e+00> : vector<384x8xf32>
    %220 = tpu.matmul %217, %219, %cst_350 {dimension_numbers = #tpu.dot_dimension_numbers<[1], [0], [0], [1], [0, 0, 1, 1], [], []>} : vector<384x24xbf16>, vector<24x8xbf16>, vector<384x8xf32> -> vector<384x8xf32>
    %c0_351 = arith.constant 0 : index
    %c0_352 = arith.constant 0 : index
    %221 = vector.load %arg10[%c0_351, %c0_352] : memref<384x8xf32, #tpu.memory_space<vmem>>, vector<384x8xf32>
    tpu.vector_store %arg10[%c0_351, %c0_352], %220 {strides = array<i32>} : memref<384x8xf32, #tpu.memory_space<vmem>>, vector<384x8xf32>,
    %c0_353 = arith.constant 0 : index
    %c0_354 = arith.constant 0 : index
    %222 = vector.load %arg10[%c0_353, %c0_354] : memref<384x8xf32, #tpu.memory_space<vmem>>, vector<384x8xf32>
    %c32_355 = arith.constant 32 : index
    %c0_356 = arith.constant 0 : index
    %223 = vector.load %arg9[%c32_355, %c0_356] : memref<440x24xbf16, #tpu.memory_space<vmem>>, vector<384x24xbf16>
    %c1_357 = arith.constant 1 : index
    %c0_358 = arith.constant 0 : index
    %c0_359 = arith.constant 0 : index
    %224 = vector.load %arg6[%c1_357, %c0_358, %c0_359] : memref<3x24x8xbf16, #tpu.memory_space<vmem>>, vector<1x24x8xbf16>
    %225 = vector.shape_cast %224 : vector<1x24x8xbf16> to vector<24x8xbf16>
    %cst_360 = arith.constant dense<0.000000e+00> : vector<384x8xf32>
    %226 = tpu.matmul %223, %225, %cst_360 {dimension_numbers = #tpu.dot_dimension_numbers<[1], [0], [0], [1], [0, 0, 1, 1], [], []>} : vector<384x24xbf16>, vector<24x8xbf16>, vector<384x8xf32> -> vector<384x8xf32>
    %227 = arith.addf %222, %226 : vector<384x8xf32>
    %c0_361 = arith.constant 0 : index
    %c0_362 = arith.constant 0 : index
    %228 = vector.load %arg10[%c0_361, %c0_362] : memref<384x8xf32, #tpu.memory_space<vmem>>, vector<384x8xf32>
    tpu.vector_store %arg10[%c0_361, %c0_362], %227 {strides = array<i32>} : memref<384x8xf32, #tpu.memory_space<vmem>>, vector<384x8xf32>,
    %c0_363 = arith.constant 0 : index
    %c0_364 = arith.constant 0 : index
    %229 = vector.load %arg10[%c0_363, %c0_364] : memref<384x8xf32, #tpu.memory_space<vmem>>, vector<384x8xf32>
    %c56_365 = arith.constant 56 : index
    %c0_366 = arith.constant 0 : index
    %230 = vector.load %arg9[%c56_365, %c0_366] : memref<440x24xbf16, #tpu.memory_space<vmem>>, vector<384x24xbf16>
    %c2_367 = arith.constant 2 : index
    %c0_368 = arith.constant 0 : index
    %c0_369 = arith.constant 0 : index
    %231 = vector.load %arg6[%c2_367, %c0_368, %c0_369] : memref<3x24x8xbf16, #tpu.memory_space<vmem>>, vector<1x24x8xbf16>
    %232 = vector.shape_cast %231 : vector<1x24x8xbf16> to vector<24x8xbf16>
    %cst_370 = arith.constant dense<0.000000e+00> : vector<384x8xf32>
    %233 = tpu.matmul %230, %232, %cst_370 {dimension_numbers = #tpu.dot_dimension_numbers<[1], [0], [0], [1], [0, 0, 1, 1], [], []>} : vector<384x24xbf16>, vector<24x8xbf16>, vector<384x8xf32> -> vector<384x8xf32>
    %234 = arith.addf %229, %233 : vector<384x8xf32>
    %c0_371 = arith.constant 0 : index
    %c0_372 = arith.constant 0 : index
    %235 = vector.load %arg10[%c0_371, %c0_372] : memref<384x8xf32, #tpu.memory_space<vmem>>, vector<384x8xf32>
    tpu.vector_store %arg10[%c0_371, %c0_372], %234 {strides = array<i32>} : memref<384x8xf32, #tpu.memory_space<vmem>>, vector<384x8xf32>,
    %c0_373 = arith.constant 0 : index
    %c0_374 = arith.constant 0 : index
    %236 = vector.load %arg7[%c0_373, %c0_374] : memref<1x8xf32, #tpu.memory_space<vmem>>, vector<1x8xf32>
    %c0_375 = arith.constant 0 : index
    %c0_376 = arith.constant 0 : index
    %237 = vector.load %arg10[%c0_375, %c0_376] : memref<384x8xf32, #tpu.memory_space<vmem>>, vector<16x8xf32>
    %238 = vector.broadcast %236 : vector<1x8xf32> to vector<16x8xf32>
    %239 = arith.addf %237, %238 : vector<16x8xf32>
    %cst_377 = arith.constant 0.000000e+00 : f32
    %240 = vector.broadcast %cst_377 : f32 to vector<16x8xf32>
    %241 = arith.maximumf %239, %240 : vector<16x8xf32>
    %242 = arith.truncf %241 : vector<16x8xf32> to vector<16x8xbf16>
    %c0_378 = arith.constant 0 : index
    %c0_379 = arith.constant 0 : index
    %c0_380 = arith.constant 0 : index
    %c0_381 = arith.constant 0 : index
    %243 = vector.load %arg8[%c0_378, %c0_379, %c0_380, %c0_381] : memref<1x16x16x8xbf16, #tpu.memory_space<vmem>>, vector<1x1x16x8xbf16>
    %244 = vector.shape_cast %243 : vector<1x1x16x8xbf16> to vector<16x8xbf16>
    %245 = vector.shape_cast %242 : vector<16x8xbf16> to vector<1x1x16x8xbf16>
    tpu.vector_store %arg8[%c0_378, %c0_379, %c0_380, %c0_381], %245 {strides = array<i32>} : memref<1x16x16x8xbf16, #tpu.memory_space<vmem>>, vector<1x1x16x8xbf16>,
    %c24 = arith.constant 24 : index
    %c0_382 = arith.constant 0 : index
    %246 = vector.load %arg10[%c24, %c0_382] : memref<384x8xf32, #tpu.memory_space<vmem>>, vector<16x8xf32>
    %247 = vector.broadcast %236 : vector<1x8xf32> to vector<16x8xf32>
    %248 = arith.addf %246, %247 : vector<16x8xf32>
    %cst_383 = arith.constant 0.000000e+00 : f32
    %249 = vector.broadcast %cst_383 : f32 to vector<16x8xf32>
    %250 = arith.maximumf %248, %249 : vector<16x8xf32>
    %251 = arith.truncf %250 : vector<16x8xf32> to vector<16x8xbf16>
    %c0_384 = arith.constant 0 : index
    %c1_385 = arith.constant 1 : index
    %c0_386 = arith.constant 0 : index
    %c0_387 = arith.constant 0 : index
    %252 = vector.load %arg8[%c0_384, %c1_385, %c0_386, %c0_387] : memref<1x16x16x8xbf16, #tpu.memory_space<vmem>>, vector<1x1x16x8xbf16>
    %253 = vector.shape_cast %252 : vector<1x1x16x8xbf16> to vector<16x8xbf16>
    %254 = vector.shape_cast %251 : vector<16x8xbf16> to vector<1x1x16x8xbf16>
    tpu.vector_store %arg8[%c0_384, %c1_385, %c0_386, %c0_387], %254 {strides = array<i32>} : memref<1x16x16x8xbf16, #tpu.memory_space<vmem>>, vector<1x1x16x8xbf16>,
    %c48 = arith.constant 48 : index
    %c0_388 = arith.constant 0 : index
    %255 = vector.load %arg10[%c48, %c0_388] : memref<384x8xf32, #tpu.memory_space<vmem>>, vector<16x8xf32>
    %256 = vector.broadcast %236 : vector<1x8xf32> to vector<16x8xf32>
    %257 = arith.addf %255, %256 : vector<16x8xf32>
    %cst_389 = arith.constant 0.000000e+00 : f32
    %258 = vector.broadcast %cst_389 : f32 to vector<16x8xf32>
    %259 = arith.maximumf %257, %258 : vector<16x8xf32>
    %260 = arith.truncf %259 : vector<16x8xf32> to vector<16x8xbf16>
    %c0_390 = arith.constant 0 : index
    %c2_391 = arith.constant 2 : index
    %c0_392 = arith.constant 0 : index
    %c0_393 = arith.constant 0 : index
    %261 = vector.load %arg8[%c0_390, %c2_391, %c0_392, %c0_393] : memref<1x16x16x8xbf16, #tpu.memory_space<vmem>>, vector<1x1x16x8xbf16>
    %262 = vector.shape_cast %261 : vector<1x1x16x8xbf16> to vector<16x8xbf16>
    %263 = vector.shape_cast %260 : vector<16x8xbf16> to vector<1x1x16x8xbf16>
    tpu.vector_store %arg8[%c0_390, %c2_391, %c0_392, %c0_393], %263 {strides = array<i32>} : memref<1x16x16x8xbf16, #tpu.memory_space<vmem>>, vector<1x1x16x8xbf16>,
    %c72 = arith.constant 72 : index
    %c0_394 = arith.constant 0 : index
    %264 = vector.load %arg10[%c72, %c0_394] : memref<384x8xf32, #tpu.memory_space<vmem>>, vector<16x8xf32>
    %265 = vector.broadcast %236 : vector<1x8xf32> to vector<16x8xf32>
    %266 = arith.addf %264, %265 : vector<16x8xf32>
    %cst_395 = arith.constant 0.000000e+00 : f32
    %267 = vector.broadcast %cst_395 : f32 to vector<16x8xf32>
    %268 = arith.maximumf %266, %267 : vector<16x8xf32>
    %269 = arith.truncf %268 : vector<16x8xf32> to vector<16x8xbf16>
    %c0_396 = arith.constant 0 : index
    %c3_397 = arith.constant 3 : index
    %c0_398 = arith.constant 0 : index
    %c0_399 = arith.constant 0 : index
    %270 = vector.load %arg8[%c0_396, %c3_397, %c0_398, %c0_399] : memref<1x16x16x8xbf16, #tpu.memory_space<vmem>>, vector<1x1x16x8xbf16>
    %271 = vector.shape_cast %270 : vector<1x1x16x8xbf16> to vector<16x8xbf16>
    %272 = vector.shape_cast %269 : vector<16x8xbf16> to vector<1x1x16x8xbf16>
    tpu.vector_store %arg8[%c0_396, %c3_397, %c0_398, %c0_399], %272 {strides = array<i32>} : memref<1x16x16x8xbf16, #tpu.memory_space<vmem>>, vector<1x1x16x8xbf16>,
    %c96 = arith.constant 96 : index
    %c0_400 = arith.constant 0 : index
    %273 = vector.load %arg10[%c96, %c0_400] : memref<384x8xf32, #tpu.memory_space<vmem>>, vector<16x8xf32>
    %274 = vector.broadcast %236 : vector<1x8xf32> to vector<16x8xf32>
    %275 = arith.addf %273, %274 : vector<16x8xf32>
    %cst_401 = arith.constant 0.000000e+00 : f32
    %276 = vector.broadcast %cst_401 : f32 to vector<16x8xf32>
    %277 = arith.maximumf %275, %276 : vector<16x8xf32>
    %278 = arith.truncf %277 : vector<16x8xf32> to vector<16x8xbf16>
    %c0_402 = arith.constant 0 : index
    %c4_403 = arith.constant 4 : index
    %c0_404 = arith.constant 0 : index
    %c0_405 = arith.constant 0 : index
    %279 = vector.load %arg8[%c0_402, %c4_403, %c0_404, %c0_405] : memref<1x16x16x8xbf16, #tpu.memory_space<vmem>>, vector<1x1x16x8xbf16>
    %280 = vector.shape_cast %279 : vector<1x1x16x8xbf16> to vector<16x8xbf16>
    %281 = vector.shape_cast %278 : vector<16x8xbf16> to vector<1x1x16x8xbf16>
    tpu.vector_store %arg8[%c0_402, %c4_403, %c0_404, %c0_405], %281 {strides = array<i32>} : memref<1x16x16x8xbf16, #tpu.memory_space<vmem>>, vector<1x1x16x8xbf16>,
    %c120 = arith.constant 120 : index
    %c0_406 = arith.constant 0 : index
    %282 = vector.load %arg10[%c120, %c0_406] : memref<384x8xf32, #tpu.memory_space<vmem>>, vector<16x8xf32>
    %283 = vector.broadcast %236 : vector<1x8xf32> to vector<16x8xf32>
    %284 = arith.addf %282, %283 : vector<16x8xf32>
    %cst_407 = arith.constant 0.000000e+00 : f32
    %285 = vector.broadcast %cst_407 : f32 to vector<16x8xf32>
    %286 = arith.maximumf %284, %285 : vector<16x8xf32>
    %287 = arith.truncf %286 : vector<16x8xf32> to vector<16x8xbf16>
    %c0_408 = arith.constant 0 : index
    %c5_409 = arith.constant 5 : index
    %c0_410 = arith.constant 0 : index
    %c0_411 = arith.constant 0 : index
    %288 = vector.load %arg8[%c0_408, %c5_409, %c0_410, %c0_411] : memref<1x16x16x8xbf16, #tpu.memory_space<vmem>>, vector<1x1x16x8xbf16>
    %289 = vector.shape_cast %288 : vector<1x1x16x8xbf16> to vector<16x8xbf16>
    %290 = vector.shape_cast %287 : vector<16x8xbf16> to vector<1x1x16x8xbf16>
    tpu.vector_store %arg8[%c0_408, %c5_409, %c0_410, %c0_411], %290 {strides = array<i32>} : memref<1x16x16x8xbf16, #tpu.memory_space<vmem>>, vector<1x1x16x8xbf16>,
    %c144 = arith.constant 144 : index
    %c0_412 = arith.constant 0 : index
    %291 = vector.load %arg10[%c144, %c0_412] : memref<384x8xf32, #tpu.memory_space<vmem>>, vector<16x8xf32>
    %292 = vector.broadcast %236 : vector<1x8xf32> to vector<16x8xf32>
    %293 = arith.addf %291, %292 : vector<16x8xf32>
    %cst_413 = arith.constant 0.000000e+00 : f32
    %294 = vector.broadcast %cst_413 : f32 to vector<16x8xf32>
    %295 = arith.maximumf %293, %294 : vector<16x8xf32>
    %296 = arith.truncf %295 : vector<16x8xf32> to vector<16x8xbf16>
    %c0_414 = arith.constant 0 : index
    %c6_415 = arith.constant 6 : index
    %c0_416 = arith.constant 0 : index
    %c0_417 = arith.constant 0 : index
    %297 = vector.load %arg8[%c0_414, %c6_415, %c0_416, %c0_417] : memref<1x16x16x8xbf16, #tpu.memory_space<vmem>>, vector<1x1x16x8xbf16>
    %298 = vector.shape_cast %297 : vector<1x1x16x8xbf16> to vector<16x8xbf16>
    %299 = vector.shape_cast %296 : vector<16x8xbf16> to vector<1x1x16x8xbf16>
    tpu.vector_store %arg8[%c0_414, %c6_415, %c0_416, %c0_417], %299 {strides = array<i32>} : memref<1x16x16x8xbf16, #tpu.memory_space<vmem>>, vector<1x1x16x8xbf16>,
    %c168 = arith.constant 168 : index
    %c0_418 = arith.constant 0 : index
    %300 = vector.load %arg10[%c168, %c0_418] : memref<384x8xf32, #tpu.memory_space<vmem>>, vector<16x8xf32>
    %301 = vector.broadcast %236 : vector<1x8xf32> to vector<16x8xf32>
    %302 = arith.addf %300, %301 : vector<16x8xf32>
    %cst_419 = arith.constant 0.000000e+00 : f32
    %303 = vector.broadcast %cst_419 : f32 to vector<16x8xf32>
    %304 = arith.maximumf %302, %303 : vector<16x8xf32>
    %305 = arith.truncf %304 : vector<16x8xf32> to vector<16x8xbf16>
    %c0_420 = arith.constant 0 : index
    %c7_421 = arith.constant 7 : index
    %c0_422 = arith.constant 0 : index
    %c0_423 = arith.constant 0 : index
    %306 = vector.load %arg8[%c0_420, %c7_421, %c0_422, %c0_423] : memref<1x16x16x8xbf16, #tpu.memory_space<vmem>>, vector<1x1x16x8xbf16>
    %307 = vector.shape_cast %306 : vector<1x1x16x8xbf16> to vector<16x8xbf16>
    %308 = vector.shape_cast %305 : vector<16x8xbf16> to vector<1x1x16x8xbf16>
    tpu.vector_store %arg8[%c0_420, %c7_421, %c0_422, %c0_423], %308 {strides = array<i32>} : memref<1x16x16x8xbf16, #tpu.memory_space<vmem>>, vector<1x1x16x8xbf16>,
    %c192 = arith.constant 192 : index
    %c0_424 = arith.constant 0 : index
    %309 = vector.load %arg10[%c192, %c0_424] : memref<384x8xf32, #tpu.memory_space<vmem>>, vector<16x8xf32>
    %310 = vector.broadcast %236 : vector<1x8xf32> to vector<16x8xf32>
    %311 = arith.addf %309, %310 : vector<16x8xf32>
    %cst_425 = arith.constant 0.000000e+00 : f32
    %312 = vector.broadcast %cst_425 : f32 to vector<16x8xf32>
    %313 = arith.maximumf %311, %312 : vector<16x8xf32>
    %314 = arith.truncf %313 : vector<16x8xf32> to vector<16x8xbf16>
    %c0_426 = arith.constant 0 : index
    %c8_427 = arith.constant 8 : index
    %c0_428 = arith.constant 0 : index
    %c0_429 = arith.constant 0 : index
    %315 = vector.load %arg8[%c0_426, %c8_427, %c0_428, %c0_429] : memref<1x16x16x8xbf16, #tpu.memory_space<vmem>>, vector<1x1x16x8xbf16>
    %316 = vector.shape_cast %315 : vector<1x1x16x8xbf16> to vector<16x8xbf16>
    %317 = vector.shape_cast %314 : vector<16x8xbf16> to vector<1x1x16x8xbf16>
    tpu.vector_store %arg8[%c0_426, %c8_427, %c0_428, %c0_429], %317 {strides = array<i32>} : memref<1x16x16x8xbf16, #tpu.memory_space<vmem>>, vector<1x1x16x8xbf16>,
    %c216 = arith.constant 216 : index
    %c0_430 = arith.constant 0 : index
    %318 = vector.load %arg10[%c216, %c0_430] : memref<384x8xf32, #tpu.memory_space<vmem>>, vector<16x8xf32>
    %319 = vector.broadcast %236 : vector<1x8xf32> to vector<16x8xf32>
    %320 = arith.addf %318, %319 : vector<16x8xf32>
    %cst_431 = arith.constant 0.000000e+00 : f32
    %321 = vector.broadcast %cst_431 : f32 to vector<16x8xf32>
    %322 = arith.maximumf %320, %321 : vector<16x8xf32>
    %323 = arith.truncf %322 : vector<16x8xf32> to vector<16x8xbf16>
    %c0_432 = arith.constant 0 : index
    %c9_433 = arith.constant 9 : index
    %c0_434 = arith.constant 0 : index
    %c0_435 = arith.constant 0 : index
    %324 = vector.load %arg8[%c0_432, %c9_433, %c0_434, %c0_435] : memref<1x16x16x8xbf16, #tpu.memory_space<vmem>>, vector<1x1x16x8xbf16>
    %325 = vector.shape_cast %324 : vector<1x1x16x8xbf16> to vector<16x8xbf16>
    %326 = vector.shape_cast %323 : vector<16x8xbf16> to vector<1x1x16x8xbf16>
    tpu.vector_store %arg8[%c0_432, %c9_433, %c0_434, %c0_435], %326 {strides = array<i32>} : memref<1x16x16x8xbf16, #tpu.memory_space<vmem>>, vector<1x1x16x8xbf16>,
    %c240 = arith.constant 240 : index
    %c0_436 = arith.constant 0 : index
    %327 = vector.load %arg10[%c240, %c0_436] : memref<384x8xf32, #tpu.memory_space<vmem>>, vector<16x8xf32>
    %328 = vector.broadcast %236 : vector<1x8xf32> to vector<16x8xf32>
    %329 = arith.addf %327, %328 : vector<16x8xf32>
    %cst_437 = arith.constant 0.000000e+00 : f32
    %330 = vector.broadcast %cst_437 : f32 to vector<16x8xf32>
    %331 = arith.maximumf %329, %330 : vector<16x8xf32>
    %332 = arith.truncf %331 : vector<16x8xf32> to vector<16x8xbf16>
    %c0_438 = arith.constant 0 : index
    %c10_439 = arith.constant 10 : index
    %c0_440 = arith.constant 0 : index
    %c0_441 = arith.constant 0 : index
    %333 = vector.load %arg8[%c0_438, %c10_439, %c0_440, %c0_441] : memref<1x16x16x8xbf16, #tpu.memory_space<vmem>>, vector<1x1x16x8xbf16>
    %334 = vector.shape_cast %333 : vector<1x1x16x8xbf16> to vector<16x8xbf16>
    %335 = vector.shape_cast %332 : vector<16x8xbf16> to vector<1x1x16x8xbf16>
    tpu.vector_store %arg8[%c0_438, %c10_439, %c0_440, %c0_441], %335 {strides = array<i32>} : memref<1x16x16x8xbf16, #tpu.memory_space<vmem>>, vector<1x1x16x8xbf16>,
    %c264 = arith.constant 264 : index
    %c0_442 = arith.constant 0 : index
    %336 = vector.load %arg10[%c264, %c0_442] : memref<384x8xf32, #tpu.memory_space<vmem>>, vector<16x8xf32>
    %337 = vector.broadcast %236 : vector<1x8xf32> to vector<16x8xf32>
    %338 = arith.addf %336, %337 : vector<16x8xf32>
    %cst_443 = arith.constant 0.000000e+00 : f32
    %339 = vector.broadcast %cst_443 : f32 to vector<16x8xf32>
    %340 = arith.maximumf %338, %339 : vector<16x8xf32>
    %341 = arith.truncf %340 : vector<16x8xf32> to vector<16x8xbf16>
    %c0_444 = arith.constant 0 : index
    %c11_445 = arith.constant 11 : index
    %c0_446 = arith.constant 0 : index
    %c0_447 = arith.constant 0 : index
    %342 = vector.load %arg8[%c0_444, %c11_445, %c0_446, %c0_447] : memref<1x16x16x8xbf16, #tpu.memory_space<vmem>>, vector<1x1x16x8xbf16>
    %343 = vector.shape_cast %342 : vector<1x1x16x8xbf16> to vector<16x8xbf16>
    %344 = vector.shape_cast %341 : vector<16x8xbf16> to vector<1x1x16x8xbf16>
    tpu.vector_store %arg8[%c0_444, %c11_445, %c0_446, %c0_447], %344 {strides = array<i32>} : memref<1x16x16x8xbf16, #tpu.memory_space<vmem>>, vector<1x1x16x8xbf16>,
    %c288 = arith.constant 288 : index
    %c0_448 = arith.constant 0 : index
    %345 = vector.load %arg10[%c288, %c0_448] : memref<384x8xf32, #tpu.memory_space<vmem>>, vector<16x8xf32>
    %346 = vector.broadcast %236 : vector<1x8xf32> to vector<16x8xf32>
    %347 = arith.addf %345, %346 : vector<16x8xf32>
    %cst_449 = arith.constant 0.000000e+00 : f32
    %348 = vector.broadcast %cst_449 : f32 to vector<16x8xf32>
    %349 = arith.maximumf %347, %348 : vector<16x8xf32>
    %350 = arith.truncf %349 : vector<16x8xf32> to vector<16x8xbf16>
    %c0_450 = arith.constant 0 : index
    %c12_451 = arith.constant 12 : index
    %c0_452 = arith.constant 0 : index
    %c0_453 = arith.constant 0 : index
    %351 = vector.load %arg8[%c0_450, %c12_451, %c0_452, %c0_453] : memref<1x16x16x8xbf16, #tpu.memory_space<vmem>>, vector<1x1x16x8xbf16>
    %352 = vector.shape_cast %351 : vector<1x1x16x8xbf16> to vector<16x8xbf16>
    %353 = vector.shape_cast %350 : vector<16x8xbf16> to vector<1x1x16x8xbf16>
    tpu.vector_store %arg8[%c0_450, %c12_451, %c0_452, %c0_453], %353 {strides = array<i32>} : memref<1x16x16x8xbf16, #tpu.memory_space<vmem>>, vector<1x1x16x8xbf16>,
    %c312 = arith.constant 312 : index
    %c0_454 = arith.constant 0 : index
    %354 = vector.load %arg10[%c312, %c0_454] : memref<384x8xf32, #tpu.memory_space<vmem>>, vector<16x8xf32>
    %355 = vector.broadcast %236 : vector<1x8xf32> to vector<16x8xf32>
    %356 = arith.addf %354, %355 : vector<16x8xf32>
    %cst_455 = arith.constant 0.000000e+00 : f32
    %357 = vector.broadcast %cst_455 : f32 to vector<16x8xf32>
    %358 = arith.maximumf %356, %357 : vector<16x8xf32>
    %359 = arith.truncf %358 : vector<16x8xf32> to vector<16x8xbf16>
    %c0_456 = arith.constant 0 : index
    %c13_457 = arith.constant 13 : index
    %c0_458 = arith.constant 0 : index
    %c0_459 = arith.constant 0 : index
    %360 = vector.load %arg8[%c0_456, %c13_457, %c0_458, %c0_459] : memref<1x16x16x8xbf16, #tpu.memory_space<vmem>>, vector<1x1x16x8xbf16>
    %361 = vector.shape_cast %360 : vector<1x1x16x8xbf16> to vector<16x8xbf16>
    %362 = vector.shape_cast %359 : vector<16x8xbf16> to vector<1x1x16x8xbf16>
    tpu.vector_store %arg8[%c0_456, %c13_457, %c0_458, %c0_459], %362 {strides = array<i32>} : memref<1x16x16x8xbf16, #tpu.memory_space<vmem>>, vector<1x1x16x8xbf16>,
    %c336 = arith.constant 336 : index
    %c0_460 = arith.constant 0 : index
    %363 = vector.load %arg10[%c336, %c0_460] : memref<384x8xf32, #tpu.memory_space<vmem>>, vector<16x8xf32>
    %364 = vector.broadcast %236 : vector<1x8xf32> to vector<16x8xf32>
    %365 = arith.addf %363, %364 : vector<16x8xf32>
    %cst_461 = arith.constant 0.000000e+00 : f32
    %366 = vector.broadcast %cst_461 : f32 to vector<16x8xf32>
    %367 = arith.maximumf %365, %366 : vector<16x8xf32>
    %368 = arith.truncf %367 : vector<16x8xf32> to vector<16x8xbf16>
    %c0_462 = arith.constant 0 : index
    %c14_463 = arith.constant 14 : index
    %c0_464 = arith.constant 0 : index
    %c0_465 = arith.constant 0 : index
    %369 = vector.load %arg8[%c0_462, %c14_463, %c0_464, %c0_465] : memref<1x16x16x8xbf16, #tpu.memory_space<vmem>>, vector<1x1x16x8xbf16>
    %370 = vector.shape_cast %369 : vector<1x1x16x8xbf16> to vector<16x8xbf16>
    %371 = vector.shape_cast %368 : vector<16x8xbf16> to vector<1x1x16x8xbf16>
    tpu.vector_store %arg8[%c0_462, %c14_463, %c0_464, %c0_465], %371 {strides = array<i32>} : memref<1x16x16x8xbf16, #tpu.memory_space<vmem>>, vector<1x1x16x8xbf16>,
    %c360 = arith.constant 360 : index
    %c0_466 = arith.constant 0 : index
    %372 = vector.load %arg10[%c360, %c0_466] : memref<384x8xf32, #tpu.memory_space<vmem>>, vector<16x8xf32>
    %373 = vector.broadcast %236 : vector<1x8xf32> to vector<16x8xf32>
    %374 = arith.addf %372, %373 : vector<16x8xf32>
    %cst_467 = arith.constant 0.000000e+00 : f32
    %375 = vector.broadcast %cst_467 : f32 to vector<16x8xf32>
    %376 = arith.maximumf %374, %375 : vector<16x8xf32>
    %377 = arith.truncf %376 : vector<16x8xf32> to vector<16x8xbf16>
    %c0_468 = arith.constant 0 : index
    %c15_469 = arith.constant 15 : index
    %c0_470 = arith.constant 0 : index
    %c0_471 = arith.constant 0 : index
    %378 = vector.load %arg8[%c0_468, %c15_469, %c0_470, %c0_471] : memref<1x16x16x8xbf16, #tpu.memory_space<vmem>>, vector<1x1x16x8xbf16>
    %379 = vector.shape_cast %378 : vector<1x1x16x8xbf16> to vector<16x8xbf16>
    %380 = vector.shape_cast %377 : vector<16x8xbf16> to vector<1x1x16x8xbf16>
    tpu.vector_store %arg8[%c0_468, %c15_469, %c0_470, %c0_471], %380 {strides = array<i32>} : memref<1x16x16x8xbf16, #tpu.memory_space<vmem>>, vector<1x1x16x8xbf16>,
    return
  }
  func.func @transform_0(%arg0: i32, %arg1: i32) -> (i32, i32, i32, i32) {
    %c0_i32 = arith.constant 0 : i32
    %c0_i32_0 = arith.constant 0 : i32
    %c0_i32_1 = arith.constant 0 : i32
    return %arg0, %arg1, %c0_i32, %c0_i32_0 : i32, i32, i32, i32
  }
  func.func @transform_1(%arg0: i32, %arg1: i32) -> (i32, i32, i32, i32) {
    %c0_i32 = arith.constant 0 : i32
    %c0_i32_0 = arith.constant 0 : i32
    %c0_i32_1 = arith.constant 0 : i32
    return %arg0, %arg1, %c0_i32, %c0_i32_0 : i32, i32, i32, i32
  }
  func.func @transform_2(%arg0: i32, %arg1: i32) -> (i32, i32, i32, i32) {
    %c0_i32 = arith.constant 0 : i32
    %c0_i32_0 = arith.constant 0 : i32
    %c0_i32_1 = arith.constant 0 : i32
    return %arg0, %arg1, %c0_i32, %c0_i32_0 : i32, i32, i32, i32
  }
  func.func @transform_3(%arg0: i32, %arg1: i32) -> (i32, i32, i32, i32) {
    %c0_i32 = arith.constant 0 : i32
    %c0_i32_0 = arith.constant 0 : i32
    %c0_i32_1 = arith.constant 0 : i32
    return %arg0, %arg1, %c0_i32, %c0_i32_0 : i32, i32, i32, i32
  }
  func.func @transform_4(%arg0: i32, %arg1: i32) -> (i32, i32, i32) {
    %c0_i32 = arith.constant 0 : i32
    %c0_i32_0 = arith.constant 0 : i32
    %c0_i32_1 = arith.constant 0 : i32
    %c0_i32_2 = arith.constant 0 : i32
    return %c0_i32, %c0_i32_0, %c0_i32_1 : i32, i32, i32
  }
  func.func @transform_5(%arg0: i32, %arg1: i32) -> (i32, i32) {
    %c0_i32 = arith.constant 0 : i32
    %c0_i32_0 = arith.constant 0 : i32
    %c0_i32_1 = arith.constant 0 : i32
    return %c0_i32, %c0_i32_0 : i32, i32
  }
  func.func @transform_6(%arg0: i32, %arg1: i32) -> (i32, i32, i32, i32) {
    %c0_i32 = arith.constant 0 : i32
    %c0_i32_0 = arith.constant 0 : i32
    %c0_i32_1 = arith.constant 0 : i32
    return %arg0, %arg1, %c0_i32, %c0_i32_0 : i32, i32, i32, i32
  }
}

module attributes {stable_mosaic.version = 11 : i64} {
  func.func @_conv3x3_bias_relu_kernel(%arg0: i32, %arg1: i32, %arg2: memref<1x16x16x8xbf16, #tpu.memory_space<vmem>>, %arg3: memref<1x2x16x8xbf16, #tpu.memory_space<vmem>>, %arg4: memref<3x24x8xbf16, #tpu.memory_space<vmem>>, %arg5: memref<1x8xf32, #tpu.memory_space<vmem>>, %arg6: memref<1x16x16x8xf32, #tpu.memory_space<vmem>>, %arg7: memref<440x24xbf16, #tpu.memory_space<vmem>>, %arg8: memref<384x8xf32, #tpu.memory_space<vmem>>) attributes {dimension_semantics = [#tpu.dimension_semantics<parallel>, #tpu.dimension_semantics<parallel>], iteration_bounds = array<i64: 2, 1>, scalar_prefetch = 0 : i64, scratch_operands = 2 : i64, tpu.core_type = #tpu.core_type<tc>, window_params = [{transform_indices = @transform_0, window_bounds = array<i64: 1, 16, 16, 8>}, {transform_indices = @transform_1, window_bounds = array<i64: 1, 2, 16, 8>}, {pipeline_mode = #tpu.pipeline_mode<synchronous>, transform_indices = @transform_2, window_bounds = array<i64: 3, 24, 8>}, {pipeline_mode = #tpu.pipeline_mode<synchronous>, transform_indices = @transform_3, window_bounds = array<i64: 1, 8>}, {transform_indices = @transform_4, window_bounds = array<i64: 1, 16, 16, 8>}]} {
    %cst = arith.constant 0.000000e+00 : bf16
    %0 = vector.broadcast %cst : bf16 to vector<1x8xbf16>
    %c0 = arith.constant 0 : index
    %c0_0 = arith.constant 0 : index
    %c0_1 = arith.constant 0 : index
    %c0_2 = arith.constant 0 : index
    %1 = vector.load %arg3[%c0, %c0_0, %c0_1, %c0_2] : memref<1x2x16x8xbf16, #tpu.memory_space<vmem>>, vector<1x1x16x8xbf16>
    %2 = vector.shape_cast %1 : vector<1x1x16x8xbf16> to vector<16x8xbf16>
    %c9 = arith.constant 9 : index
    %c0_3 = arith.constant 0 : index
    %3 = vector.load %arg7[%c9, %c0_3] : memref<440x24xbf16, #tpu.memory_space<vmem>>, vector<16x8xbf16>
    tpu.vector_store %arg7[%c9, %c0_3], %2 {strides = array<i32>} : memref<440x24xbf16, #tpu.memory_space<vmem>>, vector<16x8xbf16>,
    %c8 = arith.constant 8 : index
    %c8_4 = arith.constant 8 : index
    %4 = vector.load %arg7[%c8, %c8_4] : memref<440x24xbf16, #tpu.memory_space<vmem>>, vector<16x8xbf16>
    tpu.vector_store %arg7[%c8, %c8_4], %2 {strides = array<i32>} : memref<440x24xbf16, #tpu.memory_space<vmem>>, vector<16x8xbf16>,
    %c7 = arith.constant 7 : index
    %c16 = arith.constant 16 : index
    %5 = vector.load %arg7[%c7, %c16] : memref<440x24xbf16, #tpu.memory_space<vmem>>, vector<16x8xbf16>
    tpu.vector_store %arg7[%c7, %c16], %2 {strides = array<i32>} : memref<440x24xbf16, #tpu.memory_space<vmem>>, vector<16x8xbf16>,
    %c8_5 = arith.constant 8 : index
    %c0_6 = arith.constant 0 : index
    %6 = vector.load %arg7[%c8_5, %c0_6] : memref<440x24xbf16, #tpu.memory_space<vmem>>, vector<1x8xbf16>
    tpu.vector_store %arg7[%c8_5, %c0_6], %0 {strides = array<i32>} : memref<440x24xbf16, #tpu.memory_space<vmem>>, vector<1x8xbf16>,
    %c23 = arith.constant 23 : index
    %c16_7 = arith.constant 16 : index
    %7 = vector.load %arg7[%c23, %c16_7] : memref<440x24xbf16, #tpu.memory_space<vmem>>, vector<1x8xbf16>
    tpu.vector_store %arg7[%c23, %c16_7], %0 {strides = array<i32>} : memref<440x24xbf16, #tpu.memory_space<vmem>>, vector<1x8xbf16>,
    %c0_8 = arith.constant 0 : index
    %c0_9 = arith.constant 0 : index
    %c0_10 = arith.constant 0 : index
    %c0_11 = arith.constant 0 : index
    %8 = vector.load %arg2[%c0_8, %c0_9, %c0_10, %c0_11] : memref<1x16x16x8xbf16, #tpu.memory_space<vmem>>, vector<1x1x16x8xbf16>
    %9 = vector.shape_cast %8 : vector<1x1x16x8xbf16> to vector<16x8xbf16>
    %c33 = arith.constant 33 : index
    %c0_12 = arith.constant 0 : index
    %10 = vector.load %arg7[%c33, %c0_12] : memref<440x24xbf16, #tpu.memory_space<vmem>>, vector<16x8xbf16>
    tpu.vector_store %arg7[%c33, %c0_12], %9 {strides = array<i32>} : memref<440x24xbf16, #tpu.memory_space<vmem>>, vector<16x8xbf16>,
    %c32 = arith.constant 32 : index
    %c8_13 = arith.constant 8 : index
    %11 = vector.load %arg7[%c32, %c8_13] : memref<440x24xbf16, #tpu.memory_space<vmem>>, vector<16x8xbf16>
    tpu.vector_store %arg7[%c32, %c8_13], %9 {strides = array<i32>} : memref<440x24xbf16, #tpu.memory_space<vmem>>, vector<16x8xbf16>,
    %c31 = arith.constant 31 : index
    %c16_14 = arith.constant 16 : index
    %12 = vector.load %arg7[%c31, %c16_14] : memref<440x24xbf16, #tpu.memory_space<vmem>>, vector<16x8xbf16>
    tpu.vector_store %arg7[%c31, %c16_14], %9 {strides = array<i32>} : memref<440x24xbf16, #tpu.memory_space<vmem>>, vector<16x8xbf16>,
    %c32_15 = arith.constant 32 : index
    %c0_16 = arith.constant 0 : index
    %13 = vector.load %arg7[%c32_15, %c0_16] : memref<440x24xbf16, #tpu.memory_space<vmem>>, vector<1x8xbf16>
    tpu.vector_store %arg7[%c32_15, %c0_16], %0 {strides = array<i32>} : memref<440x24xbf16, #tpu.memory_space<vmem>>, vector<1x8xbf16>,
    %c47 = arith.constant 47 : index
    %c16_17 = arith.constant 16 : index
    %14 = vector.load %arg7[%c47, %c16_17] : memref<440x24xbf16, #tpu.memory_space<vmem>>, vector<1x8xbf16>
    tpu.vector_store %arg7[%c47, %c16_17], %0 {strides = array<i32>} : memref<440x24xbf16, #tpu.memory_space<vmem>>, vector<1x8xbf16>,
    %c0_18 = arith.constant 0 : index
    %c1 = arith.constant 1 : index
    %c0_19 = arith.constant 0 : index
    %c0_20 = arith.constant 0 : index
    %15 = vector.load %arg2[%c0_18, %c1, %c0_19, %c0_20] : memref<1x16x16x8xbf16, #tpu.memory_space<vmem>>, vector<1x1x16x8xbf16>
    %16 = vector.shape_cast %15 : vector<1x1x16x8xbf16> to vector<16x8xbf16>
    %c57 = arith.constant 57 : index
    %c0_21 = arith.constant 0 : index
    %17 = vector.load %arg7[%c57, %c0_21] : memref<440x24xbf16, #tpu.memory_space<vmem>>, vector<16x8xbf16>
    tpu.vector_store %arg7[%c57, %c0_21], %16 {strides = array<i32>} : memref<440x24xbf16, #tpu.memory_space<vmem>>, vector<16x8xbf16>,
    %c56 = arith.constant 56 : index
    %c8_22 = arith.constant 8 : index
    %18 = vector.load %arg7[%c56, %c8_22] : memref<440x24xbf16, #tpu.memory_space<vmem>>, vector<16x8xbf16>
    tpu.vector_store %arg7[%c56, %c8_22], %16 {strides = array<i32>} : memref<440x24xbf16, #tpu.memory_space<vmem>>, vector<16x8xbf16>,
    %c55 = arith.constant 55 : index
    %c16_23 = arith.constant 16 : index
    %19 = vector.load %arg7[%c55, %c16_23] : memref<440x24xbf16, #tpu.memory_space<vmem>>, vector<16x8xbf16>
    tpu.vector_store %arg7[%c55, %c16_23], %16 {strides = array<i32>} : memref<440x24xbf16, #tpu.memory_space<vmem>>, vector<16x8xbf16>,
    %c56_24 = arith.constant 56 : index
    %c0_25 = arith.constant 0 : index
    %20 = vector.load %arg7[%c56_24, %c0_25] : memref<440x24xbf16, #tpu.memory_space<vmem>>, vector<1x8xbf16>
    tpu.vector_store %arg7[%c56_24, %c0_25], %0 {strides = array<i32>} : memref<440x24xbf16, #tpu.memory_space<vmem>>, vector<1x8xbf16>,
    %c71 = arith.constant 71 : index
    %c16_26 = arith.constant 16 : index
    %21 = vector.load %arg7[%c71, %c16_26] : memref<440x24xbf16, #tpu.memory_space<vmem>>, vector<1x8xbf16>
    tpu.vector_store %arg7[%c71, %c16_26], %0 {strides = array<i32>} : memref<440x24xbf16, #tpu.memory_space<vmem>>, vector<1x8xbf16>,
    %c0_27 = arith.constant 0 : index
    %c2 = arith.constant 2 : index
    %c0_28 = arith.constant 0 : index
    %c0_29 = arith.constant 0 : index
    %22 = vector.load %arg2[%c0_27, %c2, %c0_28, %c0_29] : memref<1x16x16x8xbf16, #tpu.memory_space<vmem>>, vector<1x1x16x8xbf16>
    %23 = vector.shape_cast %22 : vector<1x1x16x8xbf16> to vector<16x8xbf16>
    %c81 = arith.constant 81 : index
    %c0_30 = arith.constant 0 : index
    %24 = vector.load %arg7[%c81, %c0_30] : memref<440x24xbf16, #tpu.memory_space<vmem>>, vector<16x8xbf16>
    tpu.vector_store %arg7[%c81, %c0_30], %23 {strides = array<i32>} : memref<440x24xbf16, #tpu.memory_space<vmem>>, vector<16x8xbf16>,
    %c80 = arith.constant 80 : index
    %c8_31 = arith.constant 8 : index
    %25 = vector.load %arg7[%c80, %c8_31] : memref<440x24xbf16, #tpu.memory_space<vmem>>, vector<16x8xbf16>
    tpu.vector_store %arg7[%c80, %c8_31], %23 {strides = array<i32>} : memref<440x24xbf16, #tpu.memory_space<vmem>>, vector<16x8xbf16>,
    %c79 = arith.constant 79 : index
    %c16_32 = arith.constant 16 : index
    %26 = vector.load %arg7[%c79, %c16_32] : memref<440x24xbf16, #tpu.memory_space<vmem>>, vector<16x8xbf16>
    tpu.vector_store %arg7[%c79, %c16_32], %23 {strides = array<i32>} : memref<440x24xbf16, #tpu.memory_space<vmem>>, vector<16x8xbf16>,
    %c80_33 = arith.constant 80 : index
    %c0_34 = arith.constant 0 : index
    %27 = vector.load %arg7[%c80_33, %c0_34] : memref<440x24xbf16, #tpu.memory_space<vmem>>, vector<1x8xbf16>
    tpu.vector_store %arg7[%c80_33, %c0_34], %0 {strides = array<i32>} : memref<440x24xbf16, #tpu.memory_space<vmem>>, vector<1x8xbf16>,
    %c95 = arith.constant 95 : index
    %c16_35 = arith.constant 16 : index
    %28 = vector.load %arg7[%c95, %c16_35] : memref<440x24xbf16, #tpu.memory_space<vmem>>, vector<1x8xbf16>
    tpu.vector_store %arg7[%c95, %c16_35], %0 {strides = array<i32>} : memref<440x24xbf16, #tpu.memory_space<vmem>>, vector<1x8xbf16>,
    %c0_36 = arith.constant 0 : index
    %c3 = arith.constant 3 : index
    %c0_37 = arith.constant 0 : index
    %c0_38 = arith.constant 0 : index
    %29 = vector.load %arg2[%c0_36, %c3, %c0_37, %c0_38] : memref<1x16x16x8xbf16, #tpu.memory_space<vmem>>, vector<1x1x16x8xbf16>
    %30 = vector.shape_cast %29 : vector<1x1x16x8xbf16> to vector<16x8xbf16>
    %c105 = arith.constant 105 : index
    %c0_39 = arith.constant 0 : index
    %31 = vector.load %arg7[%c105, %c0_39] : memref<440x24xbf16, #tpu.memory_space<vmem>>, vector<16x8xbf16>
    tpu.vector_store %arg7[%c105, %c0_39], %30 {strides = array<i32>} : memref<440x24xbf16, #tpu.memory_space<vmem>>, vector<16x8xbf16>,
    %c104 = arith.constant 104 : index
    %c8_40 = arith.constant 8 : index
    %32 = vector.load %arg7[%c104, %c8_40] : memref<440x24xbf16, #tpu.memory_space<vmem>>, vector<16x8xbf16>
    tpu.vector_store %arg7[%c104, %c8_40], %30 {strides = array<i32>} : memref<440x24xbf16, #tpu.memory_space<vmem>>, vector<16x8xbf16>,
    %c103 = arith.constant 103 : index
    %c16_41 = arith.constant 16 : index
    %33 = vector.load %arg7[%c103, %c16_41] : memref<440x24xbf16, #tpu.memory_space<vmem>>, vector<16x8xbf16>
    tpu.vector_store %arg7[%c103, %c16_41], %30 {strides = array<i32>} : memref<440x24xbf16, #tpu.memory_space<vmem>>, vector<16x8xbf16>,
    %c104_42 = arith.constant 104 : index
    %c0_43 = arith.constant 0 : index
    %34 = vector.load %arg7[%c104_42, %c0_43] : memref<440x24xbf16, #tpu.memory_space<vmem>>, vector<1x8xbf16>
    tpu.vector_store %arg7[%c104_42, %c0_43], %0 {strides = array<i32>} : memref<440x24xbf16, #tpu.memory_space<vmem>>, vector<1x8xbf16>,
    %c119 = arith.constant 119 : index
    %c16_44 = arith.constant 16 : index
    %35 = vector.load %arg7[%c119, %c16_44] : memref<440x24xbf16, #tpu.memory_space<vmem>>, vector<1x8xbf16>
    tpu.vector_store %arg7[%c119, %c16_44], %0 {strides = array<i32>} : memref<440x24xbf16, #tpu.memory_space<vmem>>, vector<1x8xbf16>,
    %c0_45 = arith.constant 0 : index
    %c4 = arith.constant 4 : index
    %c0_46 = arith.constant 0 : index
    %c0_47 = arith.constant 0 : index
    %36 = vector.load %arg2[%c0_45, %c4, %c0_46, %c0_47] : memref<1x16x16x8xbf16, #tpu.memory_space<vmem>>, vector<1x1x16x8xbf16>
    %37 = vector.shape_cast %36 : vector<1x1x16x8xbf16> to vector<16x8xbf16>
    %c129 = arith.constant 129 : index
    %c0_48 = arith.constant 0 : index
    %38 = vector.load %arg7[%c129, %c0_48] : memref<440x24xbf16, #tpu.memory_space<vmem>>, vector<16x8xbf16>
    tpu.vector_store %arg7[%c129, %c0_48], %37 {strides = array<i32>} : memref<440x24xbf16, #tpu.memory_space<vmem>>, vector<16x8xbf16>,
    %c128 = arith.constant 128 : index
    %c8_49 = arith.constant 8 : index
    %39 = vector.load %arg7[%c128, %c8_49] : memref<440x24xbf16, #tpu.memory_space<vmem>>, vector<16x8xbf16>
    tpu.vector_store %arg7[%c128, %c8_49], %37 {strides = array<i32>} : memref<440x24xbf16, #tpu.memory_space<vmem>>, vector<16x8xbf16>,
    %c127 = arith.constant 127 : index
    %c16_50 = arith.constant 16 : index
    %40 = vector.load %arg7[%c127, %c16_50] : memref<440x24xbf16, #tpu.memory_space<vmem>>, vector<16x8xbf16>
    tpu.vector_store %arg7[%c127, %c16_50], %37 {strides = array<i32>} : memref<440x24xbf16, #tpu.memory_space<vmem>>, vector<16x8xbf16>,
    %c128_51 = arith.constant 128 : index
    %c0_52 = arith.constant 0 : index
    %41 = vector.load %arg7[%c128_51, %c0_52] : memref<440x24xbf16, #tpu.memory_space<vmem>>, vector<1x8xbf16>
    tpu.vector_store %arg7[%c128_51, %c0_52], %0 {strides = array<i32>} : memref<440x24xbf16, #tpu.memory_space<vmem>>, vector<1x8xbf16>,
    %c143 = arith.constant 143 : index
    %c16_53 = arith.constant 16 : index
    %42 = vector.load %arg7[%c143, %c16_53] : memref<440x24xbf16, #tpu.memory_space<vmem>>, vector<1x8xbf16>
    tpu.vector_store %arg7[%c143, %c16_53], %0 {strides = array<i32>} : memref<440x24xbf16, #tpu.memory_space<vmem>>, vector<1x8xbf16>,
    %c0_54 = arith.constant 0 : index
    %c5 = arith.constant 5 : index
    %c0_55 = arith.constant 0 : index
    %c0_56 = arith.constant 0 : index
    %43 = vector.load %arg2[%c0_54, %c5, %c0_55, %c0_56] : memref<1x16x16x8xbf16, #tpu.memory_space<vmem>>, vector<1x1x16x8xbf16>
    %44 = vector.shape_cast %43 : vector<1x1x16x8xbf16> to vector<16x8xbf16>
    %c153 = arith.constant 153 : index
    %c0_57 = arith.constant 0 : index
    %45 = vector.load %arg7[%c153, %c0_57] : memref<440x24xbf16, #tpu.memory_space<vmem>>, vector<16x8xbf16>
    tpu.vector_store %arg7[%c153, %c0_57], %44 {strides = array<i32>} : memref<440x24xbf16, #tpu.memory_space<vmem>>, vector<16x8xbf16>,
    %c152 = arith.constant 152 : index
    %c8_58 = arith.constant 8 : index
    %46 = vector.load %arg7[%c152, %c8_58] : memref<440x24xbf16, #tpu.memory_space<vmem>>, vector<16x8xbf16>
    tpu.vector_store %arg7[%c152, %c8_58], %44 {strides = array<i32>} : memref<440x24xbf16, #tpu.memory_space<vmem>>, vector<16x8xbf16>,
    %c151 = arith.constant 151 : index
    %c16_59 = arith.constant 16 : index
    %47 = vector.load %arg7[%c151, %c16_59] : memref<440x24xbf16, #tpu.memory_space<vmem>>, vector<16x8xbf16>
    tpu.vector_store %arg7[%c151, %c16_59], %44 {strides = array<i32>} : memref<440x24xbf16, #tpu.memory_space<vmem>>, vector<16x8xbf16>,
    %c152_60 = arith.constant 152 : index
    %c0_61 = arith.constant 0 : index
    %48 = vector.load %arg7[%c152_60, %c0_61] : memref<440x24xbf16, #tpu.memory_space<vmem>>, vector<1x8xbf16>
    tpu.vector_store %arg7[%c152_60, %c0_61], %0 {strides = array<i32>} : memref<440x24xbf16, #tpu.memory_space<vmem>>, vector<1x8xbf16>,
    %c167 = arith.constant 167 : index
    %c16_62 = arith.constant 16 : index
    %49 = vector.load %arg7[%c167, %c16_62] : memref<440x24xbf16, #tpu.memory_space<vmem>>, vector<1x8xbf16>
    tpu.vector_store %arg7[%c167, %c16_62], %0 {strides = array<i32>} : memref<440x24xbf16, #tpu.memory_space<vmem>>, vector<1x8xbf16>,
    %c0_63 = arith.constant 0 : index
    %c6 = arith.constant 6 : index
    %c0_64 = arith.constant 0 : index
    %c0_65 = arith.constant 0 : index
    %50 = vector.load %arg2[%c0_63, %c6, %c0_64, %c0_65] : memref<1x16x16x8xbf16, #tpu.memory_space<vmem>>, vector<1x1x16x8xbf16>
    %51 = vector.shape_cast %50 : vector<1x1x16x8xbf16> to vector<16x8xbf16>
    %c177 = arith.constant 177 : index
    %c0_66 = arith.constant 0 : index
    %52 = vector.load %arg7[%c177, %c0_66] : memref<440x24xbf16, #tpu.memory_space<vmem>>, vector<16x8xbf16>
    tpu.vector_store %arg7[%c177, %c0_66], %51 {strides = array<i32>} : memref<440x24xbf16, #tpu.memory_space<vmem>>, vector<16x8xbf16>,
    %c176 = arith.constant 176 : index
    %c8_67 = arith.constant 8 : index
    %53 = vector.load %arg7[%c176, %c8_67] : memref<440x24xbf16, #tpu.memory_space<vmem>>, vector<16x8xbf16>
    tpu.vector_store %arg7[%c176, %c8_67], %51 {strides = array<i32>} : memref<440x24xbf16, #tpu.memory_space<vmem>>, vector<16x8xbf16>,
    %c175 = arith.constant 175 : index
    %c16_68 = arith.constant 16 : index
    %54 = vector.load %arg7[%c175, %c16_68] : memref<440x24xbf16, #tpu.memory_space<vmem>>, vector<16x8xbf16>
    tpu.vector_store %arg7[%c175, %c16_68], %51 {strides = array<i32>} : memref<440x24xbf16, #tpu.memory_space<vmem>>, vector<16x8xbf16>,
    %c176_69 = arith.constant 176 : index
    %c0_70 = arith.constant 0 : index
    %55 = vector.load %arg7[%c176_69, %c0_70] : memref<440x24xbf16, #tpu.memory_space<vmem>>, vector<1x8xbf16>
    tpu.vector_store %arg7[%c176_69, %c0_70], %0 {strides = array<i32>} : memref<440x24xbf16, #tpu.memory_space<vmem>>, vector<1x8xbf16>,
    %c191 = arith.constant 191 : index
    %c16_71 = arith.constant 16 : index
    %56 = vector.load %arg7[%c191, %c16_71] : memref<440x24xbf16, #tpu.memory_space<vmem>>, vector<1x8xbf16>
    tpu.vector_store %arg7[%c191, %c16_71], %0 {strides = array<i32>} : memref<440x24xbf16, #tpu.memory_space<vmem>>, vector<1x8xbf16>,
    %c0_72 = arith.constant 0 : index
    %c7_73 = arith.constant 7 : index
    %c0_74 = arith.constant 0 : index
    %c0_75 = arith.constant 0 : index
    %57 = vector.load %arg2[%c0_72, %c7_73, %c0_74, %c0_75] : memref<1x16x16x8xbf16, #tpu.memory_space<vmem>>, vector<1x1x16x8xbf16>
    %58 = vector.shape_cast %57 : vector<1x1x16x8xbf16> to vector<16x8xbf16>
    %c201 = arith.constant 201 : index
    %c0_76 = arith.constant 0 : index
    %59 = vector.load %arg7[%c201, %c0_76] : memref<440x24xbf16, #tpu.memory_space<vmem>>, vector<16x8xbf16>
    tpu.vector_store %arg7[%c201, %c0_76], %58 {strides = array<i32>} : memref<440x24xbf16, #tpu.memory_space<vmem>>, vector<16x8xbf16>,
    %c200 = arith.constant 200 : index
    %c8_77 = arith.constant 8 : index
    %60 = vector.load %arg7[%c200, %c8_77] : memref<440x24xbf16, #tpu.memory_space<vmem>>, vector<16x8xbf16>
    tpu.vector_store %arg7[%c200, %c8_77], %58 {strides = array<i32>} : memref<440x24xbf16, #tpu.memory_space<vmem>>, vector<16x8xbf16>,
    %c199 = arith.constant 199 : index
    %c16_78 = arith.constant 16 : index
    %61 = vector.load %arg7[%c199, %c16_78] : memref<440x24xbf16, #tpu.memory_space<vmem>>, vector<16x8xbf16>
    tpu.vector_store %arg7[%c199, %c16_78], %58 {strides = array<i32>} : memref<440x24xbf16, #tpu.memory_space<vmem>>, vector<16x8xbf16>,
    %c200_79 = arith.constant 200 : index
    %c0_80 = arith.constant 0 : index
    %62 = vector.load %arg7[%c200_79, %c0_80] : memref<440x24xbf16, #tpu.memory_space<vmem>>, vector<1x8xbf16>
    tpu.vector_store %arg7[%c200_79, %c0_80], %0 {strides = array<i32>} : memref<440x24xbf16, #tpu.memory_space<vmem>>, vector<1x8xbf16>,
    %c215 = arith.constant 215 : index
    %c16_81 = arith.constant 16 : index
    %63 = vector.load %arg7[%c215, %c16_81] : memref<440x24xbf16, #tpu.memory_space<vmem>>, vector<1x8xbf16>
    tpu.vector_store %arg7[%c215, %c16_81], %0 {strides = array<i32>} : memref<440x24xbf16, #tpu.memory_space<vmem>>, vector<1x8xbf16>,
    %c0_82 = arith.constant 0 : index
    %c8_83 = arith.constant 8 : index
    %c0_84 = arith.constant 0 : index
    %c0_85 = arith.constant 0 : index
    %64 = vector.load %arg2[%c0_82, %c8_83, %c0_84, %c0_85] : memref<1x16x16x8xbf16, #tpu.memory_space<vmem>>, vector<1x1x16x8xbf16>
    %65 = vector.shape_cast %64 : vector<1x1x16x8xbf16> to vector<16x8xbf16>
    %c225 = arith.constant 225 : index
    %c0_86 = arith.constant 0 : index
    %66 = vector.load %arg7[%c225, %c0_86] : memref<440x24xbf16, #tpu.memory_space<vmem>>, vector<16x8xbf16>
    tpu.vector_store %arg7[%c225, %c0_86], %65 {strides = array<i32>} : memref<440x24xbf16, #tpu.memory_space<vmem>>, vector<16x8xbf16>,
    %c224 = arith.constant 224 : index
    %c8_87 = arith.constant 8 : index
    %67 = vector.load %arg7[%c224, %c8_87] : memref<440x24xbf16, #tpu.memory_space<vmem>>, vector<16x8xbf16>
    tpu.vector_store %arg7[%c224, %c8_87], %65 {strides = array<i32>} : memref<440x24xbf16, #tpu.memory_space<vmem>>, vector<16x8xbf16>,
    %c223 = arith.constant 223 : index
    %c16_88 = arith.constant 16 : index
    %68 = vector.load %arg7[%c223, %c16_88] : memref<440x24xbf16, #tpu.memory_space<vmem>>, vector<16x8xbf16>
    tpu.vector_store %arg7[%c223, %c16_88], %65 {strides = array<i32>} : memref<440x24xbf16, #tpu.memory_space<vmem>>, vector<16x8xbf16>,
    %c224_89 = arith.constant 224 : index
    %c0_90 = arith.constant 0 : index
    %69 = vector.load %arg7[%c224_89, %c0_90] : memref<440x24xbf16, #tpu.memory_space<vmem>>, vector<1x8xbf16>
    tpu.vector_store %arg7[%c224_89, %c0_90], %0 {strides = array<i32>} : memref<440x24xbf16, #tpu.memory_space<vmem>>, vector<1x8xbf16>,
    %c239 = arith.constant 239 : index
    %c16_91 = arith.constant 16 : index
    %70 = vector.load %arg7[%c239, %c16_91] : memref<440x24xbf16, #tpu.memory_space<vmem>>, vector<1x8xbf16>
    tpu.vector_store %arg7[%c239, %c16_91], %0 {strides = array<i32>} : memref<440x24xbf16, #tpu.memory_space<vmem>>, vector<1x8xbf16>,
    %c0_92 = arith.constant 0 : index
    %c9_93 = arith.constant 9 : index
    %c0_94 = arith.constant 0 : index
    %c0_95 = arith.constant 0 : index
    %71 = vector.load %arg2[%c0_92, %c9_93, %c0_94, %c0_95] : memref<1x16x16x8xbf16, #tpu.memory_space<vmem>>, vector<1x1x16x8xbf16>
    %72 = vector.shape_cast %71 : vector<1x1x16x8xbf16> to vector<16x8xbf16>
    %c249 = arith.constant 249 : index
    %c0_96 = arith.constant 0 : index
    %73 = vector.load %arg7[%c249, %c0_96] : memref<440x24xbf16, #tpu.memory_space<vmem>>, vector<16x8xbf16>
    tpu.vector_store %arg7[%c249, %c0_96], %72 {strides = array<i32>} : memref<440x24xbf16, #tpu.memory_space<vmem>>, vector<16x8xbf16>,
    %c248 = arith.constant 248 : index
    %c8_97 = arith.constant 8 : index
    %74 = vector.load %arg7[%c248, %c8_97] : memref<440x24xbf16, #tpu.memory_space<vmem>>, vector<16x8xbf16>
    tpu.vector_store %arg7[%c248, %c8_97], %72 {strides = array<i32>} : memref<440x24xbf16, #tpu.memory_space<vmem>>, vector<16x8xbf16>,
    %c247 = arith.constant 247 : index
    %c16_98 = arith.constant 16 : index
    %75 = vector.load %arg7[%c247, %c16_98] : memref<440x24xbf16, #tpu.memory_space<vmem>>, vector<16x8xbf16>
    tpu.vector_store %arg7[%c247, %c16_98], %72 {strides = array<i32>} : memref<440x24xbf16, #tpu.memory_space<vmem>>, vector<16x8xbf16>,
    %c248_99 = arith.constant 248 : index
    %c0_100 = arith.constant 0 : index
    %76 = vector.load %arg7[%c248_99, %c0_100] : memref<440x24xbf16, #tpu.memory_space<vmem>>, vector<1x8xbf16>
    tpu.vector_store %arg7[%c248_99, %c0_100], %0 {strides = array<i32>} : memref<440x24xbf16, #tpu.memory_space<vmem>>, vector<1x8xbf16>,
    %c263 = arith.constant 263 : index
    %c16_101 = arith.constant 16 : index
    %77 = vector.load %arg7[%c263, %c16_101] : memref<440x24xbf16, #tpu.memory_space<vmem>>, vector<1x8xbf16>
    tpu.vector_store %arg7[%c263, %c16_101], %0 {strides = array<i32>} : memref<440x24xbf16, #tpu.memory_space<vmem>>, vector<1x8xbf16>,
    %c0_102 = arith.constant 0 : index
    %c10 = arith.constant 10 : index
    %c0_103 = arith.constant 0 : index
    %c0_104 = arith.constant 0 : index
    %78 = vector.load %arg2[%c0_102, %c10, %c0_103, %c0_104] : memref<1x16x16x8xbf16, #tpu.memory_space<vmem>>, vector<1x1x16x8xbf16>
    %79 = vector.shape_cast %78 : vector<1x1x16x8xbf16> to vector<16x8xbf16>
    %c273 = arith.constant 273 : index
    %c0_105 = arith.constant 0 : index
    %80 = vector.load %arg7[%c273, %c0_105] : memref<440x24xbf16, #tpu.memory_space<vmem>>, vector<16x8xbf16>
    tpu.vector_store %arg7[%c273, %c0_105], %79 {strides = array<i32>} : memref<440x24xbf16, #tpu.memory_space<vmem>>, vector<16x8xbf16>,
    %c272 = arith.constant 272 : index
    %c8_106 = arith.constant 8 : index
    %81 = vector.load %arg7[%c272, %c8_106] : memref<440x24xbf16, #tpu.memory_space<vmem>>, vector<16x8xbf16>
    tpu.vector_store %arg7[%c272, %c8_106], %79 {strides = array<i32>} : memref<440x24xbf16, #tpu.memory_space<vmem>>, vector<16x8xbf16>,
    %c271 = arith.constant 271 : index
    %c16_107 = arith.constant 16 : index
    %82 = vector.load %arg7[%c271, %c16_107] : memref<440x24xbf16, #tpu.memory_space<vmem>>, vector<16x8xbf16>
    tpu.vector_store %arg7[%c271, %c16_107], %79 {strides = array<i32>} : memref<440x24xbf16, #tpu.memory_space<vmem>>, vector<16x8xbf16>,
    %c272_108 = arith.constant 272 : index
    %c0_109 = arith.constant 0 : index
    %83 = vector.load %arg7[%c272_108, %c0_109] : memref<440x24xbf16, #tpu.memory_space<vmem>>, vector<1x8xbf16>
    tpu.vector_store %arg7[%c272_108, %c0_109], %0 {strides = array<i32>} : memref<440x24xbf16, #tpu.memory_space<vmem>>, vector<1x8xbf16>,
    %c287 = arith.constant 287 : index
    %c16_110 = arith.constant 16 : index
    %84 = vector.load %arg7[%c287, %c16_110] : memref<440x24xbf16, #tpu.memory_space<vmem>>, vector<1x8xbf16>
    tpu.vector_store %arg7[%c287, %c16_110], %0 {strides = array<i32>} : memref<440x24xbf16, #tpu.memory_space<vmem>>, vector<1x8xbf16>,
    %c0_111 = arith.constant 0 : index
    %c11 = arith.constant 11 : index
    %c0_112 = arith.constant 0 : index
    %c0_113 = arith.constant 0 : index
    %85 = vector.load %arg2[%c0_111, %c11, %c0_112, %c0_113] : memref<1x16x16x8xbf16, #tpu.memory_space<vmem>>, vector<1x1x16x8xbf16>
    %86 = vector.shape_cast %85 : vector<1x1x16x8xbf16> to vector<16x8xbf16>
    %c297 = arith.constant 297 : index
    %c0_114 = arith.constant 0 : index
    %87 = vector.load %arg7[%c297, %c0_114] : memref<440x24xbf16, #tpu.memory_space<vmem>>, vector<16x8xbf16>
    tpu.vector_store %arg7[%c297, %c0_114], %86 {strides = array<i32>} : memref<440x24xbf16, #tpu.memory_space<vmem>>, vector<16x8xbf16>,
    %c296 = arith.constant 296 : index
    %c8_115 = arith.constant 8 : index
    %88 = vector.load %arg7[%c296, %c8_115] : memref<440x24xbf16, #tpu.memory_space<vmem>>, vector<16x8xbf16>
    tpu.vector_store %arg7[%c296, %c8_115], %86 {strides = array<i32>} : memref<440x24xbf16, #tpu.memory_space<vmem>>, vector<16x8xbf16>,
    %c295 = arith.constant 295 : index
    %c16_116 = arith.constant 16 : index
    %89 = vector.load %arg7[%c295, %c16_116] : memref<440x24xbf16, #tpu.memory_space<vmem>>, vector<16x8xbf16>
    tpu.vector_store %arg7[%c295, %c16_116], %86 {strides = array<i32>} : memref<440x24xbf16, #tpu.memory_space<vmem>>, vector<16x8xbf16>,
    %c296_117 = arith.constant 296 : index
    %c0_118 = arith.constant 0 : index
    %90 = vector.load %arg7[%c296_117, %c0_118] : memref<440x24xbf16, #tpu.memory_space<vmem>>, vector<1x8xbf16>
    tpu.vector_store %arg7[%c296_117, %c0_118], %0 {strides = array<i32>} : memref<440x24xbf16, #tpu.memory_space<vmem>>, vector<1x8xbf16>,
    %c311 = arith.constant 311 : index
    %c16_119 = arith.constant 16 : index
    %91 = vector.load %arg7[%c311, %c16_119] : memref<440x24xbf16, #tpu.memory_space<vmem>>, vector<1x8xbf16>
    tpu.vector_store %arg7[%c311, %c16_119], %0 {strides = array<i32>} : memref<440x24xbf16, #tpu.memory_space<vmem>>, vector<1x8xbf16>,
    %c0_120 = arith.constant 0 : index
    %c12 = arith.constant 12 : index
    %c0_121 = arith.constant 0 : index
    %c0_122 = arith.constant 0 : index
    %92 = vector.load %arg2[%c0_120, %c12, %c0_121, %c0_122] : memref<1x16x16x8xbf16, #tpu.memory_space<vmem>>, vector<1x1x16x8xbf16>
    %93 = vector.shape_cast %92 : vector<1x1x16x8xbf16> to vector<16x8xbf16>
    %c321 = arith.constant 321 : index
    %c0_123 = arith.constant 0 : index
    %94 = vector.load %arg7[%c321, %c0_123] : memref<440x24xbf16, #tpu.memory_space<vmem>>, vector<16x8xbf16>
    tpu.vector_store %arg7[%c321, %c0_123], %93 {strides = array<i32>} : memref<440x24xbf16, #tpu.memory_space<vmem>>, vector<16x8xbf16>,
    %c320 = arith.constant 320 : index
    %c8_124 = arith.constant 8 : index
    %95 = vector.load %arg7[%c320, %c8_124] : memref<440x24xbf16, #tpu.memory_space<vmem>>, vector<16x8xbf16>
    tpu.vector_store %arg7[%c320, %c8_124], %93 {strides = array<i32>} : memref<440x24xbf16, #tpu.memory_space<vmem>>, vector<16x8xbf16>,
    %c319 = arith.constant 319 : index
    %c16_125 = arith.constant 16 : index
    %96 = vector.load %arg7[%c319, %c16_125] : memref<440x24xbf16, #tpu.memory_space<vmem>>, vector<16x8xbf16>
    tpu.vector_store %arg7[%c319, %c16_125], %93 {strides = array<i32>} : memref<440x24xbf16, #tpu.memory_space<vmem>>, vector<16x8xbf16>,
    %c320_126 = arith.constant 320 : index
    %c0_127 = arith.constant 0 : index
    %97 = vector.load %arg7[%c320_126, %c0_127] : memref<440x24xbf16, #tpu.memory_space<vmem>>, vector<1x8xbf16>
    tpu.vector_store %arg7[%c320_126, %c0_127], %0 {strides = array<i32>} : memref<440x24xbf16, #tpu.memory_space<vmem>>, vector<1x8xbf16>,
    %c335 = arith.constant 335 : index
    %c16_128 = arith.constant 16 : index
    %98 = vector.load %arg7[%c335, %c16_128] : memref<440x24xbf16, #tpu.memory_space<vmem>>, vector<1x8xbf16>
    tpu.vector_store %arg7[%c335, %c16_128], %0 {strides = array<i32>} : memref<440x24xbf16, #tpu.memory_space<vmem>>, vector<1x8xbf16>,
    %c0_129 = arith.constant 0 : index
    %c13 = arith.constant 13 : index
    %c0_130 = arith.constant 0 : index
    %c0_131 = arith.constant 0 : index
    %99 = vector.load %arg2[%c0_129, %c13, %c0_130, %c0_131] : memref<1x16x16x8xbf16, #tpu.memory_space<vmem>>, vector<1x1x16x8xbf16>
    %100 = vector.shape_cast %99 : vector<1x1x16x8xbf16> to vector<16x8xbf16>
    %c345 = arith.constant 345 : index
    %c0_132 = arith.constant 0 : index
    %101 = vector.load %arg7[%c345, %c0_132] : memref<440x24xbf16, #tpu.memory_space<vmem>>, vector<16x8xbf16>
    tpu.vector_store %arg7[%c345, %c0_132], %100 {strides = array<i32>} : memref<440x24xbf16, #tpu.memory_space<vmem>>, vector<16x8xbf16>,
    %c344 = arith.constant 344 : index
    %c8_133 = arith.constant 8 : index
    %102 = vector.load %arg7[%c344, %c8_133] : memref<440x24xbf16, #tpu.memory_space<vmem>>, vector<16x8xbf16>
    tpu.vector_store %arg7[%c344, %c8_133], %100 {strides = array<i32>} : memref<440x24xbf16, #tpu.memory_space<vmem>>, vector<16x8xbf16>,
    %c343 = arith.constant 343 : index
    %c16_134 = arith.constant 16 : index
    %103 = vector.load %arg7[%c343, %c16_134] : memref<440x24xbf16, #tpu.memory_space<vmem>>, vector<16x8xbf16>
    tpu.vector_store %arg7[%c343, %c16_134], %100 {strides = array<i32>} : memref<440x24xbf16, #tpu.memory_space<vmem>>, vector<16x8xbf16>,
    %c344_135 = arith.constant 344 : index
    %c0_136 = arith.constant 0 : index
    %104 = vector.load %arg7[%c344_135, %c0_136] : memref<440x24xbf16, #tpu.memory_space<vmem>>, vector<1x8xbf16>
    tpu.vector_store %arg7[%c344_135, %c0_136], %0 {strides = array<i32>} : memref<440x24xbf16, #tpu.memory_space<vmem>>, vector<1x8xbf16>,
    %c359 = arith.constant 359 : index
    %c16_137 = arith.constant 16 : index
    %105 = vector.load %arg7[%c359, %c16_137] : memref<440x24xbf16, #tpu.memory_space<vmem>>, vector<1x8xbf16>
    tpu.vector_store %arg7[%c359, %c16_137], %0 {strides = array<i32>} : memref<440x24xbf16, #tpu.memory_space<vmem>>, vector<1x8xbf16>,
    %c0_138 = arith.constant 0 : index
    %c14 = arith.constant 14 : index
    %c0_139 = arith.constant 0 : index
    %c0_140 = arith.constant 0 : index
    %106 = vector.load %arg2[%c0_138, %c14, %c0_139, %c0_140] : memref<1x16x16x8xbf16, #tpu.memory_space<vmem>>, vector<1x1x16x8xbf16>
    %107 = vector.shape_cast %106 : vector<1x1x16x8xbf16> to vector<16x8xbf16>
    %c369 = arith.constant 369 : index
    %c0_141 = arith.constant 0 : index
    %108 = vector.load %arg7[%c369, %c0_141] : memref<440x24xbf16, #tpu.memory_space<vmem>>, vector<16x8xbf16>
    tpu.vector_store %arg7[%c369, %c0_141], %107 {strides = array<i32>} : memref<440x24xbf16, #tpu.memory_space<vmem>>, vector<16x8xbf16>,
    %c368 = arith.constant 368 : index
    %c8_142 = arith.constant 8 : index
    %109 = vector.load %arg7[%c368, %c8_142] : memref<440x24xbf16, #tpu.memory_space<vmem>>, vector<16x8xbf16>
    tpu.vector_store %arg7[%c368, %c8_142], %107 {strides = array<i32>} : memref<440x24xbf16, #tpu.memory_space<vmem>>, vector<16x8xbf16>,
    %c367 = arith.constant 367 : index
    %c16_143 = arith.constant 16 : index
    %110 = vector.load %arg7[%c367, %c16_143] : memref<440x24xbf16, #tpu.memory_space<vmem>>, vector<16x8xbf16>
    tpu.vector_store %arg7[%c367, %c16_143], %107 {strides = array<i32>} : memref<440x24xbf16, #tpu.memory_space<vmem>>, vector<16x8xbf16>,
    %c368_144 = arith.constant 368 : index
    %c0_145 = arith.constant 0 : index
    %111 = vector.load %arg7[%c368_144, %c0_145] : memref<440x24xbf16, #tpu.memory_space<vmem>>, vector<1x8xbf16>
    tpu.vector_store %arg7[%c368_144, %c0_145], %0 {strides = array<i32>} : memref<440x24xbf16, #tpu.memory_space<vmem>>, vector<1x8xbf16>,
    %c383 = arith.constant 383 : index
    %c16_146 = arith.constant 16 : index
    %112 = vector.load %arg7[%c383, %c16_146] : memref<440x24xbf16, #tpu.memory_space<vmem>>, vector<1x8xbf16>
    tpu.vector_store %arg7[%c383, %c16_146], %0 {strides = array<i32>} : memref<440x24xbf16, #tpu.memory_space<vmem>>, vector<1x8xbf16>,
    %c0_147 = arith.constant 0 : index
    %c15 = arith.constant 15 : index
    %c0_148 = arith.constant 0 : index
    %c0_149 = arith.constant 0 : index
    %113 = vector.load %arg2[%c0_147, %c15, %c0_148, %c0_149] : memref<1x16x16x8xbf16, #tpu.memory_space<vmem>>, vector<1x1x16x8xbf16>
    %114 = vector.shape_cast %113 : vector<1x1x16x8xbf16> to vector<16x8xbf16>
    %c393 = arith.constant 393 : index
    %c0_150 = arith.constant 0 : index
    %115 = vector.load %arg7[%c393, %c0_150] : memref<440x24xbf16, #tpu.memory_space<vmem>>, vector<16x8xbf16>
    tpu.vector_store %arg7[%c393, %c0_150], %114 {strides = array<i32>} : memref<440x24xbf16, #tpu.memory_space<vmem>>, vector<16x8xbf16>,
    %c392 = arith.constant 392 : index
    %c8_151 = arith.constant 8 : index
    %116 = vector.load %arg7[%c392, %c8_151] : memref<440x24xbf16, #tpu.memory_space<vmem>>, vector<16x8xbf16>
    tpu.vector_store %arg7[%c392, %c8_151], %114 {strides = array<i32>} : memref<440x24xbf16, #tpu.memory_space<vmem>>, vector<16x8xbf16>,
    %c391 = arith.constant 391 : index
    %c16_152 = arith.constant 16 : index
    %117 = vector.load %arg7[%c391, %c16_152] : memref<440x24xbf16, #tpu.memory_space<vmem>>, vector<16x8xbf16>
    tpu.vector_store %arg7[%c391, %c16_152], %114 {strides = array<i32>} : memref<440x24xbf16, #tpu.memory_space<vmem>>, vector<16x8xbf16>,
    %c392_153 = arith.constant 392 : index
    %c0_154 = arith.constant 0 : index
    %118 = vector.load %arg7[%c392_153, %c0_154] : memref<440x24xbf16, #tpu.memory_space<vmem>>, vector<1x8xbf16>
    tpu.vector_store %arg7[%c392_153, %c0_154], %0 {strides = array<i32>} : memref<440x24xbf16, #tpu.memory_space<vmem>>, vector<1x8xbf16>,
    %c407 = arith.constant 407 : index
    %c16_155 = arith.constant 16 : index
    %119 = vector.load %arg7[%c407, %c16_155] : memref<440x24xbf16, #tpu.memory_space<vmem>>, vector<1x8xbf16>
    tpu.vector_store %arg7[%c407, %c16_155], %0 {strides = array<i32>} : memref<440x24xbf16, #tpu.memory_space<vmem>>, vector<1x8xbf16>,
    %c0_156 = arith.constant 0 : index
    %c1_157 = arith.constant 1 : index
    %c0_158 = arith.constant 0 : index
    %c0_159 = arith.constant 0 : index
    %120 = vector.load %arg3[%c0_156, %c1_157, %c0_158, %c0_159] : memref<1x2x16x8xbf16, #tpu.memory_space<vmem>>, vector<1x1x16x8xbf16>
    %121 = vector.shape_cast %120 : vector<1x1x16x8xbf16> to vector<16x8xbf16>
    %c417 = arith.constant 417 : index
    %c0_160 = arith.constant 0 : index
    %122 = vector.load %arg7[%c417, %c0_160] : memref<440x24xbf16, #tpu.memory_space<vmem>>, vector<16x8xbf16>
    tpu.vector_store %arg7[%c417, %c0_160], %121 {strides = array<i32>} : memref<440x24xbf16, #tpu.memory_space<vmem>>, vector<16x8xbf16>,
    %c416 = arith.constant 416 : index
    %c8_161 = arith.constant 8 : index
    %123 = vector.load %arg7[%c416, %c8_161] : memref<440x24xbf16, #tpu.memory_space<vmem>>, vector<16x8xbf16>
    tpu.vector_store %arg7[%c416, %c8_161], %121 {strides = array<i32>} : memref<440x24xbf16, #tpu.memory_space<vmem>>, vector<16x8xbf16>,
    %c415 = arith.constant 415 : index
    %c16_162 = arith.constant 16 : index
    %124 = vector.load %arg7[%c415, %c16_162] : memref<440x24xbf16, #tpu.memory_space<vmem>>, vector<16x8xbf16>
    tpu.vector_store %arg7[%c415, %c16_162], %121 {strides = array<i32>} : memref<440x24xbf16, #tpu.memory_space<vmem>>, vector<16x8xbf16>,
    %c416_163 = arith.constant 416 : index
    %c0_164 = arith.constant 0 : index
    %125 = vector.load %arg7[%c416_163, %c0_164] : memref<440x24xbf16, #tpu.memory_space<vmem>>, vector<1x8xbf16>
    tpu.vector_store %arg7[%c416_163, %c0_164], %0 {strides = array<i32>} : memref<440x24xbf16, #tpu.memory_space<vmem>>, vector<1x8xbf16>,
    %c431 = arith.constant 431 : index
    %c16_165 = arith.constant 16 : index
    %126 = vector.load %arg7[%c431, %c16_165] : memref<440x24xbf16, #tpu.memory_space<vmem>>, vector<1x8xbf16>
    tpu.vector_store %arg7[%c431, %c16_165], %0 {strides = array<i32>} : memref<440x24xbf16, #tpu.memory_space<vmem>>, vector<1x8xbf16>,
    %c8_166 = arith.constant 8 : index
    %c0_167 = arith.constant 0 : index
    %127 = vector.load %arg7[%c8_166, %c0_167] : memref<440x24xbf16, #tpu.memory_space<vmem>>, vector<384x24xbf16>
    %c0_168 = arith.constant 0 : index
    %c0_169 = arith.constant 0 : index
    %c0_170 = arith.constant 0 : index
    %128 = vector.load %arg4[%c0_168, %c0_169, %c0_170] : memref<3x24x8xbf16, #tpu.memory_space<vmem>>, vector<1x24x8xbf16>
    %129 = vector.shape_cast %128 : vector<1x24x8xbf16> to vector<24x8xbf16>
    %cst_171 = arith.constant dense<0.000000e+00> : vector<384x8xf32>
    %130 = tpu.matmul %127, %129, %cst_171 {dimension_numbers = #tpu.dot_dimension_numbers<[1], [0], [0], [1], [0, 0, 1, 1], [], []>} : vector<384x24xbf16>, vector<24x8xbf16>, vector<384x8xf32> -> vector<384x8xf32>
    %c0_172 = arith.constant 0 : index
    %c0_173 = arith.constant 0 : index
    %131 = vector.load %arg8[%c0_172, %c0_173] : memref<384x8xf32, #tpu.memory_space<vmem>>, vector<384x8xf32>
    tpu.vector_store %arg8[%c0_172, %c0_173], %130 {strides = array<i32>} : memref<384x8xf32, #tpu.memory_space<vmem>>, vector<384x8xf32>,
    %c0_174 = arith.constant 0 : index
    %c0_175 = arith.constant 0 : index
    %132 = vector.load %arg8[%c0_174, %c0_175] : memref<384x8xf32, #tpu.memory_space<vmem>>, vector<384x8xf32>
    %c32_176 = arith.constant 32 : index
    %c0_177 = arith.constant 0 : index
    %133 = vector.load %arg7[%c32_176, %c0_177] : memref<440x24xbf16, #tpu.memory_space<vmem>>, vector<384x24xbf16>
    %c1_178 = arith.constant 1 : index
    %c0_179 = arith.constant 0 : index
    %c0_180 = arith.constant 0 : index
    %134 = vector.load %arg4[%c1_178, %c0_179, %c0_180] : memref<3x24x8xbf16, #tpu.memory_space<vmem>>, vector<1x24x8xbf16>
    %135 = vector.shape_cast %134 : vector<1x24x8xbf16> to vector<24x8xbf16>
    %cst_181 = arith.constant dense<0.000000e+00> : vector<384x8xf32>
    %136 = tpu.matmul %133, %135, %cst_181 {dimension_numbers = #tpu.dot_dimension_numbers<[1], [0], [0], [1], [0, 0, 1, 1], [], []>} : vector<384x24xbf16>, vector<24x8xbf16>, vector<384x8xf32> -> vector<384x8xf32>
    %137 = arith.addf %132, %136 : vector<384x8xf32>
    %c0_182 = arith.constant 0 : index
    %c0_183 = arith.constant 0 : index
    %138 = vector.load %arg8[%c0_182, %c0_183] : memref<384x8xf32, #tpu.memory_space<vmem>>, vector<384x8xf32>
    tpu.vector_store %arg8[%c0_182, %c0_183], %137 {strides = array<i32>} : memref<384x8xf32, #tpu.memory_space<vmem>>, vector<384x8xf32>,
    %c0_184 = arith.constant 0 : index
    %c0_185 = arith.constant 0 : index
    %139 = vector.load %arg8[%c0_184, %c0_185] : memref<384x8xf32, #tpu.memory_space<vmem>>, vector<384x8xf32>
    %c56_186 = arith.constant 56 : index
    %c0_187 = arith.constant 0 : index
    %140 = vector.load %arg7[%c56_186, %c0_187] : memref<440x24xbf16, #tpu.memory_space<vmem>>, vector<384x24xbf16>
    %c2_188 = arith.constant 2 : index
    %c0_189 = arith.constant 0 : index
    %c0_190 = arith.constant 0 : index
    %141 = vector.load %arg4[%c2_188, %c0_189, %c0_190] : memref<3x24x8xbf16, #tpu.memory_space<vmem>>, vector<1x24x8xbf16>
    %142 = vector.shape_cast %141 : vector<1x24x8xbf16> to vector<24x8xbf16>
    %cst_191 = arith.constant dense<0.000000e+00> : vector<384x8xf32>
    %143 = tpu.matmul %140, %142, %cst_191 {dimension_numbers = #tpu.dot_dimension_numbers<[1], [0], [0], [1], [0, 0, 1, 1], [], []>} : vector<384x24xbf16>, vector<24x8xbf16>, vector<384x8xf32> -> vector<384x8xf32>
    %144 = arith.addf %139, %143 : vector<384x8xf32>
    %c0_192 = arith.constant 0 : index
    %c0_193 = arith.constant 0 : index
    %145 = vector.load %arg8[%c0_192, %c0_193] : memref<384x8xf32, #tpu.memory_space<vmem>>, vector<384x8xf32>
    tpu.vector_store %arg8[%c0_192, %c0_193], %144 {strides = array<i32>} : memref<384x8xf32, #tpu.memory_space<vmem>>, vector<384x8xf32>,
    %c0_194 = arith.constant 0 : index
    %c0_195 = arith.constant 0 : index
    %146 = vector.load %arg5[%c0_194, %c0_195] : memref<1x8xf32, #tpu.memory_space<vmem>>, vector<1x8xf32>
    %c0_196 = arith.constant 0 : index
    %c0_197 = arith.constant 0 : index
    %147 = vector.load %arg8[%c0_196, %c0_197] : memref<384x8xf32, #tpu.memory_space<vmem>>, vector<16x8xf32>
    %148 = vector.broadcast %146 : vector<1x8xf32> to vector<16x8xf32>
    %149 = arith.addf %147, %148 : vector<16x8xf32>
    %cst_198 = arith.constant 0.000000e+00 : f32
    %150 = vector.broadcast %cst_198 : f32 to vector<16x8xf32>
    %151 = arith.maximumf %149, %150 : vector<16x8xf32>
    %c0_199 = arith.constant 0 : index
    %c0_200 = arith.constant 0 : index
    %c0_201 = arith.constant 0 : index
    %c0_202 = arith.constant 0 : index
    %152 = vector.load %arg6[%c0_199, %c0_200, %c0_201, %c0_202] : memref<1x16x16x8xf32, #tpu.memory_space<vmem>>, vector<1x1x16x8xf32>
    %153 = vector.shape_cast %152 : vector<1x1x16x8xf32> to vector<16x8xf32>
    %154 = vector.shape_cast %151 : vector<16x8xf32> to vector<1x1x16x8xf32>
    tpu.vector_store %arg6[%c0_199, %c0_200, %c0_201, %c0_202], %154 {strides = array<i32>} : memref<1x16x16x8xf32, #tpu.memory_space<vmem>>, vector<1x1x16x8xf32>,
    %c24 = arith.constant 24 : index
    %c0_203 = arith.constant 0 : index
    %155 = vector.load %arg8[%c24, %c0_203] : memref<384x8xf32, #tpu.memory_space<vmem>>, vector<16x8xf32>
    %156 = vector.broadcast %146 : vector<1x8xf32> to vector<16x8xf32>
    %157 = arith.addf %155, %156 : vector<16x8xf32>
    %cst_204 = arith.constant 0.000000e+00 : f32
    %158 = vector.broadcast %cst_204 : f32 to vector<16x8xf32>
    %159 = arith.maximumf %157, %158 : vector<16x8xf32>
    %c0_205 = arith.constant 0 : index
    %c1_206 = arith.constant 1 : index
    %c0_207 = arith.constant 0 : index
    %c0_208 = arith.constant 0 : index
    %160 = vector.load %arg6[%c0_205, %c1_206, %c0_207, %c0_208] : memref<1x16x16x8xf32, #tpu.memory_space<vmem>>, vector<1x1x16x8xf32>
    %161 = vector.shape_cast %160 : vector<1x1x16x8xf32> to vector<16x8xf32>
    %162 = vector.shape_cast %159 : vector<16x8xf32> to vector<1x1x16x8xf32>
    tpu.vector_store %arg6[%c0_205, %c1_206, %c0_207, %c0_208], %162 {strides = array<i32>} : memref<1x16x16x8xf32, #tpu.memory_space<vmem>>, vector<1x1x16x8xf32>,
    %c48 = arith.constant 48 : index
    %c0_209 = arith.constant 0 : index
    %163 = vector.load %arg8[%c48, %c0_209] : memref<384x8xf32, #tpu.memory_space<vmem>>, vector<16x8xf32>
    %164 = vector.broadcast %146 : vector<1x8xf32> to vector<16x8xf32>
    %165 = arith.addf %163, %164 : vector<16x8xf32>
    %cst_210 = arith.constant 0.000000e+00 : f32
    %166 = vector.broadcast %cst_210 : f32 to vector<16x8xf32>
    %167 = arith.maximumf %165, %166 : vector<16x8xf32>
    %c0_211 = arith.constant 0 : index
    %c2_212 = arith.constant 2 : index
    %c0_213 = arith.constant 0 : index
    %c0_214 = arith.constant 0 : index
    %168 = vector.load %arg6[%c0_211, %c2_212, %c0_213, %c0_214] : memref<1x16x16x8xf32, #tpu.memory_space<vmem>>, vector<1x1x16x8xf32>
    %169 = vector.shape_cast %168 : vector<1x1x16x8xf32> to vector<16x8xf32>
    %170 = vector.shape_cast %167 : vector<16x8xf32> to vector<1x1x16x8xf32>
    tpu.vector_store %arg6[%c0_211, %c2_212, %c0_213, %c0_214], %170 {strides = array<i32>} : memref<1x16x16x8xf32, #tpu.memory_space<vmem>>, vector<1x1x16x8xf32>,
    %c72 = arith.constant 72 : index
    %c0_215 = arith.constant 0 : index
    %171 = vector.load %arg8[%c72, %c0_215] : memref<384x8xf32, #tpu.memory_space<vmem>>, vector<16x8xf32>
    %172 = vector.broadcast %146 : vector<1x8xf32> to vector<16x8xf32>
    %173 = arith.addf %171, %172 : vector<16x8xf32>
    %cst_216 = arith.constant 0.000000e+00 : f32
    %174 = vector.broadcast %cst_216 : f32 to vector<16x8xf32>
    %175 = arith.maximumf %173, %174 : vector<16x8xf32>
    %c0_217 = arith.constant 0 : index
    %c3_218 = arith.constant 3 : index
    %c0_219 = arith.constant 0 : index
    %c0_220 = arith.constant 0 : index
    %176 = vector.load %arg6[%c0_217, %c3_218, %c0_219, %c0_220] : memref<1x16x16x8xf32, #tpu.memory_space<vmem>>, vector<1x1x16x8xf32>
    %177 = vector.shape_cast %176 : vector<1x1x16x8xf32> to vector<16x8xf32>
    %178 = vector.shape_cast %175 : vector<16x8xf32> to vector<1x1x16x8xf32>
    tpu.vector_store %arg6[%c0_217, %c3_218, %c0_219, %c0_220], %178 {strides = array<i32>} : memref<1x16x16x8xf32, #tpu.memory_space<vmem>>, vector<1x1x16x8xf32>,
    %c96 = arith.constant 96 : index
    %c0_221 = arith.constant 0 : index
    %179 = vector.load %arg8[%c96, %c0_221] : memref<384x8xf32, #tpu.memory_space<vmem>>, vector<16x8xf32>
    %180 = vector.broadcast %146 : vector<1x8xf32> to vector<16x8xf32>
    %181 = arith.addf %179, %180 : vector<16x8xf32>
    %cst_222 = arith.constant 0.000000e+00 : f32
    %182 = vector.broadcast %cst_222 : f32 to vector<16x8xf32>
    %183 = arith.maximumf %181, %182 : vector<16x8xf32>
    %c0_223 = arith.constant 0 : index
    %c4_224 = arith.constant 4 : index
    %c0_225 = arith.constant 0 : index
    %c0_226 = arith.constant 0 : index
    %184 = vector.load %arg6[%c0_223, %c4_224, %c0_225, %c0_226] : memref<1x16x16x8xf32, #tpu.memory_space<vmem>>, vector<1x1x16x8xf32>
    %185 = vector.shape_cast %184 : vector<1x1x16x8xf32> to vector<16x8xf32>
    %186 = vector.shape_cast %183 : vector<16x8xf32> to vector<1x1x16x8xf32>
    tpu.vector_store %arg6[%c0_223, %c4_224, %c0_225, %c0_226], %186 {strides = array<i32>} : memref<1x16x16x8xf32, #tpu.memory_space<vmem>>, vector<1x1x16x8xf32>,
    %c120 = arith.constant 120 : index
    %c0_227 = arith.constant 0 : index
    %187 = vector.load %arg8[%c120, %c0_227] : memref<384x8xf32, #tpu.memory_space<vmem>>, vector<16x8xf32>
    %188 = vector.broadcast %146 : vector<1x8xf32> to vector<16x8xf32>
    %189 = arith.addf %187, %188 : vector<16x8xf32>
    %cst_228 = arith.constant 0.000000e+00 : f32
    %190 = vector.broadcast %cst_228 : f32 to vector<16x8xf32>
    %191 = arith.maximumf %189, %190 : vector<16x8xf32>
    %c0_229 = arith.constant 0 : index
    %c5_230 = arith.constant 5 : index
    %c0_231 = arith.constant 0 : index
    %c0_232 = arith.constant 0 : index
    %192 = vector.load %arg6[%c0_229, %c5_230, %c0_231, %c0_232] : memref<1x16x16x8xf32, #tpu.memory_space<vmem>>, vector<1x1x16x8xf32>
    %193 = vector.shape_cast %192 : vector<1x1x16x8xf32> to vector<16x8xf32>
    %194 = vector.shape_cast %191 : vector<16x8xf32> to vector<1x1x16x8xf32>
    tpu.vector_store %arg6[%c0_229, %c5_230, %c0_231, %c0_232], %194 {strides = array<i32>} : memref<1x16x16x8xf32, #tpu.memory_space<vmem>>, vector<1x1x16x8xf32>,
    %c144 = arith.constant 144 : index
    %c0_233 = arith.constant 0 : index
    %195 = vector.load %arg8[%c144, %c0_233] : memref<384x8xf32, #tpu.memory_space<vmem>>, vector<16x8xf32>
    %196 = vector.broadcast %146 : vector<1x8xf32> to vector<16x8xf32>
    %197 = arith.addf %195, %196 : vector<16x8xf32>
    %cst_234 = arith.constant 0.000000e+00 : f32
    %198 = vector.broadcast %cst_234 : f32 to vector<16x8xf32>
    %199 = arith.maximumf %197, %198 : vector<16x8xf32>
    %c0_235 = arith.constant 0 : index
    %c6_236 = arith.constant 6 : index
    %c0_237 = arith.constant 0 : index
    %c0_238 = arith.constant 0 : index
    %200 = vector.load %arg6[%c0_235, %c6_236, %c0_237, %c0_238] : memref<1x16x16x8xf32, #tpu.memory_space<vmem>>, vector<1x1x16x8xf32>
    %201 = vector.shape_cast %200 : vector<1x1x16x8xf32> to vector<16x8xf32>
    %202 = vector.shape_cast %199 : vector<16x8xf32> to vector<1x1x16x8xf32>
    tpu.vector_store %arg6[%c0_235, %c6_236, %c0_237, %c0_238], %202 {strides = array<i32>} : memref<1x16x16x8xf32, #tpu.memory_space<vmem>>, vector<1x1x16x8xf32>,
    %c168 = arith.constant 168 : index
    %c0_239 = arith.constant 0 : index
    %203 = vector.load %arg8[%c168, %c0_239] : memref<384x8xf32, #tpu.memory_space<vmem>>, vector<16x8xf32>
    %204 = vector.broadcast %146 : vector<1x8xf32> to vector<16x8xf32>
    %205 = arith.addf %203, %204 : vector<16x8xf32>
    %cst_240 = arith.constant 0.000000e+00 : f32
    %206 = vector.broadcast %cst_240 : f32 to vector<16x8xf32>
    %207 = arith.maximumf %205, %206 : vector<16x8xf32>
    %c0_241 = arith.constant 0 : index
    %c7_242 = arith.constant 7 : index
    %c0_243 = arith.constant 0 : index
    %c0_244 = arith.constant 0 : index
    %208 = vector.load %arg6[%c0_241, %c7_242, %c0_243, %c0_244] : memref<1x16x16x8xf32, #tpu.memory_space<vmem>>, vector<1x1x16x8xf32>
    %209 = vector.shape_cast %208 : vector<1x1x16x8xf32> to vector<16x8xf32>
    %210 = vector.shape_cast %207 : vector<16x8xf32> to vector<1x1x16x8xf32>
    tpu.vector_store %arg6[%c0_241, %c7_242, %c0_243, %c0_244], %210 {strides = array<i32>} : memref<1x16x16x8xf32, #tpu.memory_space<vmem>>, vector<1x1x16x8xf32>,
    %c192 = arith.constant 192 : index
    %c0_245 = arith.constant 0 : index
    %211 = vector.load %arg8[%c192, %c0_245] : memref<384x8xf32, #tpu.memory_space<vmem>>, vector<16x8xf32>
    %212 = vector.broadcast %146 : vector<1x8xf32> to vector<16x8xf32>
    %213 = arith.addf %211, %212 : vector<16x8xf32>
    %cst_246 = arith.constant 0.000000e+00 : f32
    %214 = vector.broadcast %cst_246 : f32 to vector<16x8xf32>
    %215 = arith.maximumf %213, %214 : vector<16x8xf32>
    %c0_247 = arith.constant 0 : index
    %c8_248 = arith.constant 8 : index
    %c0_249 = arith.constant 0 : index
    %c0_250 = arith.constant 0 : index
    %216 = vector.load %arg6[%c0_247, %c8_248, %c0_249, %c0_250] : memref<1x16x16x8xf32, #tpu.memory_space<vmem>>, vector<1x1x16x8xf32>
    %217 = vector.shape_cast %216 : vector<1x1x16x8xf32> to vector<16x8xf32>
    %218 = vector.shape_cast %215 : vector<16x8xf32> to vector<1x1x16x8xf32>
    tpu.vector_store %arg6[%c0_247, %c8_248, %c0_249, %c0_250], %218 {strides = array<i32>} : memref<1x16x16x8xf32, #tpu.memory_space<vmem>>, vector<1x1x16x8xf32>,
    %c216 = arith.constant 216 : index
    %c0_251 = arith.constant 0 : index
    %219 = vector.load %arg8[%c216, %c0_251] : memref<384x8xf32, #tpu.memory_space<vmem>>, vector<16x8xf32>
    %220 = vector.broadcast %146 : vector<1x8xf32> to vector<16x8xf32>
    %221 = arith.addf %219, %220 : vector<16x8xf32>
    %cst_252 = arith.constant 0.000000e+00 : f32
    %222 = vector.broadcast %cst_252 : f32 to vector<16x8xf32>
    %223 = arith.maximumf %221, %222 : vector<16x8xf32>
    %c0_253 = arith.constant 0 : index
    %c9_254 = arith.constant 9 : index
    %c0_255 = arith.constant 0 : index
    %c0_256 = arith.constant 0 : index
    %224 = vector.load %arg6[%c0_253, %c9_254, %c0_255, %c0_256] : memref<1x16x16x8xf32, #tpu.memory_space<vmem>>, vector<1x1x16x8xf32>
    %225 = vector.shape_cast %224 : vector<1x1x16x8xf32> to vector<16x8xf32>
    %226 = vector.shape_cast %223 : vector<16x8xf32> to vector<1x1x16x8xf32>
    tpu.vector_store %arg6[%c0_253, %c9_254, %c0_255, %c0_256], %226 {strides = array<i32>} : memref<1x16x16x8xf32, #tpu.memory_space<vmem>>, vector<1x1x16x8xf32>,
    %c240 = arith.constant 240 : index
    %c0_257 = arith.constant 0 : index
    %227 = vector.load %arg8[%c240, %c0_257] : memref<384x8xf32, #tpu.memory_space<vmem>>, vector<16x8xf32>
    %228 = vector.broadcast %146 : vector<1x8xf32> to vector<16x8xf32>
    %229 = arith.addf %227, %228 : vector<16x8xf32>
    %cst_258 = arith.constant 0.000000e+00 : f32
    %230 = vector.broadcast %cst_258 : f32 to vector<16x8xf32>
    %231 = arith.maximumf %229, %230 : vector<16x8xf32>
    %c0_259 = arith.constant 0 : index
    %c10_260 = arith.constant 10 : index
    %c0_261 = arith.constant 0 : index
    %c0_262 = arith.constant 0 : index
    %232 = vector.load %arg6[%c0_259, %c10_260, %c0_261, %c0_262] : memref<1x16x16x8xf32, #tpu.memory_space<vmem>>, vector<1x1x16x8xf32>
    %233 = vector.shape_cast %232 : vector<1x1x16x8xf32> to vector<16x8xf32>
    %234 = vector.shape_cast %231 : vector<16x8xf32> to vector<1x1x16x8xf32>
    tpu.vector_store %arg6[%c0_259, %c10_260, %c0_261, %c0_262], %234 {strides = array<i32>} : memref<1x16x16x8xf32, #tpu.memory_space<vmem>>, vector<1x1x16x8xf32>,
    %c264 = arith.constant 264 : index
    %c0_263 = arith.constant 0 : index
    %235 = vector.load %arg8[%c264, %c0_263] : memref<384x8xf32, #tpu.memory_space<vmem>>, vector<16x8xf32>
    %236 = vector.broadcast %146 : vector<1x8xf32> to vector<16x8xf32>
    %237 = arith.addf %235, %236 : vector<16x8xf32>
    %cst_264 = arith.constant 0.000000e+00 : f32
    %238 = vector.broadcast %cst_264 : f32 to vector<16x8xf32>
    %239 = arith.maximumf %237, %238 : vector<16x8xf32>
    %c0_265 = arith.constant 0 : index
    %c11_266 = arith.constant 11 : index
    %c0_267 = arith.constant 0 : index
    %c0_268 = arith.constant 0 : index
    %240 = vector.load %arg6[%c0_265, %c11_266, %c0_267, %c0_268] : memref<1x16x16x8xf32, #tpu.memory_space<vmem>>, vector<1x1x16x8xf32>
    %241 = vector.shape_cast %240 : vector<1x1x16x8xf32> to vector<16x8xf32>
    %242 = vector.shape_cast %239 : vector<16x8xf32> to vector<1x1x16x8xf32>
    tpu.vector_store %arg6[%c0_265, %c11_266, %c0_267, %c0_268], %242 {strides = array<i32>} : memref<1x16x16x8xf32, #tpu.memory_space<vmem>>, vector<1x1x16x8xf32>,
    %c288 = arith.constant 288 : index
    %c0_269 = arith.constant 0 : index
    %243 = vector.load %arg8[%c288, %c0_269] : memref<384x8xf32, #tpu.memory_space<vmem>>, vector<16x8xf32>
    %244 = vector.broadcast %146 : vector<1x8xf32> to vector<16x8xf32>
    %245 = arith.addf %243, %244 : vector<16x8xf32>
    %cst_270 = arith.constant 0.000000e+00 : f32
    %246 = vector.broadcast %cst_270 : f32 to vector<16x8xf32>
    %247 = arith.maximumf %245, %246 : vector<16x8xf32>
    %c0_271 = arith.constant 0 : index
    %c12_272 = arith.constant 12 : index
    %c0_273 = arith.constant 0 : index
    %c0_274 = arith.constant 0 : index
    %248 = vector.load %arg6[%c0_271, %c12_272, %c0_273, %c0_274] : memref<1x16x16x8xf32, #tpu.memory_space<vmem>>, vector<1x1x16x8xf32>
    %249 = vector.shape_cast %248 : vector<1x1x16x8xf32> to vector<16x8xf32>
    %250 = vector.shape_cast %247 : vector<16x8xf32> to vector<1x1x16x8xf32>
    tpu.vector_store %arg6[%c0_271, %c12_272, %c0_273, %c0_274], %250 {strides = array<i32>} : memref<1x16x16x8xf32, #tpu.memory_space<vmem>>, vector<1x1x16x8xf32>,
    %c312 = arith.constant 312 : index
    %c0_275 = arith.constant 0 : index
    %251 = vector.load %arg8[%c312, %c0_275] : memref<384x8xf32, #tpu.memory_space<vmem>>, vector<16x8xf32>
    %252 = vector.broadcast %146 : vector<1x8xf32> to vector<16x8xf32>
    %253 = arith.addf %251, %252 : vector<16x8xf32>
    %cst_276 = arith.constant 0.000000e+00 : f32
    %254 = vector.broadcast %cst_276 : f32 to vector<16x8xf32>
    %255 = arith.maximumf %253, %254 : vector<16x8xf32>
    %c0_277 = arith.constant 0 : index
    %c13_278 = arith.constant 13 : index
    %c0_279 = arith.constant 0 : index
    %c0_280 = arith.constant 0 : index
    %256 = vector.load %arg6[%c0_277, %c13_278, %c0_279, %c0_280] : memref<1x16x16x8xf32, #tpu.memory_space<vmem>>, vector<1x1x16x8xf32>
    %257 = vector.shape_cast %256 : vector<1x1x16x8xf32> to vector<16x8xf32>
    %258 = vector.shape_cast %255 : vector<16x8xf32> to vector<1x1x16x8xf32>
    tpu.vector_store %arg6[%c0_277, %c13_278, %c0_279, %c0_280], %258 {strides = array<i32>} : memref<1x16x16x8xf32, #tpu.memory_space<vmem>>, vector<1x1x16x8xf32>,
    %c336 = arith.constant 336 : index
    %c0_281 = arith.constant 0 : index
    %259 = vector.load %arg8[%c336, %c0_281] : memref<384x8xf32, #tpu.memory_space<vmem>>, vector<16x8xf32>
    %260 = vector.broadcast %146 : vector<1x8xf32> to vector<16x8xf32>
    %261 = arith.addf %259, %260 : vector<16x8xf32>
    %cst_282 = arith.constant 0.000000e+00 : f32
    %262 = vector.broadcast %cst_282 : f32 to vector<16x8xf32>
    %263 = arith.maximumf %261, %262 : vector<16x8xf32>
    %c0_283 = arith.constant 0 : index
    %c14_284 = arith.constant 14 : index
    %c0_285 = arith.constant 0 : index
    %c0_286 = arith.constant 0 : index
    %264 = vector.load %arg6[%c0_283, %c14_284, %c0_285, %c0_286] : memref<1x16x16x8xf32, #tpu.memory_space<vmem>>, vector<1x1x16x8xf32>
    %265 = vector.shape_cast %264 : vector<1x1x16x8xf32> to vector<16x8xf32>
    %266 = vector.shape_cast %263 : vector<16x8xf32> to vector<1x1x16x8xf32>
    tpu.vector_store %arg6[%c0_283, %c14_284, %c0_285, %c0_286], %266 {strides = array<i32>} : memref<1x16x16x8xf32, #tpu.memory_space<vmem>>, vector<1x1x16x8xf32>,
    %c360 = arith.constant 360 : index
    %c0_287 = arith.constant 0 : index
    %267 = vector.load %arg8[%c360, %c0_287] : memref<384x8xf32, #tpu.memory_space<vmem>>, vector<16x8xf32>
    %268 = vector.broadcast %146 : vector<1x8xf32> to vector<16x8xf32>
    %269 = arith.addf %267, %268 : vector<16x8xf32>
    %cst_288 = arith.constant 0.000000e+00 : f32
    %270 = vector.broadcast %cst_288 : f32 to vector<16x8xf32>
    %271 = arith.maximumf %269, %270 : vector<16x8xf32>
    %c0_289 = arith.constant 0 : index
    %c15_290 = arith.constant 15 : index
    %c0_291 = arith.constant 0 : index
    %c0_292 = arith.constant 0 : index
    %272 = vector.load %arg6[%c0_289, %c15_290, %c0_291, %c0_292] : memref<1x16x16x8xf32, #tpu.memory_space<vmem>>, vector<1x1x16x8xf32>
    %273 = vector.shape_cast %272 : vector<1x1x16x8xf32> to vector<16x8xf32>
    %274 = vector.shape_cast %271 : vector<16x8xf32> to vector<1x1x16x8xf32>
    tpu.vector_store %arg6[%c0_289, %c15_290, %c0_291, %c0_292], %274 {strides = array<i32>} : memref<1x16x16x8xf32, #tpu.memory_space<vmem>>, vector<1x1x16x8xf32>,
    return
  }
  func.func @transform_0(%arg0: i32, %arg1: i32) -> (i32, i32, i32, i32) {
    %c0_i32 = arith.constant 0 : i32
    %c0_i32_0 = arith.constant 0 : i32
    %c0_i32_1 = arith.constant 0 : i32
    return %arg0, %arg1, %c0_i32, %c0_i32_0 : i32, i32, i32, i32
  }
  func.func @transform_1(%arg0: i32, %arg1: i32) -> (i32, i32, i32, i32) {
    %c0_i32 = arith.constant 0 : i32
    %c0_i32_0 = arith.constant 0 : i32
    %c0_i32_1 = arith.constant 0 : i32
    return %arg0, %arg1, %c0_i32, %c0_i32_0 : i32, i32, i32, i32
  }
  func.func @transform_2(%arg0: i32, %arg1: i32) -> (i32, i32, i32) {
    %c0_i32 = arith.constant 0 : i32
    %c0_i32_0 = arith.constant 0 : i32
    %c0_i32_1 = arith.constant 0 : i32
    %c0_i32_2 = arith.constant 0 : i32
    return %c0_i32, %c0_i32_0, %c0_i32_1 : i32, i32, i32
  }
  func.func @transform_3(%arg0: i32, %arg1: i32) -> (i32, i32) {
    %c0_i32 = arith.constant 0 : i32
    %c0_i32_0 = arith.constant 0 : i32
    %c0_i32_1 = arith.constant 0 : i32
    return %c0_i32, %c0_i32_0 : i32, i32
  }
  func.func @transform_4(%arg0: i32, %arg1: i32) -> (i32, i32, i32, i32) {
    %c0_i32 = arith.constant 0 : i32
    %c0_i32_0 = arith.constant 0 : i32
    %c0_i32_1 = arith.constant 0 : i32
    return %arg0, %arg1, %c0_i32, %c0_i32_0 : i32, i32, i32, i32
  }
}

</mosaic_0001>

<bundles_post_ra>
// kernel: up_forward.3
= control target key start
LH: loop header
LB: loop body
LE: loop exit
PB: predicated region body
PF: predicated region fallthrough
CT: control target
= control target key end

     0   :  { %s4297_s15 = smov 0   ;;  %s4299_s16 = smov 0   ;;  %s5925_s0 = inlined_call_operand.vmem [shape: bf16[2,16,16,8], index: 0, kind: input, shape index: {}]   ;;  %s5926_s1 = inlined_call_operand.vmem [shape: bf16[2,2,16,8], index: 1, kind: input, shape index: {}]   ;;  %s5927_s2 = inlined_call_operand.vmem [shape: bf16[3,24,8], index: 2, kind: input, shape index: {}]   ;;  %s5928_s3 = inlined_call_operand.vmem [shape: f32[1,8], index: 3, kind: input, shape index: {}]   ;;  %s5929_s4 = inlined_call_operand.vmem [shape: f32[2,16,16,8], index: 4, kind: output, shape index: {}]  }
   0x1   :  { %s4301_s17 = smov 0  }
   0x2 LB: > { %s26_s18 = sadd.s32 1, %s4264_s16  ;;  %p3629_p0 = scmp.ge.s32.totalorder %s4268_s17, 1  ;;  %s4268_s17 = sphi %s4301_s17, %s14_s17   ;;  %s4264_s16 = sphi %s4299_s16, %s6016_s16   ;;  %s4260_s15 = sphi %s4297_s15, %s6015_s15  }
   0x3   : > { %p28_p1 = scmp.ge.s32.totalorder %s26_s18, 2  ;;  %p202_p2 = scmp.lt.s32.totalorder %s4268_s17, 3 }
   0x5   : > { %s6018_s18 = smov (%p28_p1, %s26_s18), 0  ;;  %p203_p3 = pnand %p3629_p0, %p202_p2 }
   0x7   : > { %206 = sbr.rel (%p203_p3) target bundleno = 620 (0x26c), region = 36 }
   0xe   : > { %p249_p4 = scmp.lt.s32.totalorder %s4260_s15, 1  ;;  %vm284_vm0 = vsmask.f32 256  ;;  %vm315_vm1 = vcmask 57344   ;;  %s4270_s23 = smov 8   ;;  %vm307_vm6 = vcmask 60416  }
   0xf   : > { %v965_v6 = vld [vmem:[#allocation2 + $0x78] sm:$0x1]  ;;  %v894_v10 = vld [vmem:[#allocation2 + $0x6c] sm:$0x1]  ;;  %vm331_vm2 = vsmask.f32 3328  ;;  %vm4359_vm3 = vmand %vm315_vm1, %vm284_vm0 }
  0x10   : > { %s6020_s15 = smov (!%p249_p4, %s4260_s15), 1  ;;  %vm332_vm4 = vsmask.f32 7440  ;;  %v317_v39 = vld [vmem:[#allocation2 + $0xc] sm:$0x1]  ;;  %s4271_s28 = smov 16  }
  0x11   : > { %s3857_s19 = sshll.u32 %s6020_s15, 7  ;;  %s3858_s24 = sshll.u32 %s6020_s15, 4  ;;  %vm4404_vm5 = vmor %vm331_vm2, %vm332_vm4  ;;  %v1036_v46 = vld [vmem:[#allocation2 + $0x84] sm:$0x1]  ;;  %vm285_vm7 = vsmask.f32 4368 }
  0x12   : > { %s4321_s22 = scalar_lea.vmem %s5925_s0, %s3857_s19  ;;  %s4346_s27 = scalar_lea.vmem %s5926_s1, %s3858_s24  ;;  %vm308_vm8 = vsmask.f32 7938  ;;  %vm4853_vm9 = vmor %vm284_vm0, %vm285_vm7  ;;  %vm1830_vm11 = vcmask 1043456   ;;  %vm328_vm12 = vcmask 126016   ;;  %vm358_vm13 = vcmask 191616  }
  0x13   : > { %v4324_v0 = vld [vmem:[%s4321_s22 + $0x44] sm:$0xf]  ;;  %v3649_v1 = vld [vmem:[%s4321_s22 + $0x3c] sm:$0xf]  ;;  %v4332_v5 = vld [vmem:[%s4321_s22 + $0x38] sm:$0xf] }
  0x14   : > { %972 = vrot.lane.b32.xlu1 %v4324_v0, %s4270_s23  ;;  %v950_v2 = vshrl.u32 %v4324_v0, 16  ;;  %901 = vrot.lane.b32.xlu0 %v3649_v1, %s4270_s23  ;;  %v879_v3 = vshrl.u32 %v3649_v1, 16  ;;  %v882_v4 = vshll.u32 %v3649_v1, 16  ;;  %v953_v7 = vshll.u32 %v4324_v0, 16  ;;  %v4336_v8 = vld [vmem:[%s4321_s22 + $0x40] sm:$0xf]  ;;  %vm4870_vm10 = vmand %vm307_vm6, %vm308_vm8 }
  0x15   : > { %v871_v12 = vshrl.u32 %v4332_v5, 16  ;;  %v874_v13 = vshll.u32 %v4332_v5, 16  ;;  %v942_v15 = vshrl.u32 %v4336_v8, 16  ;;  %v945_v16 = vshll.u32 %v4336_v8, 16  ;;  %v4366_v24 = vld [vmem:[%s4346_s27 + $0x4] sm:$0xf]  ;;  %vm5289_vm14 = vmand %vm358_vm13, %vm331_vm2 }
  0x16   : > { %v4339_v9 = vrot.slane %v950_v2, 7  ;;  %v881_v11 = vrot.slane %v879_v3, 7  ;;  %v911_v14 = vrot.slane %v882_v4, 5  ;;  %v913_v20 = vrot.slane %v879_v3, 4  ;;  %v4369_v25 = vld [vmem:[%s4321_s22 + $0x4c] sm:$0xf] }
  0x17   : > { %v982_v22 = vrot.slane %v953_v7, 5  ;;  %v984_v23 = vrot.slane %v950_v2, 4  ;;  %v4377_v28 = vrot.slane %v874_v13, 5  ;;  %v908_v29 = vrot.slane %v871_v12, 4  ;;  %v4418_v54 = vld [vmem:[%s4321_s22 + $0x48] sm:$0xf] }
  0x18   : > { %v957_v17 = vrot.slane %v4339_v9, 4  ;;  %v4351_v18 = vor.u32 %v882_v4, %v881_v11  ;;  %v886_v19 = vrot.slane %v881_v11, 4  ;;  %970 = vrot.lane.b32.xlu1 %v4336_v8, %s4270_s23  ;;  %899 = vrot.lane.b32.xlu0 %v4332_v5, %s4270_s23  ;;  %v4383_v30 = vrot.slane %v945_v16, 5  ;;  %v4426_v59 = vld [vmem:[%s4321_s22 + $0x54] sm:$0xf]  ;;  %s3859_s21 = sshll.u32 %s6020_s15, 8 }
  0x19   : > { %5958 = vst [vmem:[#allocation4_spill] sm:$0xff] %v4377_v28  ;;  %v979_v31 = vrot.slane %v942_v15, 4  ;;  %v296_v32 = vshrl.u32 %v4366_v24, 16  ;;  %v1021_v33 = vshrl.u32 %v4369_v25, 16  ;;  %v1024_v34 = vshll.u32 %v4369_v25, 16 }
  0x1a   : > { %v966_v26 = vsel %vm4359_vm3, %v957_v17, %v965_v6  ;;  %v895_v27 = vsel %vm4359_vm3, %v886_v19, %v894_v10  ;;  %v914_v35 = vor.u32 %v913_v20, %v911_v14  ;;  %v909_v36 = vor.u32 %v908_v29, %v4377_v28  ;;  %v1107_v1 = vld [vmem:[#allocation2 + $0x90] sm:$0x1]  ;;  %v4434_v2 = vld [vmem:[%s4346_s27] sm:$0xf]  ;;  %v4441_v4 = vld [vmem:[%s4321_s22 + $0x4] sm:$0xf] }
  0x1b   : > { %967 = vst [vmem:[#allocation2 + $0x78] sm:$0x1] %v966_v26  ;;  %896 = vst [vmem:[#allocation2 + $0x6c] sm:$0x1] %v895_v27  ;;  %v4395_v37 = vrot.slane %v296_v32, 7  ;;  %v985_v38 = vor.u32 %v984_v23, %v982_v22  ;;  %v4397_v40 = vrot.slane %v1021_v33, 7  ;;  %v980_v50 = vor.u32 %v979_v31, %v4383_v30 }
  0x1c   : > { %324 = vrot.lane.b32.xlu1 %v4366_v24, %s4270_s23  ;;  %1043 = vrot.lane.b32.xlu0 %v4369_v25, %s4270_s23  ;;  %v4401_v41 = vrot.slane %v1024_v34, 5  ;;  %v1055_v42 = vrot.slane %v1021_v33, 4  ;;  %v915_v43 = vrot.slane %v914_v35, 4  ;;  %v910_v47 = vrot.slane %v909_v36, 4  ;;  %v4471_v35 = vld [vmem:[%s4321_s22 + $0xc] sm:$0xf] }
  0x1d   : > { %v303_v45 = vrot.slane %v4395_v37, 4  ;;  %v1028_v48 = vrot.slane %v4397_v40, 4  ;;  %v986_v49 = vrot.slane %v985_v38, 4  ;;  %v299_v55 = vshll.u32 %v4366_v24, 16  ;;  %v4680_v8 = vld [vmem:[%s4321_s22 + $0x74] sm:$0xf] }
  0x1e   : > { %v1056_v51 = vor.u32 %v1055_v42, %v4401_v41  ;;  %v912_v53 = vsel %vm4404_vm5, %v910_v47, %v911_v14  ;;  %v981_v57 = vrot.slane %v980_v50, 4  ;;  %v1013_v58 = vshrl.u32 %v4418_v54, 16  ;;  %v4451_v14 = vld [vmem:[%s4321_s22] sm:$0xf] }
  0x1f   : > { %v318_v52 = vsel %vm4359_vm3, %v303_v45, %v317_v39  ;;  %v1037_v56 = vsel %vm4359_vm3, %v1028_v48, %v1036_v46  ;;  %v1092_v60 = vshrl.u32 %v4426_v59, 16  ;;  %v5943_v63 = vshll.u32 %v4418_v54, 16 }
  0x20   : > { %920 = vrot.lane.b32.xlu1 %v915_v43, %s4271_s28  ;;  %319 = vst [vmem:[#allocation2 + $0xc] sm:$0x1] %v318_v52  ;;  %918 = vrot.lane.b32.xlu0 %v912_v53, %s4271_s28  ;;  %1038 = vst [vmem:[#allocation2 + $0x84] sm:$0x1] %v1037_v56  ;;  %v983_v61 = vsel %vm4404_vm5, %v981_v57, %v982_v22  ;;  %v1057_v62 = vrot.slane %v1056_v51, 4  ;;  %v4445_v6 = vrot.slane %v299_v55, 5 }
  0x21   : > { %v4438_v3 = vrot.slane %v1092_v60, 7  ;;  %v340_v10 = vrot.slane %v296_v32, 4  ;;  %v1050_v11 = vrot.slane %v1013_v58, 4  ;;  %v288_v17 = vshrl.u32 %v4434_v2, 16  ;;  %v397_v32 = vld [vmem:[#allocation2 + $0x18] sm:$0x1] }
  0x22   : > { %v5942_v19 = vshll.u32 %v4434_v2, 16  ;;  %v382_v22 = vshrl.u32 %v4441_v4, 16  ;;  %v1049_v23 = vrot.slane %v5943_v63, 5  ;;  %v5937_v29 = vshrl.u32 %v4451_v14, 16  ;;  %v4169_v43 = vld [vmem:[%s5927_s2] sm:$0xff]  }
  0x23   : > { %v1099_v20 = vrot.slane %v4438_v3, 4  ;;  %v341_v31 = vor.u32 %v340_v10, %v4445_v6  ;;  %v335_v38 = vrot.slane %v288_v17, 4  ;;  %v5932_v42 = vshll.u32 %v4451_v14, 16  ;;  %4094 = vmatprep.subr.bf16.mxu1 %v4169_v43  ;;  %3938 = vmatprep.subr.bf16.mxu0 %v4169_v43  ;;  %v468_v53 = vld [vmem:[#allocation2 + $0x24] sm:$0x1] }
  0x24   : > { %991 = vrot.lane.b32.xlu1 %v986_v49, %s4271_s28  ;;  %989 = vrot.lane.b32.xlu0 %v983_v61, %s4271_s28  ;;  %v4464_v27 = vrot.slane %v382_v22, 7  ;;  %v1051_v33 = vor.u32 %v1050_v11, %v1049_v23  ;;  %v4475_v36 = vrot.slane %v5942_v19, 5  ;;  %v453_v45 = vshrl.u32 %v4471_v35, 16  ;;  %v4503_v56 = vld [vmem:[%s4321_s22 + $0x5c] sm:$0xf] }
  0x25   : > { %v1108_v26 = vsel %vm4359_vm3, %v1099_v20, %v1107_v1  ;;  %v4491_v48 = vrot.slane %v5932_v42, 5  ;;  %v411_v49 = vrot.slane %v5937_v29, 4  ;;  %v342_v50 = vrot.slane %v341_v31, 4  ;;  %4096 = vmatpush3.bf16.msra.mxu1 %v4169_v43  ;;  %3939 = vmatpush3.bf16.msra.mxu0 %v4169_v43  ;;  %v4509_v61 = vld [vmem:[%s4321_s22 + $0x50] sm:$0xf] }
  0x26   : > { %1109 = vst [vmem:[#allocation2 + $0x90] sm:$0x1] %v1108_v26  ;;  %5961 = vst [vmem:[#allocation5_spill] sm:$0xff] %v4475_v36  ;;  %v389_v39 = vrot.slane %v4464_v27, 4  ;;  %v1052_v47 = vrot.slane %v1051_v33, 4  ;;  %v4499_v51 = vrot.slane %v453_v45, 7  ;;  %v336_v52 = vor.u32 %v335_v38, %v4475_v36 }
  0x27   : > { %v5934_v1 = vshll.u32 %v4441_v4, 16  ;;  %v412_v11 = vor.u32 %v411_v49, %v4491_v48  ;;  %v4128_v20 = vpack.i.bf16 %v1049_v23, %v4383_v30  ;;  %v5936_v33 = vshrl.u32 %v4509_v61, 16  ;;  %v1178_v38 = vld [vmem:[#allocation2 + $0x9c] sm:$0x1]  ;;  %v4608_v29 = vld [vmem:[%s4321_s22 + $0x58] sm:$0xf] }
  0x28   : > { %1062 = vrot.lane.b32.xlu1 %v1057_v62, %s4271_s28  ;;  %1041 = vrot.lane.b32.xlu0 %v4418_v54, %s4270_s23  ;;  %v398_v46 = vsel %vm4359_vm3, %v389_v39, %v397_v32  ;;  %v460_v57 = vrot.slane %v4499_v51, 4  ;;  %v1163_v62 = vshrl.u32 %v4503_v56, 16  ;;  %v1054_v10 = vsel %vm4404_vm5, %v1052_v47, %v4401_v41 }
  0x29   : > { %399 = vst [vmem:[#allocation2 + $0x18] sm:$0x1] %v398_v46  ;;  %v337_v32 = vrot.slane %v336_v52, 4  ;;  %v5931_v41 = vshll.u32 %v4509_v61, 16  ;;  %v5935_v39 = vshll.u32 %v4426_v59, 16  ;;  %v414_v23 = vrot.slane %v5934_v1, 5 }
  0x2a   : > { %v469_v26 = vsel %vm4359_vm3, %v460_v57, %v468_v53  ;;  %v4523_v31 = vrot.slane %v1163_v62, 7  ;;  %v413_v43 = vrot.slane %v412_v11, 4  ;;  %v4533_v46 = vld [vmem:[%s4321_s22 + $0x14] sm:$0xf]  ;;  %v1121_v53 = vrot.slane %v5936_v33, 4 }
  0x2b   : > { %470 = vst [vmem:[#allocation2 + $0x24] sm:$0x1] %v469_v26  ;;  %v5930_v49 = vshrl.u32 %v4533_v46, 16  ;;  %v4544_v52 = vrot.slane %v5931_v41, 5  ;;  %v1124_v57 = vrot.slane %v5935_v39, 5  ;;  %v4632_v19 = vrot.slane %v942_v15, 7 }
  0x2c   : > { %322 = vrot.lane.b32.xlu1 %v4434_v2, %s4270_s23  ;;  %1114 = vrot.lane.b32.xlu0 %v4426_v59, %s4270_s23  ;;  %v1170_v30 = vrot.slane %v4523_v31, 4  ;;  %v415_v11 = vsel %vm4404_vm5, %v413_v43, %v414_v23  ;;  %v4562_v26 = vld [vmem:[%s4321_s22 + $0x8] sm:$0xf]  ;;  %v4640_v63 = vrot.slane %v871_v12, 7  ;;  %v610_v15 = vld [vmem:[#allocation2 + $0x3c] sm:$0x1]  ;;  %v4700_v5 = vor.u32 %v1024_v34, %v4397_v40 }
  0x2d   : > { %v4675_v0 = vrot.slane %v288_v17, 7  ;;  %v5946_v17 = vshrl.u32 %v4680_v8, 16  ;;  %v4133_v25 = vpack.i.bf16 %v4544_v52, %v4491_v48  ;;  %v4718_v34 = vld [vmem:[%s4321_s22 + $0x60] sm:$0xf]  ;;  %vm352_vm15 = vcmask 191619  }
  0x2e   : > { %v1179_v47 = vsel %vm4359_vm3, %v1170_v30, %v1178_v38  ;;  %v4566_v38 = vld [vmem:[%s4321_s22 + $0x64] sm:$0xf]  ;;  %v5978_v36 = vrot.slane %v4640_v63, 4  ;;  %vm353_vm0 = vsmask.f32 7950  ;;  %vm1757_vm2 = vcmask 195584  }
  0x2f   : > { %1180 = vst [vmem:[#allocation2 + $0x9c] sm:$0x1] %v1179_v47  ;;  %v5933_v30 = vshrl.u32 %v4566_v38, 16  ;;  %vm5323_vm1 = vmand %vm352_vm15, %vm353_vm0 }
  0x30   : > { %404 = vrot.lane.b32.xlu1 %v4441_v4, %s4270_s23  ;;  %347 = vrot.lane.b32.xlu0 %v342_v50, %s4271_s28  ;;  %v339_v50 = vsel %vm4404_vm5, %v337_v32, %v4445_v6  ;;  %v4556_v6 = vrot.slane %v5930_v49, 7  ;;  %v5939_v49 = vshrl.u32 %v4562_v26, 16 }
  0x31   : > { %v4577_v41 = vrot.slane %v5933_v30, 7 }
  0x32   : > { %v531_v32 = vrot.slane %v4556_v6, 4  ;;  %v482_v1 = vrot.slane %v5939_v49, 4  ;;  %v1166_v49 = vshll.u32 %v4503_v56, 16 }
  0x33   : > { %v1241_v42 = vrot.slane %v4577_v41, 4 }
  0x34   : > { %1060 = vrot.lane.b32.xlu1 %v1054_v10, %s4271_s28  ;;  %4129 = vrot.lane.b32.xlu0 %v4128_v20, %s4271_s28  ;;  %v1126_v10 = vrot.slane %v1092_v60, 4  ;;  %v539_v20 = vld [vmem:[#allocation2 + $0x30] sm:$0x1]  ;;  %v1122_v60 = vor.u32 %v1121_v53, %v4544_v52  ;;  %v416_v53 = vrot.slane %v382_v22, 4  ;;  %v1391_v52 = vld [vmem:[#allocation2 + $0xc0] sm:$0x1] }
  0x35   : > { %v540_v43 = vsel %vm4359_vm3, %v531_v32, %v539_v20  ;;  %v4585_v20 = vld [vmem:[%s4321_s22 + $0x6c] sm:$0xf] }
  0x36   : > { %v1127_v47 = vor.u32 %v1126_v10, %v1124_v57  ;;  %541 = vst [vmem:[#allocation2 + $0x30] sm:$0x1] %v540_v43  ;;  %v5940_v10 = vshll.u32 %v4471_v35, 16  ;;  %v1123_v32 = vrot.slane %v1122_v60, 4  ;;  %v5941_v30 = vshrl.u32 %v4585_v20, 16 }
  0x37   : > { %v417_v33 = vor.u32 %v416_v53, %v414_v23  ;;  %v5945_v53 = vshll.u32 %v4608_v29, 16 }
  0x38   : > { %402 = vrot.lane.b32.xlu1 %v4451_v14, %s4270_s23  ;;  %345 = vrot.lane.b32.xlu0 %v339_v50, %s4271_s28  ;;  %v5938_v50 = vshll.u32 %v4562_v26, 16  ;;  %v1128_v43 = vrot.slane %v1127_v47, 4  ;;  %v4601_v60 = vrot.slane %v5940_v10, 5  ;;  %v487_v47 = vrot.slane %v453_v45, 4  ;;  %v4620_v10 = vld [vmem:[%s4321_s22 + $0x1c] sm:$0xf] }
  0x3a   : > { %v4593_v22 = vrot.slane %v5938_v50, 5  ;;  %v4612_v50 = vrot.slane %v5941_v30, 7  ;;  %v5944_v30 = vshrl.u32 %v4620_v10, 16 }
  0x3c   : > { %421 = vrot.lane.b32.xlu1 %v415_v11, %s4271_s28  ;;  %475 = vrot.lane.b32.xlu0 %v4471_v35, %s4270_s23  ;;  %v1249_v11 = vld [vmem:[#allocation2 + $0xa8] sm:$0x1]  ;;  %v1312_v45 = vrot.slane %v4612_v50, 4  ;;  %v483_v23 = vor.u32 %v482_v1, %v4593_v22  ;;  %v4636_v1 = vrot.slane %v5944_v30, 7 }
  0x3d   : > { %v1250_v39 = vsel %vm4359_vm3, %v1241_v42, %v1249_v11  ;;  %v1125_v42 = vsel %vm4404_vm5, %v1123_v32, %v1124_v57  ;;  %v1320_v11 = vld [vmem:[#allocation2 + $0xb4] sm:$0x1]  ;;  %v418_v57 = vrot.slane %v417_v33, 4  ;;  %v488_v32 = vor.u32 %v487_v47, %v4601_v60 }
  0x3e   : > { %1251 = vst [vmem:[#allocation2 + $0xa8] sm:$0x1] %v1250_v39  ;;  %v1155_v39 = vshrl.u32 %v4608_v29, 16  ;;  %v4644_v33 = vrot.slane %v1166_v49, 5  ;;  %v1197_v47 = vrot.slane %v1163_v62, 4  ;;  %v4665_v62 = vor.u32 %v945_v16, %v4632_v19 }
  0x40   : > { %1185 = vrot.lane.b32.xlu1 %v4503_v56, %s4270_s23  ;;  %1112 = vrot.lane.b32.xlu0 %v4509_v61, %s4270_s23  ;;  %v1192_v12 = vrot.slane %v1155_v39, 4 }
  0x44   : > { %1133 = vrot.lane.b32.xlu1 %v1128_v43, %s4271_s28  ;;  %1131 = vrot.lane.b32.xlu0 %v1125_v42, %s4271_s28  ;;  %v1321_v43 = vsel %vm4359_vm3, %v1312_v45, %v1320_v11  ;;  %v484_v42 = vrot.slane %v483_v23, 4  ;;  %v4652_v11 = vrot.slane %v5945_v53, 5  ;;  %v602_v45 = vrot.slane %v4636_v1, 4 }
  0x45   : > { %1322 = vst [vmem:[#allocation2 + $0xb4] sm:$0x1] %v1321_v43  ;;  %v4660_v43 = vor.u32 %v953_v7, %v4339_v9  ;;  %v489_v23 = vrot.slane %v488_v32, 4  ;;  %v4671_v53 = vrot.slane %v1013_v58, 7  ;;  %v4685_v9 = vor.u32 %v874_v13, %v4640_v63 }
  0x46   : > { %v611_v7 = vsel %vm4359_vm3, %v602_v45, %v610_v15  ;;  %v1198_v58 = vor.u32 %v1197_v47, %v4644_v33  ;;  %v486_v13 = vsel %vm4404_vm5, %v484_v42, %v4601_v60  ;;  %v1193_v32 = vor.u32 %v1192_v12, %v4652_v11  ;;  %v4707_v47 = vld [vmem:[%s4321_s22 + $0x24] sm:$0xf] }
  0x47   : > { %612 = vst [vmem:[#allocation2 + $0x3c] sm:$0x1] %v611_v7  ;;  %v5962_v15 = vshll.u32 %v4418_v54, 16  ;;  %v5947_v40 = vshrl.u32 %v4707_v47, 16  ;;  %v5963_v54 = vshll.u32 %v4434_v2, 16  ;;  %v5964_v12 = vshrl.u32 %v4451_v14, 16 }
  0x48   : > { %473 = vrot.lane.b32.xlu1 %v4562_v26, %s4270_s23  ;;  %423 = vrot.lane.b32.xlu0 %v418_v57, %s4271_s28  ;;  %v4695_v57 = vor.u32 %v299_v55, %v4395_v37  ;;  %v4722_v37 = vrot.slane %v5946_v17, 7  ;;  %v5965_v45 = vshrl.u32 %v4509_v61, 16  ;;  %v1199_v7 = vrot.slane %v1198_v58, 4  ;;  %v681_v58 = vld [vmem:[#allocation2 + $0x48] sm:$0x1] }
  0x49   : > { %v4712_v24 = vor.u32 %v5962_v15, %v4671_v53  ;;  %v4729_v60 = vor.u32 %v5963_v54, %v4675_v0  ;;  %v4734_v48 = vrot.slane %v5964_v12, 7  ;;  %v4742_v15 = vld [vmem:[%s4321_s22 + $0x10] sm:$0xf]  ;;  %v4747_v54 = vrot.slane %v5947_v40, 7 }
  0x4a   : > { %v1383_v2 = vrot.slane %v4722_v37, 4  ;;  %v5966_v12 = vshll.u32 %v4426_v59, 16  ;;  %v1194_v55 = vrot.slane %v1193_v32, 4  ;;  %v5967_v42 = vshll.u32 %v4441_v4, 16  ;;  %v961_v32 = vld [vmem:[#allocation2 + $0x70] sm:$0xf] }
  0x4b   : > { %v5968_v40 = vshll.u32 %v4451_v14, 16 }
  0x4c   : > { %546 = vrot.lane.b32.xlu1 %v4533_v46, %s4270_s23  ;;  %494 = vrot.lane.b32.xlu0 %v489_v23, %s4271_s28  ;;  %v4738_v23 = vrot.slane %v5965_v45, 7  ;;  %v4752_v17 = vor.u32 %v5966_v12, %v4438_v3  ;;  %v1226_v45 = vshrl.u32 %v4718_v34, 16  ;;  %v4759_v16 = vor.u32 %v5967_v42, %v4464_v27  ;;  %v4786_v42 = vld [vmem:[%s4321_s22 + $0x2c] sm:$0xf] }
  0x4d   : > { %v4764_v30 = vor.u32 %v5968_v40, %v4734_v48  ;;  %v1392_v59 = vsel %vm4359_vm3, %v1383_v2, %v1391_v52  ;;  %v673_v3 = vrot.slane %v4747_v54, 4  ;;  %v5969_v12 = vshll.u32 %v4471_v35, 16 }
  0x4e   : > { %v5970_v27 = vshll.u32 %v4509_v61, 16  ;;  %v5971_v40 = vshrl.u32 %v4562_v26, 16  ;;  %1393 = vst [vmem:[#allocation2 + $0xc0] sm:$0x1] %v1392_v59  ;;  %v516_v35 = vshrl.u32 %v4742_v15, 16  ;;  %v5948_v61 = vshrl.u32 %v4786_v42, 16 }
  0x4f   : > { %v4774_v4 = vor.u32 %v5969_v12, %v4499_v51  ;;  %v682_v51 = vsel %vm4359_vm3, %v673_v3, %v681_v58  ;;  %v1196_v2 = vsel %vm4404_vm5, %v1194_v55, %v4644_v33  ;;  %v1263_v12 = vrot.slane %v1226_v45, 4  ;;  %v752_v55 = vld [vmem:[#allocation2 + $0x54] sm:$0x1] }
  0x50   : > { %492 = vrot.lane.b32.xlu1 %v486_v13, %s4271_s28  ;;  %v5949_v13 = vshll.u32 %v4718_v34, 16  ;;  %4134 = vrot.lane.b32.xlu0 %v4133_v25, %s4271_s28  ;;  %v4779_v14 = vor.u32 %v5970_v27, %v4738_v23  ;;  %v4783_v25 = vrot.slane %v5971_v40, 7  ;;  %v5951_v27 = vshll.u32 %v4742_v15, 16  ;;  %683 = vst [vmem:[#allocation2 + $0x48] sm:$0x1] %v682_v51 }
  0x51   : > { %v527_v58 = vshll.u32 %v4533_v46, 16  ;;  %v4810_v3 = vrot.slane %v1155_v39, 7  ;;  %v4816_v33 = vrot.slane %v5948_v61, 7  ;;  %v5972_v40 = vshll.u32 %v4562_v26, 16 }
  0x52   : > { %v4799_v59 = vrot.slane %v5949_v13, 5  ;;  %v1237_v39 = vshll.u32 %v4566_v38, 16  ;;  %v1308_v61 = vshll.u32 %v4585_v20, 16  ;;  %v553_v13 = vrot.slane %v516_v35, 4 }
  0x53   : > { %v4821_v56 = vor.u32 %v5972_v40, %v4783_v25  ;;  %v4830_v52 = vor.u32 %v527_v58, %v4556_v6  ;;  %v744_v26 = vrot.slane %v4816_v33, 4  ;;  %v890_v40 = vld [vmem:[#allocation2 + $0x64] sm:$0xf]  ;;  %v5974_v6 = vshll.u32 %v4608_v29, 16 }
  0x54   : > { %1204 = vrot.lane.b32.xlu1 %v1199_v7, %s4271_s28  ;;  %v4805_v7 = vor.u32 %v1166_v49, %v4523_v31  ;;  %1183 = vrot.lane.b32.xlu0 %v4608_v29, %s4270_s23  ;;  %v5973_v49 = vshrl.u32 %v4533_v46, 16  ;;  %v4837_v31 = vrot.slane %v5951_v27, 5  ;;  %v1264_v46 = vor.u32 %v1263_v12, %v4799_v59 }
  0x55   : > { %v753_v27 = vsel %vm4359_vm3, %v744_v26, %v752_v55  ;;  %v4857_v28 = vrot.slane %v1226_v45, 7  ;;  %v5977_v29 = vrot.slane %v4632_v19, 4  ;;  %v885_v55 = vsel %vm4853_vm9, %v5978_v36, %v4351_v18 }
  0x56   : > { %v4826_v51 = vrot.slane %v5973_v49, 4  ;;  %v4840_v49 = vrot.slane %v527_v58, 5  ;;  %v1266_v58 = vrot.slane %v1237_v39, 5  ;;  %754 = vst [vmem:[#allocation2 + $0x54] sm:$0x1] %v753_v27  ;;  %v5981_v45 = vshrl.u32 %v4566_v38, 16 }
  0x57   : > { %v4878_v19 = vrot.slane %v516_v35, 7  ;;  %893 = vst.msk [vmem:[#allocation2 + $0x68] sm:$0xf] %vm307_vm6, %v885_v55  ;;  %v962_v18 = vsel %vm4870_vm10, %v4665_v62, %v961_v32  ;;  %v891_v63 = vsel %vm4870_vm10, %v4685_v9, %v890_v40  ;;  %v4889_v36 = vor.u32 %v1237_v39, %v4577_v41 }
  0x58   : > { %1202 = vrot.lane.b32.xlu1 %v1196_v2, %s4271_s28  ;;  %v4845_v2 = vor.u32 %v5974_v6, %v4810_v3  ;;  %1256 = vrot.lane.b32.xlu0 %v4566_v38, %s4270_s23  ;;  %v956_v6 = vsel %vm4853_vm9, %v5977_v29, %v4660_v43  ;;  %v1268_v27 = vrot.slane %v5981_v45, 4  ;;  %v4891_v38 = vrot.slane %v1308_v61, 5  ;;  %963 = vst [vmem:[#allocation2 + $0x70] sm:$0xf] %v962_v18 }
  0x59   : > { %964 = vst.msk [vmem:[#allocation2 + $0x74] sm:$0xf] %vm307_vm6, %v956_v6  ;;  %v1265_v43 = vrot.slane %v1264_v46, 4  ;;  %v554_v35 = vor.u32 %v553_v13, %v4837_v31  ;;  %892 = vst [vmem:[#allocation2 + $0x64] sm:$0xf] %v891_v63  ;;  %v5982_v62 = vshrl.u32 %v4585_v20, 16  ;;  %v4916_v6 = vor.u32 %v1308_v61, %v4612_v50 }
  0x5a   : > { %v598_v9 = vshll.u32 %v4620_v10, 16  ;;  %v5983_v41 = vrot.slane %v4675_v0, 4  ;;  %v5984_v13 = vrot.slane %v4671_v53, 4  ;;  %v559_v0 = vor.u32 %v4826_v51, %v4840_v49  ;;  %v4932_v61 = vld [vmem:[%s4321_s22 + $0x18] sm:$0xf] }
  0x5b   : > { %v1339_v32 = vrot.slane %v5982_v62, 4  ;;  %v1269_v50 = vor.u32 %v1268_v27, %v1266_v58  ;;  %v4935_v51 = vld [vmem:[%s4321_s22 + $0x34] sm:$0xf]  ;;  %v1267_v55 = vsel %vm4404_vm5, %v1265_v43, %v1266_v58  ;;  %v555_v45 = vrot.slane %v554_v35, 4  ;;  %v1032_v62 = vld [vmem:[#allocation2 + $0x7c] sm:$0xf] }
  0x5c   : > { %1327 = vrot.lane.b32.xlu1 %v4585_v20, %s4270_s23  ;;  %1254 = vrot.lane.b32.xlu0 %v4718_v34, %s4270_s23  ;;  %v302_v39 = vsel %vm4853_vm9, %v5983_v41, %v4695_v57  ;;  %v1027_v40 = vsel %vm4853_vm9, %v5984_v13, %v4700_v5  ;;  %v5985_v20 = vshll.u32 %v4718_v34, 16  ;;  %v4921_v57 = vld [vmem:[%s4321_s22 + $0x68] sm:$0xf]  ;;  %v4138_v5 = vpack.i.bf16 %v4593_v22, %v4652_v11  ;;  %v4954_v43 = vld [vmem:[%s4321_s22 + $0x20] sm:$0xf] }
  0x5d   : > { %314 = vst.msk [vmem:[#allocation2 + $0x8] sm:$0xf] %vm307_vm6, %v302_v39  ;;  %1035 = vst.msk [vmem:[#allocation2 + $0x80] sm:$0xf] %vm307_vm6, %v1027_v40  ;;  %v1297_v34 = vshrl.u32 %v4921_v57, 16  ;;  %v1300_v18 = vshll.u32 %v4921_v57, 16  ;;  %v1340_v58 = vor.u32 %v1339_v32, %v4891_v38  ;;  %v4957_v35 = vor.u32 %v598_v9, %v4636_v1 }
  0x5e   : > { %v4912_v46 = vor.u32 %v5985_v20, %v4857_v28  ;;  %v5953_v63 = vshrl.u32 %v4935_v51, 16  ;;  %v5986_v41 = vshll.u32 %v4742_v15, 16  ;;  %v4948_v11 = vrot.slane %v598_v9, 5  ;;  %v823_v20 = vld [vmem:[#allocation2 + $0x60] sm:$0x1] }
  0x5f   : > { %v4950_v27 = vrot.slane %v1297_v34, 7  ;;  %v5987_v39 = vshrl.u32 %v4620_v10, 16  ;;  %v560_v40 = vrot.slane %v559_v0, 4  ;;  %v587_v32 = vshrl.u32 %v4932_v61, 16 }
  0x60   : > { %617 = vrot.lane.b32.xlu1 %v4620_v10, %s4270_s23  ;;  %v4944_v22 = vor.u32 %v5986_v41, %v4878_v19  ;;  %544 = vrot.lane.b32.xlu0 %v4742_v15, %s4270_s23  ;;  %v4965_v15 = vrot.slane %v5953_v63, 7  ;;  %v1270_v41 = vrot.slane %v1269_v50, 4  ;;  %v590_v29 = vshll.u32 %v4932_v61, 16  ;;  %v310_v10 = vld [vmem:[#allocation2 + $0x4] sm:$0xf] }
  0x61   : > { %v4961_v13 = vrot.slane %v5987_v39, 4  ;;  %v1033_v1 = vsel %vm4870_vm10, %v4712_v24, %v1032_v62  ;;  %v557_v9 = vsel %vm4404_vm5, %v555_v45, %v4840_v49  ;;  %v4976_v0 = vrot.slane %v1300_v18, 5  ;;  %v4981_v63 = vld [vmem:[%s4321_s22 + $0x70] sm:$0xf]  ;;  %v5027_v24 = vld [vmem:[%s4321_s22 + $0x7c] sm:$0xf] }
  0x62   : > { %v4978_v39 = vrot.slane %v1297_v34, 4  ;;  %v815_v50 = vrot.slane %v4965_v15, 4  ;;  %1034 = vst [vmem:[#allocation2 + $0x7c] sm:$0xf] %v1033_v1  ;;  %v4989_v62 = vrot.slane %v1340_v58, 4  ;;  %v5954_v49 = vshrl.u32 %v4954_v43, 16 }
  0x63   : > { %v4993_v45 = vrot.slane %v587_v32, 7  ;;  %v5003_v58 = vrot.slane %v587_v32, 4  ;;  %v5011_v34 = vld [vmem:[%s4321_s22 + $0x28] sm:$0xf] }
  0x64   : > { %1273 = vrot.lane.b32.xlu1 %v1267_v55, %s4271_s28  ;;  %4139 = vrot.lane.b32.xlu0 %v4138_v5, %s4271_s28  ;;  %v4986_v55 = vor.u32 %v1300_v18, %v4950_v27  ;;  %v824_v53 = vsel %vm4359_vm3, %v815_v50, %v823_v20  ;;  %v311_v5 = vsel %vm4870_vm10, %v4729_v60, %v310_v10  ;;  %v5001_v18 = vrot.slane %v590_v29, 5  ;;  %v393_v20 = vld [vmem:[#allocation2 + $0x10] sm:$0xf] }
  0x65   : > { %v5007_v1 = vrot.slane %v5954_v49, 7  ;;  %825 = vst [vmem:[#allocation2 + $0x60] sm:$0x1] %v824_v53  ;;  %312 = vst [vmem:[#allocation2 + $0x4] sm:$0xf] %v311_v5  ;;  %v5988_v60 = vshll.u32 %v4680_v8, 16  ;;  %v5046_v32 = vor.u32 %v590_v29, %v4993_v45 }
  0x66   : > { %v5989_v50 = vrot.slane %v4738_v23, 4  ;;  %v4170_v53 = vld [vmem:[%s5927_s2 + $0x8] ss:$0 sps:$4 sm:$0xff]   ;;  %v5991_v23 = vrot.slane %v4734_v48, 4  ;;  %v394_v48 = vsel %vm4870_vm10, %v4764_v30, %v393_v20  ;;  %v5993_v29 = vshll.u32 %v4954_v43, 16 }
  0x67   : > { %v5016_v10 = vor.u32 %v5988_v60, %v4722_v37  ;;  %v5955_v60 = vshrl.u32 %v5027_v24, 16  ;;  %395 = vst [vmem:[#allocation2 + $0x10] sm:$0xf] %v394_v48  ;;  %v1174_v30 = vld [vmem:[#allocation2 + $0x94] sm:$0xf]  ;;  %v729_v20 = vshrl.u32 %v5011_v34, 16  ;;  %4099 = vmatprep.subr.msk.bf16.mxu1 %vm1830_vm11, %v4170_v53  ;;  %4098 = vmatprep.subr.msk.bf16.mxu0 %vm1830_vm11, %v4170_v53 }
  0x68   : > { %565 = vrot.lane.b32.xlu1 %v560_v40, %s4271_s28  ;;  %v630_v40 = vor.u32 %v4961_v13, %v4948_v11  ;;  %v1098_v49 = vsel %vm4853_vm9, %v5989_v50, %v4752_v17  ;;  %563 = vrot.lane.b32.xlu0 %v557_v9, %s4271_s28  ;;  %v5990_v13 = vshrl.u32 %v4981_v63, 16  ;;  %v388_v17 = vsel %vm4853_vm9, %v5991_v23, %v4759_v16  ;;  %v1103_v50 = vld [vmem:[#allocation2 + $0x88] sm:$0xf]  ;;  %v464_v23 = vld [vmem:[#allocation2 + $0x1c] sm:$0xf] }
  0x69   : > { %1106 = vst.msk [vmem:[#allocation2 + $0x8c] sm:$0xf] %vm307_vm6, %v1098_v49  ;;  %v593_v9 = vrot.slane %v4993_v45, 4  ;;  %396 = vst.msk [vmem:[#allocation2 + $0x14] sm:$0xf] %vm307_vm6, %v388_v17  ;;  %v625_v16 = vor.u32 %v5003_v58, %v5001_v18  ;;  %v5063_v49 = vor.u32 %v5993_v29, %v5007_v1  ;;  %v664_v45 = vrot.slane %v5007_v1, 4 }
  0x6a   : > { %v5036_v5 = vrot.slane %v5990_v13, 7  ;;  %v5992_v13 = vshll.u32 %v4707_v47, 16  ;;  %v5994_v17 = vrot.slane %v4783_v25, 4  ;;  %v1104_v1 = vsel %vm4870_vm10, %v4779_v14, %v1103_v50  ;;  %v1245_v29 = vld [vmem:[#allocation2 + $0xa0] sm:$0xf] }
  0x6b   : > { %v1832_v25 = vsel %vm1830_vm11, %v4170_v53, 0  ;;  %1105 = vst [vmem:[#allocation2 + $0x88] sm:$0xf] %v1104_v1  ;;  %v535_v50 = vld [vmem:[#allocation2 + $0x28] sm:$0xf]  ;;  %v5998_v53 = vrot.slane %v4950_v27, 4 }
  0x6c   : > { %v671_v37 = vor.u32 %v5992_v13, %v4747_v54  ;;  %1325 = vrot.lane.b32.xlu1 %v4921_v57, %s4270_s23  ;;  %v5068_v54 = vrot.slane %v5955_v60, 7  ;;  %v1462_v57 = vld [vmem:[#allocation2 + $0xcc] sm:$0x1]  ;;  %v459_v13 = vsel %vm4853_vm9, %v5994_v17, %v4774_v4  ;;  %1275 = vrot.lane.b32.xlu0 %v1270_v41, %s4271_s28  ;;  %v1374_v48 = vrot.slane %v5036_v5, 4 }
  0x6d   : > { %467 = vst.msk [vmem:[#allocation2 + $0x20] sm:$0xf] %vm307_vm6, %v459_v13  ;;  %v5995_v4 = vrot.slane %v4810_v3, 4  ;;  %v5092_v41 = vrot.slane %v729_v20, 7  ;;  %4097 = vmatpush3.bf16.msra.mxu1 %v1832_v25  ;;  %v465_v17 = vsel %vm4870_vm10, %v4821_v56, %v464_v23  ;;  %v5996_v13 = vrot.slane %v4878_v19, 4  ;;  %3941 = vmatpush3.bf16.msra.mxu0 %v1832_v25 }
  0x6e   : > { %v1454_v60 = vrot.slane %v5068_v54, 4  ;;  %v1316_v1 = vld [vmem:[#allocation2 + $0xac] sm:$0xf]  ;;  %466 = vst [vmem:[#allocation2 + $0x1c] sm:$0xf] %v465_v17  ;;  %v1246_v19 = vsel %vm4870_vm10, %v4912_v46, %v1245_v29  ;;  %v601_v46 = vsel %vm4853_vm9, %v593_v9, %v4957_v35  ;;  %v672_v35 = vsel %vm4853_vm9, %v664_v45, %v671_v37 }
  0x6f   : > { %v1169_v14 = vsel %vm4853_vm9, %v5995_v4, %v4805_v7  ;;  %v530_v3 = vsel %vm4853_vm9, %v5996_v13, %v4830_v52  ;;  %v1175_v7 = vsel %vm4870_vm10, %v4845_v2, %v1174_v30  ;;  %v606_v4 = vld [vmem:[#allocation2 + $0x34] sm:$0xf]  ;;  %v5997_v52 = vrot.slane %v4857_v28, 4  ;;  %1247 = vst [vmem:[#allocation2 + $0xa0] sm:$0xf] %v1246_v19 }
  0x70   : > { %1177 = vst.msk [vmem:[#allocation2 + $0x98] sm:$0xf] %vm307_vm6, %v1169_v14  ;;  %1398 = vrot.lane.b32.xlu1 %v4680_v8, %s4270_s23  ;;  %v631_v14 = vrot.slane %v630_v40, 4  ;;  %v1463_v56 = vsel %vm4359_vm3, %v1454_v60, %v1462_v57  ;;  %538 = vst.msk [vmem:[#allocation2 + $0x2c] sm:$0xf] %vm307_vm6, %v530_v3  ;;  %v740_v40 = vshll.u32 %v4786_v42, 16  ;;  %v1311_v28 = vsel %vm4853_vm9, %v5998_v53, %v4916_v6 }
  0x71   : > { %1176 = vst [vmem:[#allocation2 + $0x94] sm:$0xf] %v1175_v7  ;;  %v1240_v2 = vsel %vm4853_vm9, %v5997_v52, %v4889_v36  ;;  %1464 = vst [vmem:[#allocation2 + $0xcc] sm:$0x1] %v1463_v56  ;;  %v536_v36 = vsel %vm4870_vm10, %v4944_v22, %v535_v50  ;;  %1346 = vrot.lane.b32.xlu0 %v4989_v62, %s4271_s28  ;;  %v1317_v6 = vsel %vm4870_vm10, %v4986_v55, %v1316_v1  ;;  %v5173_v57 = vld [vmem:[%s4346_s27 + $0xc] sm:$0xf] }
  0x72   : > { %1248 = vst.msk [vmem:[#allocation2 + $0xa4] sm:$0xf] %vm307_vm6, %v1240_v2  ;;  %1319 = vst.msk [vmem:[#allocation2 + $0xb0] sm:$0xf] %vm307_vm6, %v1311_v28  ;;  %v1382_v22 = vsel %vm4853_vm9, %v1374_v48, %v5016_v10  ;;  %v607_v27 = vsel %vm4870_vm10, %v5046_v32, %v606_v4  ;;  %v1335_v62 = vor.u32 %v4978_v39, %v4976_v0  ;;  %v735_v55 = vrot.slane %v5092_v41, 4 }
  0x73   : > { %537 = vst [vmem:[#allocation2 + $0x28] sm:$0xf] %v536_v36  ;;  %609 = vst.msk [vmem:[#allocation2 + $0x38] sm:$0xf] %vm307_vm6, %v601_v46  ;;  %v742_v60 = vor.u32 %v740_v40, %v4816_v33  ;;  %v677_v10 = vld [vmem:[#allocation2 + $0x40] sm:$0xf]  ;;  %v4143_v32 = vpack.i.bf16 %v4837_v31, %v4799_v59 }
  0x74   : > { %1318 = vst [vmem:[#allocation2 + $0xac] sm:$0xf] %v1317_v6  ;;  %1390 = vst.msk [vmem:[#allocation2 + $0xbc] sm:$0xf] %vm307_vm6, %v1382_v22  ;;  %636 = vrot.lane.b32.xlu1 %v631_v14, %s4271_s28  ;;  %v626_v39 = vrot.slane %v625_v16, 4  ;;  %v678_v33 = vsel %vm4870_vm10, %v5063_v49, %v677_v10  ;;  %v5999_v37 = vshll.u32 %v4954_v43, 16 }
  0x75   : > { %608 = vst [vmem:[#allocation2 + $0x34] sm:$0xf] %v607_v27  ;;  %680 = vst.msk [vmem:[#allocation2 + $0x44] sm:$0xf] %vm307_vm6, %v672_v35  ;;  %v6000_v45 = vshrl.u32 %v4954_v43, 16  ;;  %v1371_v30 = vshll.u32 %v4981_v63, 16  ;;  %615 = vrot.lane.b32.xlu0 %v4932_v61, %s4270_s23  ;;  %v743_v31 = vsel %vm4853_vm9, %v735_v55, %v742_v60 }
  0x76   : > { %v5167_v9 = vrot.slane %v5999_v37, 5  ;;  %679 = vst [vmem:[#allocation2 + $0x40] sm:$0xf] %v678_v33  ;;  %v1336_v59 = vrot.slane %v1335_v62, 4  ;;  %v628_v58 = vsel %vm4404_vm5, %v626_v39, %v4948_v11  ;;  %v1518_v16 = vshrl.u32 %v5173_v57, 16  ;;  %v5200_v11 = vld [vmem:[%s5927_s2 + $0xc] sm:$0xff]  }
  0x77   : > { %v695_v23 = vrot.slane %v6000_v45, 4  ;;  %751 = vst.msk [vmem:[#allocation2 + $0x50] sm:$0xf] %vm307_vm6, %v743_v31  ;;  %v1373_v29 = vor.u32 %v1371_v30, %v5036_v5  ;;  %v5187_v48 = vrot.slane %v1371_v30, 5  ;;  %v6001_v61 = vshrl.u32 %v4981_v63, 16  ;;  %3990 = vmatprep.subr.bf16.mxu1 %v5200_v11 }
  0x78   : > { %4144 = vrot.lane.b32.xlu1 %v4143_v32, %s4271_s28  ;;  %v5195_v50 = vrot.slane %v1518_v16, 7  ;;  %v1338_v5 = vsel %vm4404_vm5, %v1336_v59, %v4891_v38  ;;  %v5206_v17 = vld [vmem:[%s4321_s22 + $0x30] sm:$0xf]  ;;  %v1533_v13 = vld [vmem:[#allocation2 + $0xd8] sm:$0x1]  ;;  %v6002_v1 = vshll.u32 %v4707_v47, 16 }
  0x79   : > { %v696_v49 = vor.u32 %v695_v23, %v5167_v9  ;;  %v1405_v25 = vrot.slane %v6001_v61, 4  ;;  %688 = vrot.lane.b32.xlu0 %v4707_v47, %s4270_s23  ;;  %v1387_v3 = vld [vmem:[#allocation2 + $0xb8] sm:$0xf]  ;;  %v732_v38 = vshll.u32 %v5011_v34, 16  ;;  %v800_v2 = vshrl.u32 %v5206_v17, 16 }
  0x7a   : > { %v1525_v7 = vrot.slane %v5195_v50, 4  ;;  %v698_v4 = vrot.slane %v6002_v1, 5  ;;  %v1388_v52 = vsel %vm4870_vm10, %v1373_v29, %v1387_v3  ;;  %v6003_v53 = vshrl.u32 %v4707_v47, 16  ;;  %v748_v39 = vld [vmem:[#allocation2 + $0x4c] sm:$0xf] }
  0x7b   : > { %v697_v14 = vrot.slane %v696_v49, 4  ;;  %v1406_v56 = vor.u32 %v1405_v25, %v5187_v48  ;;  %1389 = vst [vmem:[#allocation2 + $0xb8] sm:$0xf] %v1388_v52  ;;  %v734_v36 = vor.u32 %v732_v38, %v5092_v41  ;;  %v802_v46 = vrot.slane %v800_v2, 7  ;;  %v819_v1 = vld [vmem:[#allocation2 + $0x58] sm:$0xf] }
  0x7c   : > { %634 = vrot.lane.b32.xlu1 %v628_v58, %s4271_s28  ;;  %v1534_v19 = vsel %vm4359_vm3, %v1525_v7, %v1533_v13  ;;  %v700_v28 = vrot.slane %v6003_v53, 4  ;;  %v6004_v6 = vshll.u32 %v4680_v8, 16  ;;  %v6005_v62 = vshrl.u32 %v4680_v8, 16 }
  0x7d   : > { %1344 = vrot.lane.b32.xlu0 %v1338_v5, %s4271_s28  ;;  %1535 = vst [vmem:[#allocation2 + $0xd8] sm:$0x1] %v1534_v19  ;;  %v699_v27 = vsel %vm4404_vm5, %v697_v14, %v698_v4  ;;  %v1407_v35 = vrot.slane %v1406_v56, 4  ;;  %v4148_v47 = vpack.i.bf16 %v4976_v0, %v5001_v18  ;;  %v811_v55 = vshll.u32 %v4935_v51, 16 }
  0x7e   : > { %v1408_v22 = vrot.slane %v6004_v6, 5  ;;  %v1410_v60 = vrot.slane %v6005_v62, 4  ;;  %v5239_v41 = vrot.slane %v740_v40, 5  ;;  %v6006_v10 = vshrl.u32 %v4786_v42, 16 }
  0x7f   : > { %v701_v8 = vor.u32 %v700_v28, %v698_v4  ;;  %v806_v33 = vrot.slane %v802_v46, 4  ;;  %v749_v0 = vsel %vm4870_vm10, %v734_v36, %v748_v39  ;;  %v803_v59 = vshll.u32 %v5206_v17, 16 }
  0x80   : > { %759 = vrot.lane.b32.xlu1 %v4786_v42, %s4270_s23  ;;  %v771_v32 = vrot.slane %v6006_v10, 4  ;;  %v1409_v18 = vsel %vm4404_vm5, %v1407_v35, %v1408_v22  ;;  %750 = vst [vmem:[#allocation2 + $0x4c] sm:$0xf] %v749_v0  ;;  %v1411_v37 = vor.u32 %v1410_v60, %v1408_v22  ;;  %v5270_v29 = vrot.slane %v732_v38, 5  ;;  %v5335_v0 = vld [vmem:[%s4346_s27 + $0x8] sm:$0xf] }
  0x81   : > { %686 = vrot.lane.b32.xlu0 %v4954_v43, %s4270_s23  ;;  %v813_v43 = vor.u32 %v811_v55, %v4965_v15  ;;  %v5257_v15 = vld [vmem:[%s5927_s2 + $0x18] sm:$0xff]   ;;  %v702_v45 = vrot.slane %v701_v8, 4  ;;  %v766_v61 = vrot.slane %v729_v20, 4  ;;  %v805_v25 = vor.u32 %v803_v59, %v802_v46 }
  0x82   : > { %v772_v23 = vor.u32 %v771_v32, %v5239_v41  ;;  %4042 = vmatprep.subr.bf16.mxu0 %v5257_v15  ;;  %v1412_v49 = vrot.slane %v1411_v37, 4  ;;  %v5275_v13 = vrot.slane %v803_v59, 5  ;;  %v5282_v20 = vld [vmem:[%s4321_s22 + $0x78] sm:$0xf]  ;;  %v4153_v52 = vpack.i.bf16 %v5187_v48, %v5167_v9 }
  0x83   : > { %v814_v30 = vsel %vm4853_vm9, %v806_v33, %v813_v43  ;;  %v767_v4 = vor.u32 %v766_v61, %v5270_v29  ;;  %v820_v14 = vsel %vm4870_vm10, %v805_v25, %v819_v1  ;;  %v1439_v38 = vshrl.u32 %v5282_v20, 16 }
  0x84   : > { %705 = vrot.lane.b32.xlu1 %v699_v27, %s4271_s28  ;;  %822 = vst.msk [vmem:[#allocation2 + $0x5c] sm:$0xf] %vm307_vm6, %v814_v30  ;;  %v773_v5 = vrot.slane %v772_v23, 4  ;;  %821 = vst [vmem:[#allocation2 + $0x58] sm:$0xf] %v820_v14  ;;  %v1442_v28 = vshll.u32 %v5282_v20, 16 }
  0x85   : > { %4149 = vrot.lane.b32.xlu0 %v4148_v47, %s4271_s28  ;;  %v768_v46 = vrot.slane %v767_v4, 4  ;;  %v5302_v6 = vrot.slane %v1439_v38, 7  ;;  %v6009_v22 = vshrl.u32 %v4935_v51, 16  ;;  %v1450_v8 = vshll.u32 %v5027_v24, 16 }
  0x86   : > { %v973_v42 = vpop.permute.xlu1 %972  ;;  %v902_v40 = vpop.permute.xlu0 %901  ;;  %v5312_v60 = vrot.slane %v1442_v28, 5  ;;  %v1476_v37 = vrot.slane %v1439_v38, 4 }
  0x87   : > { %977 = vst.msk [vmem:[#allocation2 + $0x74] sm:$0xf] %vm328_vm12, %v973_v42  ;;  %906 = vst.msk [vmem:[#allocation2 + $0x68] sm:$0xf] %vm328_vm12, %v902_v40  ;;  %v842_v27 = vrot.slane %v6009_v22, 4  ;;  %v1444_v10 = vor.u32 %v1442_v28, %v5302_v6  ;;  %v1452_v25 = vor.u32 %v1450_v8, %v5068_v54  ;;  %v1445_v14 = vrot.slane %v5302_v6, 4 }
  0x88   : > { %1415 = vrot.lane.b32.xlu1 %v1409_v18, %s4271_s28  ;;  %v4158_v33 = vpack.i.bf16 %v5270_v29, %v5312_v60  ;;  %v1458_v18 = vld [vmem:[#allocation2 + $0xc4] sm:$0xf]  ;;  %v1477_v4 = vor.u32 %v1476_v37, %v5312_v60  ;;  %v1521_v60 = vshll.u32 %v5173_v57, 16 }
  0x89   : > { %1396 = vrot.lane.b32.xlu0 %v4981_v63, %s4270_s23  ;;  %v837_v63 = vrot.slane %v800_v2, 4 }
  0x8a   : > { %v971_v31 = vpop.permute.xlu1 %970  ;;  %v900_v58 = vpop.permute.xlu0 %899 }
  0x8b   : > { %976 = vst.msk [vmem:[#allocation2 + $0x70] sm:$0xf] %vm328_vm12, %v971_v31  ;;  %905 = vst.msk [vmem:[#allocation2 + $0x64] sm:$0xf] %vm328_vm12, %v900_v58  ;;  %v838_v2 = vor.u32 %v837_v63, %v5275_v13  ;;  %v6012_v31 = vld [vmem:[#allocation4_spill] sm:$0xff]  ;;  %v1513_v63 = vshll.u32 %v5335_v0, 16 }
  0x8c   : > { %707 = vrot.lane.b32.xlu1 %v702_v45, %s4271_s28  ;;  %v1459_v45 = vsel %vm4870_vm10, %v1444_v10, %v1458_v18  ;;  %v4163_v58 = vpack.i.bf16 %v6012_v31, %v5275_v13  ;;  %v996_v10 = vld [vmem:[#allocation2 + $0x6c] sm:$0x8] }
  0x8d   : > { %1417 = vrot.lane.b32.xlu0 %v1412_v49, %s4271_s28  ;;  %v839_v48 = vrot.slane %v838_v2, 4  ;;  %v6013_v49 = vshrl.u32 %v5027_v24, 16  ;;  %1460 = vst [vmem:[#allocation2 + $0xc4] sm:$0xf] %v1459_v45  ;;  %v1546_v28 = vrot.slane %v1513_v63, 5 }
  0x8e   : > { %v325_v3 = vpop.permute.xlu1 %324  ;;  %v1044_v7 = vpop.permute.xlu0 %1043  ;;  %v929_v53 = vld [vmem:[#allocation2 + $0x68] sm:$0xf]  ;;  %v1000_v35 = vld [vmem:[#allocation2 + $0x74] sm:$0xf] }
  0x8f   : > { %330 = vst.msk [vmem:[#allocation2 + $0x8] sm:$0xf] %vm328_vm12, %v325_v3  ;;  %1048 = vst.msk [vmem:[#allocation2 + $0x80] sm:$0xf] %vm328_vm12, %v1044_v7  ;;  %v1481_v29 = vrot.slane %v6013_v49, 4  ;;  %v1479_v7 = vrot.slane %v1450_v8, 5 }
  0x90   : > { %778 = vrot.lane.b32.xlu1 %v773_v5, %s4271_s28  ;;  %v1510_v5 = vshrl.u32 %v5335_v0, 16  ;;  %v4189_v49 = vld [vmem:[%s5927_s2 + $0x14] ss:$0 sps:$4 sm:$0xff]  }
  0x91   : > { %757 = vrot.lane.b32.xlu0 %v5011_v34, %s4270_s23  ;;  %v840_v34 = vrot.slane %v811_v55, 5  ;;  %v770_v55 = vsel %vm4404_vm5, %v768_v46, %v5239_v41  ;;  %v1482_v2 = vor.u32 %v1481_v29, %v1479_v7 }
  0x92   : > { %v921_v19 = vpop.permute.xlu1 %920  ;;  %v919_v9 = vpop.permute.xlu0 %918 }
  0x93   : > { %v930_v36 = vsel %vm5289_vm14, %v921_v19, %v929_v53  ;;  %928 = vst.msk [vmem:[#allocation2 + $0x64] sm:$0xf] %vm358_vm13, %v919_v9  ;;  %v841_v39 = vsel %vm4404_vm5, %v839_v48, %v840_v34  ;;  %v1547_v53 = vrot.slane %v1510_v5, 4 }
  0x94   : > { %931 = vst [vmem:[#allocation2 + $0x68] sm:$0xf] %v930_v36  ;;  %4154 = vrot.lane.b32.xlu1 %v4153_v52, %s4271_s28  ;;  %v1453_v36 = vsel %vm4853_vm9, %v1445_v14, %v1452_v25 }
  0x95   : > { %830 = vrot.lane.b32.xlu0 %v4935_v51, %s4270_s23  ;;  %1461 = vst.msk [vmem:[#allocation2 + $0xc8] sm:$0xf] %vm307_vm6, %v1453_v36 }
  0x96   : > { %v992_v62 = vpop.permute.xlu1 %991  ;;  %v990_v32 = vpop.permute.xlu0 %989  ;;  %v1071_v43 = vld [vmem:[#allocation2 + $0x80] sm:$0xf]  ;;  %v362_v9 = vld [vmem:[#allocation2 + $0x8] sm:$0xf] }
  0x97   : > { %v1001_v47 = vsel %vm5289_vm14, %v992_v62, %v1000_v35  ;;  %999 = vst.msk [vmem:[#allocation2 + $0x70] sm:$0xf] %vm358_vm13, %v990_v32  ;;  %v1067_v32 = vld [vmem:[#allocation2 + $0x78] sm:$0x8] }
  0x98   : > { %1002 = vst [vmem:[#allocation2 + $0x74] sm:$0xf] %v1001_v47  ;;  %828 = vrot.lane.b32.xlu1 %v5206_v17, %s4270_s23  ;;  %v843_v17 = vor.u32 %v842_v27, %v840_v34  ;;  %v1478_v34 = vrot.slane %v1477_v4, 4  ;;  %v1483_v27 = vrot.slane %v1482_v2, 4  ;;  %v1548_v47 = vor.u32 %v1547_v53, %v1546_v28 }
  0x99   : > { %776 = vrot.lane.b32.xlu0 %v770_v55, %s4271_s28  ;;  %v2410_v2 = vsel %vm1830_vm11, %v4189_v49, 0 }
  0x9a   : > { %v1063_v41 = vpop.permute.xlu1 %1062  ;;  %v932_v30 = vld [vmem:[#allocation2 + $0x64] sm:$0x1]  ;;  %v1042_v59 = vpop.permute.xlu0 %1041  ;;  %v844_v3 = vrot.slane %v843_v17, 4 }
  0x9b   : > { %v935_v42 = vld [vmem:[#allocation2 + $0x68] sm:$0x8]  ;;  %v1072_v40 = vsel %vm5289_vm14, %v1063_v41, %v1071_v43  ;;  %v933_v61 = vsel %vm4359_vm3, 0, %v932_v30  ;;  %1047 = vst.msk [vmem:[#allocation2 + $0x7c] sm:$0xf] %vm328_vm12, %v1042_v59  ;;  %v1550_v43 = vrot.slane %v1521_v60, 5 }
  0x9c   : > { %v936_v23 = vsel %vm5323_vm1, 0, %v935_v42  ;;  %1073 = vst [vmem:[#allocation2 + $0x80] sm:$0xf] %v1072_v40  ;;  %847 = vrot.lane.b32.xlu1 %v841_v39, %s4271_s28  ;;  %934 = vst [vmem:[#allocation2 + $0x64] sm:$0x1] %v933_v61  ;;  %v1552_v42 = vrot.slane %v1518_v16, 4 }
  0x9d   : > { %937 = vst [vmem:[#allocation2 + $0x68] sm:$0x8] %v936_v23  ;;  %4159 = vrot.lane.b32.xlu0 %v4158_v33, %s4271_s28  ;;  %v1549_v33 = vrot.slane %v1548_v47, 4 }
  0x9e   : > { %v323_v13 = vpop.permute.xlu1 %322  ;;  %v1003_v52 = vld [vmem:[#allocation2 + $0x70] sm:$0x1]  ;;  %v1115_v38 = vpop.permute.xlu0 %1114  ;;  %v1553_v31 = vor.u32 %v1552_v42, %v1550_v43 }
  0x9f   : > { %v1006_v1 = vld [vmem:[#allocation2 + $0x74] sm:$0x8]  ;;  %329 = vst.msk [vmem:[#allocation2 + $0x4] sm:$0xf] %vm328_vm12, %v323_v13  ;;  %v1004_v19 = vsel %vm4359_vm3, 0, %v1003_v52  ;;  %v1551_v45 = vsel %vm4404_vm5, %v1549_v33, %v1550_v43 }
  0xa0   : > { %v1007_v54 = vsel %vm5323_vm1, 0, %v1006_v1  ;;  %4164 = vrot.lane.b32.xlu1 %v4163_v58, %s4271_s28  ;;  %1119 = vst.msk [vmem:[#allocation2 + $0x8c] sm:$0xf] %vm328_vm12, %v1115_v38  ;;  %1005 = vst [vmem:[#allocation2 + $0x70] sm:$0x1] %v1004_v19  ;;  %v1554_v61 = vrot.slane %v1553_v31, 4 }
  0xa1   : > { %1008 = vst [vmem:[#allocation2 + $0x74] sm:$0x8] %v1007_v54  ;;  %849 = vrot.lane.b32.xlu0 %v844_v3, %s4271_s28 }
  0xa2   : > { %v405_v46 = vpop.permute.xlu1 %404  ;;  %v348_v22 = vpop.permute.xlu0 %347 }
  0xa3   : > { %v1077_v6 = vld [vmem:[#allocation2 + $0x80] sm:$0x8]  ;;  %409 = vst.msk [vmem:[#allocation2 + $0x14] sm:$0xf] %vm328_vm12, %v405_v46  ;;  %v363_v35 = vsel %vm5289_vm14, %v348_v22, %v362_v9 }
  0xa4   : > { %v1078_v48 = vsel %vm5323_vm1, 0, %v1077_v6  ;;  %1467 = vrot.lane.b32.xlu1 %v5282_v20, %s4270_s23  ;;  %v4168_v62 = vld [vmem:[#allocation2 + $0x64] sm:$0xff]   ;;  %364 = vst [vmem:[#allocation2 + $0x8] sm:$0xf] %v363_v35  ;;  %v1480_v20 = vsel %vm4404_vm5, %v1478_v34, %v1479_v7 }
  0xa5   : > { %1079 = vst [vmem:[#allocation2 + $0x80] sm:$0x8] %v1078_v48  ;;  %1469 = vrot.lane.b32.xlu0 %v5027_v24, %s4270_s23  ;;  %3966 = vmatprep.mubr.msk.bf16.mxu1 %vm1757_vm2, %v4168_v62  ;;  %v6014_v7 = vld [vmem:[#allocation5_spill] sm:$0xff] }
  0xa6   : > { %v1061_v55 = vpop.permute.xlu1 %1060  ;;  %v4130_v39 = vpop.permute.xlu0 %4129 }
  0xa7   : > { %1070 = vst.msk [vmem:[#allocation2 + $0x7c] sm:$0xf] %vm358_vm13, %v1061_v55  ;;  %v4132_v8 = vunpack.i.h.bf16 %v4130_v39  ;;  %v4131_v41 = vunpack.i.l.bf16 %v4130_v39  ;;  %v1142_v4 = vld [vmem:[#allocation2 + $0x8c] sm:$0xf] }
  0xa8   : > { %1488 = vrot.lane.b32.xlu1 %v1483_v27, %s4271_s28 }
  0xa9   : > { %1486 = vrot.lane.b32.xlu0 %v1480_v20, %s4271_s28  ;;  %v1068_v17 = vsel %vm5323_vm1, %v4132_v8, %v1067_v32  ;;  %v997_v18 = vsel %vm5323_vm1, %v4131_v41, %v996_v10  ;;  %v428_v10 = vld [vmem:[#allocation2 + $0xc] sm:$0x8]  ;;  %v1138_v20 = vld [vmem:[#allocation2 + $0x84] sm:$0x8] }
  0xaa   : > { %v403_v24 = vpop.permute.xlu1 %402  ;;  %1069 = vst [vmem:[#allocation2 + $0x78] sm:$0x8] %v1068_v17  ;;  %998 = vst [vmem:[#allocation2 + $0x6c] sm:$0x8] %v997_v18  ;;  %v346_v40 = vpop.permute.xlu0 %345  ;;  %v432_v36 = vld [vmem:[#allocation2 + $0x14] sm:$0xf] }
  0xab   : > { %408 = vst.msk [vmem:[#allocation2 + $0x10] sm:$0xf] %vm328_vm12, %v403_v24  ;;  %v368_v37 = vld [vmem:[#allocation2 + $0x8] sm:$0x8] }
  0xac   : > { %1538 = vrot.lane.b32.xlu1 %v5335_v0, %s4270_s23  ;;  %359 = vst.msk [vmem:[#allocation2 + $0x4] sm:$0xf] %vm358_vm13, %v346_v40  ;;  %v369_v23 = vsel %vm5323_vm1, 0, %v368_v37 }
  0xad   : > { %1540 = vrot.lane.b32.xlu0 %v5173_v57, %s4270_s23  ;;  %370 = vst [vmem:[#allocation2 + $0x8] sm:$0x8] %v369_v23  ;;  %s5741_s23 = scalar_lea.vmem %s5929_s4, %s3859_s21 }
  0xae   : > { %v1074_v30 = vld [vmem:[#allocation2 + $0x7c] sm:$0x1]  ;;  %v422_v59 = vpop.permute.xlu1 %421  ;;  %v476_v58 = vpop.permute.xlu0 %475 }
  0xaf   : > { %v1075_v16 = vsel %vm4359_vm3, 0, %v1074_v30  ;;  %431 = vst.msk [vmem:[#allocation2 + $0x10] sm:$0xf] %vm358_vm13, %v422_v59 }
  0xb0   : > { %1076 = vst [vmem:[#allocation2 + $0x7c] sm:$0x1] %v1075_v16  ;;  %1557 = vrot.lane.b32.xlu1 %v1551_v45, %s4271_s28  ;;  %480 = vst.msk [vmem:[#allocation2 + $0x20] sm:$0xf] %vm328_vm12, %v476_v58  ;;  %v4192_v58 = vld [vmem:[%s5927_s2 + $0x20] ss:$0 sps:$4 sm:$0xff]  }
  0xb1   : > { %1555 = vrot.lane.b32.xlu0 %v1546_v28, %s4271_s28  ;;  %v4171_v29 = vld [vmem:[#allocation2 + $0x6c] sm:$0xff]   ;;  %v4172_v3 = vld [vmem:[#allocation2 + $0x74] sm:$0xff]  }
  0xb2   : > { %v1186_v44 = vpop.permute.xlu1 %1185  ;;  %v1113_v13 = vpop.permute.xlu0 %1112  ;;  %3967 = vmatmul.mubr.msk.bf16.vlgmr.msra.gmra.mrb[0].mxu1 %vm1757_vm2, %v4171_v29 }
  0xb3   : > { %1190 = vst.msk [vmem:[#allocation2 + $0x98] sm:$0xf] %vm328_vm12, %v1186_v44  ;;  %v365_v25 = vld [vmem:[#allocation2 + $0x4] sm:$0x1]  ;;  %1118 = vst.msk [vmem:[#allocation2 + $0x88] sm:$0xf] %vm328_vm12, %v1113_v13  ;;  %3970 = vmatprep.mubr.msk.bf16.mxu1 %vm1757_vm2, %v4172_v3  ;;  %3991 = vmatpush3.bf16.msra.mxu1 %v5200_v11 }
  0xb4   : > { %343 = vrot.lane.b32.xlu1 %v6014_v7, %s4271_s28  ;;  %v366_v1 = vsel %vm4359_vm3, 0, %v365_v25  ;;  %4100 = vmatprep.subr.msk.bf16.mxu1 %vm1830_vm11, %v4189_v49 }
  0xb5   : > { %367 = vst [vmem:[#allocation2 + $0x4] sm:$0x1] %v366_v1  ;;  %1559 = vrot.lane.b32.xlu0 %v1554_v61, %s4271_s28  ;;  %v3035_v1 = vsel %vm1830_vm11, %v4192_v58, 0 }
  0xb6   : > { %v435_v14 = vld [vmem:[#allocation2 + $0x10] sm:$0x1]  ;;  %v1134_v54 = vpop.permute.xlu1 %1133  ;;  %v1132_v19 = vpop.permute.xlu0 %1131 }
  0xb7   : > { %v436_v52 = vsel %vm4359_vm3, 0, %v435_v14  ;;  %v1143_v38 = vsel %vm5289_vm14, %v1134_v54, %v1142_v4  ;;  %1141 = vst.msk [vmem:[#allocation2 + $0x88] sm:$0xf] %vm358_vm13, %v1132_v19  ;;  %3993 = vmatpush3.bf16.msra.mxu1 %v2410_v2  ;;  %v4173_v11 = vld [vmem:[#allocation2 + $0x7c] sm:$0xff]   ;;  %v499_v54 = vld [vmem:[#allocation2 + $0x18] sm:$0x8] }
  0xb8   : > { %437 = vst [vmem:[#allocation2 + $0x10] sm:$0x1] %v436_v52  ;;  %1144 = vst [vmem:[#allocation2 + $0x8c] sm:$0xf] %v1143_v38  ;;  %v503_v27 = vld [vmem:[#allocation2 + $0x20] sm:$0xf] }
  0xb9   : > { %v1209_v52 = vld [vmem:[#allocation2 + $0x90] sm:$0x8]  ;;  %v1512_v19 = vrot.slane %v1510_v5, 7  ;;  %v1523_v5 = vor.u32 %v1521_v60, %v5195_v50 }
  0xba   : > { %v474_v53 = vpop.permute.xlu1 %473  ;;  %v424_v28 = vpop.permute.xlu0 %423  ;;  %3971 = vmatmul.mubr.msk.bf16.gmra.mrb[4].mxu1 %vm1757_vm2, %v4173_v11  ;;  %v1213_v33 = vld [vmem:[#allocation2 + $0x98] sm:$0xf]  ;;  %v1529_v50 = vld [vmem:[#allocation2 + $0xd0] sm:$0xf] }
  0xbb   : > { %479 = vst.msk [vmem:[#allocation2 + $0x1c] sm:$0xf] %vm328_vm12, %v474_v53  ;;  %v433_v46 = vsel %vm5289_vm14, %v424_v28, %v432_v36 }
  0xbc   : > { %v4174_v6 = vld [vmem:[#allocation2 + $0x4] sm:$0xff]   ;;  %434 = vst [vmem:[#allocation2 + $0x14] sm:$0xf] %v433_v46 }
  0xbd   : > { %3942 = vmatprep.mubr.msk.bf16.mxu0 %vm1757_vm2, %v4174_v6 }
  0xbe   : > { %v547_v9 = vpop.permute.xlu1 %546  ;;  %v1145_v48 = vld [vmem:[#allocation2 + $0x88] sm:$0x1]  ;;  %v495_v35 = vpop.permute.xlu0 %494 }
  0xbf   : > { %v1148_v34 = vld [vmem:[#allocation2 + $0x8c] sm:$0x8]  ;;  %551 = vst.msk [vmem:[#allocation2 + $0x2c] sm:$0xf] %vm328_vm12, %v547_v9  ;;  %v1146_v62 = vsel %vm4359_vm3, 0, %v1145_v48  ;;  %v504_v47 = vsel %vm5289_vm14, %v495_v35, %v503_v27  ;;  %v1516_v9 = vrot.slane %v1512_v19, 4 }
  0xc0   : > { %v1149_v22 = vsel %vm5323_vm1, 0, %v1148_v34  ;;  %1147 = vst [vmem:[#allocation2 + $0x88] sm:$0x1] %v1146_v62  ;;  %505 = vst [vmem:[#allocation2 + $0x20] sm:$0xf] %v504_v47 }
  0xc1   : > { %1150 = vst [vmem:[#allocation2 + $0x8c] sm:$0x8] %v1149_v22  ;;  %v1515_v22 = vor.u32 %v1513_v63, %v1512_v19  ;;  %v1524_v57 = vsel %vm4853_vm9, %v1516_v9, %v1523_v5 }
  0xc2   : > { %v493_v55 = vpop.permute.xlu1 %492  ;;  %v4135_v32 = vpop.permute.xlu0 %4134  ;;  %1532 = vst.msk [vmem:[#allocation2 + $0xd4] sm:$0xf] %vm307_vm6, %v1524_v57 }
  0xc3   : > { %502 = vst.msk [vmem:[#allocation2 + $0x1c] sm:$0xf] %vm358_vm13, %v493_v55  ;;  %v438_v39 = vld [vmem:[#allocation2 + $0x14] sm:$0x8]  ;;  %v4137_v8 = vunpack.i.h.bf16 %v4135_v32  ;;  %v4136_v41 = vunpack.i.l.bf16 %v4135_v32  ;;  %v1530_v63 = vsel %vm4870_vm10, %v1515_v22, %v1529_v50 }
  0xc4   : > { %v439_v43 = vsel %vm5323_vm1, 0, %v438_v39  ;;  %1531 = vst [vmem:[#allocation2 + $0xd0] sm:$0xf] %v1530_v63 }
  0xc5   : > { %440 = vst [vmem:[#allocation2 + $0x14] sm:$0x8] %v439_v43  ;;  %v1139_v17 = vsel %vm5323_vm1, %v4137_v8, %v1138_v20  ;;  %v429_v18 = vsel %vm5323_vm1, %v4136_v41, %v428_v10 }
  0xc6   : > { %v1205_v24 = vpop.permute.xlu1 %1204  ;;  %1140 = vst [vmem:[#allocation2 + $0x84] sm:$0x8] %v1139_v17  ;;  %430 = vst [vmem:[#allocation2 + $0xc] sm:$0x8] %v429_v18  ;;  %v1184_v40 = vpop.permute.xlu0 %1183  ;;  %v574_v53 = vld [vmem:[#allocation2 + $0x2c] sm:$0xf] }
  0xc7   : > { %v1214_v42 = vsel %vm5289_vm14, %v1205_v24, %v1213_v33  ;;  %v509_v37 = vld [vmem:[#allocation2 + $0x20] sm:$0x8]  ;;  %1189 = vst.msk [vmem:[#allocation2 + $0x94] sm:$0xf] %vm328_vm12, %v1184_v40 }
  0xc8   : > { %1215 = vst [vmem:[#allocation2 + $0x98] sm:$0xf] %v1214_v42  ;;  %v510_v45 = vsel %vm5323_vm1, 0, %v509_v37  ;;  %v570_v37 = vld [vmem:[#allocation2 + $0x24] sm:$0x8] }
  0xc9   : > { %511 = vst [vmem:[#allocation2 + $0x20] sm:$0x8] %v510_v45  ;;  %v1280_v45 = vld [vmem:[#allocation2 + $0x9c] sm:$0x8] }
  0xca   : > { %v506_v23 = vld [vmem:[#allocation2 + $0x1c] sm:$0x1]  ;;  %v1203_v30 = vpop.permute.xlu1 %1202  ;;  %v1257_v16 = vpop.permute.xlu0 %1256 }
  0xcb   : > { %v507_v59 = vsel %vm4359_vm3, 0, %v506_v23  ;;  %1212 = vst.msk [vmem:[#allocation2 + $0x94] sm:$0xf] %vm358_vm13, %v1203_v30 }
  0xcc   : > { %508 = vst [vmem:[#allocation2 + $0x1c] sm:$0x1] %v507_v59  ;;  %1261 = vst.msk [vmem:[#allocation2 + $0xa4] sm:$0xf] %vm328_vm12, %v1257_v16 }
  0xcd   : > { %v4175_v49 = vld [vmem:[#allocation2 + $0xc] sm:$0xff]   ;;  %v4176_v25 = vld [vmem:[#allocation2 + $0x84] sm:$0xff]  }
  0xce   : > { %v1328_v31 = vpop.permute.xlu1 %1327  ;;  %v1255_v61 = vpop.permute.xlu0 %1254  ;;  %3943 = vmatmul.mubr.msk.bf16.vlgmr.msra.gmra.mrb[0].mxu0 %vm1757_vm2, %v4175_v49  ;;  %3974 = vmatprep.mubr.msk.bf16.mxu1 %vm1757_vm2, %v4176_v25 }
  0xcf   : > { %v1219_v44 = vld [vmem:[#allocation2 + $0x98] sm:$0x8]  ;;  %1332 = vst.msk [vmem:[#allocation2 + $0xb0] sm:$0xf] %vm328_vm12, %v1328_v31  ;;  %1260 = vst.msk [vmem:[#allocation2 + $0xa0] sm:$0xf] %vm328_vm12, %v1255_v61  ;;  %4043 = vmatpush3.bf16.msra.mxu0 %v5257_v15 }
  0xd0   : > { %v1220_v29 = vsel %vm5323_vm1, 0, %v1219_v44  ;;  %4101 = vmatprep.subr.msk.bf16.mxu0 %vm1830_vm11, %v4192_v58 }
  0xd1   : > { %1221 = vst [vmem:[#allocation2 + $0x98] sm:$0x8] %v1220_v29 }
  0xd2   : > { %v1216_v13 = vld [vmem:[#allocation2 + $0x94] sm:$0x1]  ;;  %v618_v3 = vpop.permute.xlu1 %617  ;;  %v545_v4 = vpop.permute.xlu0 %544 }
  0xd3   : > { %v1217_v7 = vsel %vm4359_vm3, 0, %v1216_v13  ;;  %622 = vst.msk [vmem:[#allocation2 + $0x38] sm:$0xf] %vm328_vm12, %v618_v3  ;;  %550 = vst.msk [vmem:[#allocation2 + $0x28] sm:$0xf] %vm328_vm12, %v545_v4  ;;  %4045 = vmatpush3.bf16.msra.mxu0 %v3035_v1  ;;  %v4179_v0 = vld [vmem:[#allocation2 + $0x1c] sm:$0xff]  }
  0xd4   : > { %1218 = vst [vmem:[#allocation2 + $0x94] sm:$0x1] %v1217_v7  ;;  %v1284_v35 = vld [vmem:[#allocation2 + $0xa4] sm:$0xf] }
  0xd6   : > { %v1274_v14 = vpop.permute.xlu1 %1273  ;;  %v4140_v15 = vpop.permute.xlu0 %4139  ;;  %v1355_v60 = vld [vmem:[#allocation2 + $0xb0] sm:$0xf] }
  0xd7   : > { %1283 = vst.msk [vmem:[#allocation2 + $0xa0] sm:$0xf] %vm358_vm13, %v1274_v14  ;;  %v4142_v38 = vunpack.i.h.bf16 %v4140_v15  ;;  %v4141_v2 = vunpack.i.l.bf16 %v4140_v15  ;;  %v641_v14 = vld [vmem:[#allocation2 + $0x30] sm:$0x8] }
  0xd9   : > { %v500_v28 = vsel %vm5323_vm1, %v4142_v38, %v499_v54  ;;  %v1210_v36 = vsel %vm5323_vm1, %v4141_v2, %v1209_v52  ;;  %v1351_v2 = vld [vmem:[#allocation2 + $0xa8] sm:$0x8] }
  0xda   : > { %v566_v11 = vpop.permute.xlu1 %565  ;;  %501 = vst [vmem:[#allocation2 + $0x18] sm:$0x8] %v500_v28  ;;  %1211 = vst [vmem:[#allocation2 + $0x90] sm:$0x8] %v1210_v36  ;;  %v564_v6 = vpop.permute.xlu0 %563  ;;  %v645_v33 = vld [vmem:[#allocation2 + $0x38] sm:$0xf] }
  0xdb   : > { %v575_v46 = vsel %vm5289_vm14, %v566_v11, %v574_v53  ;;  %573 = vst.msk [vmem:[#allocation2 + $0x28] sm:$0xf] %vm358_vm13, %v564_v6  ;;  %v4180_v26 = vld [vmem:[#allocation2 + $0x94] sm:$0xff]  }
  0xdc   : > { %576 = vst [vmem:[#allocation2 + $0x2c] sm:$0xf] %v575_v46 }
  0xde   : > { %v1287_v34 = vld [vmem:[#allocation2 + $0xa0] sm:$0x1]  ;;  %v1326_v48 = vpop.permute.xlu1 %1325  ;;  %v1276_v62 = vpop.permute.xlu0 %1275 }
  0xdf   : > { %v1288_v27 = vsel %vm4359_vm3, 0, %v1287_v34  ;;  %1331 = vst.msk [vmem:[#allocation2 + $0xac] sm:$0xf] %vm328_vm12, %v1326_v48  ;;  %v1285_v47 = vsel %vm5289_vm14, %v1276_v62, %v1284_v35 }
  0xe0   : > { %1289 = vst [vmem:[#allocation2 + $0xa0] sm:$0x1] %v1288_v27  ;;  %1286 = vst [vmem:[#allocation2 + $0xa4] sm:$0xf] %v1285_v47 }
  0xe1   : > { %v4177_v20 = vld [vmem:[#allocation2 + $0x14] sm:$0xff]   ;;  %v4178_v8 = vld [vmem:[#allocation2 + $0x8c] sm:$0xff]  }
  0xe2   : > { %v1399_v55 = vpop.permute.xlu1 %1398  ;;  %v577_v32 = vld [vmem:[#allocation2 + $0x28] sm:$0x1]  ;;  %3946 = vmatprep.mubr.msk.bf16.mxu0 %vm1757_vm2, %v4177_v20  ;;  %3975 = vmatmul.mubr.msk.bf16.gmra.mrb[8].mxu1 %vm1757_vm2, %v4178_v8  ;;  %v712_v20 = vld [vmem:[#allocation2 + $0x3c] sm:$0x8] }
  0xe3   : > { %v580_v10 = vld [vmem:[#allocation2 + $0x2c] sm:$0x8]  ;;  %1403 = vst.msk [vmem:[#allocation2 + $0xbc] sm:$0xf] %vm328_vm12, %v1399_v55  ;;  %v1347_v39 = vpop.permute.xlu0 %1346  ;;  %v578_v41 = vsel %vm4359_vm3, 0, %v577_v32  ;;  %3947 = vmatmul.mubr.msk.bf16.gmra.mrb[4].mxu0 %vm1757_vm2, %v4179_v0  ;;  %3978 = vmatprep.mubr.msk.bf16.mxu1 %vm1757_vm2, %v4180_v26 }
  0xe4   : > { %v581_v12 = vsel %vm5323_vm1, 0, %v580_v10  ;;  %v1356_v43 = vsel %vm5289_vm14, %v1347_v39, %v1355_v60  ;;  %579 = vst [vmem:[#allocation2 + $0x28] sm:$0x1] %v578_v41  ;;  %v1422_v32 = vld [vmem:[#allocation2 + $0xb4] sm:$0x8] }
  0xe5   : > { %582 = vst [vmem:[#allocation2 + $0x2c] sm:$0x8] %v581_v12  ;;  %1357 = vst [vmem:[#allocation2 + $0xb0] sm:$0xf] %v1356_v43 }
  0xe6   : > { %v637_v24 = vpop.permute.xlu1 %636 }
  0xe7   : > { %v646_v17 = vsel %vm5289_vm14, %v637_v24, %v645_v33  ;;  %v616_v18 = vpop.permute.xlu0 %615  ;;  %v1290_v42 = vld [vmem:[#allocation2 + $0xa4] sm:$0x8] }
  0xe8   : > { %647 = vst [vmem:[#allocation2 + $0x38] sm:$0xf] %v646_v17  ;;  %621 = vst.msk [vmem:[#allocation2 + $0x34] sm:$0xf] %vm328_vm12, %v616_v18  ;;  %v1291_v40 = vsel %vm5323_vm1, 0, %v1290_v42 }
  0xe9   : > { %1292 = vst [vmem:[#allocation2 + $0xa4] sm:$0x8] %v1291_v40 }
  0xea   : > { %v4145_v23 = vpop.permute.xlu1 %4144  ;;  %v1426_v62 = vld [vmem:[#allocation2 + $0xbc] sm:$0xf] }
  0xeb   : > { %v4147_v30 = vunpack.i.h.bf16 %v4145_v23  ;;  %v4146_v59 = vunpack.i.l.bf16 %v4145_v23  ;;  %v689_v16 = vpop.permute.xlu0 %688 }
  0xec   : > { %v1361_v31 = vld [vmem:[#allocation2 + $0xb0] sm:$0x8]  ;;  %693 = vst.msk [vmem:[#allocation2 + $0x44] sm:$0xf] %vm328_vm12, %v689_v16 }
  0xed   : > { %v571_v58 = vsel %vm5323_vm1, %v4147_v30, %v570_v37  ;;  %v1281_v44 = vsel %vm5323_vm1, %v4146_v59, %v1280_v45  ;;  %v1362_v49 = vsel %vm5323_vm1, 0, %v1361_v31  ;;  %v783_v31 = vld [vmem:[#allocation2 + $0x48] sm:$0x8] }
  0xee   : > { %572 = vst [vmem:[#allocation2 + $0x24] sm:$0x8] %v571_v58  ;;  %1282 = vst [vmem:[#allocation2 + $0x9c] sm:$0x8] %v1281_v44  ;;  %v635_v29 = vpop.permute.xlu1 %634  ;;  %v1493_v58 = vld [vmem:[#allocation2 + $0xc0] sm:$0x8] }
  0xef   : > { %1363 = vst [vmem:[#allocation2 + $0xb0] sm:$0x8] %v1362_v49  ;;  %v651_v61 = vld [vmem:[#allocation2 + $0x38] sm:$0x8]  ;;  %644 = vst.msk [vmem:[#allocation2 + $0x34] sm:$0xf] %vm358_vm13, %v635_v29  ;;  %v1345_v13 = vpop.permute.xlu0 %1344 }
  0xf0   : > { %v652_v25 = vsel %vm5323_vm1, 0, %v651_v61  ;;  %1354 = vst.msk [vmem:[#allocation2 + $0xac] sm:$0xf] %vm358_vm13, %v1345_v13  ;;  %v854_v49 = vld [vmem:[#allocation2 + $0x54] sm:$0x8] }
  0xf1   : > { %653 = vst [vmem:[#allocation2 + $0x38] sm:$0x8] %v652_v25  ;;  %v925_v29 = vld [vmem:[#allocation2 + $0x60] sm:$0x8] }
  0xf2   : > { %v760_v3 = vpop.permute.xlu1 %759 }
  0xf3   : > { %764 = vst.msk [vmem:[#allocation2 + $0x50] sm:$0xf] %vm328_vm12, %v760_v3  ;;  %v687_v7 = vpop.permute.xlu0 %686  ;;  %v716_v34 = vld [vmem:[#allocation2 + $0x44] sm:$0xf] }
  0xf4   : > { %692 = vst.msk [vmem:[#allocation2 + $0x40] sm:$0xf] %vm328_vm12, %v687_v7 }
  0xf5   : > { %v4182_v1 = vld [vmem:[#allocation2 + $0x24] sm:$0xff]   ;;  %v4183_v52 = vld [vmem:[#allocation2 + $0x9c] sm:$0xff]  }
  0xf6   : > { %v648_v4 = vld [vmem:[#allocation2 + $0x34] sm:$0x1]  ;;  %v706_v54 = vpop.permute.xlu1 %705  ;;  %3950 = vmatprep.mubr.msk.bf16.mxu0 %vm1757_vm2, %v4182_v1  ;;  %3979 = vmatmul.mubr.msk.bf16.gmra.mrb[12].mxu1 %vm1757_vm2, %v4183_v52 }
  0xf7   : > { %v649_v15 = vsel %vm4359_vm3, 0, %v648_v4  ;;  %715 = vst.msk [vmem:[#allocation2 + $0x40] sm:$0xf] %vm358_vm13, %v706_v54  ;;  %v1358_v38 = vld [vmem:[#allocation2 + $0xac] sm:$0x1]  ;;  %v4150_v19 = vpop.permute.xlu0 %4149 }
  0xf8   : > { %650 = vst [vmem:[#allocation2 + $0x34] sm:$0x1] %v649_v15  ;;  %v1359_v53 = vsel %vm4359_vm3, 0, %v1358_v38  ;;  %v4152_v11 = vunpack.i.h.bf16 %v4150_v19  ;;  %v4151_v28 = vunpack.i.l.bf16 %v4150_v19 }
  0xf9   : > { %1360 = vst [vmem:[#allocation2 + $0xac] sm:$0x1] %v1359_v53 }
  0xfa   : > { %v1416_v36 = vpop.permute.xlu1 %1415  ;;  %v1352_v46 = vsel %vm5323_vm1, %v4152_v11, %v1351_v2  ;;  %v642_v6 = vsel %vm5323_vm1, %v4151_v28, %v641_v14  ;;  %v787_v57 = vld [vmem:[#allocation2 + $0x50] sm:$0xf] }
  0xfb   : > { %1353 = vst [vmem:[#allocation2 + $0xa8] sm:$0x8] %v1352_v46  ;;  %643 = vst [vmem:[#allocation2 + $0x30] sm:$0x8] %v642_v6  ;;  %v1397_v5 = vpop.permute.xlu0 %1396 }
  0xfc   : > { %1402 = vst.msk [vmem:[#allocation2 + $0xb8] sm:$0xf] %vm328_vm12, %v1397_v5 }
  0xfd   : > { %1425 = vst.msk [vmem:[#allocation2 + $0xb8] sm:$0xf] %vm358_vm13, %v1416_v36 }
  0xfe   : > { %v719_v9 = vld [vmem:[#allocation2 + $0x40] sm:$0x1]  ;;  %v708_v48 = vpop.permute.xlu1 %707 }
  0xff   : > { %v720_v22 = vsel %vm4359_vm3, 0, %v719_v9  ;;  %v717_v27 = vsel %vm5289_vm14, %v708_v48, %v716_v34  ;;  %v1418_v35 = vpop.permute.xlu0 %1417  ;;  %v4187_v10 = vld [vmem:[#allocation2 + $0x34] sm:$0xff]  }
 0x100   : > { %721 = vst [vmem:[#allocation2 + $0x40] sm:$0x1] %v720_v22  ;;  %718 = vst [vmem:[#allocation2 + $0x44] sm:$0xf] %v717_v27  ;;  %v1427_v47 = vsel %vm5289_vm14, %v1418_v35, %v1426_v62  ;;  %v4188_v39 = vld [vmem:[#allocation2 + $0xac] sm:$0xff]  }
 0x101   : > { %1428 = vst [vmem:[#allocation2 + $0xbc] sm:$0xf] %v1427_v47  ;;  %v4195_v34 = vld [vmem:[#allocation2 + $0x10] sm:$0xff]  }
 0x102   : > { %v779_v50 = vpop.permute.xlu1 %778  ;;  %v4185_v55 = vld [vmem:[#allocation2 + $0x2c] sm:$0xff]   ;;  %v4186_v63 = vld [vmem:[#allocation2 + $0xa4] sm:$0xff]  }
 0x103   : > { %v788_v60 = vsel %vm5289_vm14, %v779_v50, %v787_v57  ;;  %v758_v0 = vpop.permute.xlu0 %757  ;;  %3951 = vmatmul.mubr.msk.bf16.gmra.mrb[8].mxu0 %vm1757_vm2, %v4185_v55  ;;  %3982 = vmatprep.mubr.msk.bf16.mxu1 %vm1757_vm2, %v4186_v63 }
 0x104   : > { %789 = vst [vmem:[#allocation2 + $0x50] sm:$0xf] %v788_v60  ;;  %v1429_v12 = vld [vmem:[#allocation2 + $0xb8] sm:$0x1]  ;;  %763 = vst.msk [vmem:[#allocation2 + $0x4c] sm:$0xf] %vm328_vm12, %v758_v0  ;;  %3954 = vmatprep.mubr.msk.bf16.mxu0 %vm1757_vm2, %v4187_v10  ;;  %3983 = vmatmul.mubr.msk.bf16.gmra.mrb[16].mxu1 %vm1757_vm2, %v4188_v39 }
 0x105   : > { %v1430_v8 = vsel %vm4359_vm3, 0, %v1429_v12  ;;  %v1564_v60 = vld [vmem:[#allocation2 + $0xcc] sm:$0x8]  ;;  %v4198_v0 = vld [vmem:[#allocation2 + $0x18] sm:$0xff]   ;;  %v4199_v12 = vld [vmem:[#allocation2 + $0x20] sm:$0xff]  }
 0x106   : > { %v4155_v41 = vpop.permute.xlu1 %4154  ;;  %1431 = vst [vmem:[#allocation2 + $0xb8] sm:$0x1] %v1430_v8 }
 0x107   : > { %v722_v43 = vld [vmem:[#allocation2 + $0x44] sm:$0x8]  ;;  %v4157_v26 = vunpack.i.h.bf16 %v4155_v41  ;;  %v4156_v33 = vunpack.i.l.bf16 %v4155_v41  ;;  %v831_v17 = vpop.permute.xlu0 %830 }
 0x108   : > { %v723_v24 = vsel %vm5323_vm1, 0, %v722_v43  ;;  %v1432_v18 = vld [vmem:[#allocation2 + $0xbc] sm:$0x8]  ;;  %835 = vst.msk [vmem:[#allocation2 + $0x5c] sm:$0xf] %vm328_vm12, %v831_v17 }
 0x109   : > { %724 = vst [vmem:[#allocation2 + $0x44] sm:$0x8] %v723_v24  ;;  %v1423_v42 = vsel %vm5323_vm1, %v4157_v26, %v1422_v32  ;;  %v713_v40 = vsel %vm5323_vm1, %v4156_v33, %v712_v20  ;;  %v1433_v37 = vsel %vm5323_vm1, 0, %v1432_v18  ;;  %v4201_v43 = vld [vmem:[#allocation2 + $0x1c] sm:$0xff]  }
 0x10a   : > { %1424 = vst [vmem:[#allocation2 + $0xb4] sm:$0x8] %v1423_v42  ;;  %714 = vst [vmem:[#allocation2 + $0x3c] sm:$0x8] %v713_v40  ;;  %v829_v45 = vpop.permute.xlu1 %828  ;;  %v4202_v42 = vld [vmem:[#allocation2 + $0x28] sm:$0xff]   ;;  %v4203_v40 = vld [vmem:[#allocation2 + $0x30] sm:$0xff]  }
 0x10b   : > { %1434 = vst [vmem:[#allocation2 + $0xbc] sm:$0x8] %v1433_v37  ;;  %v793_v23 = vld [vmem:[#allocation2 + $0x50] sm:$0x8]  ;;  %834 = vst.msk [vmem:[#allocation2 + $0x58] sm:$0xf] %vm328_vm12, %v829_v45  ;;  %v777_v59 = vpop.permute.xlu0 %776 }
 0x10c   : > { %v794_v30 = vsel %vm5323_vm1, 0, %v793_v23  ;;  %786 = vst.msk [vmem:[#allocation2 + $0x4c] sm:$0xf] %vm358_vm13, %v777_v59  ;;  %v4204_v45 = vld [vmem:[#allocation2 + $0x24] sm:$0xff]  }
 0x10d   : > { %795 = vst [vmem:[#allocation2 + $0x50] sm:$0x8] %v794_v30  ;;  %v4205_v30 = vld [vmem:[#allocation2 + $0x2c] sm:$0xff]  }
 0x10e   : > { %v848_v16 = vpop.permute.xlu1 %847 }
 0x10f   : > { %857 = vst.msk [vmem:[#allocation2 + $0x58] sm:$0xf] %vm358_vm13, %v848_v16  ;;  %v4160_v44 = vpop.permute.xlu0 %4159  ;;  %v858_v15 = vld [vmem:[#allocation2 + $0x5c] sm:$0xf] }
 0x110   : > { %v4162_v61 = vunpack.i.h.bf16 %v4160_v44  ;;  %v4161_v25 = vunpack.i.l.bf16 %v4160_v44  ;;  %v4207_v16 = vld [vmem:[#allocation2 + $0x40] sm:$0xff]  }
 0x111   : > { %v4190_v13 = vld [vmem:[#allocation2 + $0x3c] sm:$0xff]   ;;  %v4191_v7 = vld [vmem:[#allocation2 + $0xb4] sm:$0xff]  }
 0x112   : > { %v4165_v3 = vpop.permute.xlu1 %4164  ;;  %v784_v1 = vsel %vm5323_vm1, %v4162_v61, %v783_v31  ;;  %v1494_v4 = vsel %vm5323_vm1, %v4161_v25, %v1493_v58  ;;  %3955 = vmatmul.mubr.msk.bf16.gmra.mrb[12].mxu0 %vm1757_vm2, %v4190_v13  ;;  %3986 = vmatprep.mubr.msk.bf16.mxu1 %vm1757_vm2, %v4191_v7  ;;  %v4206_v59 = vld [vmem:[#allocation2 + $0x38] sm:$0xff]  }
 0x113   : > { %v4167_v14 = vunpack.i.h.bf16 %v4165_v3  ;;  %v4166_v54 = vunpack.i.l.bf16 %v4165_v3  ;;  %v790_v52 = vld [vmem:[#allocation2 + $0x4c] sm:$0x1]  ;;  %785 = vst [vmem:[#allocation2 + $0x48] sm:$0x8] %v784_v1  ;;  %1495 = vst [vmem:[#allocation2 + $0xc0] sm:$0x8] %v1494_v4  ;;  %v850_v38 = vpop.permute.xlu0 %849 }
 0x114   : > { %v791_v2 = vsel %vm4359_vm3, 0, %v790_v52  ;;  %v859_v19 = vsel %vm5289_vm14, %v850_v38, %v858_v15  ;;  %v4208_v31 = vld [vmem:[#allocation2 + $0x34] sm:$0xff]   ;;  %v4209_v58 = vld [vmem:[#allocation2 + $0x3c] sm:$0xff]   ;;  %v4218_v1 = vld [vmem:[#allocation2 + $0x68] sm:$0xff]  }
 0x115   : > { %v926_v53 = vsel %vm5323_vm1, %v4167_v14, %v925_v29  ;;  %v855_v11 = vsel %vm5323_vm1, %v4166_v54, %v854_v49  ;;  %792 = vst [vmem:[#allocation2 + $0x4c] sm:$0x1] %v791_v2  ;;  %860 = vst [vmem:[#allocation2 + $0x5c] sm:$0xf] %v859_v19  ;;  %v4219_v4 = vld [vmem:[#allocation2 + $0x70] sm:$0xff]   ;;  %v4220_v14 = vld [vmem:[#allocation2 + $0x64] sm:$0xff]  }
 0x116   : > { %v861_v28 = vld [vmem:[#allocation2 + $0x58] sm:$0x1]  ;;  %927 = vst [vmem:[#allocation2 + $0x60] sm:$0x8] %v926_v53  ;;  %856 = vst [vmem:[#allocation2 + $0x54] sm:$0x8] %v855_v11  ;;  %v1468_v36 = vpop.permute.xlu1 %1467 }
 0x117   : > { %v862_v46 = vsel %vm4359_vm3, 0, %v861_v28  ;;  %1473 = vst.msk [vmem:[#allocation2 + $0xc4] sm:$0xf] %vm328_vm12, %v1468_v36  ;;  %v1470_v6 = vpop.permute.xlu0 %1469  ;;  %v4221_v54 = vld [vmem:[#allocation2 + $0x6c] sm:$0xff]   ;;  %v4222_v52 = vld [vmem:[#allocation2 + $0x78] sm:$0xff]   ;;  %v4223_v15 = vld [vmem:[#allocation2 + $0x80] sm:$0xff]  }
 0x118   : > { %863 = vst [vmem:[#allocation2 + $0x58] sm:$0x1] %v862_v46  ;;  %1474 = vst.msk [vmem:[#allocation2 + $0xc8] sm:$0xf] %vm328_vm12, %v1470_v6  ;;  %v4224_v38 = vld [vmem:[#allocation2 + $0x74] sm:$0xff]   ;;  %v4225_v2 = vld [vmem:[#allocation2 + $0x7c] sm:$0xff]  }
 0x119   : > { %v4226_v19 = vld [vmem:[#allocation2 + $0x88] sm:$0xff]   ;;  %v4227_v53 = vld [vmem:[#allocation2 + $0x90] sm:$0xff]   ;;  %v4230_v36 = vld [vmem:[#allocation2 + $0x98] sm:$0xff]  }
 0x11a   : > { %v1489_v5 = vpop.permute.xlu1 %1488  ;;  %v4193_v9 = vld [vmem:[#allocation2 + $0x44] sm:$0xff]   ;;  %v4194_v22 = vld [vmem:[#allocation2 + $0xbc] sm:$0xff]   ;;  %v4229_v28 = vld [vmem:[#allocation2 + $0x8c] sm:$0xff]  }
 0x11b   : > { %v1487_v48 = vpop.permute.xlu0 %1486  ;;  %3958 = vmatprep.mubr.msk.bf16.mxu0 %vm1757_vm2, %v4193_v9  ;;  %3987 = vmatmul.mubr.msk.bf16.gmra.mrb[20].mxu1 %vm1757_vm2, %v4194_v22  ;;  %v4212_v29 = vld [vmem:[#allocation2 + $0x44] sm:$0xff]   ;;  %v4232_v6 = vld [vmem:[#allocation2 + $0x94] sm:$0xff]   ;;  %v4237_v22 = vld [vmem:[#allocation2 + $0xac] sm:$0xff]  }
 0x11c   : > { %v864_v27 = vld [vmem:[#allocation2 + $0x5c] sm:$0x8]  ;;  %1496 = vst.msk [vmem:[#allocation2 + $0xc4] sm:$0xf] %vm358_vm13, %v1487_v48  ;;  %v4196_v35 = vld [vmem:[#allocation2 + $0x4c] sm:$0xff]   ;;  %3994 = vmatprep.mubr.msk.bf16.mxu1 %vm1757_vm2, %v4195_v34  ;;  %v4228_v11 = vld [vmem:[#allocation2 + $0x84] sm:$0xff]  }
 0x11d   : > { %v865_v62 = vsel %vm5323_vm1, 0, %v864_v27  ;;  %3959 = vmatmul.mubr.msk.bf16.gmra.mrb[16].mxu0 %vm1757_vm2, %v4196_v35  ;;  %v4210_v44 = vld [vmem:[#allocation2 + $0x48] sm:$0xff]   ;;  %v4211_v49 = vld [vmem:[#allocation2 + $0x50] sm:$0xff]   ;;  %v4215_v13 = vld [vmem:[#allocation2 + $0x60] sm:$0xff]  }
 0x11e   : > { %v1539_v47 = vpop.permute.xlu1 %1538  ;;  %866 = vst [vmem:[#allocation2 + $0x5c] sm:$0x8] %v865_v62  ;;  %v4213_v61 = vld [vmem:[#allocation2 + $0x4c] sm:$0xff]   ;;  %v4231_v46 = vld [vmem:[#allocation2 + $0xa0] sm:$0xff]   ;;  %v4238_v27 = vld [vmem:[#allocation2 + $0xb8] sm:$0xff]  }
 0x11f   : > { %v4197_v57 = vld [vmem:[#allocation2 + $0x54] sm:$0xff]   ;;  %1544 = vst.msk [vmem:[#allocation2 + $0xd0] sm:$0xf] %vm328_vm12, %v1539_v47  ;;  %v1541_v50 = vpop.permute.xlu0 %1540  ;;  %v1497_v10 = vld [vmem:[#allocation2 + $0xc8] sm:$0xf]  ;;  %v4241_v47 = vld [vmem:[#allocation2 + $0xbc] sm:$0xff]  }
 0x120   : > { %3962 = vmatprep.mubr.msk.bf16.mxu0 %vm1757_vm2, %v4197_v57  ;;  %1545 = vst.msk [vmem:[#allocation2 + $0xd4] sm:$0xf] %vm328_vm12, %v1541_v50  ;;  %v1498_v39 = vsel %vm5289_vm14, %v1489_v5, %v1497_v10  ;;  %v4216_v3 = vld [vmem:[#allocation2 + $0x54] sm:$0xff]   ;;  %v4233_v5 = vld [vmem:[#allocation2 + $0x9c] sm:$0xff]   ;;  %v4234_v9 = vld [vmem:[#allocation2 + $0xa8] sm:$0xff]  }
 0x121   : > { %1499 = vst [vmem:[#allocation2 + $0xc8] sm:$0xf] %v1498_v39  ;;  %v4235_v34 = vld [vmem:[#allocation2 + $0xb0] sm:$0xff]   ;;  %v4236_v48 = vld [vmem:[#allocation2 + $0xa4] sm:$0xff]  }
 0x122   : > { %v1558_v55 = vpop.permute.xlu1 %1557  ;;  %v4240_v62 = vld [vmem:[#allocation2 + $0xb4] sm:$0xff]  }
 0x123   : > { %1567 = vst.msk [vmem:[#allocation2 + $0xd0] sm:$0xf] %vm358_vm13, %v1558_v55  ;;  %v1500_v63 = vld [vmem:[#allocation2 + $0xc4] sm:$0x1]  ;;  %v1556_v20 = vpop.permute.xlu0 %1555  ;;  %3995 = vmatmul.mubr.msk.bf16.vlgmr.msra.gmra.mrb[24].mxu1 %vm1757_vm2, %v4198_v0 }
 0x124   : > { %v1501_v32 = vsel %vm4359_vm3, 0, %v1500_v63  ;;  %v1565_v8 = vsel %vm5323_vm1, %v1556_v20, %v1564_v60  ;;  %3998 = vmatprep.mubr.msk.bf16.mxu1 %vm1757_vm2, %v4199_v12 }
 0x125   : > { %1502 = vst [vmem:[#allocation2 + $0xc4] sm:$0x1] %v1501_v32  ;;  %v4200_v41 = vld [vmem:[#allocation2 + $0x5c] sm:$0xff]   ;;  %1566 = vst [vmem:[#allocation2 + $0xcc] sm:$0x8] %v1565_v8 }
 0x126   : > { %3963 = vmatmul.mubr.msk.bf16.gmra.mrb[20].mxu0 %vm1757_vm2, %v4200_v41  ;;  %v4214_v25 = vld [vmem:[#allocation2 + $0x58] sm:$0xff]  }
 0x127   : > { %v1568_v26 = vld [vmem:[#allocation2 + $0xd4] sm:$0xf]  ;;  %4046 = vmatprep.mubr.msk.bf16.mxu0 %vm1757_vm2, %v4201_v43  ;;  %v1560_v33 = vpop.permute.xlu0 %1559  ;;  %v4217_v7 = vld [vmem:[#allocation2 + $0x5c] sm:$0xff]  }
 0x128   : > { %v1569_v17 = vsel %vm5289_vm14, %v1560_v33, %v1568_v26  ;;  %v1503_v37 = vld [vmem:[#allocation2 + $0xc8] sm:$0x8] }
 0x129   : > { %1570 = vst [vmem:[#allocation2 + $0xd4] sm:$0xf] %v1569_v17  ;;  %v1504_v23 = vsel %vm5323_vm1, 0, %v1503_v37 }
 0x12a   : > { %v1571_v24 = vld [vmem:[#allocation2 + $0xd0] sm:$0x1]  ;;  %1505 = vst [vmem:[#allocation2 + $0xc8] sm:$0x8] %v1504_v23 }
 0x12b   : > { %v1572_v18 = vsel %vm4359_vm3, 0, %v1571_v24  ;;  %3999 = vmatmul.mubr.msk.bf16.gmra.mrb[28].mxu1 %vm1757_vm2, %v4202_v42  ;;  %vm2059_vm3 = vcmask 64512  }
 0x12c   : > { %1573 = vst [vmem:[#allocation2 + $0xd0] sm:$0x1] %v1572_v18  ;;  %4002 = vmatprep.mubr.msk.bf16.mxu1 %vm1757_vm2, %v4203_v40  ;;  %v4239_v35 = vld [vmem:[#allocation2 + $0xc0] sm:$0xff]  }
 0x12e   : > { %4047 = vmatmul.mubr.msk.bf16.vlgmr.msra.gmra.mrb[24].mxu0 %vm1757_vm2, %v4204_v45 }
 0x12f   : > { %4050 = vmatprep.mubr.msk.bf16.mxu0 %vm1757_vm2, %v4205_v30 }
 0x130   : > { %v1574_v21 = vld [vmem:[#allocation2 + $0xd4] sm:$0x8] }
 0x131   : > { %v1575_v56 = vsel %vm5323_vm1, 0, %v1574_v21  ;;  %v4242_v57 = vld [vmem:[#allocation2 + $0xc8] sm:$0xff]  }
 0x132   : > { %1576 = vst [vmem:[#allocation2 + $0xd4] sm:$0x8] %v1575_v56  ;;  %v4243_v50 = vld [vmem:[#allocation2 + $0xc4] sm:$0xff]  }
 0x133   : > { %4003 = vmatmul.mubr.msk.bf16.gmra.mrb[32].mxu1 %vm1757_vm2, %v4206_v59  ;;  %v4244_v60 = vld [vmem:[#allocation2 + $0xcc] sm:$0xff]  }
 0x134   : > { %4006 = vmatprep.mubr.msk.bf16.mxu1 %vm1757_vm2, %v4207_v16 }
 0x136   : > { %4051 = vmatmul.mubr.msk.bf16.gmra.mrb[28].mxu0 %vm1757_vm2, %v4208_v31 }
 0x137   : > { %4054 = vmatprep.mubr.msk.bf16.mxu0 %vm1757_vm2, %v4209_v58 }
 0x139   : > { %v4245_v55 = vld [vmem:[#allocation2 + $0xd4] sm:$0xff]  }
 0x13b   : > { %4007 = vmatmul.mubr.msk.bf16.gmra.mrb[36].mxu1 %vm1757_vm2, %v4210_v44 }
 0x13c   : > { %4010 = vmatprep.mubr.msk.bf16.mxu1 %vm1757_vm2, %v4211_v49 }
 0x13e   : > { %4055 = vmatmul.mubr.msk.bf16.gmra.mrb[32].mxu0 %vm1757_vm2, %v4212_v29 }
 0x13f   : > { %4058 = vmatprep.mubr.msk.bf16.mxu0 %vm1757_vm2, %v4213_v61 }
 0x143   : > { %4011 = vmatmul.mubr.msk.bf16.gmra.mrb[40].mxu1 %vm1757_vm2, %v4214_v25 }
 0x144   : > { %4014 = vmatprep.mubr.msk.bf16.mxu1 %vm1757_vm2, %v4215_v13 }
 0x146   : > { %4059 = vmatmul.mubr.msk.bf16.gmra.mrb[36].mxu0 %vm1757_vm2, %v4216_v3 }
 0x147   : > { %4062 = vmatprep.mubr.msk.bf16.mxu0 %vm1757_vm2, %v4217_v7 }
 0x14b   : > { %4015 = vmatmul.mubr.msk.bf16.gmra.mrb[44].mxu1 %vm1757_vm2, %v4218_v1 }
 0x14c   : > { %4018 = vmatprep.mubr.msk.bf16.mxu1 %vm1757_vm2, %v4219_v4  ;;  %v355_v4 = vld [vmem:[#allocation2] sm:$0x8] }
 0x14e   : > { %4063 = vmatmul.mubr.msk.bf16.gmra.mrb[40].mxu0 %vm1757_vm2, %v4220_v14  ;;  %v344_v14 = vpop.permute.xlu1 %343 }
 0x14f   : > { %4066 = vmatprep.mubr.msk.bf16.mxu0 %vm1757_vm2, %v4221_v54  ;;  %v356_v54 = vsel %vm5323_vm1, %v344_v14, %v355_v4 }
 0x150   : > { %357 = vst [vmem:[#allocation2] sm:$0x8] %v356_v54 }
 0x153   : > { %4019 = vmatmul.mubr.msk.bf16.gmra.mrb[48].mxu1 %vm1757_vm2, %v4222_v52 }
 0x154   : > { %4022 = vmatprep.mubr.msk.bf16.mxu1 %vm1757_vm2, %v4223_v15 }
 0x156   : > { %4067 = vmatmul.mubr.msk.bf16.gmra.mrb[44].mxu0 %vm1757_vm2, %v4224_v38 }
 0x157   : > { %4070 = vmatprep.mubr.msk.bf16.mxu0 %vm1757_vm2, %v4225_v2 }
 0x15b   : > { %4023 = vmatmul.mubr.msk.bf16.gmra.mrb[52].mxu1 %vm1757_vm2, %v4226_v19 }
 0x15c   : > { %4026 = vmatprep.mubr.msk.bf16.mxu1 %vm1757_vm2, %v4227_v53 }
 0x15e   : > { %4071 = vmatmul.mubr.msk.bf16.gmra.mrb[48].mxu0 %vm1757_vm2, %v4228_v11 }
 0x15f   : > { %4074 = vmatprep.mubr.msk.bf16.mxu0 %vm1757_vm2, %v4229_v28 }
 0x163   : > { %4027 = vmatmul.mubr.msk.bf16.gmra.mrb[56].mxu1 %vm1757_vm2, %v4230_v36 }
 0x164   : > { %4030 = vmatprep.mubr.msk.bf16.mxu1 %vm1757_vm2, %v4231_v46 }
 0x166   : > { %4075 = vmatmul.mubr.msk.bf16.gmra.mrb[52].mxu0 %vm1757_vm2, %v4232_v6 }
 0x167   : > { %4078 = vmatprep.mubr.msk.bf16.mxu0 %vm1757_vm2, %v4233_v5 }
 0x16b   : > { %4031 = vmatmul.mubr.msk.bf16.gmra.mrb[60].mxu1 %vm1757_vm2, %v4234_v9 }
 0x16c   : > { %4034 = vmatprep.mubr.msk.bf16.mxu1 %vm1757_vm2, %v4235_v34 }
 0x16e   : > { %4079 = vmatmul.mubr.msk.bf16.gmra.mrb[56].mxu0 %vm1757_vm2, %v4236_v48 }
 0x16f   : > { %4082 = vmatprep.mubr.msk.bf16.mxu0 %vm1757_vm2, %v4237_v22 }
 0x173   : > { %4035 = vmatmul.mubr.msk.bf16.gmra.mrb[64].mxu1 %vm1757_vm2, %v4238_v27 }
 0x174   : > { %4038 = vmatprep.mubr.msk.bf16.mxu1 %vm1757_vm2, %v4239_v35 }
 0x176   : > { %4083 = vmatmul.mubr.msk.bf16.gmra.mrb[60].mxu0 %vm1757_vm2, %v4240_v62 }
 0x177   : > { %4086 = vmatprep.mubr.msk.bf16.mxu0 %vm1757_vm2, %v4241_v47 }
 0x17b   : > { %4039 = vmatmul.mubr.msk.bf16.gmra.mrb[68].mxu1 %vm1757_vm2, %v4242_v57 }
 0x17e   : > { %4087 = vmatmul.mubr.msk.bf16.gmra.mrb[64].mxu0 %vm1757_vm2, %v4243_v50 }
 0x17f   : > { %4090 = vmatprep.mubr.msk.bf16.mxu0 %vm1757_vm2, %v4244_v60 }
 0x185   : > { %v3968_v0 = vpop.f32.mrb[0].mxu1 }
 0x186   : > { %4091 = vmatmul.mubr.msk.bf16.gmra.mrb[68].mxu0 %vm1757_vm2, %v4245_v55  ;;  %2086 = vst.msk [vmem:[#allocation3 + $0xd0] sm:$0xff] %vm2059_vm3, %v3968_v0  ;;  %v1964_v63 = vpop.f32.mrb[1].mxu1 }
 0x187   : > { %2084 = vst.msk [vmem:[#allocation3 + $0xc0] sm:$0xff] %vm2059_vm3, %v1964_v63  ;;  %v3969_v10 = vpop.f32.mrb[2].mxu1 }
 0x188   : > { %2087 = vst.msk [vmem:[#allocation3 + $0xd8] sm:$0xff] %vm2059_vm3, %v3969_v10  ;;  %v1967_v20 = vpop.f32.mrb[3].mxu1 }
 0x189   : > { %2085 = vst.msk [vmem:[#allocation3 + $0xc8] sm:$0xff] %vm2059_vm3, %v1967_v20 }
 0x18d   : > { %v3972_v32 = vpop.f32.mrb[4].mxu1 }
 0x18e   : > { %2090 = vst.msk [vmem:[#allocation3 + $0xf0] sm:$0xff] %vm2059_vm3, %v3972_v32  ;;  %v1980_v12 = vpop.f32.mrb[5].mxu1 }
 0x18f   : > { %2088 = vst.msk [vmem:[#allocation3 + $0xe0] sm:$0xff] %vm2059_vm3, %v1980_v12  ;;  %v3973_v39 = vpop.f32.mrb[6].mxu1 }
 0x190   : > { %2091 = vst.msk [vmem:[#allocation3 + $0xf8] sm:$0xff] %vm2059_vm3, %v3973_v39  ;;  %v1983_v8 = vpop.f32.mrb[7].mxu1 }
 0x191   : > { %2089 = vst.msk [vmem:[#allocation3 + $0xe8] sm:$0xff] %vm2059_vm3, %v1983_v8 }
 0x1a1   : > { %v3944_v41 = vpop.f32.mrb[0].mxu0 }
 0x1a2   : > { %2062 = vst.msk [vmem:[#allocation3 + $0x10] sm:$0xff] %vm2059_vm3, %v3944_v41  ;;  %v1868_v43 = vpop.f32.mrb[1].mxu0 }
 0x1a3   : > { %2060 = vst.msk [vmem:[#allocation3] sm:$0xff] %vm2059_vm3, %v1868_v43  ;;  %v3945_v26 = vpop.f32.mrb[2].mxu0 }
 0x1a4   : > { %2063 = vst.msk [vmem:[#allocation3 + $0x18] sm:$0xff] %vm2059_vm3, %v3945_v26  ;;  %v1871_v33 = vpop.f32.mrb[3].mxu0 }
 0x1a5   : > { %2061 = vst.msk [vmem:[#allocation3 + $0x8] sm:$0xff] %vm2059_vm3, %v1871_v33 }
 0x1a9   : > { %v2110_v28 = vld [vmem:[#allocation3 + $0x10] sm:$0xff] }
 0x1aa   : > { %v2108_v6 = vld [vmem:[#allocation3] sm:$0xff] }
 0x1ab   : > { %v2111_v34 = vld [vmem:[#allocation3 + $0x18] sm:$0xff] }
 0x1ac   : > { %v2109_v35 = vld [vmem:[#allocation3 + $0x8] sm:$0xff] }
 0x1b5   : > { %v3976_v24 = vpop.f32.mrb[8].mxu1 }
 0x1b6   : > { %v3948_v17 = vpop.f32.mrb[4].mxu0  ;;  %2094 = vst.msk [vmem:[#allocation3 + $0x110] sm:$0xff] %vm2059_vm3, %v3976_v24  ;;  %v1996_v18 = vpop.f32.mrb[9].mxu1 }
 0x1b7   : > { %2066 = vst.msk [vmem:[#allocation3 + $0x30] sm:$0xff] %vm2059_vm3, %v3948_v17  ;;  %v1884_v42 = vpop.f32.mrb[5].mxu0  ;;  %2092 = vst.msk [vmem:[#allocation3 + $0x100] sm:$0xff] %vm2059_vm3, %v1996_v18  ;;  %v3977_v40 = vpop.f32.mrb[10].mxu1 }
 0x1b8   : > { %2064 = vst.msk [vmem:[#allocation3 + $0x20] sm:$0xff] %vm2059_vm3, %v1884_v42  ;;  %v3949_v37 = vpop.f32.mrb[6].mxu0  ;;  %2095 = vst.msk [vmem:[#allocation3 + $0x118] sm:$0xff] %vm2059_vm3, %v3977_v40  ;;  %v1999_v45 = vpop.f32.mrb[11].mxu1 }
 0x1b9   : > { %2067 = vst.msk [vmem:[#allocation3 + $0x38] sm:$0xff] %vm2059_vm3, %v3949_v37  ;;  %v1887_v23 = vpop.f32.mrb[7].mxu0  ;;  %2093 = vst.msk [vmem:[#allocation3 + $0x108] sm:$0xff] %vm2059_vm3, %v1999_v45 }
 0x1ba   : > { %2065 = vst.msk [vmem:[#allocation3 + $0x28] sm:$0xff] %vm2059_vm3, %v1887_v23 }
 0x1be   : > { %v2114_v55 = vld [vmem:[#allocation3 + $0x30] sm:$0xff] }
 0x1bf   : > { %v2112_v10 = vld [vmem:[#allocation3 + $0x20] sm:$0xff] }
 0x1c0   : > { %v2115_v12 = vld [vmem:[#allocation3 + $0x38] sm:$0xff] }
 0x1c1   : > { %v2113_v26 = vld [vmem:[#allocation3 + $0x28] sm:$0xff] }
 0x1c9   : > { %v3980_v30 = vpop.f32.mrb[12].mxu1 }
 0x1ca   : > { %2098 = vst.msk [vmem:[#allocation3 + $0x130] sm:$0xff] %vm2059_vm3, %v3980_v30  ;;  %v2012_v21 = vpop.f32.mrb[13].mxu1 }
 0x1cb   : > { %2096 = vst.msk [vmem:[#allocation3 + $0x120] sm:$0xff] %vm2059_vm3, %v2012_v21  ;;  %v3981_v56 = vpop.f32.mrb[14].mxu1 }
 0x1cc   : > { %2099 = vst.msk [vmem:[#allocation3 + $0x138] sm:$0xff] %vm2059_vm3, %v3981_v56  ;;  %v2015_v59 = vpop.f32.mrb[15].mxu1 }
 0x1cd   : > { %2097 = vst.msk [vmem:[#allocation3 + $0x128] sm:$0xff] %vm2059_vm3, %v2015_v59 }
 0x1d6   : > { %v3952_v16 = vpop.f32.mrb[8].mxu0 }
 0x1d7   : > { %2070 = vst.msk [vmem:[#allocation3 + $0x50] sm:$0xff] %vm2059_vm3, %v3952_v16  ;;  %v1900_v31 = vpop.f32.mrb[9].mxu0  ;;  %v3984_v58 = vpop.f32.mrb[16].mxu1 }
 0x1d8   : > { %2068 = vst.msk [vmem:[#allocation3 + $0x40] sm:$0xff] %vm2059_vm3, %v1900_v31  ;;  %v3953_v44 = vpop.f32.mrb[10].mxu0  ;;  %2102 = vst.msk [vmem:[#allocation3 + $0x150] sm:$0xff] %vm2059_vm3, %v3984_v58  ;;  %v2028_v49 = vpop.f32.mrb[17].mxu1 }
 0x1d9   : > { %2071 = vst.msk [vmem:[#allocation3 + $0x58] sm:$0xff] %vm2059_vm3, %v3953_v44  ;;  %v1903_v29 = vpop.f32.mrb[11].mxu0  ;;  %2100 = vst.msk [vmem:[#allocation3 + $0x140] sm:$0xff] %vm2059_vm3, %v2028_v49  ;;  %v3985_v61 = vpop.f32.mrb[18].mxu1 }
 0x1da   : > { %2069 = vst.msk [vmem:[#allocation3 + $0x48] sm:$0xff] %vm2059_vm3, %v1903_v29  ;;  %2103 = vst.msk [vmem:[#allocation3 + $0x158] sm:$0xff] %vm2059_vm3, %v3985_v61  ;;  %v2031_v25 = vpop.f32.mrb[19].mxu1 }
 0x1db   : > { %2101 = vst.msk [vmem:[#allocation3 + $0x148] sm:$0xff] %vm2059_vm3, %v2031_v25 }
 0x1de   : > { %v2118_v59 = vld [vmem:[#allocation3 + $0x50] sm:$0xff] }
 0x1df   : > { %v2116_v58 = vld [vmem:[#allocation3 + $0x40] sm:$0xff] }
 0x1e0   : > { %v2119_v29 = vld [vmem:[#allocation3 + $0x58] sm:$0xff] }
 0x1e5   : > { %v3956_v13 = vpop.f32.mrb[12].mxu0 }
 0x1e6   : > { %2074 = vst.msk [vmem:[#allocation3 + $0x70] sm:$0xff] %vm2059_vm3, %v3956_v13  ;;  %v1916_v3 = vpop.f32.mrb[13].mxu0 }
 0x1e7   : > { %2072 = vst.msk [vmem:[#allocation3 + $0x60] sm:$0xff] %vm2059_vm3, %v1916_v3  ;;  %v3957_v7 = vpop.f32.mrb[14].mxu0  ;;  %v5728_v3 = vld [vmem:[%s5928_s3] ss:$0 sm:$0xff] }
 0x1e8   : > { %2075 = vst.msk [vmem:[#allocation3 + $0x78] sm:$0xff] %vm2059_vm3, %v3957_v7  ;;  %v1919_v1 = vpop.f32.mrb[15].mxu0 }
 0x1e9   : > { %2073 = vst.msk [vmem:[#allocation3 + $0x68] sm:$0xff] %vm2059_vm3, %v1919_v1  ;;  %v2117_v1 = vld [vmem:[#allocation3 + $0x48] sm:$0xff] }
 0x1ee   : > { %v3988_v52 = vpop.f32.mrb[20].mxu1 }
 0x1ef   : > { %2106 = vst.msk [vmem:[#allocation3 + $0x170] sm:$0xff] %vm2059_vm3, %v3988_v52  ;;  %v2044_v15 = vpop.f32.mrb[21].mxu1 }
 0x1f0   : > { %v3960_v38 = vpop.f32.mrb[16].mxu0  ;;  %2104 = vst.msk [vmem:[#allocation3 + $0x160] sm:$0xff] %vm2059_vm3, %v2044_v15  ;;  %v3989_v2 = vpop.f32.mrb[22].mxu1 }
 0x1f1   : > { %2078 = vst.msk [vmem:[#allocation3 + $0x90] sm:$0xff] %vm2059_vm3, %v3960_v38  ;;  %v1932_v19 = vpop.f32.mrb[17].mxu0  ;;  %2107 = vst.msk [vmem:[#allocation3 + $0x178] sm:$0xff] %vm2059_vm3, %v3989_v2  ;;  %v2047_v53 = vpop.f32.mrb[23].mxu1 }
 0x1f2   : > { %2076 = vst.msk [vmem:[#allocation3 + $0x80] sm:$0xff] %vm2059_vm3, %v1932_v19  ;;  %v3961_v11 = vpop.f32.mrb[18].mxu0  ;;  %2105 = vst.msk [vmem:[#allocation3 + $0x168] sm:$0xff] %vm2059_vm3, %v2047_v53 }
 0x1f3   : > { %2079 = vst.msk [vmem:[#allocation3 + $0x98] sm:$0xff] %vm2059_vm3, %v3961_v11  ;;  %v1935_v51 = vpop.f32.mrb[19].mxu0 }
 0x1f4   : > { %2077 = vst.msk [vmem:[#allocation3 + $0x88] sm:$0xff] %vm2059_vm3, %v1935_v51 }
 0x1f6   : > { %v3996_v36 = vpop.f32.mrb[24].mxu1 }
 0x1f7   : > { %v2639_v46 = vadd.f32 %v3996_v36, %v2110_v28  ;;  %v2446_v5 = vpop.f32.mrb[25].mxu1 }
 0x1f8   : > { %v2637_v9 = vadd.f32 %v2446_v5, %v2108_v6  ;;  %v3997_v48 = vpop.f32.mrb[26].mxu1 }
 0x1f9   : > { %v3964_v22 = vpop.f32.mrb[20].mxu0  ;;  %2687 = vst.msk [vmem:[#allocation3 + $0x10] sm:$0xff] %vm2059_vm3, %v2639_v46  ;;  %v2640_v27 = vadd.f32 %v3997_v48, %v2111_v34  ;;  %v2449_v62 = vpop.f32.mrb[27].mxu1 }
 0x1fa   : > { %2082 = vst.msk [vmem:[#allocation3 + $0xb0] sm:$0xff] %vm2059_vm3, %v3964_v22  ;;  %v1948_v47 = vpop.f32.mrb[21].mxu0  ;;  %2685 = vst.msk [vmem:[#allocation3] sm:$0xff] %vm2059_vm3, %v2637_v9  ;;  %v2638_v57 = vadd.f32 %v2449_v62, %v2109_v35  ;;  %v2122_v22 = vld [vmem:[#allocation3 + $0x70] sm:$0xff] }
 0x1fb   : > { %2080 = vst.msk [vmem:[#allocation3 + $0xa0] sm:$0xff] %vm2059_vm3, %v1948_v47  ;;  %v3965_v50 = vpop.f32.mrb[22].mxu0  ;;  %2688 = vst.msk [vmem:[#allocation3 + $0x18] sm:$0xff] %vm2059_vm3, %v2640_v27  ;;  %v2120_v47 = vld [vmem:[#allocation3 + $0x60] sm:$0xff] }
 0x1fc   : > { %2083 = vst.msk [vmem:[#allocation3 + $0xb8] sm:$0xff] %vm2059_vm3, %v3965_v50  ;;  %v1951_v60 = vpop.f32.mrb[23].mxu0  ;;  %2686 = vst.msk [vmem:[#allocation3 + $0x8] sm:$0xff] %vm2059_vm3, %v2638_v57 }
 0x1fd   : > { %2081 = vst.msk [vmem:[#allocation3 + $0xa8] sm:$0xff] %vm2059_vm3, %v1951_v60 }
 0x1fe   : > { %v4000_v0 = vpop.f32.mrb[28].mxu1 }
 0x1ff   : > { %v2643_v63 = vadd.f32 %v4000_v0, %v2114_v55  ;;  %v2462_v20 = vpop.f32.mrb[29].mxu1  ;;  %v2123_v55 = vld [vmem:[#allocation3 + $0x78] sm:$0xff] }
 0x200   : > { %v2641_v32 = vadd.f32 %v2462_v20, %v2112_v10  ;;  %v4001_v39 = vpop.f32.mrb[30].mxu1  ;;  %v2735_v8 = vld [vmem:[#allocation3 + $0x10] sm:$0xff] }
 0x201   : > { %v4048_v41 = vpop.f32.mrb[24].mxu0  ;;  %2691 = vst.msk [vmem:[#allocation3 + $0x30] sm:$0xff] %vm2059_vm3, %v2643_v63  ;;  %v2644_v43 = vadd.f32 %v4001_v39, %v2115_v12  ;;  %v2465_v33 = vpop.f32.mrb[31].mxu1  ;;  %v2733_v17 = vld [vmem:[#allocation3] sm:$0xff] }
 0x202   : > { %v3264_v24 = vadd.f32 %v4048_v41, %v2735_v8  ;;  %v3071_v18 = vpop.f32.mrb[25].mxu0  ;;  %2689 = vst.msk [vmem:[#allocation3 + $0x20] sm:$0xff] %vm2059_vm3, %v2641_v32  ;;  %v2642_v42 = vadd.f32 %v2465_v33, %v2113_v26  ;;  %v2736_v37 = vld [vmem:[#allocation3 + $0x18] sm:$0xff]  ;;  %v2121_v32 = vld [vmem:[#allocation3 + $0x68] sm:$0xff] }
 0x203   : > { %v3262_v40 = vadd.f32 %v3071_v18, %v2733_v17  ;;  %v4049_v45 = vpop.f32.mrb[26].mxu0  ;;  %2692 = vst.msk [vmem:[#allocation3 + $0x38] sm:$0xff] %vm2059_vm3, %v2644_v43  ;;  %v2734_v30 = vld [vmem:[#allocation3 + $0x8] sm:$0xff] }
 0x204   : > { %3312 = vst.msk [vmem:[#allocation3 + $0x10] sm:$0xff] %vm2059_vm3, %v3264_v24  ;;  %v3265_v23 = vadd.f32 %v4049_v45, %v2736_v37  ;;  %v3074_v21 = vpop.f32.mrb[27].mxu0  ;;  %2690 = vst.msk [vmem:[#allocation3 + $0x28] sm:$0xff] %vm2059_vm3, %v2642_v42 }
 0x205   : > { %3310 = vst.msk [vmem:[#allocation3] sm:$0xff] %vm2059_vm3, %v3262_v40  ;;  %v3263_v56 = vadd.f32 %v3074_v21, %v2734_v30 }
 0x206   : > { %3313 = vst.msk [vmem:[#allocation3 + $0x18] sm:$0xff] %vm2059_vm3, %v3265_v23  ;;  %v4004_v16 = vpop.f32.mrb[32].mxu1 }
 0x207   : > { %3311 = vst.msk [vmem:[#allocation3 + $0x8] sm:$0xff] %vm2059_vm3, %v3263_v56  ;;  %v2647_v31 = vadd.f32 %v4004_v16, %v2118_v59  ;;  %v2478_v44 = vpop.f32.mrb[33].mxu1 }
 0x208   : > { %v2645_v49 = vadd.f32 %v2478_v44, %v2116_v58  ;;  %v4005_v61 = vpop.f32.mrb[34].mxu1  ;;  %v2739_v25 = vld [vmem:[#allocation3 + $0x30] sm:$0xff] }
 0x209   : > { %v4052_v13 = vpop.f32.mrb[28].mxu0  ;;  %2695 = vst.msk [vmem:[#allocation3 + $0x50] sm:$0xff] %vm2059_vm3, %v2647_v31  ;;  %v2648_v7 = vadd.f32 %v4005_v61, %v2119_v29  ;;  %v2481_v4 = vpop.f32.mrb[35].mxu1  ;;  %v2737_v54 = vld [vmem:[#allocation3 + $0x20] sm:$0xff]  ;;  %v2126_v31 = vld [vmem:[#allocation3 + $0x90] sm:$0xff] }
 0x20a   : > { %v3268_v14 = vadd.f32 %v4052_v13, %v2739_v25  ;;  %v3087_v52 = vpop.f32.mrb[29].mxu0  ;;  %2693 = vst.msk [vmem:[#allocation3 + $0x40] sm:$0xff] %vm2059_vm3, %v2645_v49  ;;  %v2646_v15 = vadd.f32 %v2481_v4, %v2117_v1  ;;  %v2740_v2 = vld [vmem:[#allocation3 + $0x38] sm:$0xff]  ;;  %v2124_v29 = vld [vmem:[#allocation3 + $0x80] sm:$0xff] }
 0x20b   : > { %v3266_v38 = vadd.f32 %v3087_v52, %v2737_v54  ;;  %v4053_v19 = vpop.f32.mrb[30].mxu0  ;;  %2696 = vst.msk [vmem:[#allocation3 + $0x58] sm:$0xff] %vm2059_vm3, %v2648_v7  ;;  %v2738_v51 = vld [vmem:[#allocation3 + $0x28] sm:$0xff]  ;;  %v2127_v13 = vld [vmem:[#allocation3 + $0x98] sm:$0xff] }
 0x20c   : > { %v3359_v53 = vld [vmem:[#allocation3] sm:$0xff]  ;;  %3316 = vst.msk [vmem:[#allocation3 + $0x30] sm:$0xff] %vm2059_vm3, %v3268_v14  ;;  %v3269_v11 = vadd.f32 %v4053_v19, %v2740_v2  ;;  %v3090_v28 = vpop.f32.mrb[31].mxu0  ;;  %2694 = vst.msk [vmem:[#allocation3 + $0x48] sm:$0xff] %vm2059_vm3, %v2646_v15  ;;  %v2125_v54 = vld [vmem:[#allocation3 + $0x88] sm:$0xff] }
 0x20d   : > { %v3367_v36 = vadd.f32 %v5728_v3, %v3359_v53  ;;  %v3373_v46 = vld [vmem:[#allocation3 + $0x18] sm:$0xff]  ;;  %3314 = vst.msk [vmem:[#allocation3 + $0x20] sm:$0xff] %vm2059_vm3, %v3266_v38  ;;  %v3267_v6 = vadd.f32 %v3090_v28, %v2738_v51 }
 0x20e   : > { %v3375_v5 = vadd.f32 %v5728_v3, %v3373_v46  ;;  %v3360_v9 = vld [vmem:[#allocation3 + $0x8] sm:$0xff]  ;;  %3317 = vst.msk [vmem:[#allocation3 + $0x38] sm:$0xff] %vm2059_vm3, %v3269_v11  ;;  %v4008_v27 = vpop.f32.mrb[36].mxu1 }
 0x20f   : > { %v3369_v34 = vmax.f32 %v3367_v36, 0.0  ;;  %v3368_v48 = vadd.f32 %v5728_v3, %v3360_v9  ;;  %3315 = vst.msk [vmem:[#allocation3 + $0x28] sm:$0xff] %vm2059_vm3, %v3267_v6  ;;  %v2651_v62 = vadd.f32 %v4008_v27, %v2122_v22  ;;  %v2494_v57 = vpop.f32.mrb[37].mxu1  ;;  %v2130_v27 = vld [vmem:[#allocation3 + $0xb0] sm:$0xff] }
 0x210   : > { %v3377_v35 = vmax.f32 %v3375_v5, 0.0  ;;  %v2649_v60 = vadd.f32 %v2494_v57, %v2120_v47  ;;  %v4009_v0 = vpop.f32.mrb[38].mxu1  ;;  %v2743_v63 = vld [vmem:[#allocation3 + $0x50] sm:$0xff]  ;;  %v2128_v47 = vld [vmem:[#allocation3 + $0xa0] sm:$0xff] }
 0x211   : > { %3371 = vst.msk [vmem:[%s5741_s23] sm:$0xff] %vm2059_vm3, %v3369_v34  ;;  %v3370_v50 = vmax.f32 %v3368_v48, 0.0  ;;  %v4056_v10 = vpop.f32.mrb[32].mxu0  ;;  %2699 = vst.msk [vmem:[#allocation3 + $0x70] sm:$0xff] %vm2059_vm3, %v2651_v62  ;;  %v2652_v20 = vadd.f32 %v4009_v0, %v2123_v55  ;;  %v2497_v12 = vpop.f32.mrb[39].mxu1  ;;  %v2741_v8 = vld [vmem:[#allocation3 + $0x40] sm:$0xff] }
 0x212   : > { %3825 = vst.msk [vmem:[%s5741_s23 + $0x10] sm:$0xff] %vm2059_vm3, %v3377_v35  ;;  %v3272_v39 = vadd.f32 %v4056_v10, %v2743_v63  ;;  %v3103_v41 = vpop.f32.mrb[33].mxu0  ;;  %2697 = vst.msk [vmem:[#allocation3 + $0x60] sm:$0xff] %vm2059_vm3, %v2649_v60  ;;  %v2650_v26 = vadd.f32 %v2497_v12, %v2121_v32  ;;  %v2744_v24 = vld [vmem:[#allocation3 + $0x58] sm:$0xff]  ;;  %v2129_v32 = vld [vmem:[#allocation3 + $0xa8] sm:$0xff] }
 0x213   : > { %3372 = vst.msk [vmem:[%s5741_s23 + $0x8] sm:$0xff] %vm2059_vm3, %v3370_v50  ;;  %v3382_v43 = vld [vmem:[#allocation3 + $0x30] sm:$0xff]  ;;  %v3270_v33 = vadd.f32 %v3103_v41, %v2741_v8  ;;  %v4057_v17 = vpop.f32.mrb[34].mxu0  ;;  %2700 = vst.msk [vmem:[#allocation3 + $0x78] sm:$0xff] %vm2059_vm3, %v2652_v20  ;;  %v2742_v37 = vld [vmem:[#allocation3 + $0x48] sm:$0xff] }
 0x214   : > { %v3384_v18 = vadd.f32 %v5728_v3, %v3382_v43  ;;  %v3374_v42 = vld [vmem:[#allocation3 + $0x20] sm:$0xff]  ;;  %3320 = vst.msk [vmem:[#allocation3 + $0x50] sm:$0xff] %vm2059_vm3, %v3272_v39  ;;  %v3273_v40 = vadd.f32 %v4057_v17, %v2744_v24  ;;  %v3106_v45 = vpop.f32.mrb[35].mxu0  ;;  %2698 = vst.msk [vmem:[#allocation3 + $0x68] sm:$0xff] %vm2059_vm3, %v2650_v26  ;;  %v2131_v55 = vld [vmem:[#allocation3 + $0xb8] sm:$0xff] }
 0x215   : > { %v3376_v23 = vadd.f32 %v5728_v3, %v3374_v42  ;;  %v3383_v30 = vld [vmem:[#allocation3 + $0x38] sm:$0xff]  ;;  %3318 = vst.msk [vmem:[#allocation3 + $0x40] sm:$0xff] %vm2059_vm3, %v3270_v33  ;;  %v3271_v21 = vadd.f32 %v3106_v45, %v2742_v37 }
 0x216   : > { %v3386_v56 = vmax.f32 %v3384_v18, 0.0  ;;  %v3385_v59 = vadd.f32 %v5728_v3, %v3383_v30  ;;  %3321 = vst.msk [vmem:[#allocation3 + $0x58] sm:$0xff] %vm2059_vm3, %v3273_v40  ;;  %v4012_v58 = vpop.f32.mrb[40].mxu1 }
 0x217   : > { %v3378_v16 = vmax.f32 %v3376_v23, 0.0  ;;  %3319 = vst.msk [vmem:[#allocation3 + $0x48] sm:$0xff] %vm2059_vm3, %v3271_v21  ;;  %v2655_v49 = vadd.f32 %v4012_v58, %v2126_v31  ;;  %v2510_v61 = vpop.f32.mrb[41].mxu1 }
 0x218   : > { %3827 = vst.msk [vmem:[%s5741_s23 + $0x20] sm:$0xff] %vm2059_vm3, %v3386_v56  ;;  %v3387_v44 = vmax.f32 %v3385_v59, 0.0  ;;  %v2653_v25 = vadd.f32 %v2510_v61, %v2124_v29  ;;  %v4013_v7 = vpop.f32.mrb[42].mxu1  ;;  %v2747_v1 = vld [vmem:[#allocation3 + $0x70] sm:$0xff] }
 0x219   : > { %3826 = vst.msk [vmem:[%s5741_s23 + $0x18] sm:$0xff] %vm2059_vm3, %v3378_v16  ;;  %v4060_v4 = vpop.f32.mrb[36].mxu0  ;;  %2703 = vst.msk [vmem:[#allocation3 + $0x90] sm:$0xff] %vm2059_vm3, %v2655_v49  ;;  %v2656_v14 = vadd.f32 %v4013_v7, %v2127_v13  ;;  %v2513_v52 = vpop.f32.mrb[43].mxu1  ;;  %v2745_v38 = vld [vmem:[#allocation3 + $0x60] sm:$0xff]  ;;  %v2134_v16 = vld [vmem:[#allocation3 + $0xd0] sm:$0xff] }
 0x21a   : > { %3828 = vst.msk [vmem:[%s5741_s23 + $0x28] sm:$0xff] %vm2059_vm3, %v3387_v44  ;;  %v3276_v15 = vadd.f32 %v4060_v4, %v2747_v1  ;;  %v3119_v2 = vpop.f32.mrb[37].mxu0  ;;  %2701 = vst.msk [vmem:[#allocation3 + $0x80] sm:$0xff] %vm2059_vm3, %v2653_v25  ;;  %v2654_v53 = vadd.f32 %v2513_v52, %v2125_v54  ;;  %v2748_v51 = vld [vmem:[#allocation3 + $0x78] sm:$0xff]  ;;  %v2132_v49 = vld [vmem:[#allocation3 + $0xc0] sm:$0xff] }
 0x21b   : > { %v3392_v19 = vld [vmem:[#allocation3 + $0x50] sm:$0xff]  ;;  %v3274_v11 = vadd.f32 %v3119_v2, %v2745_v38  ;;  %v4061_v28 = vpop.f32.mrb[38].mxu0  ;;  %2704 = vst.msk [vmem:[#allocation3 + $0x98] sm:$0xff] %vm2059_vm3, %v2656_v14  ;;  %v2746_v6 = vld [vmem:[#allocation3 + $0x68] sm:$0xff]  ;;  %v2135_v13 = vld [vmem:[#allocation3 + $0xd8] sm:$0xff] }
 0x21c   : > { %v3394_v36 = vadd.f32 %v5728_v3, %v3392_v19  ;;  %3324 = vst.msk [vmem:[#allocation3 + $0x70] sm:$0xff] %vm2059_vm3, %v3276_v15  ;;  %v3277_v46 = vadd.f32 %v4061_v28, %v2748_v51  ;;  %v3122_v5 = vpop.f32.mrb[39].mxu0  ;;  %2702 = vst.msk [vmem:[#allocation3 + $0x88] sm:$0xff] %vm2059_vm3, %v2654_v53  ;;  %v2133_v54 = vld [vmem:[#allocation3 + $0xc8] sm:$0xff] }
 0x21d   : > { %3322 = vst.msk [vmem:[#allocation3 + $0x60] sm:$0xff] %vm2059_vm3, %v3274_v11  ;;  %v3275_v9 = vadd.f32 %v3122_v5, %v2746_v6 }
 0x21e   : > { %v3396_v34 = vmax.f32 %v3394_v36, 0.0  ;;  %v3391_v48 = vld [vmem:[#allocation3 + $0x48] sm:$0xff]  ;;  %3325 = vst.msk [vmem:[#allocation3 + $0x78] sm:$0xff] %vm2059_vm3, %v3277_v46  ;;  %v4016_v35 = vpop.f32.mrb[44].mxu1 }
 0x21f   : > { %v3393_v22 = vadd.f32 %v5728_v3, %v3391_v48  ;;  %3323 = vst.msk [vmem:[#allocation3 + $0x68] sm:$0xff] %vm2059_vm3, %v3275_v9  ;;  %v2659_v62 = vadd.f32 %v4016_v35, %v2130_v27  ;;  %v2526_v57 = vpop.f32.mrb[45].mxu1 }
 0x220   : > { %3830 = vst.msk [vmem:[%s5741_s23 + $0x38] sm:$0xff] %vm2059_vm3, %v3396_v34  ;;  %v2657_v60 = vadd.f32 %v2526_v57, %v2128_v47  ;;  %v4017_v0 = vpop.f32.mrb[46].mxu1  ;;  %v2751_v63 = vld [vmem:[#allocation3 + $0x90] sm:$0xff] }
 0x221   : > { %v3395_v50 = vmax.f32 %v3393_v22, 0.0  ;;  %v4064_v10 = vpop.f32.mrb[40].mxu0  ;;  %2707 = vst.msk [vmem:[#allocation3 + $0xb0] sm:$0xff] %vm2059_vm3, %v2659_v62  ;;  %v2660_v20 = vadd.f32 %v4017_v0, %v2131_v55  ;;  %v2529_v12 = vpop.f32.mrb[47].mxu1  ;;  %v2749_v8 = vld [vmem:[#allocation3 + $0x80] sm:$0xff]  ;;  %v2138_v47 = vld [vmem:[#allocation3 + $0xf0] sm:$0xff] }
 0x222   : > { %v3280_v39 = vadd.f32 %v4064_v10, %v2751_v63  ;;  %v3135_v41 = vpop.f32.mrb[41].mxu0  ;;  %2705 = vst.msk [vmem:[#allocation3 + $0xa0] sm:$0xff] %vm2059_vm3, %v2657_v60  ;;  %v2658_v43 = vadd.f32 %v2529_v12, %v2129_v32  ;;  %v2752_v33 = vld [vmem:[#allocation3 + $0x98] sm:$0xff]  ;;  %v2136_v55 = vld [vmem:[#allocation3 + $0xe0] sm:$0xff] }
 0x223   : > { %3829 = vst.msk [vmem:[%s5741_s23 + $0x30] sm:$0xff] %vm2059_vm3, %v3395_v50  ;;  %v3278_v26 = vadd.f32 %v3135_v41, %v2749_v8  ;;  %v4065_v24 = vpop.f32.mrb[42].mxu0  ;;  %2708 = vst.msk [vmem:[#allocation3 + $0xb8] sm:$0xff] %vm2059_vm3, %v2660_v20  ;;  %v2750_v42 = vld [vmem:[#allocation3 + $0x88] sm:$0xff]  ;;  %v2139_v10 = vld [vmem:[#allocation3 + $0xf8] sm:$0xff] }
 0x224   : > { %v3400_v17 = vld [vmem:[#allocation3 + $0x60] sm:$0xff]  ;;  %3328 = vst.msk [vmem:[#allocation3 + $0x90] sm:$0xff] %vm2059_vm3, %v3280_v39  ;;  %v3281_v18 = vadd.f32 %v4065_v24, %v2752_v33  ;;  %v3138_v40 = vpop.f32.mrb[43].mxu0  ;;  %2706 = vst.msk [vmem:[#allocation3 + $0xa8] sm:$0xff] %vm2059_vm3, %v2658_v43  ;;  %v2137_v8 = vld [vmem:[#allocation3 + $0xe8] sm:$0xff] }
 0x225   : > { %v3402_v37 = vadd.f32 %v5728_v3, %v3400_v17  ;;  %v3409_v45 = vld [vmem:[#allocation3 + $0x78] sm:$0xff]  ;;  %3326 = vst.msk [vmem:[#allocation3 + $0x80] sm:$0xff] %vm2059_vm3, %v3278_v26  ;;  %v3279_v23 = vadd.f32 %v3138_v40, %v2750_v42 }
 0x226   : > { %v3411_v30 = vadd.f32 %v5728_v3, %v3409_v45  ;;  %v3401_v21 = vld [vmem:[#allocation3 + $0x68] sm:$0xff]  ;;  %3329 = vst.msk [vmem:[#allocation3 + $0x98] sm:$0xff] %vm2059_vm3, %v3281_v18  ;;  %v4020_v31 = vpop.f32.mrb[48].mxu1 }
 0x227   : > { %v3404_v56 = vmax.f32 %v3402_v37, 0.0  ;;  %v3403_v59 = vadd.f32 %v5728_v3, %v3401_v21  ;;  %3327 = vst.msk [vmem:[#allocation3 + $0x88] sm:$0xff] %vm2059_vm3, %v3279_v23  ;;  %v2663_v44 = vadd.f32 %v4020_v31, %v2134_v16  ;;  %v2542_v29 = vpop.f32.mrb[49].mxu1  ;;  %v2142_v31 = vld [vmem:[#allocation3 + $0x110] sm:$0xff] }
 0x228   : > { %v3413_v58 = vmax.f32 %v3411_v30, 0.0  ;;  %v2661_v25 = vadd.f32 %v2542_v29, %v2132_v49  ;;  %v4021_v7 = vpop.f32.mrb[50].mxu1  ;;  %v2755_v1 = vld [vmem:[#allocation3 + $0xb0] sm:$0xff]  ;;  %v2140_v49 = vld [vmem:[#allocation3 + $0x100] sm:$0xff] }
 0x229   : > { %3831 = vst.msk [vmem:[%s5741_s23 + $0x40] sm:$0xff] %vm2059_vm3, %v3404_v56  ;;  %v3405_v61 = vmax.f32 %v3403_v59, 0.0  ;;  %v4068_v4 = vpop.f32.mrb[44].mxu0  ;;  %2711 = vst.msk [vmem:[#allocation3 + $0xd0] sm:$0xff] %vm2059_vm3, %v2663_v44  ;;  %v2664_v14 = vadd.f32 %v4021_v7, %v2135_v13  ;;  %v2545_v52 = vpop.f32.mrb[51].mxu1  ;;  %v2753_v38 = vld [vmem:[#allocation3 + $0xa0] sm:$0xff] }
 0x22a   : > { %3833 = vst.msk [vmem:[%s5741_s23 + $0x50] sm:$0xff] %vm2059_vm3, %v3413_v58  ;;  %v3284_v15 = vadd.f32 %v4068_v4, %v2755_v1  ;;  %v3151_v2 = vpop.f32.mrb[45].mxu0  ;;  %2709 = vst.msk [vmem:[#allocation3 + $0xc0] sm:$0xff] %vm2059_vm3, %v2661_v25  ;;  %v2662_v53 = vadd.f32 %v2545_v52, %v2133_v54  ;;  %v2756_v51 = vld [vmem:[#allocation3 + $0xb8] sm:$0xff]  ;;  %v2141_v54 = vld [vmem:[#allocation3 + $0x108] sm:$0xff] }
 0x22b   : > { %3832 = vst.msk [vmem:[%s5741_s23 + $0x48] sm:$0xff] %vm2059_vm3, %v3405_v61  ;;  %v3418_v19 = vld [vmem:[#allocation3 + $0x90] sm:$0xff]  ;;  %v3282_v11 = vadd.f32 %v3151_v2, %v2753_v38  ;;  %v4069_v28 = vpop.f32.mrb[46].mxu0  ;;  %2712 = vst.msk [vmem:[#allocation3 + $0xd8] sm:$0xff] %vm2059_vm3, %v2664_v14  ;;  %v2754_v5 = vld [vmem:[#allocation3 + $0xa8] sm:$0xff] }
 0x22c   : > { %v3420_v36 = vadd.f32 %v5728_v3, %v3418_v19  ;;  %v3410_v46 = vld [vmem:[#allocation3 + $0x80] sm:$0xff]  ;;  %3332 = vst.msk [vmem:[#allocation3 + $0xb0] sm:$0xff] %vm2059_vm3, %v3284_v15  ;;  %v3285_v6 = vadd.f32 %v4069_v28, %v2756_v51  ;;  %v3154_v9 = vpop.f32.mrb[47].mxu0  ;;  %2710 = vst.msk [vmem:[#allocation3 + $0xc8] sm:$0xff] %vm2059_vm3, %v2662_v53  ;;  %v2143_v13 = vld [vmem:[#allocation3 + $0x118] sm:$0xff] }
 0x22d   : > { %v3412_v34 = vadd.f32 %v5728_v3, %v3410_v46  ;;  %v3419_v48 = vld [vmem:[#allocation3 + $0x98] sm:$0xff]  ;;  %3330 = vst.msk [vmem:[#allocation3 + $0xa0] sm:$0xff] %vm2059_vm3, %v3282_v11  ;;  %v3283_v22 = vadd.f32 %v3154_v9, %v2754_v5 }
 0x22e   : > { %v3422_v27 = vmax.f32 %v3420_v36, 0.0  ;;  %v3421_v35 = vadd.f32 %v5728_v3, %v3419_v48  ;;  %3333 = vst.msk [vmem:[#allocation3 + $0xb8] sm:$0xff] %vm2059_vm3, %v3285_v6  ;;  %v4024_v57 = vpop.f32.mrb[52].mxu1 }
 0x22f   : > { %v3414_v62 = vmax.f32 %v3412_v34, 0.0  ;;  %3331 = vst.msk [vmem:[#allocation3 + $0xa8] sm:$0xff] %vm2059_vm3, %v3283_v22  ;;  %v2667_v60 = vadd.f32 %v4024_v57, %v2138_v47  ;;  %v2558_v0 = vpop.f32.mrb[53].mxu1 }
 0x230   : > { %3835 = vst.msk [vmem:[%s5741_s23 + $0x60] sm:$0xff] %vm2059_vm3, %v3422_v27  ;;  %v3423_v50 = vmax.f32 %v3421_v35, 0.0  ;;  %v2665_v63 = vadd.f32 %v2558_v0, %v2136_v55  ;;  %v4025_v20 = vpop.f32.mrb[54].mxu1  ;;  %v2759_v32 = vld [vmem:[#allocation3 + $0xd0] sm:$0xff] }
 0x231   : > { %3834 = vst.msk [vmem:[%s5741_s23 + $0x58] sm:$0xff] %vm2059_vm3, %v3414_v62  ;;  %v4072_v12 = vpop.f32.mrb[48].mxu0  ;;  %2715 = vst.msk [vmem:[#allocation3 + $0xf0] sm:$0xff] %vm2059_vm3, %v2667_v60  ;;  %v2668_v39 = vadd.f32 %v4025_v20, %v2139_v10  ;;  %v2561_v41 = vpop.f32.mrb[55].mxu1  ;;  %v2757_v26 = vld [vmem:[#allocation3 + $0xc0] sm:$0xff]  ;;  %v2146_v62 = vld [vmem:[#allocation3 + $0x130] sm:$0xff] }
 0x232   : > { %3836 = vst.msk [vmem:[%s5741_s23 + $0x68] sm:$0xff] %vm2059_vm3, %v3423_v50  ;;  %v3288_v43 = vadd.f32 %v4072_v12, %v2759_v32  ;;  %v3167_v33 = vpop.f32.mrb[49].mxu0  ;;  %2713 = vst.msk [vmem:[#allocation3 + $0xe0] sm:$0xff] %vm2059_vm3, %v2665_v63  ;;  %v2666_v17 = vadd.f32 %v2561_v41, %v2137_v8  ;;  %v2760_v42 = vld [vmem:[#allocation3 + $0xd8] sm:$0xff]  ;;  %v2144_v60 = vld [vmem:[#allocation3 + $0x120] sm:$0xff] }
 0x233   : > { %v3428_v24 = vld [vmem:[#allocation3 + $0xb0] sm:$0xff]  ;;  %v3286_v18 = vadd.f32 %v3167_v33, %v2757_v26  ;;  %v4073_v40 = vpop.f32.mrb[50].mxu0  ;;  %2716 = vst.msk [vmem:[#allocation3 + $0xf8] sm:$0xff] %vm2059_vm3, %v2668_v39  ;;  %v2758_v23 = vld [vmem:[#allocation3 + $0xc8] sm:$0xff]  ;;  %v2147_v10 = vld [vmem:[#allocation3 + $0x138] sm:$0xff] }
 0x234   : > { %v3430_v37 = vadd.f32 %v5728_v3, %v3428_v24  ;;  %3336 = vst.msk [vmem:[#allocation3 + $0xd0] sm:$0xff] %vm2059_vm3, %v3288_v43  ;;  %v3289_v45 = vadd.f32 %v4073_v40, %v2760_v42  ;;  %v3170_v30 = vpop.f32.mrb[51].mxu0  ;;  %2714 = vst.msk [vmem:[#allocation3 + $0xe8] sm:$0xff] %vm2059_vm3, %v2666_v17  ;;  %v2145_v8 = vld [vmem:[#allocation3 + $0x128] sm:$0xff] }
 0x235   : > { %3334 = vst.msk [vmem:[#allocation3 + $0xc0] sm:$0xff] %vm2059_vm3, %v3286_v18  ;;  %v3287_v21 = vadd.f32 %v3170_v30, %v2758_v23 }
 0x236   : > { %v3432_v56 = vmax.f32 %v3430_v37, 0.0  ;;  %v3427_v59 = vld [vmem:[#allocation3 + $0xa8] sm:$0xff]  ;;  %3337 = vst.msk [vmem:[#allocation3 + $0xd8] sm:$0xff] %vm2059_vm3, %v3289_v45  ;;  %v4028_v58 = vpop.f32.mrb[56].mxu1 }
 0x237   : > { %v3429_v16 = vadd.f32 %v5728_v3, %v3427_v59  ;;  %3335 = vst.msk [vmem:[#allocation3 + $0xc8] sm:$0xff] %vm2059_vm3, %v3287_v21  ;;  %v2671_v44 = vadd.f32 %v4028_v58, %v2142_v31  ;;  %v2574_v29 = vpop.f32.mrb[57].mxu1 }
 0x238   : > { %3838 = vst.msk [vmem:[%s5741_s23 + $0x78] sm:$0xff] %vm2059_vm3, %v3432_v56  ;;  %v2669_v25 = vadd.f32 %v2574_v29, %v2140_v49  ;;  %v4029_v7 = vpop.f32.mrb[58].mxu1  ;;  %v2763_v1 = vld [vmem:[#allocation3 + $0xf0] sm:$0xff] }
 0x239   : > { %v3431_v61 = vmax.f32 %v3429_v16, 0.0  ;;  %v4076_v4 = vpop.f32.mrb[52].mxu0  ;;  %2719 = vst.msk [vmem:[#allocation3 + $0x110] sm:$0xff] %vm2059_vm3, %v2671_v44  ;;  %v2672_v14 = vadd.f32 %v4029_v7, %v2143_v13  ;;  %v2577_v52 = vpop.f32.mrb[59].mxu1  ;;  %v2761_v38 = vld [vmem:[#allocation3 + $0xe0] sm:$0xff]  ;;  %v2150_v49 = vld [vmem:[#allocation3 + $0x150] sm:$0xff] }
 0x23a   : > { %v3292_v15 = vadd.f32 %v4076_v4, %v2763_v1  ;;  %v3183_v2 = vpop.f32.mrb[53].mxu0  ;;  %2717 = vst.msk [vmem:[#allocation3 + $0x100] sm:$0xff] %vm2059_vm3, %v2669_v25  ;;  %v2670_v19 = vadd.f32 %v2577_v52, %v2141_v54  ;;  %v2764_v11 = vld [vmem:[#allocation3 + $0xf8] sm:$0xff]  ;;  %v2148_v13 = vld [vmem:[#allocation3 + $0x140] sm:$0xff] }
 0x23b   : > { %3837 = vst.msk [vmem:[%s5741_s23 + $0x70] sm:$0xff] %vm2059_vm3, %v3431_v61  ;;  %v3290_v53 = vadd.f32 %v3183_v2, %v2761_v38  ;;  %v4077_v51 = vpop.f32.mrb[54].mxu0  ;;  %2720 = vst.msk [vmem:[#allocation3 + $0x118] sm:$0xff] %vm2059_vm3, %v2672_v14  ;;  %v2762_v46 = vld [vmem:[#allocation3 + $0xe8] sm:$0xff]  ;;  %v2151_v4 = vld [vmem:[#allocation3 + $0x158] sm:$0xff] }
 0x23c   : > { %v3436_v28 = vld [vmem:[#allocation3 + $0xc0] sm:$0xff]  ;;  %3340 = vst.msk [vmem:[#allocation3 + $0xf0] sm:$0xff] %vm2059_vm3, %v3292_v15  ;;  %v3293_v36 = vadd.f32 %v4077_v51, %v2764_v11  ;;  %v3186_v6 = vpop.f32.mrb[55].mxu0  ;;  %2718 = vst.msk [vmem:[#allocation3 + $0x108] sm:$0xff] %vm2059_vm3, %v2670_v19  ;;  %v2149_v38 = vld [vmem:[#allocation3 + $0x148] sm:$0xff] }
 0x23d   : > { %v3438_v5 = vadd.f32 %v5728_v3, %v3436_v28  ;;  %v3445_v9 = vld [vmem:[#allocation3 + $0xd8] sm:$0xff]  ;;  %3338 = vst.msk [vmem:[#allocation3 + $0xe0] sm:$0xff] %vm2059_vm3, %v3290_v53  ;;  %v3291_v34 = vadd.f32 %v3186_v6, %v2762_v46 }
 0x23e   : > { %v3447_v48 = vadd.f32 %v5728_v3, %v3445_v9  ;;  %v3437_v22 = vld [vmem:[#allocation3 + $0xc8] sm:$0xff]  ;;  %3341 = vst.msk [vmem:[#allocation3 + $0xf8] sm:$0xff] %vm2059_vm3, %v3293_v36  ;;  %v4032_v47 = vpop.f32.mrb[60].mxu1 }
 0x23f   : > { %v3440_v27 = vmax.f32 %v3438_v5, 0.0  ;;  %v3439_v35 = vadd.f32 %v5728_v3, %v3437_v22  ;;  %3339 = vst.msk [vmem:[#allocation3 + $0xe8] sm:$0xff] %vm2059_vm3, %v3291_v34  ;;  %v2675_v50 = vadd.f32 %v4032_v47, %v2146_v62  ;;  %v2590_v55 = vpop.f32.mrb[61].mxu1  ;;  %v2154_v47 = vld [vmem:[#allocation3 + $0x170] sm:$0xff] }
 0x240   : > { %v3449_v57 = vmax.f32 %v3447_v48, 0.0  ;;  %v2673_v63 = vadd.f32 %v2590_v55, %v2144_v60  ;;  %v4033_v20 = vpop.f32.mrb[62].mxu1  ;;  %v2767_v32 = vld [vmem:[#allocation3 + $0x110] sm:$0xff]  ;;  %v2152_v60 = vld [vmem:[#allocation3 + $0x160] sm:$0xff] }
 0x241   : > { %3839 = vst.msk [vmem:[%s5741_s23 + $0x80] sm:$0xff] %vm2059_vm3, %v3440_v27  ;;  %v3441_v0 = vmax.f32 %v3439_v35, 0.0  ;;  %v4080_v12 = vpop.f32.mrb[56].mxu0  ;;  %2723 = vst.msk [vmem:[#allocation3 + $0x130] sm:$0xff] %vm2059_vm3, %v2675_v50  ;;  %v2676_v39 = vadd.f32 %v4033_v20, %v2147_v10  ;;  %v2593_v41 = vpop.f32.mrb[63].mxu1  ;;  %v2765_v26 = vld [vmem:[#allocation3 + $0x100] sm:$0xff] }
 0x242   : > { %3841 = vst.msk [vmem:[%s5741_s23 + $0x90] sm:$0xff] %vm2059_vm3, %v3449_v57  ;;  %v3296_v43 = vadd.f32 %v4080_v12, %v2767_v32  ;;  %v3199_v33 = vpop.f32.mrb[57].mxu0  ;;  %2721 = vst.msk [vmem:[#allocation3 + $0x120] sm:$0xff] %vm2059_vm3, %v2673_v63  ;;  %v2674_v17 = vadd.f32 %v2593_v41, %v2145_v8  ;;  %v2768_v42 = vld [vmem:[#allocation3 + $0x118] sm:$0xff]  ;;  %v2153_v8 = vld [vmem:[#allocation3 + $0x168] sm:$0xff] }
 0x243   : > { %3840 = vst.msk [vmem:[%s5741_s23 + $0x88] sm:$0xff] %vm2059_vm3, %v3441_v0  ;;  %v3454_v24 = vld [vmem:[#allocation3 + $0xf0] sm:$0xff]  ;;  %v3294_v18 = vadd.f32 %v3199_v33, %v2765_v26  ;;  %v4081_v40 = vpop.f32.mrb[58].mxu0  ;;  %2724 = vst.msk [vmem:[#allocation3 + $0x138] sm:$0xff] %vm2059_vm3, %v2676_v39  ;;  %v2766_v30 = vld [vmem:[#allocation3 + $0x108] sm:$0xff] }
 0x244   : > { %v3456_v37 = vadd.f32 %v5728_v3, %v3454_v24  ;;  %v3446_v45 = vld [vmem:[#allocation3 + $0xe0] sm:$0xff]  ;;  %3344 = vst.msk [vmem:[#allocation3 + $0x110] sm:$0xff] %vm2059_vm3, %v3296_v43  ;;  %v3297_v23 = vadd.f32 %v4081_v40, %v2768_v42  ;;  %v3202_v21 = vpop.f32.mrb[59].mxu0  ;;  %2722 = vst.msk [vmem:[#allocation3 + $0x128] sm:$0xff] %vm2059_vm3, %v2674_v17  ;;  %v2155_v10 = vld [vmem:[#allocation3 + $0x178] sm:$0xff] }
 0x245   : > { %v3448_v56 = vadd.f32 %v5728_v3, %v3446_v45  ;;  %v3455_v59 = vld [vmem:[#allocation3 + $0xf8] sm:$0xff]  ;;  %3342 = vst.msk [vmem:[#allocation3 + $0x100] sm:$0xff] %vm2059_vm3, %v3294_v18  ;;  %v3295_v16 = vadd.f32 %v3202_v21, %v2766_v30 }
 0x246   : > { %v3458_v31 = vmax.f32 %v3456_v37, 0.0  ;;  %v3457_v58 = vadd.f32 %v5728_v3, %v3455_v59  ;;  %3345 = vst.msk [vmem:[#allocation3 + $0x118] sm:$0xff] %vm2059_vm3, %v3297_v23  ;;  %v4036_v29 = vpop.f32.mrb[64].mxu1 }
 0x247   : > { %v3450_v44 = vmax.f32 %v3448_v56, 0.0  ;;  %3343 = vst.msk [vmem:[#allocation3 + $0x108] sm:$0xff] %vm2059_vm3, %v3295_v16  ;;  %v2679_v25 = vadd.f32 %v4036_v29, %v2150_v49  ;;  %v2606_v7 = vpop.f32.mrb[65].mxu1 }
 0x248   : > { %3843 = vst.msk [vmem:[%s5741_s23 + $0xa0] sm:$0xff] %vm2059_vm3, %v3458_v31  ;;  %v3459_v61 = vmax.f32 %v3457_v58, 0.0  ;;  %v2677_v1 = vadd.f32 %v2606_v7, %v2148_v13  ;;  %v4037_v14 = vpop.f32.mrb[66].mxu1  ;;  %v2771_v54 = vld [vmem:[#allocation3 + $0x130] sm:$0xff] }
 0x249   : > { %3842 = vst.msk [vmem:[%s5741_s23 + $0x98] sm:$0xff] %vm2059_vm3, %v3450_v44  ;;  %v4084_v52 = vpop.f32.mrb[60].mxu0  ;;  %2727 = vst.msk [vmem:[#allocation3 + $0x150] sm:$0xff] %vm2059_vm3, %v2679_v25  ;;  %v2680_v15 = vadd.f32 %v4037_v14, %v2151_v4  ;;  %v2609_v2 = vpop.f32.mrb[67].mxu1  ;;  %v2769_v53 = vld [vmem:[#allocation3 + $0x120] sm:$0xff] }
 0x24a   : > { %3844 = vst.msk [vmem:[%s5741_s23 + $0xa8] sm:$0xff] %vm2059_vm3, %v3459_v61  ;;  %v3300_v19 = vadd.f32 %v4084_v52, %v2771_v54  ;;  %v3215_v11 = vpop.f32.mrb[61].mxu0  ;;  %2725 = vst.msk [vmem:[#allocation3 + $0x140] sm:$0xff] %vm2059_vm3, %v2677_v1  ;;  %v2678_v28 = vadd.f32 %v2609_v2, %v2149_v38  ;;  %v2772_v46 = vld [vmem:[#allocation3 + $0x138] sm:$0xff] }
 0x24b   : > { %v3464_v51 = vld [vmem:[#allocation3 + $0x110] sm:$0xff]  ;;  %v3298_v36 = vadd.f32 %v3215_v11, %v2769_v53  ;;  %v4085_v6 = vpop.f32.mrb[62].mxu0  ;;  %2728 = vst.msk [vmem:[#allocation3 + $0x158] sm:$0xff] %vm2059_vm3, %v2680_v15  ;;  %v2770_v34 = vld [vmem:[#allocation3 + $0x128] sm:$0xff] }
 0x24c   : > { %v3466_v5 = vadd.f32 %v5728_v3, %v3464_v51  ;;  %3348 = vst.msk [vmem:[#allocation3 + $0x130] sm:$0xff] %vm2059_vm3, %v3300_v19  ;;  %v3301_v9 = vadd.f32 %v4085_v6, %v2772_v46  ;;  %v3218_v48 = vpop.f32.mrb[63].mxu0  ;;  %2726 = vst.msk [vmem:[#allocation3 + $0x148] sm:$0xff] %vm2059_vm3, %v2678_v28 }
 0x24d   : > { %3346 = vst.msk [vmem:[#allocation3 + $0x120] sm:$0xff] %vm2059_vm3, %v3298_v36  ;;  %v3299_v22 = vadd.f32 %v3218_v48, %v2770_v34 }
 0x24e   : > { %v3468_v27 = vmax.f32 %v3466_v5, 0.0  ;;  %v3463_v35 = vld [vmem:[#allocation3 + $0x108] sm:$0xff]  ;;  %3349 = vst.msk [vmem:[#allocation3 + $0x138] sm:$0xff] %vm2059_vm3, %v3301_v9  ;;  %v4040_v57 = vpop.f32.mrb[68].mxu1 }
 0x24f   : > { %v3465_v62 = vadd.f32 %v5728_v3, %v3463_v35  ;;  %3347 = vst.msk [vmem:[#allocation3 + $0x128] sm:$0xff] %vm2059_vm3, %v3299_v22  ;;  %v2683_v50 = vadd.f32 %v4040_v57, %v2154_v47  ;;  %v2622_v55 = vpop.f32.mrb[69].mxu1 }
 0x250   : > { %3846 = vst.msk [vmem:[%s5741_s23 + $0xb8] sm:$0xff] %vm2059_vm3, %v3468_v27  ;;  %v2681_v63 = vadd.f32 %v2622_v55, %v2152_v60  ;;  %v4041_v20 = vpop.f32.mrb[70].mxu1  ;;  %v2775_v32 = vld [vmem:[#allocation3 + $0x150] sm:$0xff] }
 0x251   : > { %v3467_v0 = vmax.f32 %v3465_v62, 0.0  ;;  %v4088_v12 = vpop.f32.mrb[64].mxu0  ;;  %2731 = vst.msk [vmem:[#allocation3 + $0x170] sm:$0xff] %vm2059_vm3, %v2683_v50  ;;  %v2684_v39 = vadd.f32 %v4041_v20, %v2155_v10  ;;  %v2625_v41 = vpop.f32.mrb[71].mxu1  ;;  %v2773_v26 = vld [vmem:[#allocation3 + $0x140] sm:$0xff] }
 0x252   : > { %v3304_v43 = vadd.f32 %v4088_v12, %v2775_v32  ;;  %v3231_v33 = vpop.f32.mrb[65].mxu0  ;;  %2729 = vst.msk [vmem:[#allocation3 + $0x160] sm:$0xff] %vm2059_vm3, %v2681_v63  ;;  %v2682_v24 = vadd.f32 %v2625_v41, %v2153_v8  ;;  %v2776_v18 = vld [vmem:[#allocation3 + $0x158] sm:$0xff] }
 0x253   : > { %3845 = vst.msk [vmem:[%s5741_s23 + $0xb0] sm:$0xff] %vm2059_vm3, %v3467_v0  ;;  %v3302_v17 = vadd.f32 %v3231_v33, %v2773_v26  ;;  %v4089_v42 = vpop.f32.mrb[66].mxu0  ;;  %2732 = vst.msk [vmem:[#allocation3 + $0x178] sm:$0xff] %vm2059_vm3, %v2684_v39  ;;  %v2774_v45 = vld [vmem:[#allocation3 + $0x148] sm:$0xff] }
 0x254   : > { %v3472_v40 = vld [vmem:[#allocation3 + $0x120] sm:$0xff]  ;;  %3352 = vst.msk [vmem:[#allocation3 + $0x150] sm:$0xff] %vm2059_vm3, %v3304_v43  ;;  %v3305_v37 = vadd.f32 %v4089_v42, %v2776_v18  ;;  %v3234_v23 = vpop.f32.mrb[67].mxu0  ;;  %2730 = vst.msk [vmem:[#allocation3 + $0x168] sm:$0xff] %vm2059_vm3, %v2682_v24 }
 0x255   : > { %v3474_v30 = vadd.f32 %v5728_v3, %v3472_v40  ;;  %v3481_v21 = vld [vmem:[#allocation3 + $0x138] sm:$0xff]  ;;  %3350 = vst.msk [vmem:[#allocation3 + $0x140] sm:$0xff] %vm2059_vm3, %v3302_v17  ;;  %v3303_v56 = vadd.f32 %v3234_v23, %v2774_v45 }
 0x256   : > { %v3483_v59 = vadd.f32 %v5728_v3, %v3481_v21  ;;  %v3473_v16 = vld [vmem:[#allocation3 + $0x128] sm:$0xff]  ;;  %3353 = vst.msk [vmem:[#allocation3 + $0x158] sm:$0xff] %vm2059_vm3, %v3305_v37 }
 0x257   : > { %v3476_v31 = vmax.f32 %v3474_v30, 0.0  ;;  %v3475_v58 = vadd.f32 %v5728_v3, %v3473_v16  ;;  %3351 = vst.msk [vmem:[#allocation3 + $0x148] sm:$0xff] %vm2059_vm3, %v3303_v56 }
 0x258   : > { %v3485_v44 = vmax.f32 %v3483_v59, 0.0  ;;  %v2779_v29 = vld [vmem:[#allocation3 + $0x170] sm:$0xff] }
 0x259   : > { %3847 = vst.msk [vmem:[%s5741_s23 + $0xc0] sm:$0xff] %vm2059_vm3, %v3476_v31  ;;  %v3477_v49 = vmax.f32 %v3475_v58, 0.0  ;;  %v4092_v61 = vpop.f32.mrb[68].mxu0  ;;  %v2777_v13 = vld [vmem:[#allocation3 + $0x160] sm:$0xff] }
 0x25a   : > { %3849 = vst.msk [vmem:[%s5741_s23 + $0xd0] sm:$0xff] %vm2059_vm3, %v3485_v44  ;;  %v3308_v25 = vadd.f32 %v4092_v61, %v2779_v29  ;;  %v3247_v7 = vpop.f32.mrb[69].mxu0  ;;  %v2780_v14 = vld [vmem:[#allocation3 + $0x178] sm:$0xff] }
 0x25b   : > { %3848 = vst.msk [vmem:[%s5741_s23 + $0xc8] sm:$0xff] %vm2059_vm3, %v3477_v49  ;;  %v3490_v1 = vld [vmem:[#allocation3 + $0x150] sm:$0xff]  ;;  %v3306_v4 = vadd.f32 %v3247_v7, %v2777_v13  ;;  %v4093_v54 = vpop.f32.mrb[70].mxu0  ;;  %v2778_v2 = vld [vmem:[#allocation3 + $0x168] sm:$0xff] }
 0x25c   : > { %v3492_v52 = vadd.f32 %v5728_v3, %v3490_v1  ;;  %v3482_v15 = vld [vmem:[#allocation3 + $0x140] sm:$0xff]  ;;  %3356 = vst.msk [vmem:[#allocation3 + $0x170] sm:$0xff] %vm2059_vm3, %v3308_v25  ;;  %v3309_v38 = vadd.f32 %v4093_v54, %v2780_v14  ;;  %v3250_v19 = vpop.f32.mrb[71].mxu0 }
 0x25d   : > { %v3484_v53 = vadd.f32 %v5728_v3, %v3482_v15  ;;  %v3491_v11 = vld [vmem:[#allocation3 + $0x158] sm:$0xff]  ;;  %3354 = vst.msk [vmem:[#allocation3 + $0x160] sm:$0xff] %vm2059_vm3, %v3306_v4  ;;  %v3307_v51 = vadd.f32 %v3250_v19, %v2778_v2 }
 0x25e   : > { %v3494_v28 = vmax.f32 %v3492_v52, 0.0  ;;  %v3493_v36 = vadd.f32 %v5728_v3, %v3491_v11  ;;  %3357 = vst.msk [vmem:[#allocation3 + $0x178] sm:$0xff] %vm2059_vm3, %v3309_v38 }
 0x25f   : > { %v3486_v46 = vmax.f32 %v3484_v53, 0.0  ;;  %3355 = vst.msk [vmem:[#allocation3 + $0x168] sm:$0xff] %vm2059_vm3, %v3307_v51 }
 0x260   : > { %3851 = vst.msk [vmem:[%s5741_s23 + $0xe0] sm:$0xff] %vm2059_vm3, %v3494_v28  ;;  %v3495_v6 = vmax.f32 %v3493_v36, 0.0 }
 0x261   : > { %3850 = vst.msk [vmem:[%s5741_s23 + $0xd8] sm:$0xff] %vm2059_vm3, %v3486_v46 }
 0x262   : > { %3852 = vst.msk [vmem:[%s5741_s23 + $0xe8] sm:$0xff] %vm2059_vm3, %v3495_v6 }
 0x263   : > { %v3500_v5 = vld [vmem:[#allocation3 + $0x170] sm:$0xff] }
 0x264   : > { %v3502_v9 = vadd.f32 %v5728_v3, %v3500_v5 }
 0x266   : > { %v3504_v34 = vmax.f32 %v3502_v9, 0.0  ;;  %v3499_v48 = vld [vmem:[#allocation3 + $0x168] sm:$0xff] }
 0x267   : > { %v3501_v22 = vadd.f32 %v5728_v3, %v3499_v48 }
 0x268   : > { %3854 = vst.msk [vmem:[%s5741_s23 + $0xf8] sm:$0xff] %vm2059_vm3, %v3504_v34 }
 0x269   : > { %v3503_v27 = vmax.f32 %v3501_v22, 0.0 }
 0x26b   : > { %3853 = vst.msk [vmem:[%s5741_s23 + $0xf0] sm:$0xff] %vm2059_vm3, %v3503_v27 }
 0x26c PF: > { %s14_s17 = sadd.s32 1, %s4268_s17   ;;  %s6015_s15 = smov %s4264_s16 }
 0x26d   : > { %p11_p5 = scmp.ge.s32.totalorder %s14_s17, 4   ;;  %s6016_s16 = smov %s6018_s18 }
 0x26f   :  { %13 = sbr.rel (!%p11_p5) target bundleno = 2 (0x2), region = 102 }

// kernel: up_forward.2
= control target key start
LH: loop header
LB: loop body
LE: loop exit
PB: predicated region body
PF: predicated region fallthrough
CT: control target
= control target key end

     0   :  { %s6052_s21 = smov 0   ;;  %s6054_s22 = smov 0   ;;  %s8870_s0 = inlined_call_operand.vmem [shape: bf16[2,16,16,4], index: 0, kind: input, shape index: {}]   ;;  %s8871_s1 = inlined_call_operand.vmem [shape: bf16[2,16,16,4], index: 1, kind: input, shape index: {}]   ;;  %s8872_s2 = inlined_call_operand.vmem [shape: bf16[2,2,16,4], index: 2, kind: input, shape index: {}, may-alias: {2,3}]   ;;  %s8873_s3 = inlined_call_operand.vmem [shape: bf16[2,2,16,4], index: 3, kind: input, shape index: {}, may-alias: {2,3}]   ;;  %s8874_s4 = inlined_call_operand.vmem [shape: bf16[3,24,8], index: 4, kind: input, shape index: {}]   ;;  %s8875_s5 = inlined_call_operand.vmem [shape: f32[1,8], index: 5, kind: input, shape index: {}]   ;;  %s8876_s6 = inlined_call_operand.vmem [shape: bf16[2,16,16,8], index: 6, kind: output, shape index: {}]  }
   0x1   :  { %s6056_s23 = smov 0  }
   0x2 LB: > { %s28_s24 = sadd.s32 1, %s6006_s22  ;;  %p5223_p0 = scmp.ge.s32.totalorder %s6010_s23, 1  ;;  %s6010_s23 = sphi %s6056_s23, %s16_s23   ;;  %s6006_s22 = sphi %s6054_s22, %s9308_s22   ;;  %s6002_s21 = sphi %s6052_s21, %s9307_s21  }
   0x3   : > { %p30_p1 = scmp.ge.s32.totalorder %s28_s24, 2  ;;  %p288_p2 = scmp.lt.s32.totalorder %s6010_s23, 3 }
   0x5   : > { %s9310_s24 = smov (%p30_p1, %s28_s24), 0  ;;  %p289_p3 = pnand %p5223_p0, %p288_p2 }
   0x7   : > { %292 = sbr.rel (%p289_p3) target bundleno = 862 (0x35e), region = 44 }
   0xe   : > { %p359_p4 = scmp.lt.s32.totalorder %s6002_s21, 1  ;;  %s6012_s30 = smov 8   ;;  %vm418_vm0 = vsmask.f32 256  ;;  %vm419_vm1 = vsmask.f32 4368 }
   0xf   : > { %vm465_vm2 = vsmask.f32 3328  ;;  %vm466_vm3 = vsmask.f32 7440  ;;  %s6013_s13 = smov 16   ;;  %vm6166_vm4 = vmor %vm418_vm0, %vm419_vm1  ;;  %s6014_s14 = smov 4  }
  0x10   : > { %s9312_s21 = smov (!%p359_p4, %s6002_s21), 1  ;;  %vm6177_vm5 = vmor %vm465_vm2, %vm466_vm3  ;;  %s6015_s15 = smov 12   ;;  %vm442_vm6 = vsmask.f32 7938  ;;  %vm8936_vm7 = vcmask 27648   ;;  %vm8937_vm9 = vcmask 93248  }
  0x11   : > { %s6073_s25 = sshll.u32 %s9312_s21, 7  ;;  %s5521_s29 = sshll.u32 %s9312_s21, 4  ;;  %vm6430_vm8 = vmand %vm8936_vm7, %vm442_vm6  ;;  %vm449_vm10 = vcmask 24576   ;;  %vm8964_vm12 = vcmask 158848   ;;  %vm8935_vm13 = vcmask 1043456   ;;  %vm8938_vm14 = vcmask 60448  }
  0x12   : > { %s6079_s28 = scalar_lea.vmem %s8870_s0, %s6073_s25  ;;  %s6105_s9 = scalar_lea.vmem %s8872_s2, %s5521_s29  ;;  %vm6818_vm11 = vmand %vm449_vm10, %vm418_vm0  ;;  %vm8966_vm1 = vcmask 126048  }
  0x13   : > { %v6082_v0 = vld [vmem:[%s6079_s28 + $0x44] sm:$0xf]  ;;  %v6085_v1 = vld [vmem:[%s6079_s28 + $0x3c] sm:$0xf]  ;;  %v6095_v4 = vld [vmem:[%s6079_s28 + $0x40] sm:$0xf]  ;;  %s6111_s12 = scalar_lea.vmem %s8871_s1, %s6073_s25  ;;  %s6268_s18 = scalar_lea.vmem %s8873_s3, %s5521_s29 }
  0x14   : > { %1759 = vrot.lane.b32.xlu1 %v6082_v0, %s6012_s30  ;;  %1617 = vrot.lane.b32.xlu0 %v6085_v1, %s6012_s30  ;;  %v1595_v2 = vshrl.u32 %v6085_v1, 16  ;;  %v1598_v3 = vshll.u32 %v6085_v1, 16  ;;  %v6098_v5 = vld [vmem:[%s6079_s28 + $0x38] sm:$0xf]  ;;  %v1729_v6 = vshrl.u32 %v6095_v4, 16  ;;  %v1732_v7 = vshll.u32 %v6095_v4, 16  ;;  %vm6904_vm15 = vmand %vm8964_vm12, %vm465_vm2 }
  0x15   : > { %v1587_v10 = vshrl.u32 %v6098_v5, 16  ;;  %v1590_v11 = vshll.u32 %v6098_v5, 16  ;;  %v1737_v12 = vshrl.u32 %v6082_v0, 16  ;;  %v1740_v13 = vshll.u32 %v6082_v0, 16  ;;  %v6128_v14 = vld [vmem:[%s6105_s9 + $0x4] sm:$0xf]  ;;  %vm7061_vm3 = vmand %vm8938_vm14, %vm442_vm6 }
  0x16   : > { %v1627_v8 = vrot.slane %v1598_v3, 5  ;;  %v1629_v9 = vrot.slane %v1595_v2, 4  ;;  %v6131_v15 = vld [vmem:[%s6079_s28 + $0x4c] sm:$0xf]  ;;  %v6134_v16 = vld [vmem:[%s6111_s12 + $0x38] sm:$0xf] }
  0x17   : > { %v6138_v17 = vrot.slane %v1732_v7, 5  ;;  %v6141_v18 = vld [vmem:[%s6111_s12 + $0x3c] sm:$0xf]  ;;  %v1766_v19 = vrot.slane %v1729_v6, 4  ;;  %v6147_v20 = vrot.slane %v1590_v11, 5  ;;  %v1624_v21 = vrot.slane %v1587_v10, 4 }
  0x18   : > { %1757 = vrot.lane.b32.xlu1 %v6095_v4, %s6012_s30  ;;  %1615 = vrot.lane.b32.xlu0 %v6098_v5, %s6012_s30  ;;  %v1630_v22 = vor.u32 %v1629_v9, %v1627_v8  ;;  %v1769_v23 = vrot.slane %v1740_v13, 5  ;;  %v1771_v24 = vrot.slane %v1737_v12, 4  ;;  %v1649_v25 = vshrl.u32 %v6134_v16, 16  ;;  %v6209_v52 = vld [vmem:[%s6079_s28 + $0x48] sm:$0xf]  ;;  %s6016_s19 = smov 20  }
  0x19   : > { %8977 = vst [vmem:[#allocation4_spill] sm:$0xff] %v6147_v20  ;;  %v1657_v27 = vshrl.u32 %v6141_v18, 16  ;;  %v1660_v29 = vshll.u32 %v6141_v18, 16  ;;  %v1767_v32 = vor.u32 %v1766_v19, %v6138_v17  ;;  %v1625_v33 = vor.u32 %v1624_v21, %v6147_v20  ;;  %v6215_v56 = vld [vmem:[%s6111_s12 + $0x40] sm:$0xf] }
  0x1a   : > { %v1631_v26 = vrot.slane %v1630_v22, 4  ;;  %v1651_v28 = vrot.slane %v1649_v25, 7  ;;  %v1772_v36 = vor.u32 %v1771_v24, %v1769_v23  ;;  %v433_v40 = vshll.u32 %v6128_v14, 16  ;;  %v6230_v63 = vld [vmem:[%s6079_s28 + $0x54] sm:$0xf] }
  0x1b   : > { %v6172_v31 = vrot.slane %v1657_v27, 7  ;;  %v1768_v38 = vrot.slane %v1767_v32, 4  ;;  %v1626_v39 = vrot.slane %v1625_v33, 4  ;;  %v430_v43 = vshrl.u32 %v6128_v14, 16  ;;  %v6236_v9 = vld [vmem:[%s6111_s12 + $0x44] sm:$0xf] }
  0x1c   : > { %458 = vrot.lane.b32.xlu1 %v6128_v14, %s6012_s30  ;;  %1901 = vrot.lane.b32.xlu0 %v6131_v15, %s6012_s30  ;;  %v1655_v34 = vrot.slane %v1651_v28, 4  ;;  %v1879_v44 = vshrl.u32 %v6131_v15, 16  ;;  %v1882_v45 = vshll.u32 %v6131_v15, 16  ;;  %v1773_v46 = vrot.slane %v1772_v36, 4  ;;  %v1606_v15 = vld [vmem:[#allocation2 + $0x64] sm:$0xf] }
  0x1d   : > { %v1662_v37 = vor.u32 %v1660_v29, %v6172_v31  ;;  %v1770_v42 = vsel %vm6177_vm5, %v1768_v38, %v1769_v23  ;;  %v1628_v47 = vsel %vm6177_vm5, %v1626_v39, %v1627_v8  ;;  %v6198_v48 = vrot.slane %v433_v40, 5  ;;  %v6233_v8 = vld [vmem:[%s6105_s9] sm:$0xf] }
  0x1e   : > { %v474_v49 = vrot.slane %v430_v43, 4  ;;  %v1911_v50 = vrot.slane %v1882_v45, 5  ;;  %v1913_v51 = vrot.slane %v1879_v44, 4  ;;  %v1652_v53 = vshll.u32 %v6134_v16, 16 }
  0x1f   : > { %v1663_v41 = vsel %vm6166_vm4, %v1655_v34, %v1662_v37  ;;  %v1871_v54 = vshrl.u32 %v6209_v52, 16  ;;  %v8887_v55 = vshll.u32 %v6209_v52, 16  ;;  %v8889_v60 = vshrl.u32 %v6215_v56, 16 }
  0x20   : > { %1636 = vrot.lane.b32.xlu1 %v1631_v26, %s6013_s13  ;;  %1667 = vrot.lane.b32.xlu0 %v1663_v41, %s6014_s14  ;;  %v1654_v57 = vor.u32 %v1652_v53, %v1651_v28  ;;  %v1914_v58 = vor.u32 %v1913_v51, %v1911_v50  ;;  %v475_v59 = vor.u32 %v474_v49, %v6198_v48  ;;  %v422_v19 = vshrl.u32 %v6233_v8, 16  ;;  %v6283_v51 = vld [vmem:[%s6268_s18] sm:$0xf] }
  0x21   : > { %v6225_v61 = vrot.slane %v8887_v55, 5  ;;  %v1908_v62 = vrot.slane %v1871_v54, 4  ;;  %v8886_v21 = vshll.u32 %v6233_v8, 16  ;;  %v1793_v24 = vrot.slane %v8889_v60, 7 }
  0x22   : > { %v1915_v22 = vrot.slane %v1914_v58, 4  ;;  %v476_v23 = vrot.slane %v475_v59, 4  ;;  %v1794_v26 = vshll.u32 %v6215_v56, 16  ;;  %v8879_v32 = vshrl.u32 %v6236_v9, 16  ;;  %v6292_v59 = vld [vmem:[%s6079_s28] sm:$0xf] }
  0x23   : > { %v1909_v28 = vor.u32 %v1908_v62, %v6225_v61  ;;  %v6250_v33 = vrot.slane %v8886_v21, 5  ;;  %v469_v34 = vrot.slane %v422_v19, 4  ;;  %v8884_v39 = vshll.u32 %v6236_v9, 16  ;;  %v6297_v62 = vld [vmem:[%s6111_s12 + $0x48] sm:$0xf] }
  0x24   : > { %1776 = vrot.lane.b32.xlu1 %v1770_v42, %s6013_s13  ;;  %1634 = vrot.lane.b32.xlu0 %v1628_v47, %s6013_s13  ;;  %v1796_v36 = vor.u32 %v1794_v26, %v1793_v24  ;;  %v6260_v38 = vrot.slane %v8879_v32, 7  ;;  %v6275_v42 = vld [vmem:[%s6079_s28 + $0x4] sm:$0xf]  ;;  %v1797_v47 = vrot.slane %v1793_v24, 4  ;;  %v1873_v0 = vrot.slane %v1871_v54, 7 }
  0x25   : > { %8982 = vst [vmem:[#allocation5_spill] sm:$0xff] %v6250_v33  ;;  %v1910_v37 = vrot.slane %v1909_v28, 4  ;;  %v470_v41 = vor.u32 %v469_v34, %v6250_v33  ;;  %v6304_v28 = vrot.slane %v1652_v53, 5  ;;  %v1697_v53 = vrot.slane %v1657_v27, 4  ;;  %v6405_v21 = vld [vmem:[%s6079_s28 + $0x50] sm:$0xf] }
  0x26   : > { %v1804_v49 = vor.u32 %v8884_v39, %v6260_v38  ;;  %v6339_v27 = vrot.slane %v1595_v2, 7  ;;  %v6380_v39 = vrot.slane %v430_v43, 7  ;;  %v604_v1 = vshll.u32 %v6275_v42, 16 }
  0x27   : > { %v471_v58 = vrot.slane %v470_v41, 4  ;;  %8983 = vst [vmem:[#allocation6_spill] sm:$0xff] %v6304_v28  ;;  %v6316_v41 = vrot.slane %v1660_v29, 5  ;;  %v1692_v29 = vrot.slane %v1649_v25, 4  ;;  %v1877_v60 = vrot.slane %v1873_v0, 4 }
  0x28   : > { %1778 = vrot.lane.b32.xlu1 %v1773_v46, %s6013_s13  ;;  %1685 = vrot.lane.b32.xlu0 %v6141_v18, %s6015_s15  ;;  %v1912_v46 = vsel %vm6177_vm5, %v1910_v37, %v1911_v50  ;;  %v1805_v50 = vsel %vm6166_vm4, %v1797_v47, %v1804_v49  ;;  %v8881_v37 = vshll.u32 %v6292_v59, 16  ;;  %v6335_v18 = vrot.slane %v1737_v12, 7  ;;  %v6361_v12 = vld [vmem:[%s6079_s28 + $0xc] sm:$0xf] }
  0x29   : > { %v473_v34 = vsel %vm6177_vm5, %v471_v58, %v6198_v48  ;;  %v1698_v2 = vor.u32 %v1697_v53, %v6316_v41  ;;  %v1693_v53 = vor.u32 %v1692_v29, %v6304_v28  ;;  %v6422_v5 = vrot.slane %v604_v1, 5 }
  0x2a   : > { %v6350_v25 = vrot.slane %v8881_v37, 5  ;;  %v1600_v37 = vor.u32 %v1598_v3, %v6339_v27  ;;  %vm8948_vm6 = vcmask 191648  }
  0x2b   : > { %v1699_v3 = vrot.slane %v1698_v2, 4  ;;  %v1694_v29 = vrot.slane %v1693_v53, 4  ;;  %v2021_v53 = vshrl.u32 %v6230_v63, 16  ;;  %vm7170_vm10 = vmand %vm8948_vm6, %vm465_vm2  ;;  %vm8947_vm2 = vsmask.f32 7950 }
  0x2c   : > { %1899 = vrot.lane.b32.xlu1 %v6209_v52, %s6012_s30  ;;  %1665 = vrot.lane.b32.xlu0 %v1654_v57, %s6014_s14  ;;  %v6286_v57 = vld [vmem:[%s6268_s18 + $0x4] sm:$0xf] }
  0x2d   : > { %v8878_v24 = vshrl.u32 %v6286_v57, 16  ;;  %v8885_v58 = vshll.u32 %v6286_v57, 16 }
  0x2f   : > { %v6328_v49 = vrot.slane %v8878_v24, 7 }
  0x30   : > { %2043 = vrot.lane.b32.xlu1 %v6230_v63, %s6012_s30  ;;  %1920 = vrot.lane.b32.xlu0 %v1915_v22, %s6013_s13  ;;  %v6300_v22 = vld [vmem:[%s6111_s12 + $0x4c] sm:$0xf] }
  0x31   : > { %v8883_v48 = vshrl.u32 %v6300_v22, 16 }
  0x34   : > { %481 = vrot.lane.b32.xlu1 %v476_v23, %s6013_s13  ;;  %456 = vrot.lane.b32.xlu0 %v6233_v8, %s6012_s30  ;;  %v8877_v23 = vshrl.u32 %v6283_v51, 16 }
  0x36   : > { %v6324_v47 = vrot.slane %v8877_v23, 7  ;;  %v1589_v23 = vrot.slane %v1587_v10, 7  ;;  %v8888_v10 = vshll.u32 %v6300_v22, 16 }
  0x38   : > { %1807 = vrot.lane.b32.xlu1 %v1796_v36, %s6014_s14  ;;  %623 = vrot.lane.b32.xlu0 %v6275_v42, %s6012_s30  ;;  %v8882_v36 = vshrl.u32 %v6292_v59, 16  ;;  %v506_v32 = vrot.slane %v6324_v47, 4  ;;  %v1592_v55 = vor.u32 %v1590_v11, %v1589_v23  ;;  %v2013_v11 = vshrl.u32 %v6405_v21, 16 }
  0x3a   : > { %v630_v24 = vrot.slane %v8882_v36, 4 }
  0x3c   : > { %1918 = vrot.lane.b32.xlu1 %v1912_v46, %s6013_s13  ;;  %1809 = vrot.lane.b32.xlu0 %v1805_v50, %s6014_s14  ;;  %v8880_v46 = vshrl.u32 %v6297_v62, 16  ;;  %v1731_v50 = vrot.slane %v1729_v6, 7  ;;  %v631_v43 = vor.u32 %v630_v24, %v6350_v25  ;;  %v435_v24 = vor.u32 %v433_v40, %v6380_v39 }
  0x3e   : > { %v6357_v6 = vrot.slane %v8880_v46, 7  ;;  %v1742_v46 = vor.u32 %v1740_v13, %v6335_v18  ;;  %v1735_v36 = vrot.slane %v1731_v50, 4  ;;  %v6390_v13 = vrot.slane %v422_v19, 7 }
  0x3f   : > { %v1734_v2 = vor.u32 %v1732_v7, %v1731_v50  ;;  %v632_v7 = vrot.slane %v631_v43, 4  ;;  %v1607_v50 = vsel %vm6430_vm8, %v1592_v55, %v1606_v15  ;;  %v8991_v15 = vshll.u32 %v6233_v8, 16 }
  0x40   : > { %621 = vrot.lane.b32.xlu1 %v6292_v59, %s6012_s30  ;;  %479 = vrot.lane.b32.xlu0 %v473_v34, %s6013_s13  ;;  %v6365_v34 = vrot.slane %v8883_v48, 7  ;;  %v1593_v48 = vrot.slane %v1589_v23, 4  ;;  %v428_v4 = vrot.slane %v6390_v13, 4  ;;  %v2016_v23 = vshll.u32 %v6405_v21, 16  ;;  %1608 = vst [vmem:[#allocation2 + $0x64] sm:$0xf] %v1607_v50 }
  0x41   : > { %v8994_v50 = vshrl.u32 %v6292_v59, 16 }
  0x42   : > { %8984 = vst [vmem:[#allocation7_spill] sm:$0xff] %v6365_v34  ;;  %v1946_v54 = vor.u32 %v8888_v10, %v6365_v34  ;;  %v6461_v55 = vrot.slane %v2016_v23, 5 }
  0x44   : > { %1683 = vrot.lane.b32.xlu1 %v6134_v16, %s6015_s15  ;;  %v513_v16 = vor.u32 %v8885_v58, %v6328_v49  ;;  %v6384_v58 = vrot.slane %v1879_v44, 7  ;;  %765 = vrot.lane.b32.xlu0 %v6361_v12, %s6012_s30  ;;  %v1939_v44 = vrot.slane %v6357_v6, 4 }
  0x46   : > { %8985 = vst [vmem:[#allocation8_spill] sm:$0xff] %v6384_v58  ;;  %v514_v19 = vsel %vm6166_vm4, %v506_v32, %v513_v16  ;;  %v1884_v10 = vor.u32 %v1882_v45, %v6384_v58  ;;  %v1743_v32 = vsel %vm6166_vm4, %v1735_v36, %v1742_v46  ;;  %v1748_v16 = vld [vmem:[#allocation2 + $0x70] sm:$0xf]  ;;  %v1947_v40 = vsel %vm6166_vm4, %v1939_v44, %v1946_v54 }
  0x47   : > { %1751 = vst.msk [vmem:[#allocation2 + $0x74] sm:$0xf] %vm8936_vm7, %v1743_v32  ;;  %v1696_v45 = vsel %vm6177_vm5, %v1694_v29, %v6316_v41  ;;  %v1601_v36 = vsel %vm6166_vm4, %v1593_v48, %v1600_v37  ;;  %v1749_v46 = vsel %vm6430_vm8, %v1734_v2, %v1748_v16  ;;  %v634_v37 = vsel %vm6177_vm5, %v632_v7, %v6422_v5  ;;  %v1890_v7 = vld [vmem:[#allocation2 + $0x7c] sm:$0xf] }
  0x48   : > { %1827 = vrot.lane.b32.xlu1 %v6236_v9, %s6015_s15  ;;  %1704 = vrot.lane.b32.xlu0 %v1699_v3, %s6016_s19  ;;  %1609 = vst.msk [vmem:[#allocation2 + $0x68] sm:$0xf] %vm8936_vm7, %v1601_v36  ;;  %v6450_v3 = vrot.slane %v1794_v26, 5  ;;  %1750 = vst [vmem:[#allocation2 + $0x70] sm:$0xf] %v1749_v46  ;;  %v436_v41 = vsel %vm6166_vm4, %v428_v4, %v435_v24  ;;  %v2050_v48 = vrot.slane %v2013_v11, 4 }
  0x49   : > { %v8988_v26 = vshrl.u32 %v6215_v56, 16  ;;  %448 = vst.msk [vmem:[#allocation2 + $0x8] sm:$0xf] %vm8936_vm7, %v436_v41  ;;  %v1885_v44 = vsel %vm6166_vm4, %v1877_v60, %v1884_v10  ;;  %v6468_v54 = vrot.slane %v2021_v53, 7  ;;  %v2024_v29 = vshll.u32 %v6230_v63, 16 }
  0x4a   : > { %1893 = vst.msk [vmem:[#allocation2 + $0x80] sm:$0xf] %vm8936_vm7, %v1885_v44  ;;  %v601_v2 = vshrl.u32 %v6275_v42, 16  ;;  %v5827_v24 = vpack.i.bf16 %v6225_v61, %v6138_v17  ;;  %v8990_v60 = vshll.u32 %v6209_v52, 16  ;;  %v2051_v16 = vor.u32 %v2050_v48, %v6461_v55  ;;  %v6507_v41 = vld [vmem:[%s6079_s28 + $0x8] sm:$0xf] }
  0x4b   : > { %v1834_v43 = vrot.slane %v8988_v26, 4  ;;  %8989 = vst [vmem:[#allocation9_spill] sm:$0xff] %v6468_v54  ;;  %v2026_v4 = vor.u32 %v2024_v29, %v6468_v54  ;;  %v743_v17 = vshrl.u32 %v6361_v12, 16  ;;  %v746_v52 = vshll.u32 %v6361_v12, 16  ;;  %v6538_v42 = vld [vmem:[%s6079_s28 + $0x5c] sm:$0xf] }
  0x4c   : > { %518 = vrot.lane.b32.xlu1 %v514_v19, %s6014_s14  ;;  %1951 = vrot.lane.b32.xlu0 %v1947_v40, %s6014_s14  ;;  %v6470_v19 = vrot.slane %v2013_v11, 7  ;;  %v1876_v10 = vor.u32 %v8990_v60, %v1873_v0  ;;  %v2053_v11 = vrot.slane %v2024_v29, 5  ;;  %v635_v40 = vrot.slane %v601_v2, 4 }
  0x4d   : > { %v1835_v32 = vor.u32 %v1834_v43, %v6450_v3  ;;  %v8992_v0 = vshll.u32 %v6236_v9, 16  ;;  %v2052_v36 = vrot.slane %v2051_v16, 4  ;;  %v6500_v46 = vrot.slane %v601_v2, 7 }
  0x4e   : > { %v2019_v63 = vrot.slane %v6470_v19, 4  ;;  %v1891_v8 = vsel %vm6430_vm8, %v1876_v10, %v1890_v7  ;;  %v595_v12 = vrot.slane %v8994_v50, 7  ;;  %v2055_v48 = vrot.slane %v2021_v53, 4  ;;  %v6560_v50 = vld [vmem:[%s6079_s28 + $0x58] sm:$0xf] }
  0x4f   : > { %v1836_v61 = vrot.slane %v1835_v32, 4  ;;  %8993 = vst [vmem:[#allocation10_spill] sm:$0xff] %v6500_v46  ;;  %1892 = vst [vmem:[#allocation2 + $0x7c] sm:$0xf] %v1891_v8  ;;  %v636_v26 = vor.u32 %v635_v40, %v6422_v5  ;;  %v735_v43 = vshrl.u32 %v6507_v41, 16  ;;  %v6518_v29 = vrot.slane %v746_v52, 5 }
  0x50   : > { %1702 = vrot.lane.b32.xlu1 %v1696_v45, %s6016_s19  ;;  %640 = vrot.lane.b32.xlu0 %v634_v37, %s6013_s13  ;;  %v6496_v45 = vrot.slane %v8992_v0, 5  ;;  %v2027_v37 = vsel %vm6166_vm4, %v2019_v63, %v2026_v4  ;;  %v777_v2 = vrot.slane %v743_v17, 4  ;;  %v606_v5 = vor.u32 %v604_v1, %v6500_v46  ;;  %v6550_v8 = vld [vmem:[%s6111_s12] sm:$0xf] }
  0x51   : > { %2035 = vst.msk [vmem:[#allocation2 + $0x8c] sm:$0xf] %vm8936_vm7, %v2027_v37  ;;  %v599_v60 = vrot.slane %v595_v12, 4  ;;  %v6528_v10 = vrot.slane %v743_v17, 7  ;;  %v6530_v32 = vrot.slane %v735_v43, 7  ;;  %v637_v16 = vrot.slane %v636_v26, 4 }
  0x52   : > { %v1838_v53 = vsel %vm6177_vm5, %v1836_v61, %v6496_v45  ;;  %v2056_v4 = vor.u32 %v2055_v48, %v2053_v11  ;;  %v8894_v63 = vshll.u32 %v6283_v51, 16  ;;  %v8996_v7 = vshll.u32 %v6292_v59, 16  ;;  %v612_v61 = vld [vmem:[#allocation2 + $0x10] sm:$0xf]  ;;  %v6570_v26 = vld [vmem:[%s6111_s12 + $0x54] sm:$0xf] }
  0x53   : > { %8995 = vst [vmem:[#allocation11_spill] sm:$0xff] %v6528_v10  ;;  %v8896_v1 = vshll.u32 %v6297_v62, 16  ;;  %v748_v40 = vor.u32 %v746_v52, %v6528_v10  ;;  %v741_v17 = vrot.slane %v6530_v32, 4  ;;  %v8897_v59 = vshll.u32 %v6507_v41, 16  ;;  %v6567_v48 = vld [vmem:[%s6111_s12 + $0x50] sm:$0xf] }
  0x54   : > { %1825 = vrot.lane.b32.xlu1 %v6215_v56, %s6015_s15  ;;  %v427_v56 = vor.u32 %v8991_v15, %v6390_v13  ;;  %5828 = vrot.lane.b32.xlu0 %v5827_v24, %s6013_s13  ;;  %v444_v13 = vld [vmem:[#allocation2 + $0x4] sm:$0xf]  ;;  %v2054_v24 = vsel %vm6177_vm5, %v2052_v36, %v2053_v11  ;;  %v598_v15 = vor.u32 %v8996_v7, %v595_v12  ;;  %v8997_v0 = vshrl.u32 %v6236_v9, 16 }
  0x55   : > { %v607_v11 = vsel %vm6166_vm4, %v599_v60, %v606_v5  ;;  %v2057_v52 = vrot.slane %v2056_v4, 4  ;;  %v8891_v12 = vshrl.u32 %v6538_v42, 16  ;;  %v1938_v9 = vor.u32 %v8896_v1, %v6357_v6 }
  0x56   : > { %v445_v44 = vsel %vm6430_vm8, %v427_v56, %v444_v13  ;;  %v778_v56 = vor.u32 %v777_v2, %v6518_v29  ;;  %v1839_v36 = vrot.slane %v8997_v0, 4  ;;  %615 = vst.msk [vmem:[#allocation2 + $0x14] sm:$0xf] %vm8936_vm7, %v607_v11  ;;  %v505_v13 = vor.u32 %v8894_v63, %v6324_v47 }
  0x57   : > { %446 = vst [vmem:[#allocation2 + $0x4] sm:$0xf] %v445_v44  ;;  %v613_v44 = vsel %vm6430_vm8, %v598_v15, %v612_v61  ;;  %v8893_v2 = vshrl.u32 %v6550_v8, 16  ;;  %v2086_v47 = vshll.u32 %v6570_v26, 16  ;;  %v6581_v6 = vrot.slane %v8897_v59, 5 }
  0x58   : > { %541 = vrot.lane.b32.xlu1 %v6286_v57, %s6015_s15  ;;  %1969 = vrot.lane.b32.xlu0 %v6300_v22, %s6015_s15  ;;  %v779_v37 = vrot.slane %v778_v56, 4  ;;  %614 = vst [vmem:[#allocation2 + $0x10] sm:$0xf] %v613_v44  ;;  %v772_v5 = vrot.slane %v735_v43, 4  ;;  %v1840_v60 = vor.u32 %v1839_v36, %v6496_v45  ;;  %v2075_v4 = vshrl.u32 %v6567_v48, 16 }
  0x59   : > { %v2083_v7 = vshrl.u32 %v6570_v26, 16  ;;  %v6591_v15 = vld [vmem:[%s6111_s12 + $0x4] sm:$0xf]  ;;  %v6597_v45 = vrot.slane %v2086_v47, 5  ;;  %v6601_v56 = vrot.slane %v8891_v12, 7  ;;  %v8898_v11 = vshll.u32 %v6550_v8, 16 }
  0x5a   : > { %v2118_v0 = vrot.slane %v2075_v4, 4  ;;  %v2018_v36 = vor.u32 %v2016_v23, %v6470_v19  ;;  %v8899_v44 = vshrl.u32 %v6591_v15, 16  ;;  %v6625_v12 = vrot.slane %v2075_v4, 7 }
  0x5b   : > { %8998 = vst [vmem:[#allocation12_spill] sm:$0xff] %v6601_v56  ;;  %v6612_v61 = vrot.slane %v2083_v7, 4  ;;  %v9001_v59 = vshll.u32 %v6300_v22, 16 }
  0x5c   : > { %2041 = vrot.lane.b32.xlu1 %v6405_v21, %s6012_s30  ;;  %1844 = vrot.lane.b32.xlu0 %v1838_v53, %s6016_s19  ;;  %v8890_v53 = vshll.u32 %v6567_v48, 16 }
  0x5e   : > { %v6595_v43 = vrot.slane %v8890_v53, 5  ;;  %v6623_v53 = vld [vmem:[%s6079_s28 + $0x14] sm:$0xf] }
  0x60   : > { %2060 = vrot.lane.b32.xlu1 %v2054_v24, %s6013_s13  ;;  %2185 = vrot.lane.b32.xlu0 %v6538_v42, %s6012_s30  ;;  %v749_v24 = vsel %vm6166_vm4, %v741_v17, %v748_v40  ;;  %v6609_v17 = vrot.slane %v8893_v2, 7  ;;  %v2119_v23 = vor.u32 %v2118_v0, %v6595_v43  ;;  %v6646_v2 = vld [vmem:[%s6079_s28 + $0x10] sm:$0xf] }
  0x61   : > { %757 = vst.msk [vmem:[#allocation2 + $0x20] sm:$0xf] %vm8936_vm7, %v749_v24  ;;  %v1841_v24 = vrot.slane %v1840_v60, 4  ;;  %v2032_v60 = vld [vmem:[#allocation2 + $0x88] sm:$0xf]  ;;  %v8902_v0 = vshrl.u32 %v6646_v2, 16 }
  0x62   : > { %v660_v4 = vor.u32 %v8898_v11, %v6609_v17  ;;  %v6648_v63 = vrot.slane %v2119_v23, 4  ;;  %v2081_v11 = vrot.slane %v6625_v12, 4  ;;  %v9002_v23 = vshrl.u32 %v6300_v22, 16 }
  0x63   : > { %v2033_v1 = vsel %vm6430_vm8, %v2018_v36, %v2032_v60  ;;  %v9006_v36 = vshrl.u32 %v6623_v53, 16  ;;  %v9008_v60 = vshll.u32 %v6507_v41, 16 }
  0x64   : > { %642 = vrot.lane.b32.xlu1 %v637_v16, %s6013_s13  ;;  %v8892_v16 = vshrl.u32 %v6560_v50, 16  ;;  %2062 = vrot.lane.b32.xlu0 %v2057_v52, %s6013_s13  ;;  %v8895_v52 = vshll.u32 %v6538_v42, 16  ;;  %2034 = vst [vmem:[#allocation2 + $0x88] sm:$0xf] %v2033_v1 }
  0x65   : > { %v6691_v1 = vrot.slane %v9006_v36, 7 }
  0x66   : > { %v6605_v40 = vrot.slane %v8892_v16, 7  ;;  %v6628_v16 = vld [vmem:[%s6079_s28 + $0x6c] sm:$0xf]  ;;  %v2168_v19 = vor.u32 %v8895_v52, %v6601_v56 }
  0x67   : > { %9007 = vst [vmem:[#allocation16_spill] sm:$0xff] %v6691_v1 }
  0x68   : > { %516 = vrot.lane.b32.xlu1 %v505_v13, %s6014_s14  ;;  %v773_v13 = vor.u32 %v772_v5, %v6581_v6  ;;  %1949 = vrot.lane.b32.xlu0 %v1938_v9, %s6014_s14  ;;  %v6637_v5 = vrot.slane %v2083_v7, 7  ;;  %v6652_v7 = vrot.slane %v8899_v44, 7  ;;  %v6657_v9 = vrot.slane %v9001_v59, 5  ;;  %v6672_v59 = vld [vmem:[%s6079_s28 + $0x68] sm:$0xf] }
  0x69   : > { %v8904_v22 = vshrl.u32 %v6672_v59, 16  ;;  %v9005_v44 = vshrl.u32 %v6628_v16, 16 }
  0x6a   : > { %8999 = vst [vmem:[#allocation13_spill] sm:$0xff] %v6637_v5  ;;  %v774_v52 = vrot.slane %v773_v13, 4  ;;  %9000 = vst [vmem:[#allocation14_spill] sm:$0xff] %v6652_v7  ;;  %v1981_v13 = vrot.slane %v9002_v23, 4  ;;  %v2088_v21 = vor.u32 %v2086_v47, %v6637_v5  ;;  %v9003_v23 = vshll.u32 %v6628_v16, 16 }
  0x6b   : > { %v6685_v28 = vrot.slane %v9005_v44, 4  ;;  %v8903_v47 = vshll.u32 %v6672_v59, 16  ;;  %v2476_v36 = vrot.slane %v8904_v22, 4 }
  0x6c   : > { %784 = vrot.lane.b32.xlu1 %v779_v37, %s6013_s13  ;;  %v2161_v37 = vrot.slane %v6605_v40, 4  ;;  %763 = vrot.lane.b32.xlu0 %v6507_v41, %s6012_s30  ;;  %v6681_v33 = vrot.slane %v9003_v23, 5  ;;  %v740_v23 = vor.u32 %v9008_v60, %v6530_v32  ;;  %v1982_v44 = vor.u32 %v1981_v13, %v6657_v9  ;;  %v754_v60 = vld [vmem:[#allocation2 + $0x1c] sm:$0xf] }
  0x6d   : > { %v776_v41 = vsel %vm6177_vm5, %v774_v52, %v6518_v29  ;;  %v661_v32 = vrot.slane %v6609_v17, 4 }
  0x6e   : > { %9004 = vst [vmem:[#allocation15_spill] sm:$0xff] %v6681_v33  ;;  %v1983_v29 = vrot.slane %v1982_v44, 4  ;;  %v755_v52 = vsel %vm6430_vm8, %v740_v23, %v754_v60  ;;  %v9012_v23 = vshrl.u32 %v6286_v57, 16 }
  0x6f   : > { %756 = vst [vmem:[#allocation2 + $0x1c] sm:$0xf] %v755_v52 }
  0x70   : > { %1846 = vrot.lane.b32.xlu1 %v1841_v24, %s6016_s19  ;;  %v2169_v24 = vsel %vm6166_vm4, %v2161_v37, %v2168_v19  ;;  %v8905_v19 = vshll.u32 %v6623_v53, 16  ;;  %v6696_v37 = vrot.slane %v8902_v0, 7  ;;  %907 = vrot.lane.b32.xlu0 %v6623_v53, %s6012_s30  ;;  %v2089_v0 = vsel %vm6166_vm4, %v2081_v11, %v2088_v21 }
  0x71   : > { %2177 = vst.msk [vmem:[#allocation2 + $0x98] sm:$0xf] %vm8936_vm7, %v2169_v24  ;;  %v6707_v24 = vrot.slane %v8903_v47, 5  ;;  %v6737_v47 = vld [vmem:[%s6111_s12 + $0xc] sm:$0xf] }
  0x72   : > { %v890_v22 = vor.u32 %v8905_v19, %v6691_v1  ;;  %v883_v11 = vrot.slane %v6696_v37, 4  ;;  %v8907_v60 = vshrl.u32 %v6737_v47, 16 }
  0x73   : > { %9009 = vst [vmem:[#allocation17_spill] sm:$0xff] %v6707_v24  ;;  %v2477_v17 = vor.u32 %v2476_v36, %v6707_v24  ;;  %v554_v36 = vrot.slane %v9012_v23, 4  ;;  %v6780_v23 = vld [vmem:[%s6079_s28 + $0x60] sm:$0xf] }
  0x74   : > { %671 = vrot.lane.b32.xlu1 %v660_v4, %s6014_s14  ;;  %v9010_v4 = vshll.u32 %v6591_v15, 16  ;;  %2093 = vrot.lane.b32.xlu0 %v2089_v0, %s6014_s14  ;;  %v891_v19 = vsel %vm6166_vm4, %v883_v11, %v890_v22  ;;  %v9011_v0 = vshll.u32 %v6286_v57, 16  ;;  %v9015_v11 = vshrl.u32 %v6297_v62, 16 }
  0x75   : > { %899 = vst.msk [vmem:[#allocation2 + $0x2c] sm:$0xf] %vm8936_vm7, %v891_v19  ;;  %v6775_v52 = vrot.slane %v8907_v60, 7  ;;  %v1602_v57 = vrot.slane %v6339_v27, 4  ;;  %v9020_v27 = vshll.u32 %v6737_v47, 16  ;;  %v9021_v60 = vshll.u32 %v6538_v42, 16 }
  0x76   : > { %v668_v13 = vor.u32 %v9010_v4, %v6652_v7  ;;  %v6734_v4 = vld [vmem:[%s6111_s12 + $0x8] sm:$0xf]  ;;  %v6745_v44 = vrot.slane %v9011_v0, 5 }
  0x77   : > { %v8906_v22 = vshrl.u32 %v6734_v4, 16  ;;  %9016 = vst [vmem:[#allocation19_spill] sm:$0xff] %v6775_v52  ;;  %v6809_v10 = vrot.slane %v9021_v60, 5  ;;  %v6827_v60 = vld [vmem:[%s6079_s28 + $0x64] sm:$0xf] }
  0x78   : > { %782 = vrot.lane.b32.xlu1 %v776_v41, %s6013_s13  ;;  %v669_v21 = vsel %vm6166_vm4, %v661_v32, %v668_v13  ;;  %v6750_v41 = vrot.slane %v2477_v17, 4  ;;  %v9014_v32 = vshll.u32 %v6297_v62, 16  ;;  %v555_v19 = vor.u32 %v554_v36, %v6745_v44 }
  0x79   : > { %673 = vrot.lane.b32.xlu0 %v669_v21, %s6014_s14  ;;  %v6771_v17 = vrot.slane %v8906_v22, 7  ;;  %v9019_v36 = vshrl.u32 %v6283_v51, 16 }
  0x7a   : > { %9013 = vst [vmem:[#allocation18_spill] sm:$0xff] %v6750_v41  ;;  %v6754_v13 = vrot.slane %v9014_v32, 5  ;;  %v556_v22 = vrot.slane %v555_v19, 4  ;;  %v5908_v19 = vld [vmem:[%s8874_s4] sm:$0xff]  }
  0x7b   : > { %5790 = vmatprep.subr.bf16.mxu1 %v5908_v19  ;;  %5634 = vmatprep.subr.bf16.mxu0 %v5908_v19 }
  0x7c   : > { %1988 = vrot.lane.b32.xlu1 %v1983_v29, %s6016_s19  ;;  %v1976_v29 = vrot.slane %v9015_v11, 4  ;;  %v549_v11 = vrot.slane %v9019_v36, 4  ;;  %v810_v36 = vor.u32 %v9020_v27, %v6775_v52  ;;  %v9023_v52 = vshrl.u32 %v6550_v8, 16  ;;  %5792 = vmatpush3.bf16.msra.mxu1 %v5908_v19 }
  0x7d   : > { %1967 = vrot.lane.b32.xlu0 %v6297_v62, %s6015_s15  ;;  %v9017_v62 = vshll.u32 %v6283_v51, 16  ;;  %5635 = vmatpush3.bf16.msra.mxu0 %v5908_v19  ;;  %v6891_v19 = vld [vmem:[%s6111_s12 + $0x14] sm:$0xf] }
  0x7e   : > { %v1977_v0 = vor.u32 %v1976_v29, %v6754_v13  ;;  %v1664_v29 = vrot.slane %v6172_v31, 4  ;;  %v698_v56 = vrot.slane %v9023_v52, 4 }
  0x7f   : > { %v6784_v32 = vrot.slane %v9017_v62, 5  ;;  %v2158_v62 = vshll.u32 %v6560_v50, 16 }
  0x80   : > { %539 = vrot.lane.b32.xlu1 %v6283_v51, %s6015_s15  ;;  %v803_v51 = vrot.slane %v6771_v17, 4  ;;  %v1978_v1 = vrot.slane %v1977_v0, 4  ;;  %v9022_v0 = vshll.u32 %v6550_v8, 16 }
  0x81   : > { %9018 = vst [vmem:[#allocation20_spill] sm:$0xff] %v6784_v32  ;;  %2111 = vrot.lane.b32.xlu0 %v6570_v26, %s6015_s15  ;;  %v1610_v26 = vld [vmem:[#allocation2 + $0x6c] sm:$0x1]  ;;  %v550_v31 = vor.u32 %v549_v11, %v6784_v32  ;;  %v9026_v11 = vshll.u32 %v6780_v23, 16 }
  0x82   : > { %v6813_v27 = vrot.slane %v9022_v0, 5  ;;  %v9027_v0 = vshll.u32 %v6646_v2, 16  ;;  %v1611_v24 = vsel %vm6818_vm11, %v1602_v57, %v1610_v26  ;;  %v5909_v57 = vld [vmem:[%s8874_s4 + $0x8] ss:$0 sps:$4 sm:$0xff]   ;;  %v8917_v26 = vshrl.u32 %v6780_v23, 16 }
  0x83   : > { %v6831_v52 = vrot.slane %v9026_v11, 5  ;;  %v6847_v11 = vld [vmem:[%s6111_s12 + $0x10] sm:$0xf]  ;;  %1612 = vst [vmem:[#allocation2 + $0x6c] sm:$0x1] %v1611_v24  ;;  %5795 = vmatprep.subr.msk.bf16.mxu1 %vm8935_vm13, %v5909_v57  ;;  %5794 = vmatprep.subr.msk.bf16.mxu0 %vm8935_vm13, %v5909_v57 }
  0x84   : > { %691 = vrot.lane.b32.xlu1 %v6591_v15, %s6015_s15  ;;  %v6835_v32 = vrot.slane %v9027_v0, 5  ;;  %v699_v24 = vor.u32 %v698_v56, %v6813_v27  ;;  %v3255_v0 = vsel %vm8935_vm13, %v5909_v57, 0  ;;  %v9030_v56 = vshrl.u32 %v6538_v42, 16  ;;  %v2174_v42 = vld [vmem:[#allocation2 + $0x94] sm:$0xf] }
  0x85   : > { %561 = vrot.lane.b32.xlu0 %v556_v22, %s6016_s19  ;;  %v811_v22 = vsel %vm6166_vm4, %v803_v51, %v810_v36  ;;  %v551_v51 = vrot.slane %v550_v31, 4  ;;  %v6854_v36 = vrot.slane %v2158_v62, 5  ;;  %v8918_v31 = vshll.u32 %v6847_v11, 16  ;;  %5793 = vmatpush3.bf16.msra.mxu1 %v3255_v0 }
  0x86   : > { %v1760_v21 = vpop.permute.xlu1 %1759  ;;  %v1618_v20 = vpop.permute.xlu0 %1617  ;;  %5637 = vmatpush3.bf16.msra.mxu0 %v3255_v0  ;;  %vm583_vm13 = vcmask 191619  }
  0x87   : > { %1764 = vst.msk [vmem:[#allocation2 + $0x74] sm:$0xf] %vm8937_vm9, %v1760_v21  ;;  %1622 = vst.msk [vmem:[#allocation2 + $0x68] sm:$0xf] %vm8937_vm9, %v1618_v20  ;;  %v5832_v20 = vpack.i.bf16 %v6754_v13, %v6450_v3  ;;  %v1980_v3 = vsel %vm6177_vm5, %v1978_v1, %v6657_v9  ;;  %v5837_v13 = vpack.i.bf16 %v6461_v55, %v6350_v25  ;;  %v8916_v9 = vshrl.u32 %v6827_v60, 16 }
  0x88   : > { %1669 = vrot.lane.b32.xlu1 %v1664_v29, %s6014_s14  ;;  %v9028_v55 = vshrl.u32 %v6560_v50, 16 }
  0x89   : > { %815 = vrot.lane.b32.xlu0 %v811_v22, %s6014_s14  ;;  %v2160_v22 = vor.u32 %v2158_v62, %v6605_v40  ;;  %v6895_v40 = vrot.slane %v8918_v31, 5  ;;  %v9034_v62 = vshrl.u32 %v6847_v11, 16 }
  0x8a   : > { %v1758_v29 = vpop.permute.xlu1 %1757  ;;  %v1616_v7 = vpop.permute.xlu0 %1615  ;;  %v6861_v1 = vrot.slane %v9028_v55, 4 }
  0x8b   : > { %1763 = vst.msk [vmem:[#allocation2 + $0x70] sm:$0xf] %vm8937_vm9, %v1758_v29  ;;  %1621 = vst.msk [vmem:[#allocation2 + $0x64] sm:$0xf] %vm8937_vm9, %v1616_v7  ;;  %v6869_v7 = vrot.slane %v8916_v9, 7  ;;  %v6876_v29 = vrot.slane %v9030_v56, 4 }
  0x8c   : > { %1986 = vrot.lane.b32.xlu1 %v1980_v3, %s6016_s19  ;;  %v2299_v3 = vrot.slane %v8917_v26, 7  ;;  %v9031_v56 = vshrl.u32 %v6628_v16, 16  ;;  %9033 = vst [vmem:[#allocation23_spill] sm:$0xff] %v6895_v40  ;;  %v982_v57 = vrot.slane %v9034_v62, 4  ;;  %v9037_v26 = vshll.u32 %v6591_v15, 16 }
  0x8d   : > { %9029 = vst [vmem:[#allocation21_spill] sm:$0xff] %v6869_v7  ;;  %5833 = vrot.lane.b32.xlu0 %v5832_v20, %s6016_s19  ;;  %v2193_v0 = vor.u32 %v6861_v1, %v6854_v36  ;;  %v9039_v62 = vshrl.u32 %v6672_v59, 16  ;;  %v9040_v1 = vshll.u32 %v6891_v19, 16 }
  0x8e   : > { %v459_v55 = vpop.permute.xlu1 %458  ;;  %v1902_v25 = vpop.permute.xlu0 %1901  ;;  %v6888_v9 = vrot.slane %v9031_v56, 7  ;;  %v6908_v56 = vrot.slane %v699_v24, 4  ;;  %v6912_v31 = vrot.slane %v9037_v26, 5  ;;  %v6923_v24 = vld [vmem:[%s6079_s28 + $0x1c] sm:$0xf]  ;;  %v983_v20 = vor.u32 %v982_v57, %v6895_v40 }
  0x8f   : > { %464 = vst.msk [vmem:[#allocation2 + $0x8] sm:$0xf] %vm8937_vm9, %v459_v55  ;;  %1906 = vst.msk [vmem:[#allocation2 + $0x80] sm:$0xf] %vm8937_vm9, %v1902_v25  ;;  %v553_v25 = vsel %vm6177_vm5, %v551_v51, %v6745_v44  ;;  %v9038_v44 = vshll.u32 %v6827_v60, 16  ;;  %v6927_v26 = vrot.slane %v9039_v62, 7 }
  0x90   : > { %9032 = vst [vmem:[#allocation22_spill] sm:$0xff] %v6888_v9  ;;  %5838 = vrot.lane.b32.xlu1 %v5837_v13, %s6013_s13  ;;  %v1645_v13 = vld [vmem:[#allocation2 + $0x68] sm:$0xf]  ;;  %v2303_v34 = vrot.slane %v2299_v3, 4  ;;  %v9041_v62 = vshll.u32 %v6628_v16, 16  ;;  %v6946_v46 = vrot.slane %v983_v20, 4 }
  0x91   : > { %v2310_v51 = vor.u32 %v9038_v44, %v6869_v7  ;;  %v2175_v44 = vsel %vm6430_vm8, %v2160_v22, %v2174_v42  ;;  %v6935_v7 = vrot.slane %v9040_v1, 5  ;;  %v6944_v40 = vld [vmem:[%s6079_s28 + $0x74] sm:$0xf]  ;;  %v6949_v22 = vld [vmem:[%s6079_s28 + $0x70] sm:$0xf]  ;;  %v9043_v1 = vshrl.u32 %v6891_v19, 16  ;;  %559 = vrot.lane.b32.xlu0 %v553_v25, %s6016_s19 }
  0x92   : > { %v1637_v5 = vpop.permute.xlu1 %1636  ;;  %v2452_v58 = vor.u32 %v9041_v62, %v6888_v9  ;;  %2176 = vst [vmem:[#allocation2 + $0x94] sm:$0xf] %v2175_v44  ;;  %9042 = vst [vmem:[#allocation24_spill] sm:$0xff] %v6946_v46  ;;  %v8931_v62 = vshll.u32 %v6949_v22, 16  ;;  %v9045_v20 = vshll.u32 %v6780_v23, 16  ;;  %v1668_v9 = vpop.permute.xlu0 %1667  ;;  %v9048_v33 = vshrl.u32 %v6923_v24, 16 }
  0x93   : > { %v1646_v54 = vsel %vm6904_vm15, %v1637_v5, %v1645_v13  ;;  %v6954_v5 = vrot.slane %v9043_v1, 4  ;;  %v6970_v57 = vld [vmem:[%s6079_s28 + $0x18] sm:$0xf]  ;;  %v2311_v25 = vsel %vm6166_vm4, %v2303_v34, %v2310_v51  ;;  %v702_v34 = vsel %vm6177_vm5, %v6908_v56, %v6912_v31 }
  0x94   : > { %1647 = vst [vmem:[#allocation2 + $0x68] sm:$0xf] %v1646_v54  ;;  %833 = vrot.lane.b32.xlu1 %v6737_v47, %s6015_s15  ;;  %v2302_v44 = vor.u32 %v9045_v20, %v2299_v3  ;;  %v2445_v54 = vrot.slane %v6927_v26, 4  ;;  %v6978_v3 = vrot.slane %v8931_v62, 5  ;;  %v9047_v20 = vshrl.u32 %v6949_v22, 16 }
  0x95   : > { %9044 = vst [vmem:[#allocation25_spill] sm:$0xff] %v6954_v5  ;;  %v6984_v1 = vrot.slane %v9048_v33, 7  ;;  %v8933_v46 = vshrl.u32 %v6970_v57, 16  ;;  %2319 = vst.msk [vmem:[#allocation2 + $0xa4] sm:$0xf] %vm8936_vm7, %v2311_v25  ;;  %v2198_v51 = vor.u32 %v6876_v29, %v6809_v10  ;;  %689 = vrot.lane.b32.xlu0 %v6550_v8, %s6015_s15  ;;  %v9051_v8 = vshll.u32 %v6646_v2, 16 }
  0x96   : > { %9046 = vst [vmem:[#allocation26_spill] sm:$0xff] %v6978_v3  ;;  %v2618_v42 = vrot.slane %v9047_v20, 4  ;;  %v1777_v41 = vpop.permute.xlu1 %1776  ;;  %1677 = vst.msk [vmem:[#allocation2 + $0x68] sm:$0xf] %vm8938_vm14, %v1668_v9  ;;  %v9049_v20 = vshll.u32 %v6944_v40, 16  ;;  %v9050_v9 = vshrl.u32 %v6944_v40, 16  ;;  %v2453_v25 = vsel %vm6166_vm4, %v2445_v54, %v2452_v58 }
  0x97   : > { %1786 = vst.msk [vmem:[#allocation2 + $0x70] sm:$0xf] %vm8964_vm12, %v1777_v41  ;;  %v7012_v29 = vrot.slane %v8933_v46, 7  ;;  %v882_v62 = vor.u32 %v9051_v8, %v6696_v37  ;;  %v1635_v41 = vpop.permute.xlu0 %1634  ;;  %v9052_v5 = vshll.u32 %v6923_v24, 16  ;;  %v7048_v8 = vld [vmem:[%s6111_s12 + $0x58] sm:$0xf] }
  0x98   : > { %v6998_v33 = vrot.slane %v9049_v20, 5  ;;  %v2619_v13 = vor.u32 %v2618_v42, %v6978_v3  ;;  %2183 = vrot.lane.b32.xlu1 %v6560_v50, %s6012_s30  ;;  %v7008_v56 = vrot.slane %v9050_v9, 4  ;;  %v2316_v42 = vld [vmem:[#allocation2 + $0xa0] sm:$0xf]  ;;  %v2194_v20 = vrot.slane %v2193_v0, 4 }
  0x99   : > { %2461 = vst.msk [vmem:[#allocation2 + $0xb0] sm:$0xf] %vm8936_vm7, %v2453_v25  ;;  %v2317_v50 = vsel %vm6430_vm8, %v2302_v44, %v2316_v42  ;;  %v1787_v3 = vld [vmem:[#allocation2 + $0x74] sm:$0xf]  ;;  %v1032_v58 = vor.u32 %v9052_v5, %v6984_v1  ;;  %708 = vrot.lane.b32.xlu0 %v702_v34, %s6016_s19  ;;  %v2199_v5 = vrot.slane %v2198_v51, 4 }
  0x9a   : > { %v7022_v9 = vrot.slane %v2619_v13, 4  ;;  %v1779_v46 = vpop.permute.xlu1 %1778  ;;  %2318 = vst [vmem:[#allocation2 + $0xa0] sm:$0xf] %v2317_v50  ;;  %1644 = vst.msk [vmem:[#allocation2 + $0x64] sm:$0xf] %vm8964_vm12, %v1635_v41  ;;  %v1025_v13 = vrot.slane %v7012_v29, 4  ;;  %v2196_v54 = vsel %vm6177_vm5, %v2194_v20, %v6809_v10 }
  0x9b   : > { %v1788_v37 = vsel %vm6904_vm15, %v1779_v46, %v1787_v3  ;;  %v896_v44 = vld [vmem:[#allocation2 + $0x28] sm:$0xf]  ;;  %v9053_v3 = vshrl.u32 %v6780_v23, 16  ;;  %v1686_v25 = vpop.permute.xlu0 %1685  ;;  %v7051_v51 = vld [vmem:[%s6111_s12 + $0x5c] sm:$0xf] }
  0x9c   : > { %1789 = vst [vmem:[#allocation2 + $0x74] sm:$0xf] %v1788_v37  ;;  %2327 = vrot.lane.b32.xlu1 %v6827_v60, %s6012_s30  ;;  %v897_v34 = vsel %vm6430_vm8, %v882_v62, %v896_v44  ;;  %v1033_v50 = vsel %vm6166_vm4, %v1025_v13, %v1032_v58  ;;  %1690 = vst.msk [vmem:[#allocation2 + $0x68] sm:$0xf] %vm8966_vm1, %v1686_v25  ;;  %v9056_v62 = vshll.u32 %v6567_v48, 16  ;;  %v8943_v37 = vshrl.u32 %v7048_v8, 16 }
  0x9d   : > { %v2334_v41 = vrot.slane %v9053_v3, 4  ;;  %898 = vst [vmem:[#allocation2 + $0x28] sm:$0xf] %v897_v34  ;;  %1041 = vst.msk [vmem:[#allocation2 + $0x38] sm:$0xf] %vm8936_vm7, %v1033_v50  ;;  %2204 = vrot.lane.b32.xlu0 %v2199_v5, %s6013_s13  ;;  %v8945_v13 = vshrl.u32 %v7051_v51, 16 }
  0x9e   : > { %v1900_v42 = vpop.permute.xlu1 %1899  ;;  %v2080_v20 = vor.u32 %v9056_v62, %v6625_v12  ;;  %v1744_v5 = vrot.slane %v6335_v18, 4  ;;  %v9058_v12 = vshrl.u32 %v6623_v53, 16  ;;  %v9059_v50 = vshll.u32 %v6827_v60, 16  ;;  %vm7225_vm7 = vmand %vm583_vm13, %vm8947_vm2 }
  0x9f   : > { %1905 = vst.msk [vmem:[#allocation2 + $0x7c] sm:$0xf] %vm8937_vm9, %v1900_v42  ;;  %v2335_v58 = vor.u32 %v2334_v41, %v6831_v52  ;;  %v1666_v44 = vpop.permute.xlu0 %1665  ;;  %v9060_v18 = vshrl.u32 %v6646_v2, 16  ;;  %vm486_vm13 = vcmask 158851  }
  0xa0   : > { %2202 = vrot.lane.b32.xlu1 %v2196_v54, %s6013_s13  ;;  %v9057_v54 = vshll.u32 %v6623_v53, 16  ;;  %v919_v41 = vrot.slane %v9058_v12, 4  ;;  %v7082_v62 = vrot.slane %v9059_v50, 5  ;;  %v7095_v53 = vrot.slane %v8945_v13, 7  ;;  %v1929_v12 = vld [vmem:[#allocation2 + $0x80] sm:$0xf] }
  0xa1   : > { %v1674_v3 = vld [vmem:[#allocation2 + $0x64] sm:$0xf]  ;;  %2091 = vrot.lane.b32.xlu0 %v2080_v20, %s6014_s14  ;;  %v496_v50 = vld [vmem:[#allocation2 + $0x8] sm:$0xf]  ;;  %v9086_v13 = vshrl.u32 %v6923_v24, 16 }
  0xa2   : > { %v2044_v34 = vpop.permute.xlu1 %2043  ;;  %v1675_v25 = vsel %vm7061_vm3, %v1666_v44, %v1674_v3  ;;  %v917_v42 = vrot.slane %v9057_v54, 5  ;;  %v914_v44 = vrot.slane %v9060_v18, 4  ;;  %v2336_v3 = vrot.slane %v2335_v58, 4 }
  0xa3   : > { %2048 = vst.msk [vmem:[#allocation2 + $0x8c] sm:$0xf] %vm8937_vm9, %v2044_v34  ;;  %1676 = vst [vmem:[#allocation2 + $0x64] sm:$0xf] %v1675_v25  ;;  %v7091_v34 = vrot.slane %v8943_v37, 7  ;;  %v8946_v54 = vshll.u32 %v7051_v51, 16  ;;  %v1921_v20 = vpop.permute.xlu0 %1920 }
  0xa4   : > { %2469 = vrot.lane.b32.xlu1 %v6628_v16, %s6012_s30  ;;  %v1752_v25 = vld [vmem:[#allocation2 + $0x78] sm:$0x1]  ;;  %v1930_v58 = vsel %vm6904_vm15, %v1921_v20, %v1929_v12  ;;  %v920_v0 = vor.u32 %v919_v41, %v917_v42  ;;  %v915_v12 = vor.u32 %v914_v44, %v6835_v32 }
  0xa5   : > { %v1753_v16 = vsel %vm6818_vm11, %v1744_v5, %v1752_v25  ;;  %1931 = vst [vmem:[#allocation2 + $0x80] sm:$0xf] %v1930_v58  ;;  %2325 = vrot.lane.b32.xlu0 %v6780_v23, %s6012_s30  ;;  %v2338_v5 = vsel %vm6177_vm5, %v2336_v3, %v7082_v62  ;;  %v2223_v25 = vrot.slane %v7091_v34, 4 }
  0xa6   : > { %v482_v46 = vpop.permute.xlu1 %481  ;;  %1754 = vst [vmem:[#allocation2 + $0x78] sm:$0x1] %v1753_v16  ;;  %v921_v3 = vrot.slane %v920_v0, 4  ;;  %v916_v58 = vrot.slane %v915_v12, 4  ;;  %v9061_v12 = vshrl.u32 %v6591_v15, 16 }
  0xa7   : > { %v497_v18 = vsel %vm6904_vm15, %v482_v46, %v496_v50  ;;  %v2230_v46 = vor.u32 %v8946_v54, %v7095_v53  ;;  %v457_v20 = vpop.permute.xlu0 %456  ;;  %v1816_v50 = vld [vmem:[#allocation2 + $0x70] sm:$0xf]  ;;  %v1061_v54 = vrot.slane %v9086_v13, 4  ;;  %v1038_v13 = vld [vmem:[#allocation2 + $0x34] sm:$0xf] }
  0xa8   : > { %498 = vst [vmem:[#allocation2 + $0x8] sm:$0xf] %v497_v18  ;;  %1049 = vrot.lane.b32.xlu1 %v6923_v24, %s6012_s30  ;;  %463 = vst.msk [vmem:[#allocation2 + $0x4] sm:$0xf] %vm8937_vm9, %v457_v20  ;;  %v703_v20 = vrot.slane %v9061_v12, 4 }
  0xa9   : > { %905 = vrot.lane.b32.xlu0 %v6646_v2, %s6012_s30  ;;  %v2231_v16 = vsel %vm6166_vm4, %v2223_v25, %v2230_v46  ;;  %v918_v2 = vsel %vm6177_vm5, %v916_v58, %v917_v42  ;;  %v800_v25 = vshll.u32 %v6734_v4, 16  ;;  %v1806_v46 = vrot.slane %v6260_v38, 4 }
  0xaa   : > { %v1808_v23 = vpop.permute.xlu1 %1807  ;;  %v437_v42 = vrot.slane %v6380_v39, 4  ;;  %v9062_v38 = vor.u32 %v6612_v61, %v6597_v45 }
  0xab   : > { %v1817_v41 = vsel %vm7061_vm3, %v1808_v23, %v1816_v50  ;;  %v624_v44 = vpop.permute.xlu0 %623  ;;  %v7140_v50 = vld [vmem:[%s6111_s12 + $0x1c] sm:$0xf] }
  0xac   : > { %1818 = vst [vmem:[#allocation2 + $0x70] sm:$0xf] %v1817_v41  ;;  %2344 = vrot.lane.b32.xlu1 %v2338_v5, %s6013_s13  ;;  %628 = vst.msk [vmem:[#allocation2 + $0x14] sm:$0xf] %vm8937_vm9, %v624_v44  ;;  %v2125_v15 = vrot.slane %v9062_v38, 4  ;;  %v8941_v39 = vshrl.u32 %v7140_v50, 16 }
  0xad   : > { %2235 = vrot.lane.b32.xlu0 %v2231_v16, %s6014_s14  ;;  %v704_v16 = vor.u32 %v703_v20, %v6912_v31  ;;  %v8940_v58 = vshll.u32 %v7140_v50, 16  ;;  %v451_v44 = vld [vmem:[#allocation2 + $0xc] sm:$0x1]  ;;  %v9066_v20 = vshrl.u32 %v6891_v19, 16 }
  0xae   : > { %v1919_v18 = vpop.permute.xlu1 %1918  ;;  %v452_v61 = vsel %vm6818_vm11, %v437_v42, %v451_v44  ;;  %v9068_v44 = vshll.u32 %v6737_v47, 16 }
  0xaf   : > { %1928 = vst.msk [vmem:[#allocation2 + $0x7c] sm:$0xf] %vm8964_vm12, %v1919_v18  ;;  %v1810_v5 = vpop.permute.xlu0 %1809  ;;  %453 = vst [vmem:[#allocation2 + $0xc] sm:$0x1] %v452_v61  ;;  %v7183_v42 = vrot.slane %v9066_v20, 7  ;;  %v9070_v20 = vshrl.u32 %v6827_v60, 16 }
  0xb0   : > { %926 = vrot.lane.b32.xlu1 %v921_v3, %s6013_s13  ;;  %1819 = vst.msk [vmem:[#allocation2 + $0x74] sm:$0xf] %vm8938_vm14, %v1810_v5  ;;  %v802_v3 = vor.u32 %v800_v25, %v6771_v17  ;;  %v7157_v17 = vrot.slane %v8940_v58, 5  ;;  %v705_v5 = vrot.slane %v704_v16, 4  ;;  %v5842_v16 = vpack.i.bf16 %v6581_v6, %v6854_v36 }
  0xb1   : > { %924 = vrot.lane.b32.xlu0 %v918_v2, %s6013_s13 }
  0xb2   : > { %v622_v0 = vpop.permute.xlu1 %621 }
  0xb3   : > { %627 = vst.msk [vmem:[#allocation2 + $0x10] sm:$0xf] %vm8937_vm9, %v622_v0  ;;  %v480_v23 = vpop.permute.xlu0 %479  ;;  %v7263_v0 = vld [vmem:[%s6079_s28 + $0x24] sm:$0xf] }
  0xb4   : > { %2253 = vrot.lane.b32.xlu1 %v7051_v51, %s6015_s15  ;;  %493 = vst.msk [vmem:[#allocation2 + $0x4] sm:$0xf] %vm8964_vm12, %v480_v23  ;;  %v1713_v23 = vld [vmem:[#allocation2 + $0x68] sm:$0xf]  ;;  %v8944_v58 = vshrl.u32 %v7263_v0, 16 }
  0xb5   : > { %2109 = vrot.lane.b32.xlu0 %v6567_v48, %s6015_s15  ;;  %v7161_v48 = vrot.slane %v8941_v39, 4  ;;  %v7279_v39 = vld [vmem:[%s6079_s28 + $0x20] sm:$0xf] }
  0xb6   : > { %v1684_v41 = vpop.permute.xlu1 %1683 }
  0xb7   : > { %1689 = vst.msk [vmem:[#allocation2 + $0x64] sm:$0xf] %vm8966_vm1, %v1684_v41  ;;  %v766_v18 = vpop.permute.xlu0 %765 }
  0xb8   : > { %1811 = vrot.lane.b32.xlu1 %v1806_v46, %s6014_s14  ;;  %770 = vst.msk [vmem:[#allocation2 + $0x20] sm:$0xf] %vm8937_vm9, %v766_v18  ;;  %v9065_v46 = vshrl.u32 %v6847_v11, 16  ;;  %v7199_v18 = vrot.slane %v9068_v44, 5  ;;  %vm578_vm9 = vcmask 57344  }
  0xb9   : > { %813 = vrot.lane.b32.xlu0 %v802_v3, %s6014_s14 }
  0xba   : > { %v1828_v2 = vpop.permute.xlu1 %1827  ;;  %v7179_v12 = vrot.slane %v9065_v46, 7  ;;  %v7204_v46 = vld [vmem:[%s6111_s12 + $0x18] sm:$0xf] }
  0xbb   : > { %1832 = vst.msk [vmem:[#allocation2 + $0x74] sm:$0xf] %vm8966_vm1, %v1828_v2  ;;  %v1705_v41 = vpop.permute.xlu0 %1704  ;;  %v9069_v2 = vshrl.u32 %v6737_v47, 16  ;;  %v9072_v47 = vshrl.u32 %v6734_v4, 16  ;;  %v8942_v60 = vshrl.u32 %v7204_v46, 16 }
  0xbc   : > { %2130 = vrot.lane.b32.xlu1 %v2125_v15, %s6016_s19  ;;  %v1714_v38 = vsel %vm7170_vm10, %v1705_v41, %v1713_v23  ;;  %v9067_v15 = vsel %vm6177_vm5, %v6648_v63, %v6597_v45  ;;  %v2339_v23 = vrot.slane %v9070_v20, 4  ;;  %v945_v63 = vrot.slane %v7179_v12, 4 }
  0xbd   : > { %1715 = vst [vmem:[#allocation2 + $0x68] sm:$0xf] %v1714_v38  ;;  %2128 = vrot.lane.b32.xlu0 %v9067_v15, %s6016_s19  ;;  %v845_v61 = vrot.slane %v9069_v2, 4  ;;  %v9071_v45 = vshll.u32 %v6891_v19, 16  ;;  %v7212_v41 = vrot.slane %v800_v25, 5  ;;  %v8939_v38 = vshll.u32 %v7204_v46, 16 }
  0xbe   : > { %v519_v3 = vpop.permute.xlu1 %518  ;;  %v9073_v15 = vmov 0 }
  0xbf   : > { %531 = vst.msk [vmem:[#allocation2 + $0x8] sm:$0xf] %vm8938_vm14, %v519_v3  ;;  %v1952_v6 = vpop.permute.xlu0 %1951  ;;  %v840_v3 = vrot.slane %v9072_v47, 4  ;;  %v846_v25 = vor.u32 %v845_v61, %v7199_v18  ;;  %v9074_v15 = vsel %vm7225_vm7, 4294967295, %v9073_v15  ;;  %v7233_v2 = vrot.slane %v8939_v38, 5 }
  0xc0   : > { %710 = vrot.lane.b32.xlu1 %v705_v5, %s6016_s19  ;;  %v952_v5 = vor.u32 %v9071_v45, %v7183_v42  ;;  %1961 = vst.msk [vmem:[#allocation2 + $0x80] sm:$0xf] %vm8938_vm14, %v1952_v6  ;;  %v2340_v61 = vor.u32 %v2339_v23, %v7082_v62  ;;  %vm7245_vm14 = vmand %vm578_vm9, %vm418_vm0  ;;  %v1783_v62 = vld [vmem:[#allocation2 + $0x6c] sm:$0x8]  ;;  %v5847_v47 = vpack.i.bf16 %v6595_v43, %v6813_v27  ;;  %v1022_v38 = vshll.u32 %v6970_v57, 16 }
  0xc1   : > { %5843 = vrot.lane.b32.xlu0 %v5842_v16, %s6013_s13  ;;  %v1124_v16 = vrot.slane %v8942_v60, 4  ;;  %v841_v45 = vor.u32 %v840_v3, %v7212_v41  ;;  %v847_v23 = vrot.slane %v846_v25, 4  ;;  %v9077_v3 = vshrl.u32 %v6944_v40, 16  ;;  %vm7269_vm9 = vmand %vm486_vm13, %vm8947_vm2  ;;  %v2458_v60 = vld [vmem:[#allocation2 + $0xac] sm:$0xf] }
  0xc2   : > { %v1703_v36 = vpop.permute.xlu1 %1702  ;;  %v953_v44 = vsel %vm6166_vm4, %v945_v63, %v952_v5  ;;  %vm9087_vm13 = vcmask 93248   ;;  %vm9088_vm2 = vcmask 27648  }
  0xc3   : > { %1712 = vst.msk [vmem:[#allocation2 + $0x64] sm:$0xf] %vm8948_vm6, %v1703_v36  ;;  %v641_v20 = vpop.permute.xlu0 %640  ;;  %v1125_v63 = vor.u32 %v1124_v16, %v7233_v2  ;;  %v7256_v16 = vrot.slane %v9077_v3, 7  ;;  %v2341_v3 = vrot.slane %v2340_v61, 4  ;;  %v9082_v61 = vshll.u32 %v6944_v40, 16 }
  0xc4   : > { %831 = vrot.lane.b32.xlu1 %v6734_v4, %s6015_s15  ;;  %v1719_v6 = vld [vmem:[#allocation2 + $0x68] sm:$0x8]  ;;  %650 = vst.msk [vmem:[#allocation2 + $0x10] sm:$0xf] %vm8964_vm12, %v641_v20  ;;  %v1925_v20 = vld [vmem:[#allocation2 + $0x78] sm:$0x8] }
  0xc5   : > { %v1720_v5 = vsel %vm7225_vm7, 0, %v1719_v6  ;;  %957 = vrot.lane.b32.xlu0 %v953_v44, %s6014_s14  ;;  %9078 = vst [vmem:[#allocation27_spill] sm:$0xff] %v7256_v16  ;;  %v9079_v6 = vshll.u32 %v6672_v59, 16 }
  0xc6   : > { %v1826_v4 = vpop.permute.xlu1 %1825  ;;  %1721 = vst [vmem:[#allocation2 + $0x68] sm:$0x8] %v1720_v5 }
  0xc7   : > { %1831 = vst.msk [vmem:[#allocation2 + $0x70] sm:$0xf] %vm8966_vm1, %v1826_v4  ;;  %v515_v4 = vrot.slane %v6328_v49, 4  ;;  %v2444_v44 = vor.u32 %v9079_v6, %v6927_v26  ;;  %v5829_v27 = vpop.permute.xlu0 %5828  ;;  %v842_v49 = vrot.slane %v841_v45, 4  ;;  %v2594_v45 = vor.u32 %v9082_v61, %v7256_v16 }
  0xc8   : > { %975 = vrot.lane.b32.xlu1 %v6891_v19, %s6015_s15  ;;  %v7265_v19 = vrot.slane %v1125_v63, 4  ;;  %v5831_v63 = vunpack.i.h.bf16 %v5829_v27  ;;  %v5830_v6 = vunpack.i.l.bf16 %v5829_v27  ;;  %v7295_v27 = vrot.slane %v8944_v58, 7 }
  0xc9   : > { %852 = vrot.lane.b32.xlu0 %v847_v23, %s6016_s19  ;;  %v9084_v61 = vshrl.u32 %v6949_v22, 16 }
  0xca   : > { %v1716_v25 = vld [vmem:[#allocation2 + $0x64] sm:$0x1]  ;;  %v542_v5 = vpop.permute.xlu1 %541  ;;  %9083 = vst [vmem:[#allocation28_spill] sm:$0xff] %v7295_v27  ;;  %v1926_v23 = vsel %vm7269_vm9, %v5831_v63, %v1925_v20 }
  0xcb   : > { %v1717_v26 = vsel %vm7245_vm14, 0, %v1716_v25  ;;  %547 = vst.msk [vmem:[#allocation2 + $0x8] sm:$0xf] %vm8966_vm1, %v542_v5  ;;  %v1024_v25 = vor.u32 %v1022_v38, %v7012_v29  ;;  %v8956_v5 = vshrl.u32 %v7279_v39, 16  ;;  %v7306_v37 = vrot.slane %v9084_v61, 7  ;;  %v1970_v20 = vpop.permute.xlu0 %1969 }
  0xcc   : > { %1718 = vst [vmem:[#allocation2 + $0x64] sm:$0x1] %v1717_v26  ;;  %5848 = vrot.lane.b32.xlu1 %v5847_v47, %s6016_s19  ;;  %v1784_v47 = vsel %vm7269_vm9, %v5830_v6, %v1783_v62  ;;  %v2459_v26 = vsel %vm6430_vm8, %v2444_v44, %v2458_v60  ;;  %v9085_v29 = vshll.u32 %v6923_v24, 16  ;;  %1927 = vst [vmem:[#allocation2 + $0x78] sm:$0x8] %v1926_v23  ;;  %v8951_v60 = vshll.u32 %v7048_v8, 16 }
  0xcd   : > { %1785 = vst [vmem:[#allocation2 + $0x6c] sm:$0x8] %v1784_v47  ;;  %2460 = vst [vmem:[#allocation2 + $0xac] sm:$0xf] %v2459_v26  ;;  %v8950_v62 = vshll.u32 %v7263_v0, 16  ;;  %v7320_v44 = vrot.slane %v8956_v5, 7  ;;  %520 = vrot.lane.b32.xlu0 %v515_v4, %s6014_s14  ;;  %v844_v6 = vsel %vm6177_vm5, %v842_v49, %v7199_v18  ;;  %v1039_v61 = vsel %vm6430_vm8, %v1024_v25, %v1038_v13 }
  0xce   : > { %v7310_v58 = vrot.slane %v9085_v29, 5  ;;  %v2042_v63 = vpop.permute.xlu1 %2041  ;;  %1974 = vst.msk [vmem:[#allocation2 + $0x80] sm:$0xf] %vm8966_vm1, %v1970_v20  ;;  %v2587_v24 = vrot.slane %v7306_v37, 4  ;;  %v7329_v23 = vld [vmem:[%s6111_s12 + $0x60] sm:$0xf]  ;;  %v2222_v49 = vor.u32 %v8951_v60, %v7091_v34 }
  0xcf   : > { %2047 = vst.msk [vmem:[#allocation2 + $0x88] sm:$0xf] %vm9087_vm13, %v2042_v63  ;;  %v1174_v47 = vor.u32 %v8950_v62, %v7295_v27  ;;  %v1845_v4 = vpop.permute.xlu0 %1844  ;;  %vm8965_vm13 = vcmask 195584   ;;  %1040 = vst [vmem:[#allocation2 + $0x34] sm:$0xf] %v1039_v61  ;;  %v8949_v25 = vshrl.u32 %v7329_v23, 16 }
  0xd0   : > { %2346 = vrot.lane.b32.xlu1 %v2341_v3, %s6013_s13  ;;  %v2595_v26 = vsel %vm6166_vm4, %v2587_v24, %v2594_v45  ;;  %1854 = vst.msk [vmem:[#allocation2 + $0x70] sm:$0xf] %vm8948_vm6, %v1845_v4  ;;  %v1167_v3 = vrot.slane %v7320_v44, 4  ;;  %v1062_v45 = vor.u32 %v1061_v54, %v7310_v58  ;;  %v651_v13 = vld [vmem:[#allocation2 + $0x14] sm:$0xf]  ;;  %vm9089_vm6 = vcmask 93248  }
  0xd1   : > { %2603 = vst.msk [vmem:[#allocation2 + $0xbc] sm:$0xf] %vm9088_vm2, %v2595_v26  ;;  %850 = vrot.lane.b32.xlu0 %v844_v6, %s6016_s19  ;;  %v7354_v6 = vld [vmem:[%s6111_s12 + $0x64] sm:$0xf]  ;;  %v9090_v54 = vld [vmem:[#allocation15_spill] sm:$0xff]  ;;  %v1164_v60 = vshll.u32 %v7279_v39, 16 }
  0xd2   : > { %v2061_v29 = vpop.permute.xlu1 %2060  ;;  %v1175_v20 = vsel %vm6166_vm4, %v1167_v3, %v1174_v47  ;;  %v9091_v26 = vor.u32 %v6685_v28, %v9090_v54  ;;  %v1063_v4 = vrot.slane %v1062_v45, 4  ;;  %v8953_v3 = vshll.u32 %v7329_v23, 16  ;;  %v7378_v28 = vld [vmem:[%s6079_s28 + $0x28] sm:$0xf] }
  0xd3   : > { %2070 = vst.msk [vmem:[#allocation2 + $0x88] sm:$0xf] %vm8964_vm12, %v2061_v29  ;;  %v5907_v18 = vld [vmem:[#allocation2 + $0x64] sm:$0xff]   ;;  %v2186_v63 = vpop.permute.xlu0 %2185  ;;  %v7372_v29 = vrot.slane %v1022_v38, 5  ;;  %v8954_v45 = vshrl.u32 %v7378_v28, 16 }
  0xd4   : > { %2467 = vrot.lane.b32.xlu1 %v6672_v59, %s6012_s30  ;;  %5662 = vmatprep.mubr.msk.bf16.mxu1 %vm8965_vm13, %v5907_v18  ;;  %v7357_v59 = vld [vmem:[%s6079_s28 + $0x2c] sm:$0xf]  ;;  %1183 = vst.msk [vmem:[#allocation2 + $0x44] sm:$0xf] %vm9088_vm2, %v1175_v20  ;;  %v2483_v61 = vrot.slane %v9091_v26, 4  ;;  %v2361_v18 = vrot.slane %v8949_v25, 7 }
  0xd5   : > { %2190 = vst.msk [vmem:[#allocation2 + $0x98] sm:$0xf] %vm9089_vm6, %v2186_v63  ;;  %v8952_v47 = vshrl.u32 %v7357_v59, 16  ;;  %2233 = vrot.lane.b32.xlu0 %v2222_v49, %s6014_s14  ;;  %v9092_v20 = vshrl.u32 %v6970_v57, 16  ;;  %v8955_v49 = vshrl.u32 %v7354_v6, 16 }
  0xd6   : > { %v643_v24 = vpop.permute.xlu1 %642  ;;  %v2365_v5 = vrot.slane %v2361_v18, 4  ;;  %vm9121_vm13 = vsmask.f32 7950  ;;  %v1993_v27 = vld [vmem:[#allocation2 + $0x78] sm:$0x8] }
  0xd7   : > { %v652_v34 = vsel %vm6904_vm15, %v643_v24, %v651_v13  ;;  %v1056_v63 = vrot.slane %v9092_v20, 4  ;;  %v1858_v38 = vld [vmem:[#allocation2 + $0x70] sm:$0x1]  ;;  %v2071_v24 = vld [vmem:[#allocation2 + $0x8c] sm:$0xf]  ;;  %v2063_v13 = vpop.permute.xlu0 %2062 }
  0xd8   : > { %653 = vst [vmem:[#allocation2 + $0x14] sm:$0xf] %v652_v34  ;;  %2611 = vrot.lane.b32.xlu1 %v6944_v40, %s6012_s30  ;;  %v7385_v40 = vrot.slane %v8952_v47, 7  ;;  %v527_v34 = vld [vmem:[#allocation2 + $0x4] sm:$0xf]  ;;  %v1859_v25 = vsel %vm7245_vm14, 0, %v1858_v38  ;;  %v2072_v62 = vsel %vm6904_vm15, %v2063_v13, %v2071_v24  ;;  %v2364_v47 = vor.u32 %v8953_v3, %v2361_v18 }
  0xd9   : > { %1860 = vst [vmem:[#allocation2 + $0x70] sm:$0x1] %v1859_v25  ;;  %2073 = vst [vmem:[#allocation2 + $0x8c] sm:$0xf] %v2072_v62  ;;  %2488 = vrot.lane.b32.xlu0 %v2483_v61, %s6013_s13  ;;  %v8957_v38 = vshll.u32 %v7357_v59, 16  ;;  %v7402_v24 = vrot.slane %v8954_v45, 7  ;;  %v1057_v25 = vor.u32 %v1056_v63, %v7372_v29  ;;  %v1166_v61 = vor.u32 %v1164_v60, %v7320_v44 }
  0xda   : > { %9093 = vst [vmem:[#allocation15_spill] sm:$0xff] %v7385_v40  ;;  %v517_v26 = vpop.permute.xlu1 %516  ;;  %v7406_v13 = vrot.slane %v8955_v49, 7  ;;  %v8962_v62 = vshll.u32 %v7354_v6, 16  ;;  %v1180_v63 = vld [vmem:[#allocation2 + $0x40] sm:$0xf] }
  0xdb   : > { %v528_v20 = vsel %vm7061_vm3, %v517_v26, %v527_v34  ;;  %v1950_v34 = vpop.permute.xlu0 %1949  ;;  %v793_v26 = vld [vmem:[#allocation2 + $0x20] sm:$0xf]  ;;  %v1316_v3 = vor.u32 %v8957_v38, %v7385_v40  ;;  %v1309_v44 = vrot.slane %v7402_v24, 4  ;;  %v7428_v40 = vld [vmem:[%s6111_s12 + $0x68] sm:$0xf] }
  0xdc   : > { %529 = vst [vmem:[#allocation2 + $0x4] sm:$0xf] %v528_v20  ;;  %1068 = vrot.lane.b32.xlu1 %v1063_v4, %s6013_s13  ;;  %9094 = vst [vmem:[#allocation29_spill] sm:$0xff] %v7406_v13  ;;  %v1958_v4 = vld [vmem:[#allocation2 + $0x7c] sm:$0xf]  ;;  %v2372_v38 = vor.u32 %v8962_v62, %v7406_v13 }
  0xdd   : > { %v1959_v45 = vsel %vm7061_vm3, %v1950_v34, %v1958_v4  ;;  %1047 = vrot.lane.b32.xlu0 %v6970_v57, %s6012_s30  ;;  %v1058_v4 = vrot.slane %v1057_v25, 4  ;;  %v1181_v34 = vsel %vm6430_vm8, %v1166_v61, %v1180_v63  ;;  %v7431_v57 = vld [vmem:[%s6111_s12 + $0x6c] sm:$0xf] }
  0xde   : > { %v785_v20 = vpop.permute.xlu1 %784  ;;  %1960 = vst [vmem:[#allocation2 + $0x7c] sm:$0xf] %v1959_v45  ;;  %v1855_v45 = vld [vmem:[#allocation2 + $0x74] sm:$0xf]  ;;  %1182 = vst [vmem:[#allocation2 + $0x40] sm:$0xf] %v1181_v34  ;;  %v2373_v34 = vsel %vm6166_vm4, %v2365_v5, %v2372_v38 }
  0xdf   : > { %v794_v49 = vsel %vm6904_vm15, %v785_v20, %v793_v26  ;;  %v764_v26 = vpop.permute.xlu0 %763  ;;  %v7469_v38 = vrot.slane %v1164_v60, 5 }
  0xe0   : > { %795 = vst [vmem:[#allocation2 + $0x20] sm:$0xf] %v794_v49  ;;  %2375 = vrot.lane.b32.xlu1 %v2364_v47, %s6014_s14  ;;  %v1317_v47 = vsel %vm6166_vm4, %v1309_v44, %v1316_v3  ;;  %769 = vst.msk [vmem:[#allocation2 + $0x1c] sm:$0xf] %vm9089_vm6, %v764_v26  ;;  %v9095_v49 = vld [vmem:[#allocation18_spill] sm:$0xff]  ;;  %v9097_v3 = vshll.u32 %v7051_v51, 16  ;;  %v1060_v26 = vsel %vm6177_vm5, %v1058_v4, %v7310_v58 }
  0xe1   : > { %1325 = vst.msk [vmem:[#allocation2 + $0x50] sm:$0xf] %vm9088_vm2, %v1317_v47  ;;  %1191 = vrot.lane.b32.xlu0 %v7263_v0, %s6012_s30  ;;  %v9096_v25 = vsel %vm6177_vm5, %v9095_v49, %v9090_v54  ;;  %v9098_v44 = vshrl.u32 %v7051_v51, 16  ;;  %v9099_v54 = vld [vmem:[#allocation8_spill] sm:$0xff]  ;;  %v9100_v58 = vshll.u32 %v6847_v11, 16  ;;  %v9101_v4 = vshrl.u32 %v7279_v39, 16 }
  0xe2   : > { %v1847_v20 = vpop.permute.xlu1 %1846  ;;  %v7449_v61 = vrot.slane %v9097_v3, 5  ;;  %v1886_v47 = vrot.slane %v9099_v54, 4  ;;  %vm9103_vm2 = vcmask 60448  }
  0xe3   : > { %v1856_v18 = vsel %vm7170_vm10, %v1847_v20, %v1855_v45  ;;  %v2265_v63 = vrot.slane %v9098_v44, 4  ;;  %v8959_v45 = vshrl.u32 %v7428_v40, 16  ;;  %v8960_v20 = vshrl.u32 %v7431_v57, 16 }
  0xe4   : > { %1857 = vst [vmem:[#allocation2 + $0x74] sm:$0xf] %v1856_v18  ;;  %2486 = vrot.lane.b32.xlu1 %v9096_v25, %s6013_s13  ;;  %v908_v18 = vpop.permute.xlu0 %907  ;;  %v680_v25 = vld [vmem:[#allocation2 + $0x10] sm:$0xf]  ;;  %v944_v5 = vor.u32 %v9100_v58, %v7179_v12  ;;  %v1198_v3 = vrot.slane %v9101_v4, 4  ;;  %v9104_v58 = vshll.u32 %v7048_v8, 16 }
  0xe5   : > { %912 = vst.msk [vmem:[#allocation2 + $0x2c] sm:$0xf] %vm9089_vm6, %v908_v18  ;;  %2377 = vrot.lane.b32.xlu0 %v2373_v34, %s6014_s14  ;;  %v2266_v44 = vor.u32 %v2265_v63, %v7449_v61  ;;  %v7476_v54 = vrot.slane %v8959_v45, 7  ;;  %v7480_v34 = vrot.slane %v8960_v20, 7  ;;  %v1894_v18 = vld [vmem:[#allocation2 + $0x84] sm:$0x1]  ;;  %vm9106_vm6 = vmmov %vm9103_vm2 }
  0xe6   : > { %v672_v49 = vpop.permute.xlu1 %671  ;;  %v1895_v60 = vsel %vm6818_vm11, %v1886_v47, %v1894_v18  ;;  %v7495_v47 = vrot.slane %v9104_v58, 5  ;;  %v9108_v45 = vshrl.u32 %v7204_v46, 16 }
  0xe7   : > { %v681_v51 = vsel %vm7061_vm3, %v672_v49, %v680_v25  ;;  %9102 = vst [vmem:[#allocation18_spill] sm:$0xff] %v7480_v34  ;;  %1896 = vst [vmem:[#allocation2 + $0x84] sm:$0x1] %v1895_v60  ;;  %v2267_v25 = vrot.slane %v2266_v44, 4  ;;  %v2507_v4 = vrot.slane %v7476_v54, 4  ;;  %v9107_v44 = vshll.u32 %v7263_v0, 16 }
  0xe8   : > { %682 = vst [vmem:[#allocation2 + $0x10] sm:$0xf] %v681_v51  ;;  %1066 = vrot.lane.b32.xlu1 %v1060_v26, %s6013_s13  ;;  %v8961_v26 = vshll.u32 %v7431_v57, 16  ;;  %v2094_v11 = vpop.permute.xlu0 %2093  ;;  %v1199_v51 = vor.u32 %v1198_v3, %v7469_v38 }
  0xe9   : > { %2103 = vst.msk [vmem:[#allocation2 + $0x8c] sm:$0xf] %vm9103_vm2, %v2094_v11  ;;  %955 = vrot.lane.b32.xlu0 %v944_v5, %s6014_s14  ;;  %v9105_v11 = vshrl.u32 %v7048_v8, 16  ;;  %vm532_vm2 = vcmask 57376  }
  0xea   : > { %v783_v12 = vpop.permute.xlu1 %782  ;;  %v2514_v18 = vor.u32 %v8961_v26, %v7480_v34  ;;  %v1200_v58 = vrot.slane %v1199_v51, 4 }
  0xeb   : > { %v1861_v49 = vld [vmem:[#allocation2 + $0x74] sm:$0x8]  ;;  %792 = vst.msk [vmem:[#allocation2 + $0x1c] sm:$0xf] %vm8964_vm12, %v783_v12  ;;  %v2260_v5 = vrot.slane %v9105_v11, 4  ;;  %vm566_vm12 = vcmask 191651  }
  0xec   : > { %v1862_v63 = vsel %vm7225_vm7, 0, %v1861_v49  ;;  %1333 = vrot.lane.b32.xlu1 %v7357_v59, %s6012_s30  ;;  %v674_v12 = vpop.permute.xlu0 %673  ;;  %v1997_v49 = vld [vmem:[#allocation2 + $0x80] sm:$0xf]  ;;  %v2515_v11 = vsel %vm6166_vm4, %v2507_v4, %v2514_v18 }
  0xed   : > { %1863 = vst [vmem:[#allocation2 + $0x74] sm:$0x8] %v1862_v63  ;;  %683 = vst.msk [vmem:[#allocation2 + $0x14] sm:$0xf] %vm9106_vm6, %v674_v12  ;;  %v7508_v63 = vrot.slane %v9107_v44, 5  ;;  %1189 = vrot.lane.b32.xlu0 %v7279_v39, %s6012_s30  ;;  %v7517_v12 = vrot.slane %v9108_v45, 7  ;;  %v2261_v44 = vor.u32 %v2260_v5, %v7495_v47 }
  0xee   : > { %v1989_v60 = vpop.permute.xlu1 %1988  ;;  %vm7545_vm6 = vmand %vm532_vm2, %vm418_vm0  ;;  %vm9119_vm0 = vcmask 60448   ;;  %vm9120_vm2 = vcmask 191648  }
  0xef   : > { %v1998_v3 = vsel %vm7170_vm10, %v1989_v60, %v1997_v49  ;;  %v9109_v60 = vshrl.u32 %v7140_v50, 16  ;;  %v1202_v39 = vsel %vm6177_vm5, %v1200_v58, %v7508_v63  ;;  %v1087_v45 = vrot.slane %v7517_v12, 4 }
  0xf0   : > { %1999 = vst [vmem:[#allocation2 + $0x80] sm:$0xf] %v1998_v3  ;;  %2272 = vrot.lane.b32.xlu1 %v2267_v25, %s6016_s19  ;;  %v1968_v20 = vpop.permute.xlu0 %1967  ;;  %v9111_v25 = vshll.u32 %v7140_v50, 16  ;;  %v2262_v4 = vrot.slane %v2261_v44, 4 }
  0xf1   : > { %v7521_v49 = vrot.slane %v9109_v60, 7  ;;  %1973 = vst.msk [vmem:[#allocation2 + $0x7c] sm:$0xf] %vm8966_vm1, %v1968_v20  ;;  %2251 = vrot.lane.b32.xlu0 %v7048_v8, %s6015_s15  ;;  %v9112_v20 = vld [vmem:[#allocation9_spill] sm:$0xff] }
  0xf2   : > { %v540_v26 = vpop.permute.xlu1 %539  ;;  %v2028_v18 = vrot.slane %v9112_v20, 4  ;;  %v2264_v44 = vsel %vm6177_vm5, %v2262_v4, %v7449_v61  ;;  %v9115_v20 = vld [vmem:[#allocation10_spill] sm:$0xff]  ;;  %v9116_v61 = vld [vmem:[#allocation7_spill] sm:$0xff] }
  0xf3   : > { %9110 = vst [vmem:[#allocation8_spill] sm:$0xff] %v7521_v49  ;;  %546 = vst.msk [vmem:[#allocation2 + $0x4] sm:$0xf] %vm8966_vm1, %v540_v26  ;;  %v1094_v51 = vor.u32 %v9111_v25, %v7521_v49  ;;  %v2036_v25 = vld [vmem:[#allocation2 + $0x90] sm:$0x1]  ;;  %v9126_v49 = vpack.i.bf16 %v6835_v32, %v6831_v52 }
  0xf4   : > { %2519 = vrot.lane.b32.xlu1 %v2515_v11, %s6014_s14  ;;  %v2112_v26 = vpop.permute.xlu0 %2111  ;;  %v1678_v11 = vld [vmem:[#allocation2 + $0x6c] sm:$0x1]  ;;  %v2037_v62 = vsel %vm6818_vm11, %v2028_v18, %v2036_v25  ;;  %v9118_v18 = vshrl.u32 %v7329_v23, 16 }
  0xf5   : > { %2116 = vst.msk [vmem:[#allocation2 + $0x8c] sm:$0xf] %vm8966_vm1, %v2112_v26  ;;  %2395 = vrot.lane.b32.xlu0 %v7354_v6, %s6015_s15  ;;  %v1095_v60 = vsel %vm6166_vm4, %v1087_v45, %v1094_v51  ;;  %v608_v26 = vrot.slane %v9115_v20, 4  ;;  %2038 = vst [vmem:[#allocation2 + $0x90] sm:$0x1] %v2037_v62  ;;  %v1948_v45 = vrot.slane %v9116_v61, 4 }
  0xf6   : > { %v692_v5 = vpop.permute.xlu1 %691  ;;  %v9117_v51 = vshll.u32 %v7329_v23, 16  ;;  %v2402_v25 = vrot.slane %v9118_v18, 4  ;;  %v616_v20 = vld [vmem:[#allocation2 + $0x18] sm:$0x1] }
  0xf7   : > { %v2003_v3 = vld [vmem:[#allocation2 + $0x80] sm:$0x8]  ;;  %696 = vst.msk [vmem:[#allocation2 + $0x14] sm:$0xf] %vm8966_vm1, %v692_v5  ;;  %v575_v5 = vld [vmem:[#allocation2 + $0x8] sm:$0xf]  ;;  %v617_v62 = vsel %vm6818_vm11, %v608_v26, %v616_v20  ;;  %vm7579_vm1 = vmand %vm566_vm12, %vm9121_vm13 }
  0xf8   : > { %v2004_v8 = vsel %vm7225_vm7, 0, %v2003_v3  ;;  %1208 = vrot.lane.b32.xlu1 %v1202_v39, %s6013_s13  ;;  %v562_v3 = vpop.permute.xlu0 %561  ;;  %v7566_v4 = vrot.slane %v9117_v51, 5  ;;  %618 = vst [vmem:[#allocation2 + $0x18] sm:$0x1] %v617_v62  ;;  %v2067_v26 = vld [vmem:[#allocation2 + $0x84] sm:$0x8]  ;;  %vm9127_vm12 = vmmov %vm9120_vm2 }
  0xf9   : > { %2005 = vst [vmem:[#allocation2 + $0x80] sm:$0x8] %v2004_v8  ;;  %v576_v34 = vsel %vm7170_vm10, %v562_v3, %v575_v5  ;;  %1099 = vrot.lane.b32.xlu0 %v1095_v60, %s6014_s14  ;;  %v9125_v51 = vshll.u32 %v7354_v6, 16  ;;  %v1851_v62 = vld [vmem:[#allocation2 + $0x6c] sm:$0x8]  ;;  %vm9128_vm13 = vcmask 126048  }
  0xfa   : > { %v1670_v39 = vpop.permute.xlu1 %1669  ;;  %577 = vst [vmem:[#allocation2 + $0x8] sm:$0xf] %v576_v34  ;;  %v2403_v34 = vor.u32 %v2402_v25, %v7566_v4 }
  0xfb   : > { %v1679_v8 = vsel %vm7545_vm6, %v1670_v39, %v1678_v11 }
  0xfc   : > { %1680 = vst [vmem:[#allocation2 + $0x6c] sm:$0x1] %v1679_v8  ;;  %2270 = vrot.lane.b32.xlu1 %v2264_v44, %s6016_s19  ;;  %v816_v5 = vpop.permute.xlu0 %815  ;;  %v647_v44 = vld [vmem:[#allocation2 + $0xc] sm:$0x8]  ;;  %v9124_v8 = vld [vmem:[#allocation13_spill] sm:$0xff] }
  0xfd   : > { %825 = vst.msk [vmem:[#allocation2 + $0x20] sm:$0xf] %vm9119_vm0, %v816_v5  ;;  %1953 = vrot.lane.b32.xlu0 %v1948_v45, %s6014_s14  ;;  %v2090_v61 = vrot.slane %v9124_v8, 4  ;;  %v7586_v45 = vrot.slane %v9125_v51, 5  ;;  %v5985_v8 = vld [vmem:[%s6111_s12 + $0x10] sm:$0xf]  ;;  %vm9129_vm0 = vmmov %vm9128_vm13 }
  0xfe   : > { %v1987_v3 = vpop.permute.xlu1 %1986  ;;  %v2404_v51 = vrot.slane %v2403_v34, 4 }
  0xff   : > { %1996 = vst.msk [vmem:[#allocation2 + $0x7c] sm:$0xf] %vm9120_vm2, %v1987_v3  ;;  %vm9130_vm2 = vcmask 93248  }
 0x100   : > { %2393 = vrot.lane.b32.xlu1 %v7329_v23, %s6015_s15  ;;  %v5834_v60 = vpop.permute.xlu0 %5833 }
 0x101   : > { %v585_v18 = vld [vmem:[#allocation2 + $0x8] sm:$0x8]  ;;  %v5836_v23 = vunpack.i.h.bf16 %v5834_v60  ;;  %v5835_v20 = vunpack.i.l.bf16 %v5834_v60  ;;  %5853 = vrot.lane.b32.xlu0 %v9126_v49, %s6013_s13 }
 0x102   : > { %v5839_v39 = vpop.permute.xlu1 %5838  ;;  %v586_v3 = vsel %vm7225_vm7, 0, %v585_v18 }
 0x103   : > { %v5841_v25 = vunpack.i.h.bf16 %v5839_v39  ;;  %v5840_v5 = vunpack.i.l.bf16 %v5839_v39  ;;  %587 = vst [vmem:[#allocation2 + $0x8] sm:$0x8] %v586_v3  ;;  %v1852_v60 = vsel %vm7579_vm1, %v5835_v20, %v1851_v62  ;;  %v1994_v39 = vsel %vm7579_vm1, %v5836_v23, %v1993_v27  ;;  %v9137_v3 = vld [vmem:[#allocation14_spill] sm:$0xff] }
 0x104   : > { %973 = vrot.lane.b32.xlu1 %v5985_v8, %s6015_s15  ;;  %1853 = vst [vmem:[#allocation2 + $0x6c] sm:$0x8] %v1852_v60  ;;  %1995 = vst [vmem:[#allocation2 + $0x78] sm:$0x8] %v1994_v39  ;;  %v560_v32 = vpop.permute.xlu0 %559  ;;  %v2406_v27 = vsel %vm6177_vm5, %v2404_v51, %v7586_v45  ;;  %v670_v62 = vrot.slane %v9137_v3, 4  ;;  %v9138_v8 = vld [vmem:[#allocation17_spill] sm:$0xff] }
 0x105   : > { %v2068_v18 = vsel %vm7269_vm9, %v5841_v25, %v2067_v26  ;;  %v648_v16 = vsel %vm7269_vm9, %v5840_v5, %v647_v44  ;;  %572 = vst.msk [vmem:[#allocation2 + $0x4] sm:$0xf] %vm9127_vm12, %v560_v32  ;;  %2537 = vrot.lane.b32.xlu0 %v7431_v57, %s6015_s15  ;;  %v9131_v44 = vshll.u32 %v6949_v22, 16  ;;  %v5862_v51 = vpack.i.bf16 %v9138_v8, %v7372_v29  ;;  %v7644_v32 = vld [vmem:[%s6079_s28 + $0x34] sm:$0xf] }
 0x106   : > { %v2000_v13 = vld [vmem:[#allocation2 + $0x7c] sm:$0x1]  ;;  %2069 = vst [vmem:[#allocation2 + $0x84] sm:$0x8] %v2068_v18  ;;  %649 = vst [vmem:[#allocation2 + $0xc] sm:$0x8] %v648_v16  ;;  %v834_v52 = vpop.permute.xlu1 %833  ;;  %v9145_v8 = vsel %vm6177_vm5, %v7022_v9, %v6998_v33 }
 0x107   : > { %v2001_v49 = vsel %vm7245_vm14, 0, %v2000_v13  ;;  %838 = vst.msk [vmem:[#allocation2 + $0x20] sm:$0xf] %vm9128_vm13, %v834_v52  ;;  %v5857_v13 = vpack.i.bf16 %v7212_v41, %v7495_v47  ;;  %v2586_v26 = vor.u32 %v9131_v44, %v7306_v37  ;;  %vm9132_vm13 = vcmask 195584   ;;  %v9135_v37 = vld [vmem:[#allocation24_spill] sm:$0xff] }
 0x108   : > { %2002 = vst [vmem:[#allocation2 + $0x7c] sm:$0x1] %v2001_v49  ;;  %2095 = vrot.lane.b32.xlu1 %v2090_v61, %s6014_s14  ;;  %v690_v16 = vpop.permute.xlu0 %689  ;;  %v9134_v41 = vshrl.u32 %v7263_v0, 16  ;;  %v9136_v47 = vsel %vm6177_vm5, %v9135_v37, %v6935_v7  ;;  %v2213_v0 = vld [vmem:[#allocation2 + $0x98] sm:$0xf]  ;;  %v1453_v29 = vshrl.u32 %v7644_v32, 16 }
 0x109   : > { %695 = vst.msk [vmem:[#allocation2 + $0x10] sm:$0xf] %vm9129_vm0, %v690_v16  ;;  %1117 = vrot.lane.b32.xlu0 %v7140_v50, %s6015_s15  ;;  %vm9133_vm0 = vmmov %vm9130_vm2  ;;  %v2600_v50 = vld [vmem:[#allocation2 + $0xb8] sm:$0xf]  ;;  %v7647_v52 = vld [vmem:[%s6079_s28 + $0x30] sm:$0xf] }
 0x10a   : > { %v2184_v34 = vpop.permute.xlu1 %2183  ;;  %v1203_v22 = vrot.slane %v9134_v41, 4  ;;  %v2601_v60 = vsel %vm6430_vm8, %v2586_v26, %v2600_v50  ;;  %v9140_v16 = vld [vmem:[#allocation25_spill] sm:$0xff]  ;;  %v9143_v37 = vshll.u32 %v7357_v59, 16  ;;  %v9144_v3 = vshrl.u32 %v7357_v59, 16 }
 0x10b   : > { %2189 = vst.msk [vmem:[#allocation2 + $0x94] sm:$0xf] %vm9130_vm2, %v2184_v34  ;;  %v5910_v61 = vld [vmem:[#allocation2 + $0x6c] sm:$0xff]   ;;  %2602 = vst [vmem:[#allocation2 + $0xb8] sm:$0xf] %v2601_v60  ;;  %vm9139_vm2 = vcmask 158848   ;;  %v9141_v34 = vor.u32 %v9140_v16, %v6935_v7 }
 0x10c   : > { %2412 = vrot.lane.b32.xlu1 %v2406_v27, %s6016_s19  ;;  %v580_v23 = vld [vmem:[#allocation2 + $0x4] sm:$0x1]  ;;  %v709_v20 = vpop.permute.xlu0 %708  ;;  %5663 = vmatmul.mubr.msk.bf16.vlgmr.msra.gmra.mrb[0].mxu1 %vm9132_vm13, %v5910_v61  ;;  %v1306_v27 = vshll.u32 %v7378_v28, 16  ;;  %v1204_v44 = vor.u32 %v1203_v22, %v7508_v63  ;;  %v7663_v61 = vrot.slane %v1453_v29, 7  ;;  %v1322_v60 = vld [vmem:[#allocation2 + $0x4c] sm:$0xf] }
 0x10d   : > { %v581_v5 = vsel %vm7245_vm14, 0, %v580_v23  ;;  %718 = vst.msk [vmem:[#allocation2 + $0x10] sm:$0xf] %vm9127_vm12, %v709_v20  ;;  %5858 = vrot.lane.b32.xlu0 %v5857_v13, %s6016_s19  ;;  %v989_v13 = vrot.slane %v9141_v34, 4  ;;  %v1445_v23 = vshrl.u32 %v7647_v52, 16  ;;  %vm9142_vm12 = vmmov %vm9133_vm0  ;;  %v2504_v9 = vshll.u32 %v7428_v40, 16 }
 0x10e   : > { %v2328_v25 = vpop.permute.xlu1 %2327  ;;  %582 = vst [vmem:[#allocation2 + $0x4] sm:$0x1] %v581_v5  ;;  %v1308_v26 = vor.u32 %v1306_v27, %v7402_v24  ;;  %v1456_v24 = vshll.u32 %v7644_v32, 16  ;;  %v5986_v16 = vld [vmem:[%s6079_s28 + $0x70] sm:$0xf]  ;;  %v9147_v34 = vor.u32 %v7008_v56, %v6998_v33 }
 0x10f   : > { %2332 = vst.msk [vmem:[#allocation2 + $0xa4] sm:$0xf] %vm9133_vm0, %v2328_v25  ;;  %v2100_v25 = vld [vmem:[#allocation2 + $0x88] sm:$0xf]  ;;  %v7674_v22 = vrot.slane %v1445_v23, 7  ;;  %v2506_v56 = vor.u32 %v2504_v9, %v7476_v54 }
 0x110   : > { %992 = vrot.lane.b32.xlu1 %v9136_v47, %s6016_s19  ;;  %v2205_v39 = vpop.permute.xlu0 %2204  ;;  %v7678_v47 = vrot.slane %v9143_v37, 5  ;;  %v1458_v59 = vor.u32 %v1456_v24, %v7663_v61  ;;  %v7720_v33 = vld [vmem:[%s6111_s12 + $0x74] sm:$0xf] }
 0x111   : > { %v2214_v49 = vsel %vm6904_vm15, %v2205_v39, %v2213_v0  ;;  %675 = vrot.lane.b32.xlu0 %v670_v62, %s6014_s14  ;;  %v1345_v62 = vrot.slane %v9144_v3, 4  ;;  %v1323_v0 = vsel %vm6430_vm8, %v1308_v26, %v1322_v60  ;;  %v2651_v60 = vshrl.u32 %v7720_v33, 16 }
 0x112   : > { %v2203_v18 = vpop.permute.xlu1 %2202  ;;  %2215 = vst [vmem:[#allocation2 + $0x98] sm:$0xf] %v2214_v49  ;;  %1324 = vst [vmem:[#allocation2 + $0x4c] sm:$0xf] %v1323_v0  ;;  %v1451_v49 = vrot.slane %v7674_v22, 4 }
 0x113   : > { %2212 = vst.msk [vmem:[#allocation2 + $0x94] sm:$0xf] %vm9139_vm2, %v2203_v18  ;;  %vm9146_vm2 = vmmov %vm9133_vm0  ;;  %v935_v0 = vld [vmem:[#allocation2 + $0x2c] sm:$0xf] }
 0x114   : > { %5863 = vrot.lane.b32.xlu1 %v5862_v51, %s6013_s13  ;;  %v722_v20 = vld [vmem:[#allocation2 + $0x10] sm:$0x1]  ;;  %v2092_v5 = vpop.permute.xlu0 %2091  ;;  %v1205_v51 = vrot.slane %v1204_v44, 4  ;;  %v9148_v44 = vshll.u32 %v7204_v46, 16 }
 0x115   : > { %v723_v41 = vsel %vm7245_vm14, 0, %v722_v20  ;;  %v2101_v7 = vsel %vm7061_vm3, %v2092_v5, %v2100_v25  ;;  %v5911_v63 = vld [vmem:[#allocation2 + $0x4] sm:$0xff]   ;;  %994 = vrot.lane.b32.xlu0 %v989_v13, %s6016_s19  ;;  %v2625_v13 = vrot.slane %v9147_v34, 4  ;;  %v1346_v20 = vor.u32 %v1345_v62, %v7678_v47 }
 0x116   : > { %v2470_v50 = vpop.permute.xlu1 %2469  ;;  %724 = vst [vmem:[#allocation2 + $0x10] sm:$0x1] %v723_v41  ;;  %2102 = vst [vmem:[#allocation2 + $0x88] sm:$0xf] %v2101_v7  ;;  %5638 = vmatprep.mubr.msk.bf16.mxu0 %vm9132_vm13, %v5911_v63  ;;  %v1086_v26 = vor.u32 %v9148_v44, %v7517_v12  ;;  %v9149_v25 = vshrl.u32 %v7354_v6, 16  ;;  %v1459_v7 = vsel %vm6166_vm4, %v1451_v49, %v1458_v59  ;;  %v7733_v62 = vrot.slane %v1306_v27, 5 }
 0x117   : > { %2474 = vst.msk [vmem:[#allocation2 + $0xb0] sm:$0xf] %vm9142_vm12, %v2470_v50  ;;  %v7712_v50 = vld [vmem:[%s6111_s12 + $0x20] sm:$0xf]  ;;  %v7715_v41 = vld [vmem:[%s6111_s12 + $0x70] sm:$0xf]  ;;  %vm9151_vm13 = vmmov %vm9133_vm0 }
 0x118   : > { %2628 = vrot.lane.b32.xlu1 %v9145_v8, %s6013_s13  ;;  %v2326_v39 = vpop.permute.xlu0 %2325  ;;  %v2407_v5 = vrot.slane %v9149_v25, 4  ;;  %vm9150_vm12 = vcmask 27648   ;;  %v1347_v46 = vrot.slane %v1346_v20, 4  ;;  %v1223_v12 = vshrl.u32 %v7712_v50, 16 }
 0x119   : > { %2331 = vst.msk [vmem:[#allocation2 + $0xa0] sm:$0xf] %vm9133_vm0, %v2326_v39  ;;  %2609 = vrot.lane.b32.xlu0 %v5986_v16, %s6012_s30  ;;  %vm9152_vm0 = vcmask 158848   ;;  %v2643_v3 = vshrl.u32 %v7715_v41, 16  ;;  %v9153_v8 = vshrl.u32 %v7378_v28, 16  ;;  %v1226_v49 = vshll.u32 %v7712_v50, 16 }
 0x11a   : > { %v1050_v18 = vpop.permute.xlu1 %1049  ;;  %1467 = vst.msk [vmem:[#allocation2 + $0x5c] sm:$0xf] %vm9150_vm12, %v1459_v7  ;;  %v2408_v6 = vor.u32 %v2407_v5, %v7586_v45  ;;  %v7739_v39 = vld [vmem:[%s6111_s12 + $0x24] sm:$0xf]  ;;  %v7755_v34 = vrot.slane %v2651_v60, 7  ;;  %vm9155_vm12 = vmmov %vm9152_vm0 }
 0x11b   : > { %1054 = vst.msk [vmem:[#allocation2 + $0x38] sm:$0xf] %vm9146_vm2, %v1050_v18  ;;  %vm9154_vm2 = vcmask 60448   ;;  %v1225_v18 = vrot.slane %v1223_v12, 7  ;;  %v7751_v16 = vrot.slane %v2643_v3, 7 }
 0x11c   : > { %1210 = vrot.lane.b32.xlu1 %v1205_v51, %s6013_s13  ;;  %v906_v63 = vpop.permute.xlu0 %905  ;;  %v1340_v51 = vrot.slane %v9153_v8, 4  ;;  %v2409_v27 = vrot.slane %v2408_v6, 4  ;;  %v1820_v5 = vld [vmem:[#allocation2 + $0x78] sm:$0x1] }
 0x11d   : > { %911 = vst.msk [vmem:[#allocation2 + $0x28] sm:$0xf] %vm9151_vm13, %v906_v63  ;;  %2630 = vrot.lane.b32.xlu0 %v2625_v13, %s6013_s13  ;;  %v2654_v13 = vshll.u32 %v7720_v33, 16  ;;  %vm9156_vm13 = vcmask 126048   ;;  %v1228_v7 = vor.u32 %v1226_v49, %v1225_v18  ;;  %v2649_v63 = vrot.slane %v7751_v16, 4 }
 0x11e   : > { %v2345_v37 = vpop.permute.xlu1 %2344  ;;  %v1341_v44 = vor.u32 %v1340_v51, %v7733_v62 }
 0x11f   : > { %2354 = vst.msk [vmem:[#allocation2 + $0xa0] sm:$0xf] %vm9152_vm0, %v2345_v37  ;;  %v9157_v37 = vshll.u32 %v7431_v57, 16  ;;  %v2656_v8 = vor.u32 %v2654_v13, %v7755_v34  ;;  %vm9159_vm0 = vmmov %vm9156_vm13 }
 0x120   : > { %1097 = vrot.lane.b32.xlu1 %v1086_v26, %s6014_s14  ;;  %v2236_v59 = vpop.permute.xlu0 %2235  ;;  %v8971_v26 = vshrl.u32 %v7739_v39, 16 }
 0x121   : > { %2245 = vst.msk [vmem:[#allocation2 + $0x98] sm:$0xf] %vm9154_vm2, %v2236_v59  ;;  %2517 = vrot.lane.b32.xlu0 %v2506_v56, %s6014_s14  ;;  %v7770_v56 = vrot.slane %v9157_v37, 5  ;;  %v1234_v59 = vshll.u32 %v7739_v39, 16  ;;  %vm9162_vm2 = vcmask 191648  }
 0x122   : > { %v927_v54 = vpop.permute.xlu1 %926  ;;  %v7779_v51 = vrot.slane %v8971_v26, 7 }
 0x123   : > { %v936_v45 = vsel %vm6904_vm15, %v927_v54, %v935_v0 }
 0x124   : > { %937 = vst [vmem:[#allocation2 + $0x2c] sm:$0xf] %v936_v45  ;;  %1352 = vrot.lane.b32.xlu1 %v1347_v46, %s6013_s13  ;;  %v925_v20 = vpop.permute.xlu0 %924  ;;  %v9158_v46 = vshrl.u32 %v7431_v57, 16 }
 0x125   : > { %934 = vst.msk [vmem:[#allocation2 + $0x28] sm:$0xf] %vm9155_vm12, %v925_v20  ;;  %1331 = vrot.lane.b32.xlu0 %v7378_v28, %s6012_s30  ;;  %v1342_v28 = vrot.slane %v1341_v44, 4  ;;  %v1229_v20 = vrot.slane %v1225_v18, 4  ;;  %vm9163_vm12 = vcmask 195584  }
 0x126   : > { %v2254_v25 = vpop.permute.xlu1 %2253  ;;  %v2549_v6 = vrot.slane %v9158_v46, 4  ;;  %v822_v46 = vld [vmem:[#allocation2 + $0x1c] sm:$0xf] }
 0x127   : > { %2258 = vst.msk [vmem:[#allocation2 + $0x98] sm:$0xf] %vm9156_vm13, %v2254_v25  ;;  %v1344_v44 = vsel %vm6177_vm5, %v1342_v28, %v7678_v47  ;;  %v1236_v25 = vor.u32 %v1234_v59, %v7779_v51  ;;  %v7807_v28 = vld [vmem:[%s6111_s12 + $0x28] sm:$0xf]  ;;  %vm9165_vm13 = vmmov %vm9163_vm12 }
 0x128   : > { %2414 = vrot.lane.b32.xlu1 %v2409_v27, %s6016_s19  ;;  %v2110_v54 = vpop.permute.xlu0 %2109  ;;  %v2550_v57 = vor.u32 %v2549_v6, %v7770_v56  ;;  %v2657_v27 = vsel %vm6166_vm4, %v2649_v63, %v2656_v8  ;;  %v2139_v6 = vld [vmem:[#allocation2 + $0x8c] sm:$0xf] }
 0x129   : > { %2115 = vst.msk [vmem:[#allocation2 + $0x88] sm:$0xf] %vm9159_vm0, %v2110_v54  ;;  %1475 = vrot.lane.b32.xlu0 %v7644_v32, %s6012_s30  ;;  %v1237_v18 = vsel %vm6166_vm4, %v1229_v20, %v1236_v25  ;;  %v5913_v20 = vld [vmem:[#allocation2 + $0x7c] sm:$0xff]   ;;  %v8972_v25 = vshrl.u32 %v7807_v28, 16 }
 0x12a   : > { %v1812_v0 = vpop.permute.xlu1 %1811  ;;  %v2551_v47 = vrot.slane %v2550_v57, 4 }
 0x12b   : > { %v1821_v45 = vsel %vm7545_vm6, %v1812_v0, %v1820_v5  ;;  %v9160_v5 = vld [vmem:[#allocation12_spill] sm:$0xff]  ;;  %v7810_v0 = vld [vmem:[%s6111_s12 + $0x2c] sm:$0xf] }
 0x12c   : > { %1822 = vst [vmem:[#allocation2 + $0x78] sm:$0x1] %v1821_v45  ;;  %1239 = vrot.lane.b32.xlu1 %v1228_v7, %s6014_s14  ;;  %v2170_v37 = vrot.slane %v9160_v5, 4  ;;  %v814_v7 = vpop.permute.xlu0 %813  ;;  %v2178_v45 = vld [vmem:[#allocation2 + $0x9c] sm:$0x1]  ;;  %v9161_v5 = vld [vmem:[#allocation11_spill] sm:$0xff] }
 0x12d   : > { %v823_v63 = vsel %vm7061_vm3, %v814_v7, %v822_v46  ;;  %2661 = vrot.lane.b32.xlu0 %v2657_v27, %s6014_s14  ;;  %v750_v46 = vrot.slane %v9161_v5, 4 }
 0x12e   : > { %v2131_v54 = vpop.permute.xlu1 %2130  ;;  %824 = vst [vmem:[#allocation2 + $0x1c] sm:$0xf] %v823_v63  ;;  %v2179_v27 = vsel %vm6818_vm11, %v2170_v37, %v2178_v45  ;;  %v7825_v37 = vrot.slane %v2504_v9, 5  ;;  %v2209_v45 = vld [vmem:[#allocation2 + $0x90] sm:$0x8] }
 0x12f   : > { %v2140_v8 = vsel %vm7170_vm10, %v2131_v54, %v2139_v6  ;;  %v719_v54 = vld [vmem:[#allocation2 + $0x14] sm:$0xf]  ;;  %2180 = vst [vmem:[#allocation2 + $0x9c] sm:$0x1] %v2179_v27  ;;  %v8973_v6 = vshrl.u32 %v7810_v0, 16 }
 0x130   : > { %2141 = vst [vmem:[#allocation2 + $0x8c] sm:$0xf] %v2140_v8  ;;  %1350 = vrot.lane.b32.xlu1 %v1344_v44, %s6013_s13  ;;  %v2129_v7 = vpop.permute.xlu0 %2128  ;;  %v758_v8 = vld [vmem:[#allocation2 + $0x24] sm:$0x1] }
 0x131   : > { %2138 = vst.msk [vmem:[#allocation2 + $0x88] sm:$0xf] %vm9162_vm2, %v2129_v7  ;;  %1241 = vrot.lane.b32.xlu0 %v1237_v18, %s6014_s14  ;;  %v789_v18 = vld [vmem:[#allocation2 + $0x18] sm:$0x8]  ;;  %v759_v7 = vsel %vm6818_vm11, %v750_v46, %v758_v8  ;;  %v7845_v46 = vrot.slane %v8973_v6, 7  ;;  %vm9166_vm2 = vcmask 60448  }
 0x132   : > { %v711_v26 = vpop.permute.xlu1 %710  ;;  %760 = vst [vmem:[#allocation2 + $0x24] sm:$0x1] %v759_v7  ;;  %v715_v6 = vld [vmem:[#allocation2 + $0xc] sm:$0x8] }
 0x133   : > { %v720_v57 = vsel %vm7170_vm10, %v711_v26, %v719_v54  ;;  %v5912_v44 = vld [vmem:[#allocation2 + $0x74] sm:$0xff]   ;;  %v9164_v26 = vshrl.u32 %v7428_v40, 16 }
 0x134   : > { %721 = vst [vmem:[#allocation2 + $0x14] sm:$0xf] %v720_v57  ;;  %2556 = vrot.lane.b32.xlu1 %v2551_v47, %s6016_s19  ;;  %5666 = vmatprep.mubr.msk.bf16.mxu1 %vm9163_vm12, %v5912_v44  ;;  %v5844_v5 = vpop.permute.xlu0 %5843  ;;  %v5987_v44 = vld [vmem:[%s6111_s12 + $0x18] sm:$0xf]  ;;  %vm9167_vm12 = vmmov %vm9159_vm0 }
 0x135   : > { %v2544_v63 = vrot.slane %v9164_v26, 4  ;;  %5667 = vmatmul.mubr.msk.bf16.gmra.mrb[4].mxu1 %vm9165_vm13, %v5913_v20  ;;  %v5846_v27 = vunpack.i.h.bf16 %v5844_v5  ;;  %v5845_v57 = vunpack.i.l.bf16 %v5844_v5  ;;  %2535 = vrot.lane.b32.xlu0 %v7428_v40, %s6015_s15  ;;  %v7841_v20 = vrot.slane %v8972_v25, 7  ;;  %v5960_v58 = vld [vmem:[#allocation2 + $0x78] sm:$0xff]  }
 0x136   : > { %v832_v47 = vpop.permute.xlu1 %831  ;;  %v8974_v40 = vshll.u32 %v7810_v0, 16  ;;  %vm9171_vm13 = vcmask 191648  }
 0x137   : > { %v2145_v54 = vld [vmem:[#allocation2 + $0x8c] sm:$0x8]  ;;  %837 = vst.msk [vmem:[#allocation2 + $0x1c] sm:$0xf] %vm9159_vm0, %v832_v47  ;;  %v790_v26 = vsel %vm7269_vm9, %v5846_v27, %v789_v18  ;;  %v2210_v8 = vsel %vm7269_vm9, %v5845_v57, %v2209_v45  ;;  %v2545_v5 = vor.u32 %v2544_v63, %v7825_v37  ;;  %v9168_v63 = vor.u32 %v7161_v48, %v7157_v17 }
 0x138   : > { %v2146_v9 = vsel %vm7225_vm7, 0, %v2145_v54  ;;  %1115 = vrot.lane.b32.xlu1 %v5987_v44, %s6015_s15  ;;  %v2142_v47 = vld [vmem:[#allocation2 + $0x88] sm:$0x1]  ;;  %791 = vst [vmem:[#allocation2 + $0x18] sm:$0x8] %v790_v26  ;;  %v958_v7 = vpop.permute.xlu0 %957  ;;  %v2232_v27 = vrot.slane %v7095_v53, 4 }
 0x139   : > { %2147 = vst [vmem:[#allocation2 + $0x8c] sm:$0x8] %v2146_v9  ;;  %2211 = vst [vmem:[#allocation2 + $0x90] sm:$0x8] %v2210_v8  ;;  %v2143_v44 = vsel %vm7245_vm14, 0, %v2142_v47  ;;  %2679 = vrot.lane.b32.xlu0 %v7720_v33, %s6015_s15  ;;  %v1131_v45 = vrot.slane %v9168_v63, 4 }
 0x13a   : > { %v976_v54 = vpop.permute.xlu1 %975  ;;  %967 = vst.msk [vmem:[#allocation2 + $0x2c] sm:$0xf] %vm9166_vm2, %v958_v7  ;;  %2144 = vst [vmem:[#allocation2 + $0x88] sm:$0x1] %v2143_v44  ;;  %v1371_v57 = vrot.slane %v7841_v20, 4  ;;  %v2546_v9 = vrot.slane %v2545_v5, 4 }
 0x13b   : > { %v725_v25 = vld [vmem:[#allocation2 + $0x14] sm:$0x8]  ;;  %980 = vst.msk [vmem:[#allocation2 + $0x2c] sm:$0xf] %vm9167_vm12, %v976_v54  ;;  %v9169_v26 = vld [vmem:[#allocation16_spill] sm:$0xff]  ;;  %vm9172_vm0 = vcmask 93248  }
 0x13c   : > { %v726_v18 = vsel %vm7225_vm7, 0, %v725_v25  ;;  %1259 = vrot.lane.b32.xlu1 %v7739_v39, %s6015_s15  ;;  %v1378_v25 = vor.u32 %v8974_v40, %v7845_v46  ;;  %v892_v8 = vrot.slane %v9169_v26, 4  ;;  %v861_v47 = vld [vmem:[#allocation2 + $0x20] sm:$0xf]  ;;  %v853_v7 = vpop.permute.xlu0 %852  ;;  %v2135_v53 = vld [vmem:[#allocation2 + $0x84] sm:$0x8]  ;;  %vm9175_vm2 = vmmov %vm9172_vm0 }
 0x13d   : > { %727 = vst [vmem:[#allocation2 + $0x14] sm:$0x8] %v726_v18  ;;  %v862_v44 = vsel %vm7170_vm10, %v853_v7, %v861_v47  ;;  %v534_v18 = vld [vmem:[#allocation2 + $0xc] sm:$0x1]  ;;  %1136 = vrot.lane.b32.xlu0 %v1131_v45, %s6016_s19  ;;  %v2548_v47 = vsel %vm6177_vm5, %v2546_v9, %v7770_v56  ;;  %v900_v7 = vld [vmem:[#allocation2 + $0x30] sm:$0x1] }
 0x13e   : > { %v5849_v54 = vpop.permute.xlu1 %5848  ;;  %863 = vst [vmem:[#allocation2 + $0x20] sm:$0xf] %v862_v44  ;;  %v1379_v40 = vsel %vm6166_vm4, %v1371_v57, %v1378_v25  ;;  %v2355_v45 = vld [vmem:[#allocation2 + $0xa4] sm:$0xf]  ;;  %v9170_v56 = vld [vmem:[#allocation23_spill] sm:$0xff]  ;;  %v7897_v25 = vrot.slane %v1226_v49, 5 }
 0x13f   : > { %v5851_v48 = vunpack.i.h.bf16 %v5849_v54  ;;  %v5850_v63 = vunpack.i.l.bf16 %v5849_v54  ;;  %v5867_v57 = vpack.i.bf16 %v9170_v56, %v7566_v4  ;;  %v1266_v9 = vrot.slane %v1223_v12, 4  ;;  %v9174_v12 = vld [vmem:[#allocation19_spill] sm:$0xff] }
 0x140   : > { %2237 = vrot.lane.b32.xlu1 %v2232_v27, %s6014_s14  ;;  %v521_v54 = vpop.permute.xlu0 %520  ;;  %v901_v27 = vsel %vm6818_vm11, %v892_v8, %v900_v7  ;;  %v9173_v4 = vsel %vm6177_vm5, %v7265_v19, %v7157_v17  ;;  %v812_v49 = vrot.slane %v9174_v12, 4  ;;  %v1448_v7 = vshll.u32 %v7647_v52, 16  ;;  %v9176_v17 = vld [vmem:[#allocation26_spill] sm:$0xff] }
 0x141   : > { %v716_v5 = vsel %vm7579_vm1, %v5850_v63, %v715_v6  ;;  %v2136_v26 = vsel %vm7579_vm1, %v5851_v48, %v2135_v53  ;;  %v535_v6 = vsel %vm7545_vm6, %v521_v54, %v534_v18  ;;  %902 = vst [vmem:[#allocation2 + $0x30] sm:$0x1] %v901_v27  ;;  %1383 = vrot.lane.b32.xlu0 %v1379_v40, %s6014_s14  ;;  %vm9178_vm12 = vcmask 195584   ;;  %v5964_v36 = vld [vmem:[#allocation2 + $0x88] sm:$0xff]  }
 0x142   : > { %717 = vst [vmem:[#allocation2 + $0xc] sm:$0x8] %v716_v5  ;;  %2137 = vst [vmem:[#allocation2 + $0x84] sm:$0x8] %v2136_v26  ;;  %v2347_v44 = vpop.permute.xlu1 %2346  ;;  %v1267_v18 = vor.u32 %v1266_v9, %v7897_v25  ;;  %v2242_v5 = vld [vmem:[#allocation2 + $0x94] sm:$0xf]  ;;  %v5872_v19 = vpack.i.bf16 %v9176_v17, %v7469_v38  ;;  %v1450_v27 = vor.u32 %v1448_v7, %v7674_v22 }
 0x143   : > { %v2356_v48 = vsel %vm6904_vm15, %v2347_v44, %v2355_v45  ;;  %536 = vst [vmem:[#allocation2 + $0xc] sm:$0x1] %v535_v6  ;;  %v954_v44 = vrot.slane %v7183_v42, 4  ;;  %v9177_v6 = vld [vmem:[#allocation21_spill] sm:$0xff]  ;;  %v7933_v38 = vrot.slane %v1456_v24, 5  ;;  %v7945_v24 = vrot.slane %v1448_v7, 5 }
 0x144   : > { %2357 = vst [vmem:[#allocation2 + $0xa4] sm:$0xf] %v2356_v48  ;;  %2554 = vrot.lane.b32.xlu1 %v2548_v47, %s6016_s19  ;;  %v851_v8 = vpop.permute.xlu0 %850  ;;  %v2312_v48 = vrot.slane %v9177_v6, 4  ;;  %v1268_v56 = vrot.slane %v1267_v18, 4  ;;  %v1482_v12 = vrot.slane %v1445_v23, 4  ;;  %v2646_v7 = vshll.u32 %v7715_v41, 16 }
 0x145   : > { %v867_v53 = vld [vmem:[#allocation2 + $0x20] sm:$0x8]  ;;  %860 = vst.msk [vmem:[#allocation2 + $0x1c] sm:$0xf] %vm9171_vm13, %v851_v8  ;;  %5868 = vrot.lane.b32.xlu0 %v5867_v57, %s6016_s19  ;;  %v7929_v57 = vrot.slane %v1234_v59, 5  ;;  %vm9179_vm13 = vmmov %vm9172_vm0 }
 0x146   : > { %v2468_v63 = vpop.permute.xlu1 %2467  ;;  %v868_v40 = vsel %vm7225_vm7, 0, %v867_v53  ;;  %v2497_v8 = vld [vmem:[#allocation2 + $0xb0] sm:$0xf]  ;;  %v1464_v59 = vld [vmem:[#allocation2 + $0x58] sm:$0xf]  ;;  %v1483_v17 = vor.u32 %v1482_v12, %v7945_v24 }
 0x147   : > { %2473 = vst.msk [vmem:[#allocation2 + $0xac] sm:$0xf] %vm9172_vm0, %v2468_v63  ;;  %869 = vst [vmem:[#allocation2 + $0x20] sm:$0x8] %v868_v40  ;;  %v1270_v32 = vsel %vm6177_vm5, %v1268_v56, %v7929_v57  ;;  %v1368_v56 = vshll.u32 %v7807_v28, 16 }
 0x148   : > { %1134 = vrot.lane.b32.xlu1 %v9173_v4, %s6016_s19  ;;  %v2234_v26 = vpop.permute.xlu0 %2233  ;;  %v1487_v4 = vrot.slane %v1453_v29, 4  ;;  %v2320_v29 = vld [vmem:[#allocation2 + $0xa8] sm:$0x1] }
 0x149   : > { %v2243_v54 = vsel %vm7061_vm3, %v2234_v26, %v2242_v5  ;;  %817 = vrot.lane.b32.xlu0 %v812_v49, %s6014_s14  ;;  %v1465_v49 = vsel %vm6430_vm8, %v1450_v27, %v1464_v59  ;;  %v2384_v26 = vld [vmem:[#allocation2 + $0xa0] sm:$0xf]  ;;  %v2321_v23 = vsel %vm6818_vm11, %v2312_v48, %v2320_v29  ;;  %v1484_v48 = vrot.slane %v1483_v17, 4  ;;  %v964_v12 = vld [vmem:[#allocation2 + $0x28] sm:$0xf] }
 0x14a   : > { %v2612_v47 = vpop.permute.xlu1 %2611  ;;  %v5914_v45 = vld [vmem:[#allocation2 + $0xc] sm:$0xff]   ;;  %2244 = vst [vmem:[#allocation2 + $0x94] sm:$0xf] %v2243_v54  ;;  %1466 = vst [vmem:[#allocation2 + $0x58] sm:$0xf] %v1465_v49  ;;  %v5877_v54 = vpack.i.bf16 %v7825_v37, %v7233_v2  ;;  %v2648_v2 = vor.u32 %v2646_v7, %v7751_v16  ;;  %v1370_v16 = vor.u32 %v1368_v56, %v7841_v20  ;;  %v2691_v20 = vrot.slane %v2651_v60, 4 }
 0x14b   : > { %2616 = vst.msk [vmem:[#allocation2 + $0xbc] sm:$0xf] %vm9175_vm2, %v2612_v47  ;;  %5639 = vmatmul.mubr.msk.bf16.vlgmr.msra.gmra.mrb[0].mxu0 %vm9178_vm12, %v5914_v45  ;;  %v1488_v45 = vor.u32 %v1487_v4, %v7933_v38  ;;  %2322 = vst [vmem:[#allocation2 + $0xa8] sm:$0x1] %v2321_v23  ;;  %vm9180_vm2 = vcmask 158848   ;;  %vm9181_vm12 = vcmask 60448  }
 0x14c   : > { %1257 = vrot.lane.b32.xlu1 %v7712_v50, %s6015_s15  ;;  %v864_v9 = vld [vmem:[#allocation2 + $0x1c] sm:$0x1]  ;;  %v2489_v63 = vpop.permute.xlu0 %2488  ;;  %v1077_v50 = vld [vmem:[#allocation2 + $0x38] sm:$0xf] }
 0x14d   : > { %v865_v42 = vsel %vm7245_vm14, 0, %v864_v9  ;;  %v2498_v22 = vsel %vm6904_vm15, %v2489_v63, %v2497_v8  ;;  %5873 = vrot.lane.b32.xlu0 %v5872_v19, %s6013_s13  ;;  %v7967_v19 = vrot.slane %v2646_v7, 5  ;;  %v1489_v37 = vrot.slane %v1488_v45, 4  ;;  %v7980_v9 = vld [vmem:[%s6079_s28 + $0x78] sm:$0xf] }
 0x14e   : > { %v1069_v53 = vpop.permute.xlu1 %1068  ;;  %866 = vst [vmem:[#allocation2 + $0x1c] sm:$0x1] %v865_v42  ;;  %2499 = vst [vmem:[#allocation2 + $0xb0] sm:$0xf] %v2498_v22  ;;  %v2726_v42 = vshll.u32 %v7980_v9, 16 }
 0x14f   : > { %v1078_v40 = vsel %vm6904_vm15, %v1069_v53, %v1077_v50  ;;  %v7983_v50 = vld [vmem:[%s6111_s12 + $0x30] sm:$0xf]  ;;  %v7986_v53 = vld [vmem:[%s6111_s12 + $0x34] sm:$0xf]  ;;  %v2281_v7 = vld [vmem:[#allocation2 + $0x98] sm:$0xf] }
 0x150   : > { %1079 = vst [vmem:[#allocation2 + $0x38] sm:$0xf] %v1078_v40  ;;  %959 = vrot.lane.b32.xlu1 %v954_v44, %s6014_s14  ;;  %v1048_v18 = vpop.permute.xlu0 %1047  ;;  %v2686_v44 = vrot.slane %v2643_v3, 4  ;;  %v2689_v40 = vrot.slane %v2654_v13, 5  ;;  %v1507_v59 = vshrl.u32 %v7983_v50, 16  ;;  %v1515_v4 = vshrl.u32 %v7986_v53, 16 }
 0x151   : > { %1053 = vst.msk [vmem:[#allocation2 + $0x34] sm:$0xf] %vm9179_vm13, %v1048_v18  ;;  %1401 = vrot.lane.b32.xlu0 %v7810_v0, %s6015_s15  ;;  %vm9182_vm13 = vmmov %vm9180_vm2  ;;  %v8012_v13 = vrot.slane %v2726_v42, 5  ;;  %v1518_v60 = vshll.u32 %v7986_v53, 16 }
 0x152   : > { %v2376_v5 = vpop.permute.xlu1 %2375  ;;  %v2687_v3 = vor.u32 %v2686_v44, %v7967_v19  ;;  %v8018_v18 = vrot.slane %v1507_v59, 7  ;;  %v8022_v33 = vrot.slane %v1515_v4, 7  ;;  %v2692_v17 = vor.u32 %v2691_v20, %v2689_v40  ;;  %v2462_v20 = vld [vmem:[#allocation2 + $0xb4] sm:$0x1] }
 0x153   : > { %v2385_v47 = vsel %vm7061_vm3, %v2376_v5, %v2384_v26  ;;  %v1034_v5 = vrot.slane %v6984_v1, 4  ;;  %v5882_v1 = vpack.i.bf16 %v7733_v62, %v8012_v13  ;;  %v9185_v44 = vshrl.u32 %v7739_v39, 16 }
 0x154   : > { %2386 = vst [vmem:[#allocation2 + $0xa0] sm:$0xf] %v2385_v47  ;;  %1276 = vrot.lane.b32.xlu1 %v1270_v32, %s6016_s19  ;;  %v1192_v27 = vpop.permute.xlu0 %1191  ;;  %v2688_v22 = vrot.slane %v2687_v3, 4  ;;  %v1513_v3 = vrot.slane %v8018_v18, 4 }
 0x155   : > { %1196 = vst.msk [vmem:[#allocation2 + $0x44] sm:$0xf] %vm9172_vm0, %v1192_v27  ;;  %5878 = vrot.lane.b32.xlu0 %v5877_v54, %s6016_s19  ;;  %v9184_v54 = vld [vmem:[#allocation29_spill] sm:$0xff]  ;;  %v1271_v27 = vrot.slane %v9185_v44, 4 }
 0x156   : > { %v2487_v6 = vpop.permute.xlu1 %2486  ;;  %v2690_v29 = vsel %vm6177_vm5, %v2688_v22, %v2689_v40  ;;  %v2374_v45 = vrot.slane %v9184_v54, 4  ;;  %v5924_v54 = vld [vmem:[%s8874_s4 + $0xc] sm:$0xff]  }
 0x157   : > { %2496 = vst.msk [vmem:[#allocation2 + $0xac] sm:$0xf] %vm9180_vm2, %v2487_v6  ;;  %vm9183_vm2 = vmmov %vm9172_vm0  ;;  %v9186_v6 = vshll.u32 %v7810_v0, 16  ;;  %v1272_v22 = vor.u32 %v1271_v27, %v7929_v57  ;;  %v5927_v27 = vld [vmem:[%s8874_s4 + $0x18] sm:$0xff]   ;;  %5686 = vmatprep.subr.bf16.mxu1 %v5924_v54 }
 0x158   : > { %1473 = vrot.lane.b32.xlu1 %v7647_v52, %s6012_s30  ;;  %v2378_v8 = vpop.permute.xlu0 %2377  ;;  %v1486_v52 = vsel %vm6177_vm5, %v1484_v48, %v7933_v38  ;;  %5687 = vmatpush3.bf16.msra.mxu1 %v5924_v54 }
 0x159   : > { %2387 = vst.msk [vmem:[#allocation2 + $0xa4] sm:$0xf] %vm9181_vm12, %v2378_v8  ;;  %2659 = vrot.lane.b32.xlu0 %v2648_v2, %s6014_s14  ;;  %v8039_v2 = vrot.slane %v9186_v6, 5  ;;  %v1042_v8 = vld [vmem:[#allocation2 + $0x3c] sm:$0x1]  ;;  %vm9189_vm12 = vcmask 126048   ;;  %5738 = vmatprep.subr.bf16.mxu0 %v5927_v27 }
 0x15a   : > { %v1067_v63 = vpop.permute.xlu1 %1066  ;;  %v1043_v39 = vsel %vm6818_vm11, %v1034_v5, %v1042_v8  ;;  %v1962_v6 = vld [vmem:[#allocation2 + $0x84] sm:$0x1]  ;;  %v9198_v8 = vld [vmem:[#allocation28_spill] sm:$0xff]  ;;  %5739 = vmatpush3.bf16.msra.mxu0 %v5927_v27 }
 0x15b   : > { %1076 = vst.msk [vmem:[#allocation2 + $0x34] sm:$0xf] %vm9182_vm13, %v1067_v63  ;;  %v9188_v63 = vld [vmem:[#allocation22_spill] sm:$0xff]  ;;  %vm9190_vm13 = vcmask 60448   ;;  %1044 = vst [vmem:[#allocation2 + $0x3c] sm:$0x1] %v1043_v39 }
 0x15c   : > { %1494 = vrot.lane.b32.xlu1 %v1489_v37, %s6013_s13  ;;  %v956_v49 = vpop.permute.xlu0 %955  ;;  %v9187_v37 = vshrl.u32 %v7810_v0, 16  ;;  %v2693_v0 = vrot.slane %v2692_v17, 4 }
 0x15d   : > { %v965_v38 = vsel %vm7061_vm3, %v956_v49, %v964_v12  ;;  %1492 = vrot.lane.b32.xlu0 %v1486_v52, %s6013_s13  ;;  %v2454_v52 = vrot.slane %v9188_v63, 4  ;;  %v8060_v49 = vrot.slane %v1368_v56, 5  ;;  %v1273_v56 = vrot.slane %v1272_v22, 4  ;;  %v8098_v22 = vld [vmem:[%s6111_s12 + $0x78] sm:$0xf] }
 0x15e   : > { %v1334_v32 = vpop.permute.xlu1 %1333  ;;  %966 = vst [vmem:[#allocation2 + $0x28] sm:$0xf] %v965_v38  ;;  %v1413_v48 = vrot.slane %v9187_v37, 4  ;;  %v9197_v37 = vld [vmem:[#allocation8_spill] sm:$0xff]  ;;  %v1176_v63 = vrot.slane %v9198_v8, 4  ;;  %v2788_v54 = vshll.u32 %v8098_v22, 16 }
 0x15f   : > { %1338 = vst.msk [vmem:[#allocation2 + $0x50] sm:$0xf] %vm9172_vm0, %v1334_v32  ;;  %v9191_v32 = vshrl.u32 %v7807_v28, 16  ;;  %vm9192_vm0 = vmmov %vm9189_vm12  ;;  %v5929_v8 = vld [vmem:[%s8874_s4 + $0x14] ss:$0 sps:$4 sm:$0xff]  }
 0x160   : > { %1381 = vrot.lane.b32.xlu1 %v1370_v16, %s6014_s14  ;;  %v1190_v26 = vpop.permute.xlu0 %1189  ;;  %v1414_v40 = vor.u32 %v1413_v48, %v8039_v2  ;;  %v1096_v48 = vrot.slane %v9197_v37, 4 }
 0x161   : > { %1195 = vst.msk [vmem:[#allocation2 + $0x40] sm:$0xf] %vm9183_vm2, %v1190_v26  ;;  %2677 = vrot.lane.b32.xlu0 %v7715_v41, %s6015_s15  ;;  %v1520_v41 = vor.u32 %v1518_v60, %v8022_v33  ;;  %v1408_v38 = vrot.slane %v9191_v32, 4  ;;  %v2463_v26 = vsel %vm6818_vm11, %v2454_v52, %v2462_v20  ;;  %vm9193_vm2 = vcmask 158848   ;;  %v931_v32 = vld [vmem:[#allocation2 + $0x24] sm:$0x8] }
 0x162   : > { %v2273_v47 = vpop.permute.xlu1 %2272  ;;  %2464 = vst [vmem:[#allocation2 + $0xb4] sm:$0x1] %v2463_v26 }
 0x163   : > { %v2282_v23 = vsel %vm7170_vm10, %v2273_v47, %v2281_v7  ;;  %v1521_v12 = vsel %vm6166_vm4, %v1513_v3, %v1520_v41  ;;  %v1415_v7 = vrot.slane %v1414_v40, 4  ;;  %v2604_v41 = vld [vmem:[#allocation2 + $0xc0] sm:$0x1]  ;;  %v1184_v40 = vld [vmem:[#allocation2 + $0x48] sm:$0x1] }
 0x164   : > { %2283 = vst [vmem:[#allocation2 + $0x98] sm:$0xf] %v2282_v23  ;;  %2696 = vrot.lane.b32.xlu1 %v2690_v29, %s6016_s19  ;;  %v2252_v62 = vpop.permute.xlu0 %2251  ;;  %v1409_v23 = vor.u32 %v1408_v38, %v8060_v49  ;;  %v2351_v38 = vld [vmem:[#allocation2 + $0x9c] sm:$0x8] }
 0x165   : > { %2257 = vst.msk [vmem:[#allocation2 + $0x94] sm:$0xf] %vm9189_vm12, %v2252_v62  ;;  %2379 = vrot.lane.b32.xlu0 %v2374_v45, %s6014_s14  ;;  %v9194_v45 = vld [vmem:[#allocation27_spill] sm:$0xff]  ;;  %vm9195_vm12 = vmmov %vm9190_vm13 }
 0x166   : > { %v2520_v16 = vpop.permute.xlu1 %2519  ;;  %v2596_v17 = vrot.slane %v9194_v45, 4  ;;  %v1410_v3 = vrot.slane %v1409_v23, 4 }
 0x167   : > { %2529 = vst.msk [vmem:[#allocation2 + $0xb0] sm:$0xf] %vm9190_vm13, %v2520_v16  ;;  %vm9196_vm13 = vcmask 191648  }
 0x168   : > { %5883 = vrot.lane.b32.xlu1 %v5882_v1, %s6013_s13  ;;  %v2396_v29 = vpop.permute.xlu0 %2395  ;;  %v2605_v16 = vsel %vm6818_vm11, %v2596_v17, %v2604_v41  ;;  %v8131_v41 = vrot.slane %v2788_v54, 5 }
 0x169   : > { %2400 = vst.msk [vmem:[#allocation2 + $0xa4] sm:$0xf] %vm9192_vm0, %v2396_v29  ;;  %2698 = vrot.lane.b32.xlu0 %v2693_v0, %s6016_s19  ;;  %2606 = vst [vmem:[#allocation2 + $0xc0] sm:$0x1] %v2605_v16  ;;  %v1412_v0 = vsel %vm6177_vm5, %v1410_v3, %v8039_v2  ;;  %v1510_v2 = vshll.u32 %v7983_v50, 16  ;;  %v1460_v3 = vrot.slane %v7663_v61, 4 }
 0x16a   : > { %v1209_v5 = vpop.permute.xlu1 %1208  ;;  %v1326_v16 = vld [vmem:[#allocation2 + $0x54] sm:$0x1] }
 0x16b   : > { %v2287_v47 = vld [vmem:[#allocation2 + $0x98] sm:$0x8]  ;;  %1218 = vst.msk [vmem:[#allocation2 + $0x40] sm:$0xf] %vm9193_vm2, %v1209_v5  ;;  %v1185_v5 = vsel %vm6818_vm11, %v1176_v63, %v1184_v40  ;;  %vm9199_vm2 = vmmov %vm9192_vm0  ;;  %v1468_v40 = vld [vmem:[#allocation2 + $0x60] sm:$0x1] }
 0x16c   : > { %v2288_v57 = vsel %vm7225_vm7, 0, %v2287_v47  ;;  %1525 = vrot.lane.b32.xlu1 %v1521_v12, %s6014_s14  ;;  %v1100_v1 = vpop.permute.xlu0 %1099  ;;  %1186 = vst [vmem:[#allocation2 + $0x48] sm:$0x1] %v1185_v5  ;;  %vm9206_vm7 = vcmask 191648  }
 0x16d   : > { %2289 = vst [vmem:[#allocation2 + $0x98] sm:$0x8] %v2288_v57  ;;  %1109 = vst.msk [vmem:[#allocation2 + $0x38] sm:$0xf] %vm9195_vm12, %v1100_v1  ;;  %1278 = vrot.lane.b32.xlu0 %v1273_v56, %s6016_s19  ;;  %v5887_v57 = vpack.i.bf16 %v7967_v19, %v7897_v25  ;;  %v2104_v56 = vld [vmem:[#allocation2 + $0x90] sm:$0x1] }
 0x16e   : > { %v2271_v44 = vpop.permute.xlu1 %2270  ;;  %v8117_v1 = vrot.slane %v1510_v2, 5  ;;  %v9201_v19 = vld [vmem:[#allocation15_spill] sm:$0xff]  ;;  %vm9202_vm12 = vmmov %vm9192_vm0 }
 0x16f   : > { %2280 = vst.msk [vmem:[#allocation2 + $0x94] sm:$0xf] %vm9196_vm13, %v2271_v44  ;;  %v1550_v44 = vrot.slane %v1507_v59, 4  ;;  %v1512_v59 = vor.u32 %v1510_v2, %v8018_v18  ;;  %vm9203_vm13 = vcmask 195584   ;;  %v9207_v18 = vld [vmem:[#allocation4_spill] sm:$0xff] }
 0x170   : > { %1420 = vrot.lane.b32.xlu1 %v1415_v7, %s6016_s19  ;;  %v1954_v52 = vpop.permute.xlu0 %1953  ;;  %v9200_v7 = vld [vmem:[#allocation18_spill] sm:$0xff] }
 0x171   : > { %v1963_v39 = vsel %vm7545_vm6, %v1954_v52, %v1962_v6  ;;  %1399 = vrot.lane.b32.xlu0 %v7807_v28, %s6015_s15  ;;  %v2516_v23 = vrot.slane %v9200_v7, 4  ;;  %v1318_v6 = vrot.slane %v9201_v19, 4  ;;  %v1551_v63 = vor.u32 %v1550_v44, %v8117_v1  ;;  %v2493_v44 = vld [vmem:[#allocation2 + $0xa8] sm:$0x8] }
 0x172   : > { %v2394_v62 = vpop.permute.xlu1 %2393  ;;  %1964 = vst [vmem:[#allocation2 + $0x84] sm:$0x1] %v1963_v39  ;;  %v5892_v39 = vpack.i.bf16 %v9207_v18, %v7945_v24  ;;  %v1555_v24 = vrot.slane %v1515_v4, 4 }
 0x173   : > { %2399 = vst.msk [vmem:[#allocation2 + $0xa0] sm:$0xf] %vm9192_vm0, %v2394_v62  ;;  %vm9204_vm0 = vcmask 1043456  }
 0x174   : > { %1101 = vrot.lane.b32.xlu1 %v1096_v48, %s6014_s14  ;;  %v5854_v20 = vpop.permute.xlu0 %5853  ;;  %5796 = vmatprep.subr.msk.bf16.mxu1 %vm9204_vm0, %v5929_v8 }
 0x175   : > { %v5856_v26 = vunpack.i.h.bf16 %v5854_v20  ;;  %v5855_v47 = vunpack.i.l.bf16 %v5854_v20  ;;  %1543 = vrot.lane.b32.xlu0 %v7986_v53, %s6015_s15  ;;  %v1552_v20 = vrot.slane %v1551_v63, 4  ;;  %v2658_v53 = vrot.slane %v7755_v34, 4  ;;  %v8182_v63 = vld [vmem:[%s6111_s12 + $0x7c] sm:$0xf] }
 0x176   : > { %v2284_v12 = vld [vmem:[#allocation2 + $0x94] sm:$0x1]  ;;  %v974_v29 = vpop.permute.xlu1 %973 }
 0x177   : > { %v2285_v28 = vsel %vm7245_vm14, 0, %v2284_v12  ;;  %979 = vst.msk [vmem:[#allocation2 + $0x28] sm:$0xf] %vm9199_vm2, %v974_v29  ;;  %v932_v45 = vsel %vm7269_vm9, %v5856_v26, %v931_v32  ;;  %v2352_v17 = vsel %vm7269_vm9, %v5855_v47, %v2351_v38  ;;  %vm9205_vm2 = vmmov %vm9204_vm0  ;;  %v5897_v12 = vpack.i.bf16 %v8060_v49, %v8131_v41  ;;  %v8159_v49 = vld [vmem:[%s6079_s28 + $0x7c] sm:$0xf] }
 0x178   : > { %2286 = vst [vmem:[#allocation2 + $0x94] sm:$0x1] %v2285_v28  ;;  %1418 = vrot.lane.b32.xlu1 %v1412_v0, %s6016_s19  ;;  %933 = vst [vmem:[#allocation2 + $0x24] sm:$0x8] %v932_v45  ;;  %v2538_v27 = vpop.permute.xlu0 %2537  ;;  %v3833_v62 = vsel %vm9205_vm2, %v5929_v8, 0  ;;  %v1327_v0 = vsel %vm6818_vm11, %v1318_v6, %v1326_v16  ;;  %v1553_v32 = vrot.slane %v1518_v60, 5  ;;  %v1469_v38 = vsel %vm6818_vm11, %v1460_v3, %v1468_v40 }
 0x179   : > { %2353 = vst [vmem:[#allocation2 + $0x9c] sm:$0x8] %v2352_v17  ;;  %2542 = vst.msk [vmem:[#allocation2 + $0xb0] sm:$0xf] %vm9202_vm12, %v2538_v27  ;;  %v5915_v48 = vld [vmem:[#allocation2 + $0x84] sm:$0xff]   ;;  %5888 = vrot.lane.b32.xlu0 %v5887_v57, %s6016_s19  ;;  %5689 = vmatpush3.bf16.msra.mxu1 %v3833_v62  ;;  %v2731_v27 = vshrl.u32 %v8159_v49, 16 }
 0x17a   : > { %v2096_v25 = vpop.permute.xlu1 %2095  ;;  %5670 = vmatprep.mubr.msk.bf16.mxu1 %vm9203_vm13, %v5915_v48  ;;  %1328 = vst [vmem:[#allocation2 + $0x54] sm:$0x1] %v1327_v0  ;;  %1470 = vst [vmem:[#allocation2 + $0x60] sm:$0x1] %v1469_v38  ;;  %v857_v47 = vld [vmem:[#allocation2 + $0x18] sm:$0x8]  ;;  %v1556_v4 = vor.u32 %v1555_v24, %v1553_v32  ;;  %v1554_v7 = vsel %vm6177_vm5, %v1552_v20, %v1553_v32 }
 0x17b   : > { %v2105_v37 = vsel %vm7545_vm6, %v2096_v25, %v2104_v56  ;;  %v2277_v60 = vld [vmem:[#allocation2 + $0x90] sm:$0x8]  ;;  %v2734_v25 = vshll.u32 %v8159_v49, 16  ;;  %v1238_v3 = vrot.slane %v7779_v51, 4  ;;  %v1380_v8 = vrot.slane %v7845_v46, 4 }
 0x17c   : > { %2106 = vst [vmem:[#allocation2 + $0x90] sm:$0x1] %v2105_v37  ;;  %2521 = vrot.lane.b32.xlu1 %v2516_v23, %s6014_s14  ;;  %v1118_v61 = vpop.permute.xlu0 %1117  ;;  %v1073_v56 = vld [vmem:[#allocation2 + $0x30] sm:$0x8]  ;;  %v2723_v23 = vshrl.u32 %v7980_v9, 16  ;;  %v1522_v16 = vrot.slane %v8022_v33, 4 }
 0x17d   : > { %1122 = vst.msk [vmem:[#allocation2 + $0x38] sm:$0xf] %vm9202_vm12, %v1118_v61  ;;  %1523 = vrot.lane.b32.xlu0 %v1512_v59, %s6014_s14  ;;  %v1557_v59 = vrot.slane %v1556_v4, 4  ;;  %v2785_v61 = vshrl.u32 %v8098_v22, 16  ;;  %v1003_v46 = vld [vmem:[#allocation2 + $0x2c] sm:$0xf] }
 0x17e   : > { %v2413_v52 = vpop.permute.xlu1 %2412  ;;  %v8190_v18 = vrot.slane %v2723_v23, 4  ;;  %v8197_v32 = vrot.slane %v2734_v25, 5  ;;  %v8203_v38 = vrot.slane %v2731_v27, 4  ;;  %v2793_v20 = vshrl.u32 %v8182_v63, 16 }
 0x17f   : > { %2422 = vst.msk [vmem:[#allocation2 + $0xa0] sm:$0xf] %vm9206_vm7, %v2413_v52  ;;  %v5917_v4 = vld [vmem:[#allocation2 + $0x94] sm:$0xff]   ;;  %vm9208_vm13 = vcmask 93248   ;;  %vm9209_vm0 = vcmask 195584   ;;  %vm9211_vm12 = vcmask 158848  }
 0x180   : > { %1541 = vrot.lane.b32.xlu1 %v7983_v50, %s6015_s15  ;;  %v5859_v29 = vpop.permute.xlu0 %5858  ;;  %v684_v50 = vld [vmem:[#allocation2 + $0x18] sm:$0x1] }
 0x181   : > { %v5861_v28 = vunpack.i.h.bf16 %v5859_v29  ;;  %v5860_v26 = vunpack.i.l.bf16 %v5859_v29  ;;  %5893 = vrot.lane.b32.xlu0 %v5892_v39, %s6013_s13  ;;  %v8193_v39 = vld [vmem:[%s6105_s9 + $0x8] sm:$0xf]  ;;  %v1219_v29 = vld [vmem:[#allocation2 + $0x44] sm:$0xf] }
 0x182   : > { %v993_v5 = vpop.permute.xlu1 %992 }
 0x183   : > { %1002 = vst.msk [vmem:[#allocation2 + $0x28] sm:$0xf] %vm9206_vm7, %v993_v5  ;;  %v858_v2 = vsel %vm7579_vm1, %v5861_v28, %v857_v47  ;;  %v2278_v57 = vsel %vm7579_vm1, %v5860_v26, %v2277_v60  ;;  %v8210_v5 = vrot.slane %v2785_v61, 7  ;;  %v8213_v28 = vld [vmem:[%s6105_s9 + $0xc] sm:$0xf]  ;;  %v2865_v26 = vshrl.u32 %v8193_v39, 16  ;;  %vm9212_vm7 = vmmov %vm9209_vm0 }
 0x184   : > { %5898 = vrot.lane.b32.xlu1 %v5897_v12, %s6016_s19  ;;  %859 = vst [vmem:[#allocation2 + $0x18] sm:$0x8] %v858_v2  ;;  %2279 = vst [vmem:[#allocation2 + $0x90] sm:$0x8] %v2278_v57  ;;  %v676_v17 = vpop.permute.xlu0 %675  ;;  %v8195_v12 = vrot.slane %v2731_v27, 7  ;;  %v2725_v60 = vrot.slane %v2723_v23, 7 }
 0x185   : > { %v685_v6 = vsel %vm7545_vm6, %v676_v17, %v684_v50  ;;  %2663 = vrot.lane.b32.xlu0 %v2658_v53, %s6014_s14  ;;  %v5931_v47 = vld [vmem:[%s8874_s4 + $0x20] ss:$0 sps:$4 sm:$0xff]   ;;  %v2873_v27 = vshrl.u32 %v8213_v28, 16 }
 0x186   : > { %v2426_v45 = vld [vmem:[#allocation2 + $0xa0] sm:$0x1]  ;;  %v5864_v34 = vpop.permute.xlu1 %5863  ;;  %686 = vst [vmem:[#allocation2 + $0x18] sm:$0x1] %v685_v6  ;;  %5797 = vmatprep.subr.msk.bf16.mxu0 %vm9205_vm2, %v5931_v47 }
 0x187   : > { %v2427_v19 = vsel %vm7245_vm14, 0, %v2426_v45  ;;  %v5866_v37 = vunpack.i.h.bf16 %v5864_v34  ;;  %v5865_v48 = vunpack.i.l.bf16 %v5864_v34  ;;  %v5919_v57 = vld [vmem:[#allocation2 + $0x1c] sm:$0xff]   ;;  %v2742_v45 = vld [vmem:[#allocation2 + $0xc4] sm:$0xf]  ;;  %v9210_v34 = vld [vmem:[#allocation6_spill] sm:$0xff] }
 0x188   : > { %2428 = vst [vmem:[#allocation2 + $0xa0] sm:$0x1] %v2427_v19  ;;  %1560 = vrot.lane.b32.xlu1 %v1554_v7, %s6016_s19  ;;  %v995_v0 = vpop.permute.xlu0 %994  ;;  %v2868_v7 = vshll.u32 %v8193_v39, 16  ;;  %v5902_v23 = vpack.i.bf16 %v9210_v34, %v8117_v1  ;;  %v2761_v19 = vor.u32 %v8190_v18, %v8012_v13  ;;  %v2766_v1 = vor.u32 %v8203_v38, %v8197_v32 }
 0x189   : > { %v2494_v52 = vsel %vm7269_vm9, %v5866_v37, %v2493_v44  ;;  %v1074_v62 = vsel %vm7269_vm9, %v5865_v48, %v1073_v56  ;;  %v1004_v33 = vsel %vm7170_vm10, %v995_v0, %v1003_v46  ;;  %1243 = vrot.lane.b32.xlu0 %v1238_v3, %s6014_s14  ;;  %v2736_v56 = vor.u32 %v2734_v25, %v8195_v12  ;;  %v2639_v48 = vld [vmem:[#allocation2 + $0xbc] sm:$0xf] }
 0x18a   : > { %v1006_v51 = vld [vmem:[#allocation2 + $0x28] sm:$0x1]  ;;  %2495 = vst [vmem:[#allocation2 + $0xa8] sm:$0x8] %v2494_v52  ;;  %1075 = vst [vmem:[#allocation2 + $0x30] sm:$0x8] %v1074_v62  ;;  %v2629_v40 = vpop.permute.xlu1 %2628  ;;  %v2728_v25 = vor.u32 %v2726_v42, %v2725_v60 }
 0x18b   : > { %v1007_v24 = vsel %vm7245_vm14, 0, %v1006_v51  ;;  %1005 = vst [vmem:[#allocation2 + $0x2c] sm:$0xf] %v1004_v33  ;;  %v5916_v50 = vld [vmem:[#allocation2 + $0x8c] sm:$0xff]   ;;  %v2729_v37 = vrot.slane %v2725_v60, 4  ;;  %v8243_v42 = vrot.slane %v2873_v27, 7 }
 0x18c   : > { %1008 = vst [vmem:[#allocation2 + $0x28] sm:$0x1] %v1007_v24  ;;  %1385 = vrot.lane.b32.xlu1 %v1380_v8, %s6014_s14  ;;  %v2610_v53 = vpop.permute.xlu0 %2609  ;;  %5671 = vmatmul.mubr.msk.bf16.gmra.mrb[8].mxu1 %vm9209_vm0, %v5916_v50  ;;  %v2876_v3 = vshll.u32 %v8213_v28, 16  ;;  %v2867_v13 = vrot.slane %v2865_v26, 7  ;;  %v1106_v62 = vld [vmem:[#allocation2 + $0x34] sm:$0xf] }
 0x18d   : > { %2615 = vst.msk [vmem:[#allocation2 + $0xb8] sm:$0xf] %vm9208_vm13, %v2610_v53  ;;  %v5918_v44 = vld [vmem:[#allocation2 + $0x14] sm:$0xff]   ;;  %1562 = vrot.lane.b32.xlu0 %v1557_v59, %s6016_s19  ;;  %5674 = vmatprep.mubr.msk.bf16.mxu1 %vm9212_vm7, %v5917_v4  ;;  %vm9213_vm13 = vmmov %vm9205_vm2  ;;  %v2743_v59 = vsel %vm6430_vm8, %v2728_v25, %v2742_v45  ;;  %vm9216_vm7 = vnez %v9074_v15  ;;  %v2796_v24 = vshll.u32 %v8182_v63, 16  ;;  %v2762_v38 = vrot.slane %v2761_v19, 4  ;;  %v5969_v15 = vld [vmem:[#allocation2 + $0x8c] sm:$0xff]  }
 0x18e   : > { %v1211_v2 = vpop.permute.xlu1 %1210  ;;  %2638 = vst.msk [vmem:[#allocation2 + $0xb8] sm:$0xf] %vm9211_vm12, %v2629_v40  ;;  %v4458_v6 = vsel %vm9213_vm13, %v5931_v47, 0  ;;  %5642 = vmatprep.mubr.msk.bf16.mxu0 %vm9209_vm0, %v5918_v44  ;;  %vm9214_vm2 = vmmov %vm9209_vm0  ;;  %vm9215_vm12 = vcmask 27648   ;;  %v8263_v40 = vrot.slane %v2793_v20, 7  ;;  %v2870_v33 = vor.u32 %v2868_v7, %v2867_v13 }
 0x18f   : > { %v1220_v17 = vsel %vm6904_vm15, %v1211_v2, %v1219_v29  ;;  %5643 = vmatmul.mubr.msk.bf16.gmra.mrb[4].mxu0 %vm9214_vm2, %v5919_v57  ;;  %2744 = vst [vmem:[#allocation2 + $0xc4] sm:$0xf] %v2743_v59  ;;  %v2767_v29 = vrot.slane %v2766_v1, 4  ;;  %v2878_v50 = vor.u32 %v2876_v3, %v8243_v42  ;;  %v2526_v47 = vld [vmem:[#allocation2 + $0xac] sm:$0xf]  ;;  %v2764_v34 = vsel %vm6177_vm5, %v2762_v38, %v8197_v32  ;;  %vm9217_vm13 = vmmov %vm9215_vm12 }
 0x190   : > { %1221 = vst [vmem:[#allocation2 + $0x44] sm:$0xf] %v1220_v17  ;;  %1527 = vrot.lane.b32.xlu1 %v1522_v16, %s6014_s14  ;;  %v2631_v8 = vpop.permute.xlu0 %2630  ;;  %v2737_v16 = vsel %vm6166_vm4, %v2729_v37, %v2736_v56  ;;  %5741 = vmatpush3.bf16.msra.mxu0 %v4458_v6  ;;  %v1361_v53 = vld [vmem:[#allocation2 + $0x50] sm:$0xf]  ;;  %v2871_v56 = vrot.slane %v2867_v13, 4  ;;  %v2798_v17 = vor.u32 %v2796_v24, %v8263_v40  ;;  %vm9218_vm0 = vcmask 93248  }
 0x191   : > { %v2640_v51 = vsel %vm6904_vm15, %v2631_v8, %v2639_v48  ;;  %2745 = vst.msk [vmem:[#allocation2 + $0xc8] sm:$0xf] %vm9215_vm12, %v2737_v16  ;;  %5903 = vrot.lane.b32.xlu0 %v5902_v23, %s6016_s19  ;;  %v2884_v45 = vld [vmem:[#allocation2 + $0xd0] sm:$0xf]  ;;  %v2423_v19 = vld [vmem:[#allocation2 + $0xa4] sm:$0xf]  ;;  %v2790_v48 = vor.u32 %v2788_v54, %v8210_v5 }
 0x192   : > { %v1098_v52 = vpop.permute.xlu1 %1097  ;;  %v1009_v18 = vld [vmem:[#allocation2 + $0x2c] sm:$0x8]  ;;  %2641 = vst [vmem:[#allocation2 + $0xbc] sm:$0xf] %v2640_v51  ;;  %v2885_v44 = vsel %vm6430_vm8, %v2870_v33, %v2884_v45  ;;  %v2879_v23 = vsel %vm6166_vm4, %v2871_v56, %v2878_v50  ;;  %v2907_v1 = vrot.slane %v2873_v27, 4  ;;  %v8302_v6 = vrot.slane %v2868_v7, 5  ;;  %vm9219_vm8 = vmmov %vm9218_vm0 }
 0x193   : > { %v1107_v46 = vsel %vm7061_vm3, %v1098_v52, %v1106_v62  ;;  %v1010_v0 = vsel %vm9216_vm7, 0, %v1009_v18  ;;  %2886 = vst [vmem:[#allocation2 + $0xd0] sm:$0xf] %v2885_v44  ;;  %2887 = vst.msk [vmem:[#allocation2 + $0xd4] sm:$0xf] %vm9217_vm13, %v2879_v23  ;;  %v2902_v37 = vrot.slane %v2865_v26, 4 }
 0x194   : > { %1108 = vst [vmem:[#allocation2 + $0x34] sm:$0xf] %v1107_v46  ;;  %1011 = vst [vmem:[#allocation2 + $0x2c] sm:$0x8] %v1010_v0  ;;  %2751 = vrot.lane.b32.xlu1 %v7980_v9, %s6012_s30  ;;  %v2518_v60 = vpop.permute.xlu0 %2517  ;;  %v2791_v9 = vrot.slane %v8210_v5, 4  ;;  %v2905_v7 = vrot.slane %v2876_v3, 5 }
 0x195   : > { %v2527_v2 = vsel %vm7061_vm3, %v2518_v60, %v2526_v47  ;;  %2753 = vrot.lane.b32.xlu0 %v8159_v49, %s6012_s30  ;;  %v1248_v8 = vld [vmem:[#allocation2 + $0x40] sm:$0xf]  ;;  %v8310_v52 = vld [vmem:[%s6268_s18 + $0x8] sm:$0xf]  ;;  %v8318_v62 = vld [vmem:[%s6268_s18 + $0xc] sm:$0xf]  ;;  %v2903_v54 = vor.u32 %v2902_v37, %v8302_v6 }
 0x196   : > { %v1353_v4 = vpop.permute.xlu1 %1352  ;;  %2528 = vst [vmem:[#allocation2 + $0xac] sm:$0xf] %v2527_v2  ;;  %v2799_v32 = vsel %vm6166_vm4, %v2791_v9, %v2798_v17  ;;  %v2828_v5 = vrot.slane %v2785_v61, 4  ;;  %v2908_v26 = vor.u32 %v2907_v1, %v2905_v7  ;;  %v2833_v16 = vrot.slane %v2793_v20, 4  ;;  %v2565_v60 = vld [vmem:[#allocation2 + $0xb0] sm:$0xf] }
 0x197   : > { %v1362_v57 = vsel %vm6904_vm15, %v1353_v4, %v1361_v53  ;;  %v2927_v3 = vshrl.u32 %v8310_v52, 16  ;;  %vm9220_vm2 = vcmask 60448   ;;  %vm9221_vm12 = vcmask 158848   ;;  %v1145_v37 = vld [vmem:[#allocation2 + $0x38] sm:$0xf] }
 0x198   : > { %1363 = vst [vmem:[#allocation2 + $0x50] sm:$0xf] %v1362_v57  ;;  %2772 = vrot.lane.b32.xlu1 %v2767_v29, %s6013_s13  ;;  %v1332_v25 = vpop.permute.xlu0 %1331  ;;  %v2831_v0 = vrot.slane %v2796_v24, 5  ;;  %v2904_v61 = vrot.slane %v2903_v54, 4  ;;  %v2829_v20 = vor.u32 %v2828_v5, %v8131_v41  ;;  %v2909_v38 = vrot.slane %v2908_v26, 4  ;;  %vm9222_vm13 = vmmov %vm9220_vm2 }
 0x199   : > { %1337 = vst.msk [vmem:[#allocation2 + $0x4c] sm:$0xf] %vm9218_vm0, %v1332_v25  ;;  %2770 = vrot.lane.b32.xlu0 %v2764_v34, %s6013_s13  ;;  %v2938_v53 = vshll.u32 %v8318_v62, 16  ;;  %v2929_v4 = vrot.slane %v2927_v3, 7  ;;  %vm9223_vm0 = vcmask 126048   ;;  %v2970_v25 = vrot.slane %v2927_v3, 4 }
 0x19a   : > { %v2415_v49 = vpop.permute.xlu1 %2414  ;;  %v2834_v29 = vor.u32 %v2833_v16, %v2831_v0  ;;  %v2830_v41 = vrot.slane %v2829_v20, 4  ;;  %v2800_v16 = vrot.slane %v8263_v40, 4 }
 0x19b   : > { %v2424_v14 = vsel %vm7170_vm10, %v2415_v49, %v2423_v19  ;;  %v2933_v9 = vrot.slane %v2929_v4, 4  ;;  %v2973_v54 = vrot.slane %v2938_v53, 5 }
 0x19c   : > { %2425 = vst [vmem:[#allocation2 + $0xa4] sm:$0xf] %v2424_v14  ;;  %2895 = vrot.lane.b32.xlu1 %v8213_v28, %s6012_s30  ;;  %v1476_v13 = vpop.permute.xlu0 %1475  ;;  %v2935_v28 = vshrl.u32 %v8318_v62, 16  ;;  %v2835_v2 = vrot.slane %v2834_v29, 4  ;;  %v2832_v17 = vsel %vm6177_vm5, %v2830_v41, %v2831_v0  ;;  %v2246_v14 = vld [vmem:[#allocation2 + $0x9c] sm:$0x1] }
 0x19d   : > { %1480 = vst.msk [vmem:[#allocation2 + $0x5c] sm:$0xf] %vm9219_vm8, %v1476_v13  ;;  %2803 = vrot.lane.b32.xlu0 %v2799_v32, %s6014_s14  ;;  %vm9224_vm8 = vmmov %vm9223_vm0  ;;  %v1215_v41 = vld [vmem:[#allocation2 + $0x3c] sm:$0x8] }
 0x19e   : > { %v1240_v59 = vpop.permute.xlu1 %1239  ;;  %v8340_v24 = vrot.slane %v2935_v28, 7  ;;  %v2975_v26 = vrot.slane %v2935_v28, 4  ;;  %v2738_v28 = vrot.slane %v8195_v12, 4 }
 0x19f   : > { %v1249_v27 = vsel %vm7061_vm3, %v1240_v59, %v1248_v8 }
 0x1a0   : > { %1250 = vst [vmem:[#allocation2 + $0x40] sm:$0xf] %v1249_v27  ;;  %2801 = vrot.lane.b32.xlu1 %v2790_v48, %s6014_s14  ;;  %v2662_v18 = vpop.permute.xlu0 %2661  ;;  %v2940_v45 = vor.u32 %v2938_v53, %v8340_v24  ;;  %v2746_v53 = vld [vmem:[#allocation2 + $0xcc] sm:$0x1] }
 0x1a1   : > { %2671 = vst.msk [vmem:[#allocation2 + $0xbc] sm:$0xf] %vm9220_vm2, %v2662_v18  ;;  %2821 = vrot.lane.b32.xlu0 %v8182_v63, %s6015_s15  ;;  %vm9225_vm2 = vmmov %vm9223_vm0 }
 0x1a2   : > { %v1351_v51 = vpop.permute.xlu1 %1350  ;;  %v2941_v23 = vsel %vm6166_vm4, %v2933_v9, %v2940_v45  ;;  %vm9227_vm4 = vmmov %vm9222_vm13 }
 0x1a3   : > { %v2429_v46 = vld [vmem:[#allocation2 + $0xa4] sm:$0x8]  ;;  %1360 = vst.msk [vmem:[#allocation2 + $0x4c] sm:$0xf] %vm9221_vm12, %v1351_v51  ;;  %vm9226_vm12 = vmmov %vm9223_vm0 }
 0x1a4   : > { %v2430_v33 = vsel %vm9216_vm7, 0, %v2429_v46  ;;  %2819 = vrot.lane.b32.xlu1 %v8098_v22, %s6015_s15  ;;  %v1242_v50 = vpop.permute.xlu0 %1241  ;;  %v2906_v22 = vsel %vm6177_vm5, %v2904_v61, %v2905_v7  ;;  %v2419_v61 = vld [vmem:[#allocation2 + $0x9c] sm:$0x8] }
 0x1a5   : > { %2431 = vst [vmem:[#allocation2 + $0xa4] sm:$0x8] %v2430_v33  ;;  %1251 = vst.msk [vmem:[#allocation2 + $0x44] sm:$0xf] %vm9222_vm13, %v1242_v50  ;;  %2893 = vrot.lane.b32.xlu0 %v8193_v39, %s6012_s30  ;;  %v2930_v39 = vshll.u32 %v8310_v52, 16  ;;  %vm9228_vm13 = vcmask 191648  }
 0x1a6   : > { %v2557_v47 = vpop.permute.xlu1 %2556  ;;  %v826_v33 = vld [vmem:[#allocation2 + $0x24] sm:$0x1] }
 0x1a7   : > { %v2566_v63 = vsel %vm7170_vm10, %v2557_v47, %v2565_v60  ;;  %v2969_v32 = vrot.slane %v2930_v39, 5  ;;  %v2932_v1 = vor.u32 %v2930_v39, %v2929_v4  ;;  %v968_v4 = vld [vmem:[#allocation2 + $0x30] sm:$0x1] }
 0x1a8   : > { %2567 = vst [vmem:[#allocation2 + $0xb0] sm:$0xf] %v2566_v63  ;;  %2914 = vrot.lane.b32.xlu1 %v2909_v38, %s6013_s13  ;;  %v2536_v57 = vpop.permute.xlu0 %2535  ;;  %v2942_v38 = vrot.slane %v8340_v24, 4  ;;  %v2747_v63 = vsel %vm6818_vm11, %v2738_v28, %v2746_v53  ;;  %v2880_v28 = vrot.slane %v8243_v42, 4  ;;  %v2777_v42 = vld [vmem:[#allocation2 + $0xc0] sm:$0x8] }
 0x1a9   : > { %2541 = vst.msk [vmem:[#allocation2 + $0xac] sm:$0xf] %vm9223_vm0, %v2536_v57  ;;  %2912 = vrot.lane.b32.xlu0 %v2906_v22, %s6013_s13  ;;  %v2971_v13 = vor.u32 %v2970_v25, %v2969_v32  ;;  %vm9229_vm0 = vmmov %vm9228_vm13  ;;  %v9231_v25 = vld [vmem:[#allocation20_spill] sm:$0xff] }
 0x1aa   : > { %v1116_v56 = vpop.permute.xlu1 %1115  ;;  %2748 = vst [vmem:[#allocation2 + $0xcc] sm:$0x1] %v2747_v63 }
 0x1ab   : > { %1121 = vst.msk [vmem:[#allocation2 + $0x34] sm:$0xf] %vm9224_vm8, %v1116_v56  ;;  %v2972_v5 = vrot.slane %v2971_v13, 4  ;;  %vm9232_vm8 = vmmov %vm9225_vm2  ;;  %v1141_v13 = vld [vmem:[#allocation2 + $0x30] sm:$0x8] }
 0x1ac   : > { %2840 = vrot.lane.b32.xlu1 %v2835_v2, %s6016_s19  ;;  %v2680_v44 = vpop.permute.xlu0 %2679  ;;  %v2635_v2 = vld [vmem:[#allocation2 + $0xb4] sm:$0x8] }
 0x1ad   : > { %2684 = vst.msk [vmem:[#allocation2 + $0xbc] sm:$0xf] %vm9225_vm2, %v2680_v44  ;;  %2838 = vrot.lane.b32.xlu0 %v2832_v17, %s6016_s19  ;;  %v2974_v51 = vsel %vm6177_vm5, %v2972_v5, %v2973_v54  ;;  %vm9230_vm5 = vmmov %vm9225_vm2  ;;  %vm9233_vm2 = vcmask 195584  }
 0x1ae   : > { %v1260_v34 = vpop.permute.xlu1 %1259 }
 0x1af   : > { %v2571_v49 = vld [vmem:[#allocation2 + $0xb0] sm:$0x8]  ;;  %1264 = vst.msk [vmem:[#allocation2 + $0x44] sm:$0xf] %vm9226_vm12, %v1260_v34  ;;  %vm9234_vm12 = vmmov %vm9229_vm0 }
 0x1b0   : > { %v2572_v19 = vsel %vm9216_vm7, 0, %v2571_v49  ;;  %2945 = vrot.lane.b32.xlu1 %v2941_v23, %s6014_s14  ;;  %v1137_v30 = vpop.permute.xlu0 %1136 }
 0x1b1   : > { %2573 = vst [vmem:[#allocation2 + $0xb0] sm:$0x8] %v2572_v19  ;;  %v1146_v59 = vsel %vm7170_vm10, %v1137_v30, %v1145_v37  ;;  %2910 = vrot.lane.b32.xlu0 %v8302_v6, %s6013_s13 }
 0x1b2   : > { %v2238_v48 = vpop.permute.xlu1 %2237  ;;  %1147 = vst [vmem:[#allocation2 + $0x38] sm:$0xf] %v1146_v59  ;;  %v2561_v59 = vld [vmem:[#allocation2 + $0xa8] sm:$0x8] }
 0x1b3   : > { %v2247_v8 = vsel %vm7545_vm6, %v2238_v48, %v2246_v14 }
 0x1b4   : > { %2248 = vst [vmem:[#allocation2 + $0x9c] sm:$0x1] %v2247_v8  ;;  %2943 = vrot.lane.b32.xlu1 %v2932_v1, %s6014_s14  ;;  %v1384_v27 = vpop.permute.xlu0 %1383  ;;  %v2707_v21 = vld [vmem:[#allocation2 + $0xbc] sm:$0xf] }
 0x1b5   : > { %1393 = vst.msk [vmem:[#allocation2 + $0x50] sm:$0xf] %vm9227_vm4, %v1384_v27  ;;  %2963 = vrot.lane.b32.xlu0 %v8318_v62, %s6015_s15  ;;  %v999_v62 = vld [vmem:[#allocation2 + $0x24] sm:$0x8]  ;;  %vm9236_vm4 = vmmov %vm9233_vm2 }
 0x1b6   : > { %v2555_v7 = vpop.permute.xlu1 %2554 }
 0x1b7   : > { %2564 = vst.msk [vmem:[#allocation2 + $0xac] sm:$0xf] %vm9228_vm13, %v2555_v7  ;;  %vm9237_vm13 = vcmask 93248  }
 0x1b8   : > { %2961 = vrot.lane.b32.xlu1 %v8310_v52, %s6015_s15  ;;  %v5869_v6 = vpop.permute.xlu0 %5868  ;;  %v2976_v52 = vor.u32 %v2975_v26, %v2973_v54  ;;  %v2668_v54 = vld [vmem:[#allocation2 + $0xb8] sm:$0xf]  ;;  %s8694_s15 = scalar_lea.vmem %s8876_s6, %s6073_s25 }
 0x1b9   : > { %v1151_v3 = vld [vmem:[#allocation2 + $0x38] sm:$0x8]  ;;  %v5871_v46 = vunpack.i.h.bf16 %v5869_v6  ;;  %v5870_v0 = vunpack.i.l.bf16 %v5869_v6  ;;  %2805 = vrot.lane.b32.xlu0 %v2800_v16, %s6014_s14  ;;  %v1503_v16 = vld [vmem:[#allocation2 + $0x5c] sm:$0xf] }
 0x1ba   : > { %v1135_v18 = vpop.permute.xlu1 %1134  ;;  %v1152_v40 = vsel %vm9216_vm7, 0, %v1151_v3  ;;  %v2977_v24 = vrot.slane %v2976_v52, 4 }
 0x1bb   : > { %1144 = vst.msk [vmem:[#allocation2 + $0x34] sm:$0xf] %vm9229_vm0, %v1135_v18  ;;  %1153 = vst [vmem:[#allocation2 + $0x38] sm:$0x8] %v1152_v40  ;;  %v1000_v35 = vsel %vm7579_vm1, %v5871_v46, %v999_v62  ;;  %v2420_v20 = vsel %vm7579_vm1, %v5870_v0, %v2419_v61  ;;  %v1390_v0 = vld [vmem:[#allocation2 + $0x4c] sm:$0xf] }
 0x1bc   : > { %2980 = vrot.lane.b32.xlu1 %v2974_v51, %s6016_s19  ;;  %1001 = vst [vmem:[#allocation2 + $0x24] sm:$0x8] %v1000_v35  ;;  %2421 = vst [vmem:[#allocation2 + $0x9c] sm:$0x8] %v2420_v20  ;;  %v818_v29 = vpop.permute.xlu0 %817  ;;  %vm9238_vm0 = vcmask 158848  }
 0x1bd   : > { %v827_v60 = vsel %vm7545_vm6, %v818_v29, %v826_v33  ;;  %2978 = vrot.lane.b32.xlu0 %v2969_v32, %s6016_s19  ;;  %v9235_v32 = vld [vmem:[#allocation5_spill] sm:$0xff]  ;;  %v2888_v20 = vld [vmem:[#allocation2 + $0xd8] sm:$0x1] }
 0x1be   : > { %v2568_v12 = vld [vmem:[#allocation2 + $0xac] sm:$0x1]  ;;  %v1258_v50 = vpop.permute.xlu1 %1257  ;;  %828 = vst [vmem:[#allocation2 + $0x24] sm:$0x1] %v827_v60  ;;  %v2388_v35 = vld [vmem:[#allocation2 + $0xa8] sm:$0x1] }
 0x1bf   : > { %v2569_v47 = vsel %vm7245_vm14, 0, %v2568_v12  ;;  %1263 = vst.msk [vmem:[#allocation2 + $0x40] sm:$0xf] %vm9230_vm5, %v1258_v50  ;;  %v1357_v29 = vld [vmem:[#allocation2 + $0x48] sm:$0x8] }
 0x1c0   : > { %2570 = vst [vmem:[#allocation2 + $0xac] sm:$0x1] %v2569_v47  ;;  %2947 = vrot.lane.b32.xlu1 %v2942_v38, %s6014_s14  ;;  %v5874_v57 = vpop.permute.xlu0 %5873  ;;  %v2889_v38 = vsel %vm6818_vm11, %v2880_v28, %v2888_v20  ;;  %vm9240_vm11 = vcmask 60448  }
 0x1c1   : > { %v5876_v9 = vunpack.i.h.bf16 %v5874_v57  ;;  %v5875_v39 = vunpack.i.l.bf16 %v5874_v57  ;;  %2982 = vrot.lane.b32.xlu0 %v2977_v24, %s6016_s19  ;;  %2890 = vst [vmem:[#allocation2 + $0xd8] sm:$0x1] %v2889_v38  ;;  %v1499_v38 = vld [vmem:[#allocation2 + $0x54] sm:$0x8] }
 0x1c2   : > { %v1148_v22 = vld [vmem:[#allocation2 + $0x34] sm:$0x1]  ;;  %v960_v56 = vpop.permute.xlu1 %959 }
 0x1c3   : > { %v1149_v45 = vsel %vm7245_vm14, 0, %v1148_v22  ;;  %v969_v17 = vsel %vm7545_vm6, %v960_v56, %v968_v4  ;;  %v2636_v44 = vsel %vm7269_vm9, %v5876_v9, %v2635_v2  ;;  %v1216_v34 = vsel %vm7269_vm9, %v5875_v39, %v1215_v41  ;;  %v5920_v23 = vld [vmem:[#allocation2 + $0x9c] sm:$0xff]   ;;  %v1287_v56 = vld [vmem:[#allocation2 + $0x44] sm:$0xf] }
 0x1c4   : > { %1150 = vst [vmem:[#allocation2 + $0x34] sm:$0x1] %v1149_v45  ;;  %970 = vst [vmem:[#allocation2 + $0x30] sm:$0x1] %v969_v17  ;;  %557 = vrot.lane.b32.xlu1 %v9231_v25, %s6016_s19  ;;  %v1402_v49 = vpop.permute.xlu0 %1401  ;;  %5675 = vmatmul.mubr.msk.bf16.gmra.mrb[12].mxu1 %vm9233_vm2, %v5920_v23 }
 0x1c5   : > { %2637 = vst [vmem:[#allocation2 + $0xb4] sm:$0x8] %v2636_v44  ;;  %1217 = vst [vmem:[#allocation2 + $0x3c] sm:$0x8] %v1216_v34  ;;  %v5921_v14 = vld [vmem:[#allocation2 + $0x24] sm:$0xff]   ;;  %477 = vrot.lane.b32.xlu0 %v9235_v32, %s6013_s13 }
 0x1c6   : > { %v1277_v19 = vpop.permute.xlu1 %1276  ;;  %1406 = vst.msk [vmem:[#allocation2 + $0x50] sm:$0xf] %vm9232_vm8, %v1402_v49  ;;  %5646 = vmatprep.mubr.msk.bf16.mxu0 %vm9236_vm4, %v5921_v14  ;;  %vm9239_vm8 = vmmov %vm9233_vm2  ;;  %vm3482_vm4 = vcmask 64512   ;;  %v1110_v32 = vld [vmem:[#allocation2 + $0x3c] sm:$0x1] }
 0x1c7   : > { %1286 = vst.msk [vmem:[#allocation2 + $0x40] sm:$0xf] %vm9234_vm12, %v1277_v19  ;;  %v5926_v19 = vld [vmem:[#allocation2 + $0xac] sm:$0xff]  }
 0x1c8   : > { %v5879_v1 = vpop.permute.xlu0 %5878 }
 0x1c9   : > { %v5881_v30 = vunpack.i.h.bf16 %v5879_v1  ;;  %v5880_v48 = vunpack.i.l.bf16 %v5879_v1 }
 0x1ca   : > { %v1474_v37 = vpop.permute.xlu1 %1473 }
 0x1cb   : > { %1479 = vst.msk [vmem:[#allocation2 + $0x58] sm:$0xf] %vm9237_vm13, %v1474_v37  ;;  %v2562_v8 = vsel %vm7579_vm1, %v5881_v30, %v2561_v59  ;;  %v1142_v27 = vsel %vm7579_vm1, %v5880_v48, %v1141_v13  ;;  %v5923_v61 = vld [vmem:[#allocation2 + $0x34] sm:$0xff]   ;;  %vm9241_vm13 = vmmov %vm9233_vm2 }
 0x1cc   : > { %2563 = vst [vmem:[#allocation2 + $0xa8] sm:$0x8] %v2562_v8  ;;  %1143 = vst [vmem:[#allocation2 + $0x30] sm:$0x8] %v1142_v27  ;;  %v2660_v5 = vpop.permute.xlu0 %2659 }
 0x1cd   : > { %v2669_v18 = vsel %vm7061_vm3, %v2660_v5, %v2668_v54  ;;  %v1429_v39 = vld [vmem:[#allocation2 + $0x50] sm:$0xf] }
 0x1ce   : > { %v1290_v7 = vld [vmem:[#allocation2 + $0x40] sm:$0x1]  ;;  %v1495_v26 = vpop.permute.xlu1 %1494  ;;  %2670 = vst [vmem:[#allocation2 + $0xb8] sm:$0xf] %v2669_v18 }
 0x1cf   : > { %v1291_v6 = vsel %vm7245_vm14, 0, %v1290_v7  ;;  %v1504_v51 = vsel %vm6904_vm15, %v1495_v26, %v1503_v16  ;;  %v2530_v26 = vld [vmem:[#allocation2 + $0xb4] sm:$0x1] }
 0x1d0   : > { %1292 = vst [vmem:[#allocation2 + $0x40] sm:$0x1] %v1291_v6  ;;  %1505 = vst [vmem:[#allocation2 + $0x5c] sm:$0xf] %v1504_v51  ;;  %v1493_v3 = vpop.permute.xlu0 %1492  ;;  %v1283_v51 = vld [vmem:[#allocation2 + $0x3c] sm:$0x8] }
 0x1d1   : > { %1502 = vst.msk [vmem:[#allocation2 + $0x58] sm:$0xf] %vm9238_vm0, %v1493_v3  ;;  %vm9242_vm0 = vmmov %vm9233_vm2 }
 0x1d2   : > { %v1382_v46 = vpop.permute.xlu1 %1381 }
 0x1d3   : > { %v1391_v33 = vsel %vm7061_vm3, %v1382_v46, %v1390_v0  ;;  %v5922_v40 = vld [vmem:[#allocation2 + $0x2c] sm:$0xff]   ;;  %v2703_v46 = vld [vmem:[#allocation2 + $0xb4] sm:$0x8] }
 0x1d4   : > { %1392 = vst [vmem:[#allocation2 + $0x4c] sm:$0xf] %v1391_v33  ;;  %v2678_v62 = vpop.permute.xlu0 %2677  ;;  %5647 = vmatmul.mubr.msk.bf16.gmra.mrb[8].mxu0 %vm9239_vm8, %v5922_v40  ;;  %vm9243_vm8 = vmmov %vm9230_vm5 }
 0x1d5   : > { %2683 = vst.msk [vmem:[#allocation2 + $0xb8] sm:$0xf] %vm9230_vm5, %v2678_v62  ;;  %5650 = vmatprep.mubr.msk.bf16.mxu0 %vm9233_vm2, %v5923_v61  ;;  %vm9244_vm2 = vmmov %vm9234_vm12 }
 0x1d6   : > { %v2697_v52 = vpop.permute.xlu1 %2696 }
 0x1d7   : > { %2706 = vst.msk [vmem:[#allocation2 + $0xb8] sm:$0xf] %vm9234_vm12, %v2697_v52  ;;  %vm9245_vm12 = vmmov %vm9230_vm5 }
 0x1d8   : > { %v2380_v12 = vpop.permute.xlu0 %2379  ;;  %v1532_v40 = vld [vmem:[#allocation2 + $0x58] sm:$0xf] }
 0x1d9   : > { %v2389_v47 = vsel %vm7545_vm6, %v2380_v12, %v2388_v35  ;;  %v1641_v12 = vld [vmem:[#allocation2 + $0x60] sm:$0x8] }
 0x1da   : > { %v5884_v50 = vpop.permute.xlu1 %5883  ;;  %2390 = vst [vmem:[#allocation2 + $0xa8] sm:$0x1] %v2389_v47 }
 0x1db   : > { %v5886_v60 = vunpack.i.h.bf16 %v5884_v50  ;;  %v5885_v53 = vunpack.i.l.bf16 %v5884_v50 }
 0x1dc   : > { %v2699_v63 = vpop.permute.xlu0 %2698 }
 0x1dd   : > { %v1358_v4 = vsel %vm7269_vm9, %v5886_v60, %v1357_v29  ;;  %v2778_v24 = vsel %vm7269_vm9, %v5885_v53, %v2777_v42  ;;  %v2708_v2 = vsel %vm7170_vm10, %v2699_v63, %v2707_v21  ;;  %v2672_v21 = vld [vmem:[#allocation2 + $0xc0] sm:$0x1] }
 0x1de   : > { %1359 = vst [vmem:[#allocation2 + $0x48] sm:$0x8] %v1358_v4  ;;  %2779 = vst [vmem:[#allocation2 + $0xc0] sm:$0x8] %v2778_v24  ;;  %v1526_v22 = vpop.permute.xlu1 %1525  ;;  %v2710_v41 = vld [vmem:[#allocation2 + $0xb8] sm:$0x1] }
 0x1df   : > { %1535 = vst.msk [vmem:[#allocation2 + $0x5c] sm:$0xf] %vm9240_vm11, %v1526_v22  ;;  %v2711_v57 = vsel %vm7245_vm14, 0, %v2710_v41  ;;  %2709 = vst [vmem:[#allocation2 + $0xbc] sm:$0xf] %v2708_v2  ;;  %v5664_v9 = vpop.f32.mrb[0].mxu1 }
 0x1e0   : > { %2712 = vst [vmem:[#allocation2 + $0xb8] sm:$0x1] %v2711_v57  ;;  %v1279_v45 = vpop.permute.xlu0 %1278  ;;  %3509 = vst.msk [vmem:[#allocation3 + $0xd0] sm:$0xff] %vm3482_vm4, %v5664_v9  ;;  %v3387_v44 = vpop.f32.mrb[1].mxu1 }
 0x1e1   : > { %v1288_v17 = vsel %vm7170_vm10, %v1279_v45, %v1287_v56  ;;  %v5925_v23 = vld [vmem:[#allocation2 + $0xa4] sm:$0xff]   ;;  %3507 = vst.msk [vmem:[#allocation3 + $0xc0] sm:$0xff] %vm3482_vm4, %v3387_v44  ;;  %v5665_v25 = vpop.f32.mrb[2].mxu1  ;;  %vm9246_vm11 = vmmov %vm9242_vm0  ;;  %v1394_v44 = vld [vmem:[#allocation2 + $0x54] sm:$0x1] }
 0x1e2   : > { %v1421_v34 = vpop.permute.xlu1 %1420  ;;  %1289 = vst [vmem:[#allocation2 + $0x44] sm:$0xf] %v1288_v17  ;;  %3510 = vst.msk [vmem:[#allocation3 + $0xd8] sm:$0xff] %vm3482_vm4, %v5665_v25  ;;  %v3390_v14 = vpop.f32.mrb[3].mxu1  ;;  %5678 = vmatprep.mubr.msk.bf16.mxu1 %vm9241_vm13, %v5925_v23  ;;  %v1252_v17 = vld [vmem:[#allocation2 + $0x48] sm:$0x1] }
 0x1e3   : > { %v1430_v49 = vsel %vm7170_vm10, %v1421_v34, %v1429_v39  ;;  %3508 = vst.msk [vmem:[#allocation3 + $0xc8] sm:$0xff] %vm3482_vm4, %v3390_v14  ;;  %5679 = vmatmul.mubr.msk.bf16.gmra.mrb[16].mxu1 %vm9242_vm0, %v5926_v19  ;;  %vm9247_vm13 = vmmov %vm9244_vm2  ;;  %v1536_v19 = vld [vmem:[#allocation2 + $0x60] sm:$0x1] }
 0x1e4   : > { %1431 = vst [vmem:[#allocation2 + $0x50] sm:$0xf] %v1430_v49  ;;  %v1400_v1 = vpop.permute.xlu0 %1399 }
 0x1e5   : > { %1405 = vst.msk [vmem:[#allocation2 + $0x4c] sm:$0xf] %vm9230_vm5, %v1400_v1  ;;  %v1425_v4 = vld [vmem:[#allocation2 + $0x48] sm:$0x8]  ;;  %v2845_v24 = vld [vmem:[#allocation2 + $0xc0] sm:$0x8]  ;;  %vm9248_vm5 = vmmov %vm9242_vm0 }
 0x1e6   : > { %v2713_v37 = vld [vmem:[#allocation2 + $0xbc] sm:$0x8]  ;;  %v1102_v30 = vpop.permute.xlu1 %1101 }
 0x1e7   : > { %v2714_v48 = vsel %vm9216_vm7, 0, %v2713_v37  ;;  %v1111_v13 = vsel %vm7545_vm6, %v1102_v30, %v1110_v32 }
 0x1e8   : > { %2715 = vst [vmem:[#allocation2 + $0xbc] sm:$0x8] %v2714_v48  ;;  %1112 = vst [vmem:[#allocation2 + $0x3c] sm:$0x1] %v1111_v13  ;;  %v1544_v59 = vpop.permute.xlu0 %1543 }
 0x1e9   : > { %v1293_v8 = vld [vmem:[#allocation2 + $0x44] sm:$0x8]  ;;  %1548 = vst.msk [vmem:[#allocation2 + $0x5c] sm:$0xf] %vm9243_vm8, %v1544_v59  ;;  %vm9249_vm8 = vmmov %vm9242_vm0 }
 0x1ea   : > { %v1419_v27 = vpop.permute.xlu1 %1418  ;;  %v1294_v7 = vsel %vm9216_vm7, 0, %v1293_v8  ;;  %v5933_v8 = vld [vmem:[#allocation2 + $0x10] sm:$0xff]  }
 0x1eb   : > { %v1435_v54 = vld [vmem:[#allocation2 + $0x50] sm:$0x8]  ;;  %1428 = vst.msk [vmem:[#allocation2 + $0x4c] sm:$0xf] %vm9244_vm2, %v1419_v27  ;;  %1295 = vst [vmem:[#allocation2 + $0x44] sm:$0x8] %v1294_v7 }
 0x1ec   : > { %v1436_v5 = vsel %vm9216_vm7, 0, %v1435_v54  ;;  %v5889_v16 = vpop.permute.xlu0 %5888  ;;  %vm9250_vm2 = vcmask 93248  }
 0x1ed   : > { %1437 = vst [vmem:[#allocation2 + $0x50] sm:$0x8] %v1436_v5  ;;  %v5891_v6 = vunpack.i.h.bf16 %v5889_v16  ;;  %v5890_v18 = vunpack.i.l.bf16 %v5889_v16 }
 0x1ee   : > { %v2522_v3 = vpop.permute.xlu1 %2521 }
 0x1ef   : > { %v2531_v0 = vsel %vm7545_vm6, %v2522_v3, %v2530_v26  ;;  %v1284_v33 = vsel %vm7579_vm1, %v5890_v18, %v1283_v51  ;;  %v2704_v28 = vsel %vm7579_vm1, %v5891_v6, %v2703_v46 }
 0x1f0   : > { %2532 = vst [vmem:[#allocation2 + $0xb4] sm:$0x1] %v2531_v0  ;;  %1285 = vst [vmem:[#allocation2 + $0x3c] sm:$0x8] %v1284_v33  ;;  %v1524_v62 = vpop.permute.xlu0 %1523  ;;  %v1571_v14 = vld [vmem:[#allocation2 + $0x5c] sm:$0xf] }
 0x1f1   : > { %2705 = vst [vmem:[#allocation2 + $0xb4] sm:$0x8] %v2704_v28  ;;  %v1533_v52 = vsel %vm7061_vm3, %v1524_v62, %v1532_v40  ;;  %v5936_v62 = vld [vmem:[#allocation2 + $0x18] sm:$0xff]  }
 0x1f2   : > { %v1432_v61 = vld [vmem:[#allocation2 + $0x4c] sm:$0x1]  ;;  %v1542_v35 = vpop.permute.xlu1 %1541  ;;  %1534 = vst [vmem:[#allocation2 + $0x58] sm:$0xf] %v1533_v52 }
 0x1f3   : > { %v1433_v20 = vsel %vm7245_vm14, 0, %v1432_v61  ;;  %1547 = vst.msk [vmem:[#allocation2 + $0x58] sm:$0xf] %vm9245_vm12, %v1542_v35  ;;  %vm9251_vm12 = vmmov %vm9242_vm0  ;;  %v5937_v61 = vld [vmem:[#allocation2 + $0x20] sm:$0xff]  }
 0x1f4   : > { %1434 = vst [vmem:[#allocation2 + $0x4c] sm:$0x1] %v1433_v20  ;;  %v5894_v29 = vpop.permute.xlu0 %5893 }
 0x1f5   : > { %v5896_v42 = vunpack.i.h.bf16 %v5894_v29  ;;  %v5895_v50 = vunpack.i.l.bf16 %v5894_v29 }
 0x1f6   : > { %v5899_v47 = vpop.permute.xlu1 %5898 }
 0x1f7   : > { %v5901_v60 = vunpack.i.h.bf16 %v5899_v47  ;;  %v5900_v53 = vunpack.i.l.bf16 %v5899_v47  ;;  %v1642_v63 = vsel %vm7269_vm9, %v5896_v42, %v1641_v12  ;;  %v1500_v22 = vsel %vm7269_vm9, %v5895_v50, %v1499_v38  ;;  %v5928_v41 = vld [vmem:[#allocation2 + $0x3c] sm:$0xff]   ;;  %v5940_v47 = vld [vmem:[#allocation2 + $0x28] sm:$0xff]  }
 0x1f8   : > { %1643 = vst [vmem:[#allocation2 + $0x60] sm:$0x8] %v1642_v63  ;;  %1501 = vst [vmem:[#allocation2 + $0x54] sm:$0x8] %v1500_v22  ;;  %v2664_v56 = vpop.permute.xlu0 %2663  ;;  %v5930_v45 = vld [vmem:[#allocation2 + $0xb4] sm:$0xff]   ;;  %5651 = vmatmul.mubr.msk.bf16.gmra.mrb[12].mxu0 %vm9246_vm11, %v5928_v41 }
 0x1f9   : > { %v1426_v2 = vsel %vm7579_vm1, %v5901_v60, %v1425_v4  ;;  %v2846_v57 = vsel %vm7579_vm1, %v5900_v53, %v2845_v24  ;;  %v2673_v9 = vsel %vm7545_vm6, %v2664_v56, %v2672_v21  ;;  %5682 = vmatprep.mubr.msk.bf16.mxu1 %vm9242_vm0, %v5930_v45  ;;  %vm9252_vm11 = vmmov %vm9242_vm0  ;;  %v5942_v53 = vld [vmem:[#allocation2 + $0x30] sm:$0xff]   ;;  %v5941_v21 = vld [vmem:[#allocation2 + $0x1c] sm:$0xff]  }
 0x1fa   : > { %1427 = vst [vmem:[#allocation2 + $0x48] sm:$0x8] %v1426_v2  ;;  %2847 = vst [vmem:[#allocation2 + $0xc0] sm:$0x8] %v2846_v57  ;;  %v1561_v39 = vpop.permute.xlu1 %1560  ;;  %v5944_v45 = vld [vmem:[#allocation2 + $0x38] sm:$0xff]  }
 0x1fb   : > { %2674 = vst [vmem:[#allocation2 + $0xc0] sm:$0x1] %v2673_v9  ;;  %1570 = vst.msk [vmem:[#allocation2 + $0x58] sm:$0xf] %vm9247_vm13, %v1561_v39  ;;  %v5935_v7 = vld [vmem:[#allocation2 + $0x4c] sm:$0xff]   ;;  %v5943_v39 = vld [vmem:[#allocation2 + $0x24] sm:$0xff]  }
 0x1fc   : > { %v1244_v34 = vpop.permute.xlu0 %1243  ;;  %vm9253_vm13 = vmmov %vm9250_vm2  ;;  %v5953_v10 = vld [vmem:[#allocation2 + $0x4c] sm:$0xff]  }
 0x1fd   : > { %v1253_v23 = vsel %vm7545_vm6, %v1244_v34, %v1252_v17  ;;  %v5946_v17 = vld [vmem:[#allocation2 + $0x40] sm:$0xff]   ;;  %v5945_v34 = vld [vmem:[#allocation2 + $0x2c] sm:$0xff]  }
 0x1fe   : > { %v1386_v25 = vpop.permute.xlu1 %1385  ;;  %1254 = vst [vmem:[#allocation2 + $0x48] sm:$0x1] %v1253_v23 }
 0x1ff   : > { %v1395_v49 = vsel %vm7545_vm6, %v1386_v25, %v1394_v44  ;;  %v1567_v6 = vld [vmem:[#allocation2 + $0x54] sm:$0x8]  ;;  %v1709_v18 = vld [vmem:[#allocation2 + $0x60] sm:$0x8] }
 0x200   : > { %1396 = vst [vmem:[#allocation2 + $0x54] sm:$0x1] %v1395_v49  ;;  %v1563_v32 = vpop.permute.xlu0 %1562 }
 0x201   : > { %v1572_v37 = vsel %vm7170_vm10, %v1563_v32, %v1571_v14 }
 0x202   : > { %v1574_v1 = vld [vmem:[#allocation2 + $0x58] sm:$0x1]  ;;  %v1528_v30 = vpop.permute.xlu1 %1527  ;;  %v5932_v48 = vld [vmem:[#allocation2 + $0xbc] sm:$0xff]   ;;  %1573 = vst [vmem:[#allocation2 + $0x5c] sm:$0xf] %v1572_v37 }
 0x203   : > { %v1575_v13 = vsel %vm7245_vm14, 0, %v1574_v1  ;;  %v1537_v59 = vsel %vm7545_vm6, %v1528_v30, %v1536_v19  ;;  %5683 = vmatmul.mubr.msk.bf16.gmra.mrb[20].mxu1 %vm9248_vm5, %v5932_v48  ;;  %vm9254_vm5 = vmmov %vm9242_vm0 }
 0x204   : > { %1576 = vst [vmem:[#allocation2 + $0x58] sm:$0x1] %v1575_v13  ;;  %1538 = vst [vmem:[#allocation2 + $0x60] sm:$0x1] %v1537_v59  ;;  %v5904_v27 = vpop.permute.xlu0 %5903  ;;  %5690 = vmatprep.mubr.msk.bf16.mxu1 %vm9249_vm8, %v5933_v8  ;;  %vm9255_vm8 = vcmask 158848   ;;  %v5947_v13 = vld [vmem:[#allocation2 + $0x34] sm:$0xff]  }
 0x205   : > { %v5906_v54 = vunpack.i.h.bf16 %v5904_v27  ;;  %v5905_v5 = vunpack.i.l.bf16 %v5904_v27  ;;  %v5934_v26 = vld [vmem:[#allocation2 + $0x44] sm:$0xff]   ;;  %v2919_v8 = vld [vmem:[#allocation2 + $0xcc] sm:$0x8]  ;;  %v5949_v27 = vld [vmem:[#allocation2 + $0x3c] sm:$0xff]  }
 0x206   : > { %v2752_v16 = vpop.permute.xlu1 %2751  ;;  %5654 = vmatprep.mubr.msk.bf16.mxu0 %vm9251_vm12, %v5934_v26  ;;  %vm9256_vm12 = vmmov %vm9242_vm0  ;;  %v5948_v30 = vld [vmem:[#allocation2 + $0x48] sm:$0xff]  }
 0x207   : > { %2757 = vst.msk [vmem:[#allocation2 + $0xc4] sm:$0xf] %vm9250_vm2, %v2752_v16  ;;  %v1568_v51 = vsel %vm7579_vm1, %v5905_v5, %v1567_v6  ;;  %v1710_v3 = vsel %vm7579_vm1, %v5906_v54, %v1709_v18  ;;  %5655 = vmatmul.mubr.msk.bf16.gmra.mrb[16].mxu0 %vm9252_vm11, %v5935_v7  ;;  %vm9257_vm11 = vcmask 60448  }
 0x208   : > { %v5668_v46 = vpop.f32.mrb[4].mxu1  ;;  %1569 = vst [vmem:[#allocation2 + $0x54] sm:$0x8] %v1568_v51  ;;  %1711 = vst [vmem:[#allocation2 + $0x60] sm:$0x8] %v1710_v3  ;;  %v2754_v0 = vpop.permute.xlu0 %2753 }
 0x209   : > { %3513 = vst.msk [vmem:[#allocation3 + $0xf0] sm:$0xff] %vm3482_vm4, %v5668_v46  ;;  %v3403_v33 = vpop.f32.mrb[5].mxu1  ;;  %v1577_v28 = vld [vmem:[#allocation2 + $0x5c] sm:$0x8] }
 0x20a   : > { %2758 = vst.msk [vmem:[#allocation2 + $0xc8] sm:$0xf] %vm9253_vm13, %v2754_v0  ;;  %v5669_v40 = vpop.f32.mrb[6].mxu1  ;;  %v2773_v52 = vpop.permute.xlu1 %2772  ;;  %v1578_v35 = vsel %vm9216_vm7, 0, %v1577_v28  ;;  %vm9258_vm13 = vmmov %vm9242_vm0  ;;  %v5951_v28 = vld [vmem:[#allocation2 + $0x44] sm:$0xff]  }
 0x20b   : > { %3511 = vst.msk [vmem:[#allocation3 + $0xe0] sm:$0xff] %vm3482_vm4, %v3403_v33  ;;  %3514 = vst.msk [vmem:[#allocation3 + $0xf8] sm:$0xff] %vm3482_vm4, %v5669_v40  ;;  %v3406_v20 = vpop.f32.mrb[7].mxu1  ;;  %5691 = vmatmul.mubr.msk.bf16.vlgmr.msra.gmra.mrb[24].mxu1 %vm9242_vm0, %v5936_v62  ;;  %v2814_v62 = vld [vmem:[#allocation2 + $0xcc] sm:$0x1] }
 0x20c   : > { %1579 = vst [vmem:[#allocation2 + $0x5c] sm:$0x8] %v1578_v35  ;;  %3512 = vst.msk [vmem:[#allocation3 + $0xe8] sm:$0xff] %vm3482_vm4, %v3406_v20  ;;  %v2771_v38 = vpop.permute.xlu0 %2770  ;;  %5694 = vmatprep.mubr.msk.bf16.mxu1 %vm9254_vm5, %v5937_v61 }
 0x20d   : > { %2780 = vst.msk [vmem:[#allocation2 + $0xc4] sm:$0xf] %vm9255_vm8, %v2771_v38  ;;  %vm9259_vm5 = vmmov %vm9242_vm0  ;;  %vm9260_vm8 = vcmask 126048   ;;  %v2956_v38 = vld [vmem:[#allocation2 + $0xd8] sm:$0x1] }
 0x20e   : > { %v2896_v12 = vpop.permute.xlu1 %2895 }
 0x20f   : > { %2900 = vst.msk [vmem:[#allocation2 + $0xd4] sm:$0xf] %vm9250_vm2, %v2896_v12  ;;  %v5938_v29 = vld [vmem:[#allocation2 + $0x54] sm:$0xff]   ;;  %vm9261_vm2 = vmmov %vm9242_vm0  ;;  %v5954_v40 = vld [vmem:[#allocation2 + $0x60] sm:$0xff]  }
 0x210   : > { %v2804_v42 = vpop.permute.xlu0 %2803  ;;  %5658 = vmatprep.mubr.msk.bf16.mxu0 %vm9256_vm12, %v5938_v29  ;;  %vm9262_vm12 = vmmov %vm9260_vm8  ;;  %v5950_v59 = vld [vmem:[#allocation2 + $0x50] sm:$0xff]   ;;  %v5956_v29 = vld [vmem:[#allocation2 + $0x68] sm:$0xff]  }
 0x211   : > { %v2781_v50 = vld [vmem:[#allocation2 + $0xc8] sm:$0xf] }
 0x212   : > { %v2782_v60 = vsel %vm6904_vm15, %v2773_v52, %v2781_v50  ;;  %v2802_v4 = vpop.permute.xlu1 %2801 }
 0x213   : > { %2783 = vst [vmem:[#allocation2 + $0xc8] sm:$0xf] %v2782_v60  ;;  %v5939_v24 = vld [vmem:[#allocation2 + $0x5c] sm:$0xff]   ;;  %5695 = vmatmul.mubr.msk.bf16.gmra.mrb[28].mxu1 %vm9258_vm13, %v5940_v47  ;;  %vm9264_vm13 = vmmov %vm9242_vm0  ;;  %v5955_v47 = vld [vmem:[#allocation2 + $0x54] sm:$0xff]  }
 0x214   : > { %2813 = vst.msk [vmem:[#allocation2 + $0xc8] sm:$0xf] %vm9257_vm11, %v2804_v42  ;;  %v2822_v63 = vpop.permute.xlu0 %2821  ;;  %5659 = vmatmul.mubr.msk.bf16.gmra.mrb[20].mxu0 %vm9242_vm0, %v5939_v24  ;;  %5698 = vmatprep.mubr.msk.bf16.mxu1 %vm9259_vm5, %v5942_v53  ;;  %v2810_v22 = vld [vmem:[#allocation2 + $0xc4] sm:$0xf]  ;;  %vm9263_vm11 = vcmask 93248   ;;  %vm9265_vm5 = vmmov %vm9242_vm0  ;;  %v5952_v0 = vld [vmem:[#allocation2 + $0x58] sm:$0xff]  }
 0x215   : > { %2826 = vst.msk [vmem:[#allocation2 + $0xc8] sm:$0xf] %vm9260_vm8, %v2822_v63  ;;  %5742 = vmatprep.mubr.msk.bf16.mxu0 %vm9261_vm2, %v5941_v21  ;;  %v2811_v41 = vsel %vm7061_vm3, %v2802_v4, %v2810_v22  ;;  %vm9266_vm8 = vcmask 158848   ;;  %vm9267_vm2 = vmmov %vm9242_vm0  ;;  %v5958_v60 = vld [vmem:[#allocation2 + $0x70] sm:$0xff]   ;;  %v5957_v24 = vld [vmem:[#allocation2 + $0x5c] sm:$0xff]  }
 0x216   : > { %v2820_v2 = vpop.permute.xlu1 %2819  ;;  %2812 = vst [vmem:[#allocation2 + $0xc4] sm:$0xf] %v2811_v41  ;;  %v2923_v57 = vld [vmem:[#allocation2 + $0xd4] sm:$0xf] }
 0x217   : > { %2825 = vst.msk [vmem:[#allocation2 + $0xc4] sm:$0xf] %vm9262_vm12, %v2820_v2  ;;  %vm9269_vm12 = vcmask 60448   ;;  %v5959_v2 = vld [vmem:[#allocation2 + $0x64] sm:$0xff]  }
 0x218   : > { %v2894_v56 = vpop.permute.xlu0 %2893 }
 0x219   : > { %2899 = vst.msk [vmem:[#allocation2 + $0xd0] sm:$0xf] %vm9263_vm11, %v2894_v56  ;;  %vm9270_vm11 = vmmov %vm9242_vm0  ;;  %v5961_v56 = vld [vmem:[#allocation2 + $0x6c] sm:$0xff]  }
 0x21a   : > { %v2915_v9 = vpop.permute.xlu1 %2914 }
 0x21b   : > { %v2924_v44 = vsel %vm6904_vm15, %v2915_v9, %v2923_v57  ;;  %5699 = vmatmul.mubr.msk.bf16.gmra.mrb[32].mxu1 %vm9264_vm13, %v5944_v45  ;;  %vm9268_vm15 = vcmask 191648   ;;  %vm9271_vm13 = vmmov %vm9242_vm0  ;;  %v5962_v57 = vld [vmem:[#allocation2 + $0x80] sm:$0xff]   ;;  %v5963_v9 = vld [vmem:[#allocation2 + $0x74] sm:$0xff]  }
 0x21c   : > { %2925 = vst [vmem:[#allocation2 + $0xd4] sm:$0xf] %v2924_v44  ;;  %v2913_v23 = vpop.permute.xlu0 %2912  ;;  %5743 = vmatmul.mubr.msk.bf16.vlgmr.msra.gmra.mrb[24].mxu0 %vm9242_vm0, %v5943_v39  ;;  %5702 = vmatprep.mubr.msk.bf16.mxu1 %vm9265_vm5, %v5946_v17  ;;  %v2849_v25 = vld [vmem:[#allocation2 + $0xc8] sm:$0xf]  ;;  %vm9272_vm5 = vmmov %vm9242_vm0  ;;  %v5966_v39 = vld [vmem:[#allocation2 + $0x90] sm:$0xff]  }
 0x21d   : > { %2922 = vst.msk [vmem:[#allocation2 + $0xd0] sm:$0xf] %vm9266_vm8, %v2913_v23  ;;  %5746 = vmatprep.mubr.msk.bf16.mxu0 %vm9267_vm2, %v5945_v34  ;;  %vm9273_vm8 = vcmask 126048   ;;  %v5965_v17 = vld [vmem:[#allocation2 + $0x7c] sm:$0xff]   ;;  %v5967_v34 = vld [vmem:[#allocation2 + $0x84] sm:$0xff]  }
 0x21e   : > { %v2841_v49 = vpop.permute.xlu1 %2840  ;;  %v5640_v19 = vpop.f32.mrb[0].mxu0  ;;  %vm9274_vm2 = vmmov %vm9273_vm8  ;;  %v5968_v44 = vld [vmem:[#allocation2 + $0x98] sm:$0xff]   ;;  %v5970_v23 = vld [vmem:[#allocation2 + $0xa0] sm:$0xff]  }
 0x21f   : > { %v2850_v55 = vsel %vm7170_vm10, %v2841_v49, %v2849_v25  ;;  %3485 = vst.msk [vmem:[#allocation3 + $0x10] sm:$0xff] %vm3482_vm4, %v5640_v19  ;;  %v3291_v14 = vpop.f32.mrb[1].mxu0  ;;  %v5972_v25 = vld [vmem:[#allocation2 + $0xa8] sm:$0xff]   ;;  %v5971_v49 = vld [vmem:[#allocation2 + $0x94] sm:$0xff]  }
 0x220   : > { %2851 = vst [vmem:[#allocation2 + $0xc8] sm:$0xf] %v2850_v55  ;;  %v2839_v32 = vpop.permute.xlu0 %2838  ;;  %3483 = vst.msk [vmem:[#allocation3] sm:$0xff] %vm3482_vm4, %v3291_v14  ;;  %v5641_v1 = vpop.f32.mrb[2].mxu0  ;;  %v5974_v19 = vld [vmem:[#allocation2 + $0xb0] sm:$0xff]   ;;  %v5973_v55 = vld [vmem:[#allocation2 + $0x9c] sm:$0xff]  }
 0x221   : > { %2848 = vst.msk [vmem:[#allocation2 + $0xc4] sm:$0xf] %vm9268_vm15, %v2839_v32  ;;  %v3294_v37 = vpop.f32.mrb[3].mxu0  ;;  %vm9276_vm15 = vmmov %vm9242_vm0  ;;  %v5976_v14 = vld [vmem:[#allocation2 + $0xb8] sm:$0xff]   ;;  %v5975_v32 = vld [vmem:[#allocation2 + $0xa4] sm:$0xff]  }
 0x222   : > { %3486 = vst.msk [vmem:[#allocation3 + $0x18] sm:$0xff] %vm3482_vm4, %v5641_v1  ;;  %v2946_v48 = vpop.permute.xlu1 %2945  ;;  %3484 = vst.msk [vmem:[#allocation3 + $0x8] sm:$0xff] %vm3482_vm4, %v3294_v37  ;;  %v5977_v37 = vld [vmem:[#allocation2 + $0xac] sm:$0xff]  }
 0x223   : > { %2955 = vst.msk [vmem:[#allocation2 + $0xd4] sm:$0xf] %vm9269_vm12, %v2946_v48  ;;  %5703 = vmatmul.mubr.msk.bf16.gmra.mrb[36].mxu1 %vm9270_vm11, %v5948_v30  ;;  %vm9277_vm12 = vmmov %vm9242_vm0 }
 0x224   : > { %5747 = vmatmul.mubr.msk.bf16.gmra.mrb[28].mxu0 %vm9271_vm13, %v5947_v13  ;;  %5706 = vmatprep.mubr.msk.bf16.mxu1 %vm9242_vm0, %v5950_v59  ;;  %v2911_v7 = vpop.permute.xlu0 %2910  ;;  %v2952_v54 = vld [vmem:[#allocation2 + $0xd0] sm:$0xf]  ;;  %vm9278_vm11 = vmmov %vm9242_vm0  ;;  %vm9279_vm13 = vcmask 191648  }
 0x225   : > { %5750 = vmatprep.mubr.msk.bf16.mxu0 %vm9272_vm5, %v5949_v27  ;;  %v2920_v5 = vsel %vm7269_vm9, %v2911_v7, %v2919_v8  ;;  %vm9280_vm5 = vmmov %vm9242_vm0  ;;  %v5979_v8 = vld [vmem:[#allocation2 + $0xb4] sm:$0xff]  }
 0x226   : > { %v2944_v26 = vpop.permute.xlu1 %2943  ;;  %2921 = vst [vmem:[#allocation2 + $0xcc] sm:$0x8] %v2920_v5 }
 0x227   : > { %v2855_v16 = vld [vmem:[#allocation2 + $0xc8] sm:$0x8]  ;;  %v2953_v6 = vsel %vm7061_vm3, %v2944_v26, %v2952_v54  ;;  %vm9275_vm3 = vmmov %vm9242_vm0  ;;  %v5981_v54 = vld [vmem:[#allocation2 + $0xbc] sm:$0xff]  }
 0x228   : > { %v2856_v18 = vsel %vm9216_vm7, 0, %v2855_v16  ;;  %2954 = vst [vmem:[#allocation2 + $0xd0] sm:$0xf] %v2953_v6  ;;  %v2852_v51 = vld [vmem:[#allocation2 + $0xc4] sm:$0x1]  ;;  %v2964_v3 = vpop.permute.xlu0 %2963 }
 0x229   : > { %2857 = vst [vmem:[#allocation2 + $0xc8] sm:$0x8] %v2856_v18  ;;  %v2853_v46 = vsel %vm7245_vm14, 0, %v2852_v51  ;;  %2968 = vst.msk [vmem:[#allocation2 + $0xd4] sm:$0xf] %vm9273_vm8, %v2964_v3 }
 0x22a   : > { %v2962_v33 = vpop.permute.xlu1 %2961  ;;  %2854 = vst [vmem:[#allocation2 + $0xc4] sm:$0x1] %v2853_v46  ;;  %vm9281_vm8 = vmmov %vm9242_vm0 }
 0x22b   : > { %2967 = vst.msk [vmem:[#allocation2 + $0xd0] sm:$0xf] %vm9274_vm2, %v2962_v33  ;;  %5707 = vmatmul.mubr.msk.bf16.gmra.mrb[40].mxu1 %vm9275_vm3, %v5952_v0  ;;  %vm9282_vm2 = vmmov %vm9242_vm0 }
 0x22c   : > { %5751 = vmatmul.mubr.msk.bf16.gmra.mrb[32].mxu0 %vm9276_vm15, %v5951_v28  ;;  %5710 = vmatprep.mubr.msk.bf16.mxu1 %vm9277_vm12, %v5954_v40  ;;  %v2806_v61 = vpop.permute.xlu0 %2805  ;;  %vm9284_vm3 = vmmov %vm9242_vm0 }
 0x22d   : > { %5754 = vmatprep.mubr.msk.bf16.mxu0 %vm9278_vm11, %v5953_v10  ;;  %v2815_v52 = vsel %vm7545_vm6, %v2806_v61, %v2814_v62  ;;  %v2987_v20 = vld [vmem:[#allocation2 + $0xcc] sm:$0x8]  ;;  %vm9285_vm15 = vmmov %vm9242_vm0 }
 0x22e   : > { %v2981_v35 = vpop.permute.xlu1 %2980  ;;  %2816 = vst [vmem:[#allocation2 + $0xcc] sm:$0x1] %v2815_v52  ;;  %vm9286_vm12 = vmmov %vm9242_vm0 }
 0x22f   : > { %2990 = vst.msk [vmem:[#allocation2 + $0xd0] sm:$0xf] %vm9279_vm13, %v2981_v35  ;;  %vm9289_vm11 = vmmov %vm9242_vm0 }
 0x230   : > { %v2979_v12 = vpop.permute.xlu0 %2978  ;;  %v2991_v53 = vld [vmem:[#allocation2 + $0xd4] sm:$0xf]  ;;  %vm9290_vm13 = vmmov %vm9242_vm0 }
 0x231   : > { %v2988_v42 = vsel %vm7579_vm1, %v2979_v12, %v2987_v20  ;;  %v5978_v1 = vld [vmem:[#allocation2 + $0xc0] sm:$0xff]  }
 0x232   : > { %v2948_v50 = vpop.permute.xlu1 %2947  ;;  %2989 = vst [vmem:[#allocation2 + $0xcc] sm:$0x8] %v2988_v42  ;;  %v5982_v6 = vld [vmem:[#allocation2 + $0xc4] sm:$0xff]  }
 0x233   : > { %v2957_v4 = vsel %vm7545_vm6, %v2948_v50, %v2956_v38  ;;  %5711 = vmatmul.mubr.msk.bf16.gmra.mrb[44].mxu1 %vm9242_vm0, %v5956_v29  ;;  %vm9283_vm6 = vmmov %vm9242_vm0  ;;  %v489_v50 = vld [vmem:[#allocation2] sm:$0x8] }
 0x234   : > { %2958 = vst [vmem:[#allocation2 + $0xd8] sm:$0x1] %v2957_v4  ;;  %5755 = vmatmul.mubr.msk.bf16.gmra.mrb[36].mxu0 %vm9280_vm5, %v5955_v47  ;;  %5714 = vmatprep.mubr.msk.bf16.mxu1 %vm9281_vm8, %v5958_v60  ;;  %v2983_v21 = vpop.permute.xlu0 %2982  ;;  %vm9292_vm5 = vmmov %vm9242_vm0 }
 0x235   : > { %5758 = vmatprep.mubr.msk.bf16.mxu0 %vm9282_vm2, %v5957_v24  ;;  %v2992_v22 = vsel %vm7170_vm10, %v2983_v21, %v2991_v53  ;;  %vm9288_vm10 = vmmov %vm9242_vm0 }
 0x236   : > { %v2994_v63 = vld [vmem:[#allocation2 + $0xd0] sm:$0x1]  ;;  %2993 = vst [vmem:[#allocation2 + $0xd4] sm:$0xf] %v2992_v22  ;;  %vm9293_vm8 = vmmov %vm9242_vm0 }
 0x237   : > { %v2995_v41 = vsel %vm7245_vm14, 0, %v2994_v63  ;;  %vm9287_vm14 = vmmov %vm9242_vm0 }
 0x238   : > { %2996 = vst [vmem:[#allocation2 + $0xd0] sm:$0x1] %v2995_v41  ;;  %vm9294_vm2 = vmmov %vm9242_vm0  ;;  %v478_v47 = vpop.permute.xlu0 %477  ;;  %v558_v41 = vpop.permute.xlu1 %557 }
 0x239   : > { %v5980_v13 = vld [vmem:[#allocation2 + $0xc8] sm:$0xff]   ;;  %v490_v53 = vsel %vm7269_vm9, %v478_v47, %v489_v50 }
 0x23a   : > { %491 = vst [vmem:[#allocation2] sm:$0x8] %v490_v53 }
 0x23b   : > { %5715 = vmatmul.mubr.msk.bf16.gmra.mrb[48].mxu1 %vm9283_vm6, %v5960_v58  ;;  %vm9295_vm6 = vmmov %vm9242_vm0 }
 0x23c   : > { %5759 = vmatmul.mubr.msk.bf16.gmra.mrb[40].mxu0 %vm9284_vm3, %v5959_v2  ;;  %5718 = vmatprep.mubr.msk.bf16.mxu1 %vm9285_vm15, %v5962_v57  ;;  %vm9296_vm3 = vmmov %vm9242_vm0  ;;  %v3533_v2 = vld [vmem:[#allocation3 + $0x10] sm:$0xff] }
 0x23d   : > { %5762 = vmatprep.mubr.msk.bf16.mxu0 %vm9286_vm12, %v5961_v56  ;;  %v2997_v45 = vld [vmem:[#allocation2 + $0xd4] sm:$0x8]  ;;  %vm9297_vm15 = vmmov %vm9242_vm0 }
 0x23e   : > { %v2998_v31 = vsel %vm9216_vm7, 0, %v2997_v45  ;;  %vm9291_vm7 = vmmov %vm9242_vm0 }
 0x23f   : > { %2999 = vst [vmem:[#allocation2 + $0xd4] sm:$0x8] %v2998_v31  ;;  %vm9298_vm12 = vmmov %vm9242_vm0  ;;  %v5983_v18 = vld [vmem:[#allocation2 + $0xcc] sm:$0xff]   ;;  %v3531_v31 = vld [vmem:[#allocation3] sm:$0xff] }
 0x241   : > { %v568_v56 = vld [vmem:[#allocation2] sm:$0x8] }
 0x243   : > { %5719 = vmatmul.mubr.msk.bf16.gmra.mrb[52].mxu1 %vm9287_vm14, %v5964_v36  ;;  %vm9299_vm14 = vmmov %vm9242_vm0 }
 0x244   : > { %5763 = vmatmul.mubr.msk.bf16.gmra.mrb[44].mxu0 %vm9288_vm10, %v5963_v9  ;;  %5722 = vmatprep.mubr.msk.bf16.mxu1 %vm9289_vm11, %v5966_v39  ;;  %vm9300_vm10 = vmmov %vm9242_vm0  ;;  %v569_v9 = vsel %vm7579_vm1, %v558_v41, %v568_v56  ;;  %v8677_v41 = vld [vmem:[%s8875_s5] ss:$0 sm:$0xff]  ;;  %vm4802_vm1 = vcmask 60416  }
 0x245   : > { %5766 = vmatprep.mubr.msk.bf16.mxu0 %vm9290_vm13, %v5965_v17  ;;  %vm9301_vm11 = vmmov %vm9242_vm0  ;;  %v3534_v17 = vld [vmem:[#allocation3 + $0x18] sm:$0xff]  ;;  %570 = vst [vmem:[#allocation2] sm:$0x8] %v569_v9 }
 0x246   : > { %vm9302_vm13 = vmmov %vm9242_vm0  ;;  %v5984_v51 = vld [vmem:[#allocation2 + $0xd4] sm:$0xff]  }
 0x24b   : > { %5723 = vmatmul.mubr.msk.bf16.gmra.mrb[56].mxu1 %vm9242_vm0, %v5968_v44 }
 0x24c   : > { %5767 = vmatmul.mubr.msk.bf16.gmra.mrb[48].mxu0 %vm9291_vm7, %v5967_v34  ;;  %5726 = vmatprep.mubr.msk.bf16.mxu1 %vm9292_vm5, %v5970_v23  ;;  %vm9303_vm7 = vmmov %vm9242_vm0  ;;  %v3532_v23 = vld [vmem:[#allocation3 + $0x8] sm:$0xff] }
 0x24d   : > { %5770 = vmatprep.mubr.msk.bf16.mxu0 %vm9293_vm8, %v5969_v15  ;;  %vm9304_vm5 = vmmov %vm9242_vm0 }
 0x24e   : > { %vm9305_vm8 = vmmov %vm9242_vm0 }
 0x253   : > { %5727 = vmatmul.mubr.msk.bf16.gmra.mrb[60].mxu1 %vm9294_vm2, %v5972_v25  ;;  %vm9306_vm2 = vmmov %vm9242_vm0 }
 0x254   : > { %5771 = vmatmul.mubr.msk.bf16.gmra.mrb[52].mxu0 %vm9295_vm6, %v5971_v49  ;;  %5730 = vmatprep.mubr.msk.bf16.mxu1 %vm9296_vm3, %v5974_v19 }
 0x255   : > { %5774 = vmatprep.mubr.msk.bf16.mxu0 %vm9297_vm15, %v5973_v55 }
 0x25b   : > { %5731 = vmatmul.mubr.msk.bf16.gmra.mrb[64].mxu1 %vm9298_vm12, %v5976_v14 }
 0x25c   : > { %5775 = vmatmul.mubr.msk.bf16.gmra.mrb[56].mxu0 %vm9299_vm14, %v5975_v32  ;;  %5734 = vmatprep.mubr.msk.bf16.mxu1 %vm9300_vm10, %v5978_v1 }
 0x25d   : > { %5778 = vmatprep.mubr.msk.bf16.mxu0 %vm9301_vm11, %v5977_v37 }
 0x25f   : > { %v5672_v30 = vpop.f32.mrb[8].mxu1 }
 0x260   : > { %3517 = vst.msk [vmem:[#allocation3 + $0x110] sm:$0xff] %vm3482_vm4, %v5672_v30  ;;  %v3419_v48 = vpop.f32.mrb[9].mxu1 }
 0x261   : > { %3515 = vst.msk [vmem:[#allocation3 + $0x100] sm:$0xff] %vm3482_vm4, %v3419_v48  ;;  %v5673_v59 = vpop.f32.mrb[10].mxu1 }
 0x262   : > { %3518 = vst.msk [vmem:[#allocation3 + $0x118] sm:$0xff] %vm3482_vm4, %v5673_v59  ;;  %v5644_v27 = vpop.f32.mrb[4].mxu0  ;;  %v3422_v7 = vpop.f32.mrb[11].mxu1 }
 0x263   : > { %5735 = vmatmul.mubr.msk.bf16.gmra.mrb[68].mxu1 %vm9302_vm13, %v5980_v13  ;;  %3489 = vst.msk [vmem:[#allocation3 + $0x30] sm:$0xff] %vm3482_vm4, %v5644_v27  ;;  %3516 = vst.msk [vmem:[#allocation3 + $0x108] sm:$0xff] %vm3482_vm4, %v3422_v7  ;;  %v3307_v5 = vpop.f32.mrb[5].mxu0 }
 0x264   : > { %5779 = vmatmul.mubr.msk.bf16.gmra.mrb[60].mxu0 %vm9242_vm0, %v5979_v8  ;;  %3487 = vst.msk [vmem:[#allocation3 + $0x20] sm:$0xff] %vm3482_vm4, %v3307_v5  ;;  %v5645_v26 = vpop.f32.mrb[6].mxu0 }
 0x265   : > { %5782 = vmatprep.mubr.msk.bf16.mxu0 %vm9303_vm7, %v5981_v54  ;;  %3490 = vst.msk [vmem:[#allocation3 + $0x38] sm:$0xff] %vm3482_vm4, %v5645_v26  ;;  %v3310_v16 = vpop.f32.mrb[7].mxu0 }
 0x266   : > { %3488 = vst.msk [vmem:[#allocation3 + $0x28] sm:$0xff] %vm3482_vm4, %v3310_v16 }
 0x26a   : > { %v3537_v49 = vld [vmem:[#allocation3 + $0x30] sm:$0xff] }
 0x26b   : > { %v3535_v14 = vld [vmem:[#allocation3 + $0x20] sm:$0xff] }
 0x26c   : > { %5783 = vmatmul.mubr.msk.bf16.gmra.mrb[64].mxu0 %vm9304_vm5, %v5982_v6  ;;  %v3538_v30 = vld [vmem:[#allocation3 + $0x38] sm:$0xff] }
 0x26d   : > { %5786 = vmatprep.mubr.msk.bf16.mxu0 %vm9305_vm8, %v5983_v18  ;;  %v3536_v8 = vld [vmem:[#allocation3 + $0x28] sm:$0xff] }
 0x274   : > { %5787 = vmatmul.mubr.msk.bf16.gmra.mrb[68].mxu0 %vm9306_vm2, %v5984_v51 }
 0x297   : > { %v5676_v3 = vpop.f32.mrb[12].mxu1 }
 0x298   : > { %3521 = vst.msk [vmem:[#allocation3 + $0x130] sm:$0xff] %vm3482_vm4, %v5676_v3  ;;  %v3435_v46 = vpop.f32.mrb[13].mxu1 }
 0x299   : > { %3519 = vst.msk [vmem:[#allocation3 + $0x120] sm:$0xff] %vm3482_vm4, %v3435_v46  ;;  %v5677_v0 = vpop.f32.mrb[14].mxu1 }
 0x29a   : > { %3522 = vst.msk [vmem:[#allocation3 + $0x138] sm:$0xff] %vm3482_vm4, %v5677_v0  ;;  %v3438_v33 = vpop.f32.mrb[15].mxu1 }
 0x29b   : > { %3520 = vst.msk [vmem:[#allocation3 + $0x128] sm:$0xff] %vm3482_vm4, %v3438_v33 }
 0x2a7   : > { %v5648_v28 = vpop.f32.mrb[8].mxu0 }
 0x2a8   : > { %3493 = vst.msk [vmem:[#allocation3 + $0x50] sm:$0xff] %vm3482_vm4, %v5648_v28  ;;  %v3323_v40 = vpop.f32.mrb[9].mxu0 }
 0x2a9   : > { %3491 = vst.msk [vmem:[#allocation3 + $0x40] sm:$0xff] %vm3482_vm4, %v3323_v40  ;;  %v5649_v62 = vpop.f32.mrb[10].mxu0 }
 0x2aa   : > { %3494 = vst.msk [vmem:[#allocation3 + $0x58] sm:$0xff] %vm3482_vm4, %v5649_v62  ;;  %v3326_v10 = vpop.f32.mrb[11].mxu0 }
 0x2ab   : > { %3492 = vst.msk [vmem:[#allocation3 + $0x48] sm:$0xff] %vm3482_vm4, %v3326_v10 }
 0x2af   : > { %v3541_v5 = vld [vmem:[#allocation3 + $0x50] sm:$0xff] }
 0x2b0   : > { %v3539_v51 = vld [vmem:[#allocation3 + $0x40] sm:$0xff] }
 0x2b1   : > { %v3542_v40 = vld [vmem:[#allocation3 + $0x58] sm:$0xff] }
 0x2b6   : > { %v5680_v61 = vpop.f32.mrb[16].mxu1 }
 0x2b7   : > { %3525 = vst.msk [vmem:[#allocation3 + $0x150] sm:$0xff] %vm3482_vm4, %v5680_v61  ;;  %v3451_v52 = vpop.f32.mrb[17].mxu1 }
 0x2b8   : > { %3523 = vst.msk [vmem:[#allocation3 + $0x140] sm:$0xff] %vm3482_vm4, %v3451_v52  ;;  %v5681_v35 = vpop.f32.mrb[18].mxu1 }
 0x2b9   : > { %3526 = vst.msk [vmem:[#allocation3 + $0x158] sm:$0xff] %vm3482_vm4, %v5681_v35  ;;  %v3454_v20 = vpop.f32.mrb[19].mxu1 }
 0x2ba   : > { %3524 = vst.msk [vmem:[#allocation3 + $0x148] sm:$0xff] %vm3482_vm4, %v3454_v20  ;;  %v3540_v20 = vld [vmem:[#allocation3 + $0x48] sm:$0xff] }
 0x2cb   : > { %v5652_v38 = vpop.f32.mrb[12].mxu0 }
 0x2cc   : > { %3497 = vst.msk [vmem:[#allocation3 + $0x70] sm:$0xff] %vm3482_vm4, %v5652_v38  ;;  %v3339_v12 = vpop.f32.mrb[13].mxu0 }
 0x2cd   : > { %3495 = vst.msk [vmem:[#allocation3 + $0x60] sm:$0xff] %vm3482_vm4, %v3339_v12  ;;  %v5653_v29 = vpop.f32.mrb[14].mxu0 }
 0x2ce   : > { %3498 = vst.msk [vmem:[#allocation3 + $0x78] sm:$0xff] %vm3482_vm4, %v5653_v29  ;;  %v3342_v42 = vpop.f32.mrb[15].mxu0 }
 0x2cf   : > { %3496 = vst.msk [vmem:[#allocation3 + $0x68] sm:$0xff] %vm3482_vm4, %v3342_v42 }
 0x2d5   : > { %v3546_v56 = vld [vmem:[#allocation3 + $0x78] sm:$0xff] }
 0x2d6   : > { %v5684_v60 = vpop.f32.mrb[20].mxu1 }
 0x2d7   : > { %3529 = vst.msk [vmem:[#allocation3 + $0x170] sm:$0xff] %vm3482_vm4, %v5684_v60  ;;  %v3467_v4 = vpop.f32.mrb[21].mxu1  ;;  %v3545_v60 = vld [vmem:[#allocation3 + $0x70] sm:$0xff] }
 0x2d8   : > { %3527 = vst.msk [vmem:[#allocation3 + $0x160] sm:$0xff] %vm3482_vm4, %v3467_v4  ;;  %v5685_v24 = vpop.f32.mrb[22].mxu1 }
 0x2d9   : > { %3530 = vst.msk [vmem:[#allocation3 + $0x178] sm:$0xff] %vm3482_vm4, %v5685_v24  ;;  %v3470_v21 = vpop.f32.mrb[23].mxu1 }
 0x2da   : > { %3528 = vst.msk [vmem:[#allocation3 + $0x168] sm:$0xff] %vm3482_vm4, %v3470_v21  ;;  %v5656_v63 = vpop.f32.mrb[16].mxu0 }
 0x2db   : > { %3501 = vst.msk [vmem:[#allocation3 + $0x90] sm:$0xff] %vm3482_vm4, %v5656_v63  ;;  %v3355_v22 = vpop.f32.mrb[17].mxu0  ;;  %v3543_v63 = vld [vmem:[#allocation3 + $0x60] sm:$0xff] }
 0x2dc   : > { %3499 = vst.msk [vmem:[#allocation3 + $0x80] sm:$0xff] %vm3482_vm4, %v3355_v22  ;;  %v5657_v43 = vpop.f32.mrb[18].mxu0 }
 0x2dd   : > { %3502 = vst.msk [vmem:[#allocation3 + $0x98] sm:$0xff] %vm3482_vm4, %v5657_v43  ;;  %v3358_v58 = vpop.f32.mrb[19].mxu0 }
 0x2de   : > { %v5692_v57 = vpop.f32.mrb[24].mxu1  ;;  %3500 = vst.msk [vmem:[#allocation3 + $0x88] sm:$0xff] %vm3482_vm4, %v3358_v58 }
 0x2df   : > { %v4062_v45 = vadd.f32 %v5692_v57, %v3533_v2  ;;  %v3869_v36 = vpop.f32.mrb[25].mxu1 }
 0x2e0   : > { %v4060_v39 = vadd.f32 %v3869_v36, %v3531_v31  ;;  %v5693_v44 = vpop.f32.mrb[26].mxu1 }
 0x2e1   : > { %4110 = vst.msk [vmem:[#allocation3 + $0x10] sm:$0xff] %vm3482_vm4, %v4062_v45  ;;  %v4063_v34 = vadd.f32 %v5693_v44, %v3534_v17  ;;  %v3872_v15 = vpop.f32.mrb[27].mxu1  ;;  %v3544_v17 = vld [vmem:[#allocation3 + $0x68] sm:$0xff] }
 0x2e2   : > { %4108 = vst.msk [vmem:[#allocation3] sm:$0xff] %vm3482_vm4, %v4060_v39  ;;  %v4061_v25 = vadd.f32 %v3872_v15, %v3532_v23 }
 0x2e3   : > { %4111 = vst.msk [vmem:[#allocation3 + $0x18] sm:$0xff] %vm3482_vm4, %v4063_v34 }
 0x2e4   : > { %4109 = vst.msk [vmem:[#allocation3 + $0x8] sm:$0xff] %vm3482_vm4, %v4061_v25 }
 0x2e6   : > { %v5696_v19 = vpop.f32.mrb[28].mxu1 }
 0x2e7   : > { %v5660_v11 = vpop.f32.mrb[20].mxu0  ;;  %v4066_v55 = vadd.f32 %v5696_v19, %v3537_v49  ;;  %v3885_v32 = vpop.f32.mrb[29].mxu1 }
 0x2e8   : > { %3505 = vst.msk [vmem:[#allocation3 + $0xb0] sm:$0xff] %vm3482_vm4, %v5660_v11  ;;  %v3371_v1 = vpop.f32.mrb[21].mxu0  ;;  %v4064_v37 = vadd.f32 %v3885_v32, %v3535_v14  ;;  %v5697_v48 = vpop.f32.mrb[30].mxu1  ;;  %v4158_v16 = vld [vmem:[#allocation3 + $0x10] sm:$0xff] }
 0x2e9   : > { %3503 = vst.msk [vmem:[#allocation3 + $0xa0] sm:$0xff] %vm3482_vm4, %v3371_v1  ;;  %4114 = vst.msk [vmem:[#allocation3 + $0x30] sm:$0xff] %vm3482_vm4, %v4066_v55  ;;  %v5661_v13 = vpop.f32.mrb[22].mxu0  ;;  %v4067_v59 = vadd.f32 %v5697_v48, %v3538_v30  ;;  %v3888_v27 = vpop.f32.mrb[31].mxu1  ;;  %v4156_v0 = vld [vmem:[#allocation3] sm:$0xff]  ;;  %v3549_v48 = vld [vmem:[#allocation3 + $0x90] sm:$0xff] }
 0x2ea   : > { %3506 = vst.msk [vmem:[#allocation3 + $0xb8] sm:$0xff] %vm3482_vm4, %v5661_v13  ;;  %4112 = vst.msk [vmem:[#allocation3 + $0x20] sm:$0xff] %vm3482_vm4, %v4064_v37  ;;  %v3374_v7 = vpop.f32.mrb[23].mxu0  ;;  %v4065_v54 = vadd.f32 %v3888_v27, %v3536_v8  ;;  %v4159_v61 = vld [vmem:[#allocation3 + $0x18] sm:$0xff] }
 0x2eb   : > { %3504 = vst.msk [vmem:[#allocation3 + $0xa8] sm:$0xff] %vm3482_vm4, %v3374_v7  ;;  %4115 = vst.msk [vmem:[#allocation3 + $0x38] sm:$0xff] %vm3482_vm4, %v4067_v59  ;;  %v4157_v29 = vld [vmem:[#allocation3 + $0x8] sm:$0xff] }
 0x2ec   : > { %4113 = vst.msk [vmem:[#allocation3 + $0x28] sm:$0xff] %vm3482_vm4, %v4065_v54 }
 0x2ee   : > { %v5700_v26 = vpop.f32.mrb[32].mxu1 }
 0x2ef   : > { %v5744_v6 = vpop.f32.mrb[24].mxu0  ;;  %v4070_v18 = vadd.f32 %v5700_v26, %v3541_v5  ;;  %v3901_v3 = vpop.f32.mrb[33].mxu1  ;;  %v3547_v5 = vld [vmem:[#allocation3 + $0x80] sm:$0xff] }
 0x2f0   : > { %v4687_v46 = vadd.f32 %v5744_v6, %v4158_v16  ;;  %v4494_v33 = vpop.f32.mrb[25].mxu0  ;;  %v4068_v28 = vadd.f32 %v3901_v3, %v3539_v51  ;;  %v5701_v62 = vpop.f32.mrb[34].mxu1  ;;  %v4162_v4 = vld [vmem:[#allocation3 + $0x30] sm:$0xff] }
 0x2f1   : > { %4118 = vst.msk [vmem:[#allocation3 + $0x50] sm:$0xff] %vm3482_vm4, %v4070_v18  ;;  %v4685_v10 = vadd.f32 %v4494_v33, %v4156_v0  ;;  %v5745_v52 = vpop.f32.mrb[26].mxu0  ;;  %v4071_v35 = vadd.f32 %v5701_v62, %v3542_v40  ;;  %v3904_v38 = vpop.f32.mrb[35].mxu1  ;;  %v4160_v58 = vld [vmem:[#allocation3 + $0x20] sm:$0xff] }
 0x2f2   : > { %4735 = vst.msk [vmem:[#allocation3 + $0x10] sm:$0xff] %vm3482_vm4, %v4687_v46  ;;  %4116 = vst.msk [vmem:[#allocation3 + $0x40] sm:$0xff] %vm3482_vm4, %v4068_v28  ;;  %v4688_v12 = vadd.f32 %v5745_v52, %v4159_v61  ;;  %v4497_v42 = vpop.f32.mrb[27].mxu0  ;;  %v4069_v50 = vadd.f32 %v3904_v38, %v3540_v20  ;;  %v4163_v36 = vld [vmem:[#allocation3 + $0x38] sm:$0xff]  ;;  %v3548_v52 = vld [vmem:[#allocation3 + $0x88] sm:$0xff] }
 0x2f3   : > { %4733 = vst.msk [vmem:[#allocation3] sm:$0xff] %vm3482_vm4, %v4685_v10  ;;  %4119 = vst.msk [vmem:[#allocation3 + $0x58] sm:$0xff] %vm3482_vm4, %v4071_v35  ;;  %v4686_v47 = vadd.f32 %v4497_v42, %v4157_v29  ;;  %v4161_v15 = vld [vmem:[#allocation3 + $0x28] sm:$0xff]  ;;  %v3550_v46 = vld [vmem:[#allocation3 + $0x98] sm:$0xff] }
 0x2f4   : > { %4736 = vst.msk [vmem:[#allocation3 + $0x18] sm:$0xff] %vm3482_vm4, %v4688_v12  ;;  %4117 = vst.msk [vmem:[#allocation3 + $0x48] sm:$0xff] %vm3482_vm4, %v4069_v50 }
 0x2f5   : > { %4734 = vst.msk [vmem:[#allocation3 + $0x8] sm:$0xff] %vm3482_vm4, %v4686_v47 }
 0x2f6   : > { %v5704_v53 = vpop.f32.mrb[36].mxu1 }
 0x2f7   : > { %v5748_v24 = vpop.f32.mrb[28].mxu0  ;;  %v4074_v21 = vadd.f32 %v5704_v53, %v3545_v60  ;;  %v3917_v22 = vpop.f32.mrb[37].mxu1 }
 0x2f8   : > { %v4691_v43 = vadd.f32 %v5748_v24, %v4162_v4  ;;  %v4510_v2 = vpop.f32.mrb[29].mxu0  ;;  %v4072_v57 = vadd.f32 %v3917_v22, %v3543_v63  ;;  %v5705_v45 = vpop.f32.mrb[38].mxu1  ;;  %v4166_v27 = vld [vmem:[#allocation3 + $0x50] sm:$0xff] }
 0x2f9   : > { %4122 = vst.msk [vmem:[#allocation3 + $0x70] sm:$0xff] %vm3482_vm4, %v4074_v21  ;;  %v4689_v31 = vadd.f32 %v4510_v2, %v4160_v58  ;;  %v5749_v9 = vpop.f32.mrb[30].mxu0  ;;  %v4075_v39 = vadd.f32 %v5705_v45, %v3546_v56  ;;  %v3920_v44 = vpop.f32.mrb[39].mxu1  ;;  %v4164_v18 = vld [vmem:[#allocation3 + $0x40] sm:$0xff] }
 0x2fa   : > { %v4782_v34 = vld [vmem:[#allocation3] sm:$0xff]  ;;  %4739 = vst.msk [vmem:[#allocation3 + $0x30] sm:$0xff] %vm3482_vm4, %v4691_v43  ;;  %4120 = vst.msk [vmem:[#allocation3 + $0x60] sm:$0xff] %vm3482_vm4, %v4072_v57  ;;  %v4692_v23 = vadd.f32 %v5749_v9, %v4163_v36  ;;  %v4513_v25 = vpop.f32.mrb[31].mxu0  ;;  %v4073_v49 = vadd.f32 %v3920_v44, %v3544_v17  ;;  %v4167_v62 = vld [vmem:[#allocation3 + $0x58] sm:$0xff] }
 0x2fb   : > { %v4790_v19 = vadd.f32 %v8677_v41, %v4782_v34  ;;  %v4805_v11 = vld [vmem:[#allocation3 + $0x18] sm:$0xff]  ;;  %4737 = vst.msk [vmem:[#allocation3 + $0x20] sm:$0xff] %vm3482_vm4, %v4689_v31  ;;  %4123 = vst.msk [vmem:[#allocation3 + $0x78] sm:$0xff] %vm3482_vm4, %v4075_v39  ;;  %v4690_v55 = vadd.f32 %v4513_v25, %v4161_v15  ;;  %v4165_v29 = vld [vmem:[#allocation3 + $0x48] sm:$0xff] }
 0x2fc   : > { %v4807_v14 = vadd.f32 %v8677_v41, %v4805_v11  ;;  %v4783_v32 = vld [vmem:[#allocation3 + $0x8] sm:$0xff]  ;;  %4740 = vst.msk [vmem:[#allocation3 + $0x38] sm:$0xff] %vm3482_vm4, %v4692_v23  ;;  %4121 = vst.msk [vmem:[#allocation3 + $0x68] sm:$0xff] %vm3482_vm4, %v4073_v49  ;;  %v3553_v43 = vld [vmem:[#allocation3 + $0xb0] sm:$0xff] }
 0x2fd   : > { %v4792_v1 = vmax.f32 %v4790_v19, 0.0  ;;  %v4791_v37 = vadd.f32 %v8677_v41, %v4783_v32  ;;  %4738 = vst.msk [vmem:[#allocation3 + $0x28] sm:$0xff] %vm3482_vm4, %v4690_v55  ;;  %v3551_v31 = vld [vmem:[#allocation3 + $0xa0] sm:$0xff]  ;;  %v3554_v23 = vld [vmem:[#allocation3 + $0xb8] sm:$0xff] }
 0x2fe   : > { %v4809_v30 = vmax.f32 %v4807_v14, 0.0  ;;  %v5708_v13 = vpop.f32.mrb[40].mxu1  ;;  %v3552_v14 = vld [vmem:[#allocation3 + $0xa8] sm:$0xff] }
 0x2ff   : > { %v5524_v59 = vpack.c.bf16 %v4792_v1, %v4792_v1  ;;  %v4793_v8 = vmax.f32 %v4791_v37, 0.0  ;;  %v5752_v7 = vpop.f32.mrb[32].mxu0  ;;  %v4078_v54 = vadd.f32 %v5708_v13, %v3549_v48  ;;  %v3933_v26 = vpop.f32.mrb[41].mxu1 }
 0x300   : > { %v5526_v16 = vpack.c.bf16 %v4809_v30, %v4809_v30  ;;  %v4695_v6 = vadd.f32 %v5752_v7, %v4166_v27  ;;  %v4526_v51 = vpop.f32.mrb[33].mxu0  ;;  %v4076_v3 = vadd.f32 %v3933_v26, %v3547_v5  ;;  %v5709_v0 = vpop.f32.mrb[42].mxu1  ;;  %v4170_v57 = vld [vmem:[#allocation3 + $0x70] sm:$0xff] }
 0x301   : > { %4803 = vst.msk [vmem:[%s8694_s15] sm:$0xf] %vm4802_vm1, %v5524_v59  ;;  %v5525_v33 = vpack.c.bf16 %v4793_v8, %v4793_v8  ;;  %v4822_v28 = vld [vmem:[#allocation3 + $0x30] sm:$0xff]  ;;  %v4693_v40 = vadd.f32 %v4526_v51, %v4164_v18  ;;  %v5753_v10 = vpop.f32.mrb[34].mxu0  ;;  %v4079_v61 = vadd.f32 %v5709_v0, %v3550_v46  ;;  %v3936_v35 = vpop.f32.mrb[43].mxu1  ;;  %v4168_v17 = vld [vmem:[#allocation3 + $0x60] sm:$0xff] }
 0x302   : > { %4126 = vst.msk [vmem:[#allocation3 + $0x90] sm:$0xff] %vm3482_vm4, %v4078_v54  ;;  %v4824_v20 = vadd.f32 %v8677_v41, %v4822_v28  ;;  %v4806_v38 = vld [vmem:[#allocation3 + $0x20] sm:$0xff]  ;;  %4743 = vst.msk [vmem:[#allocation3 + $0x50] sm:$0xff] %vm3482_vm4, %v4695_v6  ;;  %v4696_v12 = vadd.f32 %v5753_v10, %v4167_v62  ;;  %v4529_v42 = vpop.f32.mrb[35].mxu0  ;;  %v4077_v50 = vadd.f32 %v3936_v35, %v3548_v52  ;;  %v4171_v19 = vld [vmem:[#allocation3 + $0x78] sm:$0xff] }
 0x303   : > { %5459 = vst.msk [vmem:[%s8694_s15 + $0x8] sm:$0xf] %vm4802_vm1, %v5526_v16  ;;  %4804 = vst.msk [vmem:[%s8694_s15 + $0x4] sm:$0xf] %vm4802_vm1, %v5525_v33  ;;  %v4808_v47 = vadd.f32 %v8677_v41, %v4806_v38  ;;  %v4823_v60 = vld [vmem:[#allocation3 + $0x38] sm:$0xff]  ;;  %v4694_v53 = vadd.f32 %v4529_v42, %v4165_v29  ;;  %v4169_v30 = vld [vmem:[#allocation3 + $0x68] sm:$0xff] }
 0x304   : > { %4124 = vst.msk [vmem:[#allocation3 + $0x80] sm:$0xff] %vm3482_vm4, %v4076_v3  ;;  %4741 = vst.msk [vmem:[#allocation3 + $0x40] sm:$0xff] %vm3482_vm4, %v4693_v40  ;;  %v4826_v4 = vmax.f32 %v4824_v20, 0.0  ;;  %v4825_v24 = vadd.f32 %v8677_v41, %v4823_v60  ;;  %v3557_v5 = vld [vmem:[#allocation3 + $0xd0] sm:$0xff]  ;;  %v3555_v3 = vld [vmem:[#allocation3 + $0xc0] sm:$0xff] }
 0x305   : > { %4127 = vst.msk [vmem:[#allocation3 + $0x98] sm:$0xff] %vm3482_vm4, %v4079_v61  ;;  %4744 = vst.msk [vmem:[#allocation3 + $0x58] sm:$0xff] %vm3482_vm4, %v4696_v12  ;;  %v4810_v21 = vmax.f32 %v4808_v47, 0.0  ;;  %v3558_v62 = vld [vmem:[#allocation3 + $0xd8] sm:$0xff]  ;;  %v3556_v12 = vld [vmem:[#allocation3 + $0xc8] sm:$0xff] }
 0x306   : > { %4125 = vst.msk [vmem:[#allocation3 + $0x88] sm:$0xff] %vm3482_vm4, %v4077_v50  ;;  %4742 = vst.msk [vmem:[#allocation3 + $0x48] sm:$0xff] %vm3482_vm4, %v4694_v53  ;;  %v5528_v63 = vpack.c.bf16 %v4826_v4, %v4826_v4  ;;  %v4827_v22 = vmax.f32 %v4825_v24, 0.0  ;;  %v5712_v58 = vpop.f32.mrb[44].mxu1 }
 0x307   : > { %v5527_v2 = vpack.c.bf16 %v4810_v21, %v4810_v21  ;;  %v5756_v56 = vpop.f32.mrb[36].mxu0  ;;  %v4082_v45 = vadd.f32 %v5712_v58, %v3553_v43  ;;  %v3949_v36 = vpop.f32.mrb[45].mxu1 }
 0x308   : > { %5463 = vst.msk [vmem:[%s8694_s15 + $0x10] sm:$0xf] %vm4802_vm1, %v5528_v63  ;;  %v5529_v9 = vpack.c.bf16 %v4827_v22, %v4827_v22  ;;  %v4699_v39 = vadd.f32 %v5756_v56, %v4170_v57  ;;  %v4542_v44 = vpop.f32.mrb[37].mxu0  ;;  %v4080_v34 = vadd.f32 %v3949_v36, %v3551_v31  ;;  %v5713_v15 = vpop.f32.mrb[46].mxu1  ;;  %v3561_v57 = vld [vmem:[#allocation3 + $0xf0] sm:$0xff] }
 0x309   : > { %5460 = vst.msk [vmem:[%s8694_s15 + $0xc] sm:$0xf] %vm4802_vm1, %v5527_v2  ;;  %v4840_v25 = vld [vmem:[#allocation3 + $0x50] sm:$0xff]  ;;  %v4697_v49 = vadd.f32 %v4542_v44, %v4168_v17  ;;  %v5757_v11 = vpop.f32.mrb[38].mxu0  ;;  %v4083_v55 = vadd.f32 %v5713_v15, %v3554_v23  ;;  %v3952_v32 = vpop.f32.mrb[47].mxu1  ;;  %v3559_v17 = vld [vmem:[#allocation3 + $0xe0] sm:$0xff] }
 0x30a   : > { %4130 = vst.msk [vmem:[#allocation3 + $0xb0] sm:$0xff] %vm3482_vm4, %v4082_v45  ;;  %v4842_v1 = vadd.f32 %v8677_v41, %v4840_v25  ;;  %4747 = vst.msk [vmem:[#allocation3 + $0x70] sm:$0xff] %vm3482_vm4, %v4699_v39  ;;  %v4700_v37 = vadd.f32 %v5757_v11, %v4171_v19  ;;  %v4545_v48 = vpop.f32.mrb[39].mxu0  ;;  %v4081_v13 = vadd.f32 %v3952_v32, %v3552_v14  ;;  %v4174_v6 = vld [vmem:[#allocation3 + $0x90] sm:$0xff]  ;;  %v3562_v19 = vld [vmem:[#allocation3 + $0xf8] sm:$0xff] }
 0x30b   : > { %5464 = vst.msk [vmem:[%s8694_s15 + $0x14] sm:$0xf] %vm4802_vm1, %v5529_v9  ;;  %v4698_v59 = vadd.f32 %v4545_v48, %v4169_v30  ;;  %v4172_v33 = vld [vmem:[#allocation3 + $0x80] sm:$0xff]  ;;  %v3560_v48 = vld [vmem:[#allocation3 + $0xe8] sm:$0xff] }
 0x30c   : > { %4128 = vst.msk [vmem:[#allocation3 + $0xa0] sm:$0xff] %vm3482_vm4, %v4080_v34  ;;  %4745 = vst.msk [vmem:[#allocation3 + $0x60] sm:$0xff] %vm3482_vm4, %v4697_v49  ;;  %v4844_v8 = vmax.f32 %v4842_v1, 0.0  ;;  %v4175_v35 = vld [vmem:[#allocation3 + $0x98] sm:$0xff] }
 0x30d   : > { %4131 = vst.msk [vmem:[#allocation3 + $0xb8] sm:$0xff] %vm3482_vm4, %v4083_v55  ;;  %v4839_v27 = vld [vmem:[#allocation3 + $0x48] sm:$0xff]  ;;  %4748 = vst.msk [vmem:[#allocation3 + $0x78] sm:$0xff] %vm3482_vm4, %v4700_v37 }
 0x30e   : > { %4129 = vst.msk [vmem:[#allocation3 + $0xa8] sm:$0xff] %vm3482_vm4, %v4081_v13  ;;  %v4841_v7 = vadd.f32 %v8677_v41, %v4839_v27  ;;  %4746 = vst.msk [vmem:[#allocation3 + $0x68] sm:$0xff] %vm3482_vm4, %v4698_v59  ;;  %v5531_v54 = vpack.c.bf16 %v4844_v8, %v4844_v8  ;;  %v5716_v26 = vpop.f32.mrb[48].mxu1  ;;  %v4173_v47 = vld [vmem:[#allocation3 + $0x88] sm:$0xff] }
 0x30f   : > { %v5760_v18 = vpop.f32.mrb[40].mxu0  ;;  %v4086_v51 = vadd.f32 %v5716_v26, %v3557_v5  ;;  %v3965_v46 = vpop.f32.mrb[49].mxu1 }
 0x310   : > { %v4843_v16 = vmax.f32 %v4841_v7, 0.0  ;;  %5468 = vst.msk [vmem:[%s8694_s15 + $0x1c] sm:$0xf] %vm4802_vm1, %v5531_v54  ;;  %v4703_v0 = vadd.f32 %v5760_v18, %v4174_v6  ;;  %v4558_v28 = vpop.f32.mrb[41].mxu0  ;;  %v4084_v40 = vadd.f32 %v3965_v46, %v3555_v3  ;;  %v5717_v10 = vpop.f32.mrb[50].mxu1 }
 0x311   : > { %4134 = vst.msk [vmem:[#allocation3 + $0xd0] sm:$0xff] %vm3482_vm4, %v4086_v51  ;;  %v4701_v52 = vadd.f32 %v4558_v28, %v4172_v33  ;;  %v5761_v20 = vpop.f32.mrb[42].mxu0  ;;  %v4087_v38 = vadd.f32 %v5717_v10, %v3558_v62  ;;  %v3968_v29 = vpop.f32.mrb[51].mxu1  ;;  %v4178_v36 = vld [vmem:[#allocation3 + $0xb0] sm:$0xff] }
 0x312   : > { %v5530_v61 = vpack.c.bf16 %v4843_v16, %v4843_v16  ;;  %4751 = vst.msk [vmem:[#allocation3 + $0x90] sm:$0xff] %vm3482_vm4, %v4703_v0  ;;  %4132 = vst.msk [vmem:[#allocation3 + $0xc0] sm:$0xff] %vm3482_vm4, %v4084_v40  ;;  %v4704_v50 = vadd.f32 %v5761_v20, %v4175_v35  ;;  %v4561_v60 = vpop.f32.mrb[43].mxu0  ;;  %v4085_v53 = vadd.f32 %v3968_v29, %v3556_v12  ;;  %v3565_v33 = vld [vmem:[#allocation3 + $0x110] sm:$0xff] }
 0x313   : > { %v4856_v42 = vld [vmem:[#allocation3 + $0x60] sm:$0xff]  ;;  %4749 = vst.msk [vmem:[#allocation3 + $0x80] sm:$0xff] %vm3482_vm4, %v4701_v52  ;;  %4135 = vst.msk [vmem:[#allocation3 + $0xd8] sm:$0xff] %vm3482_vm4, %v4087_v38  ;;  %v4702_v21 = vadd.f32 %v4561_v60, %v4173_v47 }
 0x314   : > { %5467 = vst.msk [vmem:[%s8694_s15 + $0x18] sm:$0xf] %vm4802_vm1, %v5530_v61  ;;  %v4858_v4 = vadd.f32 %v8677_v41, %v4856_v42  ;;  %v4873_v24 = vld [vmem:[#allocation3 + $0x78] sm:$0xff]  ;;  %v4176_v15 = vld [vmem:[#allocation3 + $0xa0] sm:$0xff] }
 0x315   : > { %v4875_v63 = vadd.f32 %v8677_v41, %v4873_v24  ;;  %v4857_v22 = vld [vmem:[#allocation3 + $0x68] sm:$0xff]  ;;  %4752 = vst.msk [vmem:[#allocation3 + $0x98] sm:$0xff] %vm3482_vm4, %v4704_v50  ;;  %4133 = vst.msk [vmem:[#allocation3 + $0xc8] sm:$0xff] %vm3482_vm4, %v4085_v53  ;;  %v4179_v1 = vld [vmem:[#allocation3 + $0xb8] sm:$0xff] }
 0x316   : > { %v4860_v43 = vmax.f32 %v4858_v4, 0.0  ;;  %v4859_v58 = vadd.f32 %v8677_v41, %v4857_v22  ;;  %4750 = vst.msk [vmem:[#allocation3 + $0x88] sm:$0xff] %vm3482_vm4, %v4702_v21  ;;  %v5720_v56 = vpop.f32.mrb[52].mxu1  ;;  %v4177_v7 = vld [vmem:[#allocation3 + $0xa8] sm:$0xff]  ;;  %v3563_v52 = vld [vmem:[#allocation3 + $0x100] sm:$0xff]  ;;  %v3566_v50 = vld [vmem:[#allocation3 + $0x118] sm:$0xff] }
 0x317   : > { %v4877_v2 = vmax.f32 %v4875_v63, 0.0  ;;  %v5764_v9 = vpop.f32.mrb[44].mxu0  ;;  %v4090_v39 = vadd.f32 %v5720_v56, %v3561_v57  ;;  %v3981_v44 = vpop.f32.mrb[53].mxu1  ;;  %v3564_v63 = vld [vmem:[#allocation3 + $0x108] sm:$0xff] }
 0x318   : > { %v5532_v45 = vpack.c.bf16 %v4860_v43, %v4860_v43  ;;  %v4861_v31 = vmax.f32 %v4859_v58, 0.0  ;;  %v4707_v23 = vadd.f32 %v5764_v9, %v4178_v36  ;;  %v4574_v25 = vpop.f32.mrb[45].mxu0  ;;  %v4088_v49 = vadd.f32 %v3981_v44, %v3559_v17  ;;  %v5721_v11 = vpop.f32.mrb[54].mxu1  ;;  %v4182_v62 = vld [vmem:[#allocation3 + $0xd0] sm:$0xff] }
 0x319   : > { %v5534_v34 = vpack.c.bf16 %v4877_v2, %v4877_v2  ;;  %v4890_v14 = vld [vmem:[#allocation3 + $0x90] sm:$0xff]  ;;  %4138 = vst.msk [vmem:[#allocation3 + $0xf0] sm:$0xff] %vm3482_vm4, %v4090_v39  ;;  %v4705_v32 = vadd.f32 %v4574_v25, %v4176_v15  ;;  %v5765_v37 = vpop.f32.mrb[46].mxu0  ;;  %v4091_v30 = vadd.f32 %v5721_v11, %v3562_v19  ;;  %v3984_v13 = vpop.f32.mrb[55].mxu1  ;;  %v4180_v12 = vld [vmem:[#allocation3 + $0xc0] sm:$0xff] }
 0x31a   : > { %5471 = vst.msk [vmem:[%s8694_s15 + $0x20] sm:$0xf] %vm4802_vm1, %v5532_v45  ;;  %v5533_v55 = vpack.c.bf16 %v4861_v31, %v4861_v31  ;;  %v4892_v59 = vadd.f32 %v8677_v41, %v4890_v14  ;;  %v4874_v8 = vld [vmem:[#allocation3 + $0x80] sm:$0xff]  ;;  %v4708_v27 = vadd.f32 %v5765_v37, %v4179_v1  ;;  %v4577_v54 = vpop.f32.mrb[47].mxu0  ;;  %v4089_v5 = vadd.f32 %v3984_v13, %v3560_v48  ;;  %v4183_v4 = vld [vmem:[#allocation3 + $0xd8] sm:$0xff]  ;;  %v3569_v17 = vld [vmem:[#allocation3 + $0x130] sm:$0xff] }
 0x31b   : > { %5475 = vst.msk [vmem:[%s8694_s15 + $0x28] sm:$0xf] %vm4802_vm1, %v5534_v34  ;;  %v4876_v26 = vadd.f32 %v8677_v41, %v4874_v8  ;;  %v4706_v6 = vadd.f32 %v4577_v54, %v4177_v7  ;;  %v3570_v1 = vld [vmem:[#allocation3 + $0x138] sm:$0xff] }
 0x31c   : > { %4755 = vst.msk [vmem:[#allocation3 + $0xb0] sm:$0xff] %vm3482_vm4, %v4707_v23  ;;  %4136 = vst.msk [vmem:[#allocation3 + $0xe0] sm:$0xff] %vm3482_vm4, %v4088_v49  ;;  %v4891_v16 = vld [vmem:[#allocation3 + $0x98] sm:$0xff]  ;;  %v4894_v18 = vmax.f32 %v4892_v59, 0.0  ;;  %v4181_v2 = vld [vmem:[#allocation3 + $0xc8] sm:$0xff] }
 0x31d   : > { %5472 = vst.msk [vmem:[%s8694_s15 + $0x24] sm:$0xf] %vm4802_vm1, %v5533_v55  ;;  %v4893_v51 = vadd.f32 %v8677_v41, %v4891_v16  ;;  %v4878_v3 = vmax.f32 %v4876_v26, 0.0  ;;  %v3567_v49 = vld [vmem:[#allocation3 + $0x120] sm:$0xff] }
 0x31e   : > { %4753 = vst.msk [vmem:[#allocation3 + $0xa0] sm:$0xff] %vm3482_vm4, %v4705_v32  ;;  %4139 = vst.msk [vmem:[#allocation3 + $0xf8] sm:$0xff] %vm3482_vm4, %v4091_v30  ;;  %v5536_v46 = vpack.c.bf16 %v4894_v18, %v4894_v18  ;;  %v5724_v28 = vpop.f32.mrb[56].mxu1 }
 0x31f   : > { %4756 = vst.msk [vmem:[#allocation3 + $0xb8] sm:$0xff] %vm3482_vm4, %v4708_v27  ;;  %4137 = vst.msk [vmem:[#allocation3 + $0xe8] sm:$0xff] %vm3482_vm4, %v4089_v5  ;;  %v4895_v0 = vmax.f32 %v4893_v51, 0.0  ;;  %v5535_v40 = vpack.c.bf16 %v4878_v3, %v4878_v3  ;;  %v5768_v10 = vpop.f32.mrb[48].mxu0  ;;  %v4094_v61 = vadd.f32 %v5724_v28, %v3565_v33  ;;  %v3997_v35 = vpop.f32.mrb[57].mxu1  ;;  %v3568_v27 = vld [vmem:[#allocation3 + $0x128] sm:$0xff] }
 0x320   : > { %4754 = vst.msk [vmem:[#allocation3 + $0xa8] sm:$0xff] %vm3482_vm4, %v4706_v6  ;;  %v4711_v38 = vadd.f32 %v5768_v10, %v4182_v62  ;;  %v4590_v29 = vpop.f32.mrb[49].mxu0  ;;  %v4092_v42 = vadd.f32 %v3997_v35, %v3563_v52  ;;  %v5725_v47 = vpop.f32.mrb[58].mxu1  ;;  %v4186_v23 = vld [vmem:[#allocation3 + $0xf0] sm:$0xff] }
 0x321   : > { %5479 = vst.msk [vmem:[%s8694_s15 + $0x30] sm:$0xf] %vm4802_vm1, %v5536_v46  ;;  %v5537_v20 = vpack.c.bf16 %v4895_v0, %v4895_v0  ;;  %5476 = vst.msk [vmem:[%s8694_s15 + $0x2c] sm:$0xf] %vm4802_vm1, %v5535_v40  ;;  %v4709_v53 = vadd.f32 %v4590_v29, %v4180_v12  ;;  %v5769_v24 = vpop.f32.mrb[50].mxu0  ;;  %v4095_v21 = vadd.f32 %v5725_v47, %v3566_v50  ;;  %v4000_v22 = vpop.f32.mrb[59].mxu1 }
 0x322   : > { %4142 = vst.msk [vmem:[#allocation3 + $0x110] sm:$0xff] %vm3482_vm4, %v4094_v61  ;;  %4759 = vst.msk [vmem:[#allocation3 + $0xd0] sm:$0xff] %vm3482_vm4, %v4711_v38  ;;  %v4712_v58 = vadd.f32 %v5769_v24, %v4183_v4  ;;  %v4593_v57 = vpop.f32.mrb[51].mxu0  ;;  %v4093_v56 = vadd.f32 %v4000_v22, %v3564_v63  ;;  %v3573_v62 = vld [vmem:[#allocation3 + $0x150] sm:$0xff]  ;;  %v3571_v12 = vld [vmem:[#allocation3 + $0x140] sm:$0xff] }
 0x323   : > { %v4908_v60 = vld [vmem:[#allocation3 + $0xb0] sm:$0xff]  ;;  %5480 = vst.msk [vmem:[%s8694_s15 + $0x34] sm:$0xf] %vm4802_vm1, %v5537_v20  ;;  %v4710_v45 = vadd.f32 %v4593_v57, %v4181_v2  ;;  %v4184_v55 = vld [vmem:[#allocation3 + $0xe0] sm:$0xff]  ;;  %v3574_v4 = vld [vmem:[#allocation3 + $0x158] sm:$0xff] }
 0x324   : > { %v4910_v43 = vadd.f32 %v8677_v41, %v4908_v60  ;;  %4140 = vst.msk [vmem:[#allocation3 + $0x100] sm:$0xff] %vm3482_vm4, %v4092_v42  ;;  %4757 = vst.msk [vmem:[#allocation3 + $0xc0] sm:$0xff] %vm3482_vm4, %v4709_v53  ;;  %v3572_v57 = vld [vmem:[#allocation3 + $0x148] sm:$0xff] }
 0x325   : > { %4143 = vst.msk [vmem:[#allocation3 + $0x118] sm:$0xff] %vm3482_vm4, %v4095_v21  ;;  %4760 = vst.msk [vmem:[#allocation3 + $0xd8] sm:$0xff] %vm3482_vm4, %v4712_v58  ;;  %v4187_v13 = vld [vmem:[#allocation3 + $0xf8] sm:$0xff] }
 0x326   : > { %v4912_v31 = vmax.f32 %v4910_v43, 0.0  ;;  %4141 = vst.msk [vmem:[#allocation3 + $0x108] sm:$0xff] %vm3482_vm4, %v4093_v56  ;;  %4758 = vst.msk [vmem:[#allocation3 + $0xc8] sm:$0xff] %vm3482_vm4, %v4710_v45  ;;  %v5728_v44 = vpop.f32.mrb[60].mxu1  ;;  %v4185_v26 = vld [vmem:[#allocation3 + $0xe8] sm:$0xff] }
 0x327   : > { %v4907_v36 = vld [vmem:[#allocation3 + $0xa8] sm:$0xff]  ;;  %v5772_v15 = vpop.f32.mrb[52].mxu0  ;;  %v4098_v25 = vadd.f32 %v5728_v44, %v3569_v17  ;;  %v4013_v19 = vpop.f32.mrb[61].mxu1 }
 0x328   : > { %v4909_v9 = vadd.f32 %v8677_v41, %v4907_v36  ;;  %v5539_v39 = vpack.c.bf16 %v4912_v31, %v4912_v31  ;;  %v4715_v11 = vadd.f32 %v5772_v15, %v4186_v23  ;;  %v4606_v14 = vpop.f32.mrb[53].mxu0  ;;  %v4096_v32 = vadd.f32 %v4013_v19, %v3567_v49  ;;  %v5729_v37 = vpop.f32.mrb[62].mxu1 }
 0x329   : > { %4146 = vst.msk [vmem:[#allocation3 + $0x130] sm:$0xff] %vm3482_vm4, %v4098_v25  ;;  %v4713_v48 = vadd.f32 %v4606_v14, %v4184_v55  ;;  %v5773_v59 = vpop.f32.mrb[54].mxu0  ;;  %v4099_v8 = vadd.f32 %v5729_v37, %v3570_v1  ;;  %v4016_v7 = vpop.f32.mrb[63].mxu1  ;;  %v4190_v35 = vld [vmem:[#allocation3 + $0x110] sm:$0xff] }
 0x32a   : > { %v4911_v34 = vmax.f32 %v4909_v9, 0.0  ;;  %5484 = vst.msk [vmem:[%s8694_s15 + $0x3c] sm:$0xf] %vm4802_vm1, %v5539_v39  ;;  %v4716_v5 = vadd.f32 %v5773_v59, %v4187_v13  ;;  %v4609_v16 = vpop.f32.mrb[55].mxu0  ;;  %v4097_v6 = vadd.f32 %v4016_v7, %v3568_v27  ;;  %v3577_v55 = vld [vmem:[#allocation3 + $0x170] sm:$0xff] }
 0x32b   : > { %v4924_v54 = vld [vmem:[#allocation3 + $0xc0] sm:$0xff]  ;;  %4763 = vst.msk [vmem:[#allocation3 + $0xf0] sm:$0xff] %vm3482_vm4, %v4715_v11  ;;  %4144 = vst.msk [vmem:[#allocation3 + $0x120] sm:$0xff] %vm3482_vm4, %v4096_v32  ;;  %v4714_v3 = vadd.f32 %v4609_v16, %v4185_v26 }
 0x32c   : > { %v5538_v30 = vpack.c.bf16 %v4911_v34, %v4911_v34  ;;  %v4926_v18 = vadd.f32 %v8677_v41, %v4924_v54  ;;  %v4941_v51 = vld [vmem:[#allocation3 + $0xd8] sm:$0xff]  ;;  %4761 = vst.msk [vmem:[#allocation3 + $0xe0] sm:$0xff] %vm3482_vm4, %v4713_v48  ;;  %4147 = vst.msk [vmem:[#allocation3 + $0x138] sm:$0xff] %vm3482_vm4, %v4099_v8  ;;  %v4188_v47 = vld [vmem:[#allocation3 + $0x100] sm:$0xff] }
 0x32d   : > { %v4943_v46 = vadd.f32 %v8677_v41, %v4941_v51  ;;  %v4925_v0 = vld [vmem:[#allocation3 + $0xc8] sm:$0xff]  ;;  %4764 = vst.msk [vmem:[#allocation3 + $0xf8] sm:$0xff] %vm3482_vm4, %v4716_v5  ;;  %4145 = vst.msk [vmem:[#allocation3 + $0x128] sm:$0xff] %vm3482_vm4, %v4097_v6  ;;  %v4191_v43 = vld [vmem:[#allocation3 + $0x118] sm:$0xff] }
 0x32e   : > { %5483 = vst.msk [vmem:[%s8694_s15 + $0x38] sm:$0xf] %vm4802_vm1, %v5538_v30  ;;  %v4928_v33 = vmax.f32 %v4926_v18, 0.0  ;;  %v4927_v28 = vadd.f32 %v8677_v41, %v4925_v0  ;;  %v5732_v10 = vpop.f32.mrb[64].mxu1  ;;  %v4189_v9 = vld [vmem:[#allocation3 + $0x108] sm:$0xff]  ;;  %v3575_v48 = vld [vmem:[#allocation3 + $0x160] sm:$0xff] }
 0x32f   : > { %4762 = vst.msk [vmem:[#allocation3 + $0xe8] sm:$0xff] %vm3482_vm4, %v4714_v3  ;;  %v4945_v40 = vmax.f32 %v4943_v46, 0.0  ;;  %v5776_v20 = vpop.f32.mrb[56].mxu0  ;;  %v4102_v38 = vadd.f32 %v5732_v10, %v3573_v62  ;;  %v4029_v29 = vpop.f32.mrb[65].mxu1  ;;  %v3578_v5 = vld [vmem:[#allocation3 + $0x178] sm:$0xff]  ;;  %v3576_v46 = vld [vmem:[#allocation3 + $0x168] sm:$0xff] }
 0x330   : > { %v5540_v61 = vpack.c.bf16 %v4928_v33, %v4928_v33  ;;  %v4929_v52 = vmax.f32 %v4927_v28, 0.0  ;;  %v4719_v50 = vadd.f32 %v5776_v20, %v4190_v35  ;;  %v4622_v60 = vpop.f32.mrb[57].mxu0  ;;  %v4100_v53 = vadd.f32 %v4029_v29, %v3571_v12  ;;  %v5733_v24 = vpop.f32.mrb[66].mxu1  ;;  %v4194_v1 = vld [vmem:[#allocation3 + $0x130] sm:$0xff] }
 0x331   : > { %v5542_v42 = vpack.c.bf16 %v4945_v40, %v4945_v40  ;;  %4150 = vst.msk [vmem:[#allocation3 + $0x150] sm:$0xff] %vm3482_vm4, %v4102_v38  ;;  %v4717_v22 = vadd.f32 %v4622_v60, %v4188_v47  ;;  %v5777_v58 = vpop.f32.mrb[58].mxu0  ;;  %v4103_v2 = vadd.f32 %v5733_v24, %v3574_v4  ;;  %v4032_v56 = vpop.f32.mrb[67].mxu1 }
 0x332   : > { %5487 = vst.msk [vmem:[%s8694_s15 + $0x40] sm:$0xf] %vm4802_vm1, %v5540_v61  ;;  %v5541_v21 = vpack.c.bf16 %v4929_v52, %v4929_v52  ;;  %v4958_v63 = vld [vmem:[#allocation3 + $0xf0] sm:$0xff]  ;;  %v4720_v36 = vadd.f32 %v5777_v58, %v4191_v43  ;;  %v4625_v39 = vpop.f32.mrb[59].mxu0  ;;  %v4101_v17 = vadd.f32 %v4032_v56, %v3572_v57  ;;  %v4192_v27 = vld [vmem:[#allocation3 + $0x120] sm:$0xff] }
 0x333   : > { %5491 = vst.msk [vmem:[%s8694_s15 + $0x48] sm:$0xf] %vm4802_vm1, %v5542_v42  ;;  %v4960_v45 = vadd.f32 %v8677_v41, %v4958_v63  ;;  %v4942_v31 = vld [vmem:[#allocation3 + $0xe0] sm:$0xff]  ;;  %v4718_v23 = vadd.f32 %v4625_v39, %v4189_v9  ;;  %v4195_v18 = vld [vmem:[#allocation3 + $0x138] sm:$0xff] }
 0x334   : > { %4767 = vst.msk [vmem:[#allocation3 + $0x110] sm:$0xff] %vm3482_vm4, %v4719_v50  ;;  %4148 = vst.msk [vmem:[#allocation3 + $0x140] sm:$0xff] %vm3482_vm4, %v4100_v53  ;;  %v4944_v44 = vadd.f32 %v8677_v41, %v4942_v31  ;;  %v4959_v34 = vld [vmem:[#allocation3 + $0xf8] sm:$0xff]  ;;  %v4193_v40 = vld [vmem:[#allocation3 + $0x128] sm:$0xff] }
 0x335   : > { %5488 = vst.msk [vmem:[%s8694_s15 + $0x44] sm:$0xf] %vm4802_vm1, %v5541_v21  ;;  %v4962_v15 = vmax.f32 %v4960_v45, 0.0  ;;  %v4961_v25 = vadd.f32 %v8677_v41, %v4959_v34 }
 0x336   : > { %4765 = vst.msk [vmem:[#allocation3 + $0x100] sm:$0xff] %vm3482_vm4, %v4717_v22  ;;  %4151 = vst.msk [vmem:[#allocation3 + $0x158] sm:$0xff] %vm3482_vm4, %v4103_v2  ;;  %v4946_v49 = vmax.f32 %v4944_v44, 0.0  ;;  %v5736_v14 = vpop.f32.mrb[68].mxu1 }
 0x337   : > { %4768 = vst.msk [vmem:[#allocation3 + $0x118] sm:$0xff] %vm3482_vm4, %v4720_v36  ;;  %4149 = vst.msk [vmem:[#allocation3 + $0x148] sm:$0xff] %vm3482_vm4, %v4101_v17  ;;  %v5544_v19 = vpack.c.bf16 %v4962_v15, %v4962_v15  ;;  %v4963_v11 = vmax.f32 %v4961_v25, 0.0  ;;  %v5780_v37 = vpop.f32.mrb[60].mxu0  ;;  %v4106_v30 = vadd.f32 %v5736_v14, %v3577_v55  ;;  %v4045_v13 = vpop.f32.mrb[69].mxu1 }
 0x338   : > { %4766 = vst.msk [vmem:[#allocation3 + $0x108] sm:$0xff] %vm3482_vm4, %v4718_v23  ;;  %v5543_v32 = vpack.c.bf16 %v4946_v49, %v4946_v49  ;;  %v4723_v8 = vadd.f32 %v5780_v37, %v4194_v1  ;;  %v4638_v7 = vpop.f32.mrb[61].mxu0  ;;  %v4104_v54 = vadd.f32 %v4045_v13, %v3575_v48  ;;  %v5737_v26 = vpop.f32.mrb[70].mxu1  ;;  %v4198_v29 = vld [vmem:[#allocation3 + $0x150] sm:$0xff] }
 0x339   : > { %5495 = vst.msk [vmem:[%s8694_s15 + $0x50] sm:$0xf] %vm4802_vm1, %v5544_v19  ;;  %v5545_v59 = vpack.c.bf16 %v4963_v11, %v4963_v11  ;;  %v4721_v6 = vadd.f32 %v4638_v7, %v4192_v27  ;;  %v5781_v51 = vpop.f32.mrb[62].mxu0  ;;  %v4107_v3 = vadd.f32 %v5737_v26, %v3578_v5  ;;  %v4048_v0 = vpop.f32.mrb[71].mxu1 }
 0x33a   : > { %5492 = vst.msk [vmem:[%s8694_s15 + $0x4c] sm:$0xf] %vm4802_vm1, %v5543_v32  ;;  %v4724_v28 = vadd.f32 %v5781_v51, %v4195_v18  ;;  %v4641_v62 = vpop.f32.mrb[63].mxu0  ;;  %v4105_v10 = vadd.f32 %v4048_v0, %v3576_v46 }
 0x33b   : > { %v4976_v16 = vld [vmem:[#allocation3 + $0x110] sm:$0xff]  ;;  %4154 = vst.msk [vmem:[#allocation3 + $0x170] sm:$0xff] %vm3482_vm4, %v4106_v30  ;;  %4771 = vst.msk [vmem:[#allocation3 + $0x130] sm:$0xff] %vm3482_vm4, %v4723_v8  ;;  %v4722_v61 = vadd.f32 %v4641_v62, %v4193_v40  ;;  %v4196_v47 = vld [vmem:[#allocation3 + $0x140] sm:$0xff] }
 0x33c   : > { %5496 = vst.msk [vmem:[%s8694_s15 + $0x54] sm:$0xf] %vm4802_vm1, %v5545_v59  ;;  %v4978_v33 = vadd.f32 %v8677_v41, %v4976_v16 }
 0x33d   : > { %4152 = vst.msk [vmem:[#allocation3 + $0x160] sm:$0xff] %vm3482_vm4, %v4104_v54  ;;  %4769 = vst.msk [vmem:[#allocation3 + $0x120] sm:$0xff] %vm3482_vm4, %v4721_v6  ;;  %v4199_v24 = vld [vmem:[#allocation3 + $0x158] sm:$0xff] }
 0x33e   : > { %4155 = vst.msk [vmem:[#allocation3 + $0x178] sm:$0xff] %vm3482_vm4, %v4107_v3  ;;  %v4980_v52 = vmax.f32 %v4978_v33, 0.0  ;;  %4772 = vst.msk [vmem:[#allocation3 + $0x138] sm:$0xff] %vm3482_vm4, %v4724_v28  ;;  %v4197_v43 = vld [vmem:[#allocation3 + $0x148] sm:$0xff] }
 0x33f   : > { %v4975_v35 = vld [vmem:[#allocation3 + $0x108] sm:$0xff]  ;;  %4153 = vst.msk [vmem:[#allocation3 + $0x168] sm:$0xff] %vm3482_vm4, %v4105_v10  ;;  %4770 = vst.msk [vmem:[#allocation3 + $0x128] sm:$0xff] %vm3482_vm4, %v4722_v61  ;;  %v5784_v42 = vpop.f32.mrb[64].mxu0 }
 0x340   : > { %v4977_v20 = vadd.f32 %v8677_v41, %v4975_v35  ;;  %v5547_v38 = vpack.c.bf16 %v4980_v52, %v4980_v52  ;;  %v4727_v50 = vadd.f32 %v5784_v42, %v4198_v29  ;;  %v4654_v60 = vpop.f32.mrb[65].mxu0 }
 0x341   : > { %v4725_v4 = vadd.f32 %v4654_v60, %v4196_v47  ;;  %v5785_v21 = vpop.f32.mrb[66].mxu0 }
 0x342   : > { %v4979_v12 = vmax.f32 %v4977_v20, 0.0  ;;  %5500 = vst.msk [vmem:[%s8694_s15 + $0x5c] sm:$0xf] %vm4802_vm1, %v5547_v38  ;;  %v4728_v22 = vadd.f32 %v5785_v21, %v4199_v24  ;;  %v4657_v58 = vpop.f32.mrb[67].mxu0  ;;  %v4202_v34 = vld [vmem:[#allocation3 + $0x170] sm:$0xff] }
 0x343   : > { %4775 = vst.msk [vmem:[#allocation3 + $0x150] sm:$0xff] %vm3482_vm4, %v4727_v50  ;;  %4773 = vst.msk [vmem:[#allocation3 + $0x140] sm:$0xff] %vm3482_vm4, %v4725_v4  ;;  %v4726_v56 = vadd.f32 %v4657_v58, %v4197_v43 }
 0x344   : > { %v5546_v53 = vpack.c.bf16 %v4979_v12, %v4979_v12  ;;  %v4992_v63 = vld [vmem:[#allocation3 + $0x120] sm:$0xff]  ;;  %4776 = vst.msk [vmem:[#allocation3 + $0x158] sm:$0xff] %vm3482_vm4, %v4728_v22 }
 0x345   : > { %v4994_v2 = vadd.f32 %v8677_v41, %v4992_v63  ;;  %v5009_v57 = vld [vmem:[#allocation3 + $0x138] sm:$0xff]  ;;  %4774 = vst.msk [vmem:[#allocation3 + $0x148] sm:$0xff] %vm3482_vm4, %v4726_v56  ;;  %v4200_v49 = vld [vmem:[#allocation3 + $0x160] sm:$0xff] }
 0x346   : > { %5499 = vst.msk [vmem:[%s8694_s15 + $0x58] sm:$0xf] %vm4802_vm1, %v5546_v53  ;;  %v5011_v45 = vadd.f32 %v8677_v41, %v5009_v57  ;;  %v4993_v31 = vld [vmem:[#allocation3 + $0x128] sm:$0xff]  ;;  %v4203_v32 = vld [vmem:[#allocation3 + $0x178] sm:$0xff] }
 0x347   : > { %v4996_v36 = vmax.f32 %v4994_v2, 0.0  ;;  %v4995_v9 = vadd.f32 %v8677_v41, %v4993_v31  ;;  %v5788_v23 = vpop.f32.mrb[68].mxu0  ;;  %v4201_v13 = vld [vmem:[#allocation3 + $0x168] sm:$0xff] }
 0x348   : > { %v5013_v39 = vmax.f32 %v5011_v45, 0.0  ;;  %v4731_v25 = vadd.f32 %v5788_v23, %v4202_v34  ;;  %v4670_v19 = vpop.f32.mrb[69].mxu0 }
 0x349   : > { %v5548_v17 = vpack.c.bf16 %v4996_v36, %v4996_v36  ;;  %v4997_v44 = vmax.f32 %v4995_v9, 0.0  ;;  %v4729_v14 = vadd.f32 %v4670_v19, %v4200_v49  ;;  %v5789_v1 = vpop.f32.mrb[70].mxu0 }
 0x34a   : > { %v5550_v15 = vpack.c.bf16 %v5013_v39, %v5013_v39  ;;  %v5026_v55 = vld [vmem:[#allocation3 + $0x150] sm:$0xff]  ;;  %v5010_v30 = vld [vmem:[#allocation3 + $0x140] sm:$0xff]  ;;  %4779 = vst.msk [vmem:[#allocation3 + $0x170] sm:$0xff] %vm3482_vm4, %v4731_v25  ;;  %v4732_v48 = vadd.f32 %v5789_v1, %v4203_v32  ;;  %v4673_v59 = vpop.f32.mrb[71].mxu0 }
 0x34b   : > { %5503 = vst.msk [vmem:[%s8694_s15 + $0x60] sm:$0xf] %vm4802_vm1, %v5548_v17  ;;  %v5549_v11 = vpack.c.bf16 %v4997_v44, %v4997_v44  ;;  %v5028_v37 = vadd.f32 %v8677_v41, %v5026_v55  ;;  %v5012_v8 = vadd.f32 %v8677_v41, %v5010_v30  ;;  %v5027_v27 = vld [vmem:[#allocation3 + $0x158] sm:$0xff]  ;;  %v4730_v7 = vadd.f32 %v4673_v59, %v4201_v13 }
 0x34c   : > { %5507 = vst.msk [vmem:[%s8694_s15 + $0x68] sm:$0xf] %vm4802_vm1, %v5550_v15  ;;  %v5029_v5 = vadd.f32 %v8677_v41, %v5027_v27 }
 0x34d   : > { %5504 = vst.msk [vmem:[%s8694_s15 + $0x64] sm:$0xf] %vm4802_vm1, %v5549_v11  ;;  %v5030_v54 = vmax.f32 %v5028_v37, 0.0  ;;  %v5014_v26 = vmax.f32 %v5012_v8, 0.0 }
 0x34e   : > { %4777 = vst.msk [vmem:[#allocation3 + $0x160] sm:$0xff] %vm3482_vm4, %v4729_v14  ;;  %4780 = vst.msk [vmem:[#allocation3 + $0x178] sm:$0xff] %vm3482_vm4, %v4732_v48  ;;  %v5031_v6 = vmax.f32 %v5029_v5, 0.0 }
 0x34f   : > { %4778 = vst.msk [vmem:[#allocation3 + $0x168] sm:$0xff] %vm3482_vm4, %v4730_v7  ;;  %v5552_v16 = vpack.c.bf16 %v5030_v54, %v5030_v54  ;;  %v5551_v18 = vpack.c.bf16 %v5014_v26, %v5014_v26 }
 0x350   : > { %v5553_v51 = vpack.c.bf16 %v5031_v6, %v5031_v6 }
 0x351   : > { %5511 = vst.msk [vmem:[%s8694_s15 + $0x70] sm:$0xf] %vm4802_vm1, %v5552_v16  ;;  %5508 = vst.msk [vmem:[%s8694_s15 + $0x6c] sm:$0xf] %vm4802_vm1, %v5551_v18  ;;  %v5044_v3 = vld [vmem:[#allocation3 + $0x170] sm:$0xff] }
 0x352   : > { %5512 = vst.msk [vmem:[%s8694_s15 + $0x74] sm:$0xf] %vm4802_vm1, %v5553_v51  ;;  %v5046_v46 = vadd.f32 %v8677_v41, %v5044_v3 }
 0x354   : > { %v5048_v0 = vmax.f32 %v5046_v46, 0.0 }
 0x356   : > { %v5043_v33 = vld [vmem:[#allocation3 + $0x168] sm:$0xff]  ;;  %v5555_v40 = vpack.c.bf16 %v5048_v0, %v5048_v0 }
 0x357   : > { %v5045_v28 = vadd.f32 %v8677_v41, %v5043_v33 }
 0x358   : > { %5516 = vst.msk [vmem:[%s8694_s15 + $0x7c] sm:$0xf] %vm4802_vm1, %v5555_v40 }
 0x359   : > { %v5047_v62 = vmax.f32 %v5045_v28, 0.0 }
 0x35b   : > { %v5554_v10 = vpack.c.bf16 %v5047_v62, %v5047_v62 }
 0x35d   : > { %5515 = vst.msk [vmem:[%s8694_s15 + $0x78] sm:$0xf] %vm4802_vm1, %v5554_v10 }
 0x35e PF: > { %s16_s23 = sadd.s32 1, %s6010_s23   ;;  %s9307_s21 = smov %s6006_s22 }
 0x35f   : > { %p13_p5 = scmp.ge.s32.totalorder %s16_s23, 4   ;;  %s9308_s22 = smov %s9310_s24 }
 0x361   :  { %15 = sbr.rel (!%p13_p5) target bundleno = 2 (0x2), region = 132 }

</bundles_post_ra>
